<compile_context>
chip_gen: v7x
topology: tpu7x:2x2x1
jax: 0.10.0
libtpu: 0.0.40
codegen_flags: <defaults>
</compile_context>

<pallas_src>
import functools
import math

import jax
import jax.numpy as jnp
from jax.experimental import pallas as pl
from jax.experimental.pallas import tpu as pltpu


def _round_up(x, m):
    return ((x + m - 1) // m) * m


def _m_tile(m):
    """Pick an M tile (multiple of 8, <=256) and the padded M it divides."""
    mp = _round_up(m, 8)
    if mp <= 256:
        return mp, mp
    return 256, _round_up(m, 256)


# --------------------------- fused Pallas kernels ----------------------------
def _mm_bias_swish_kernel(a_ref, w_ref, b_ref, o_ref):
    """o = swish(a @ w + b); a/w bf16, accumulate + epilogue in f32."""
    acc = jnp.dot(a_ref[...], w_ref[...], preferred_element_type=jnp.float32)
    acc = acc + b_ref[...]
    acc = acc * jax.nn.sigmoid(acc)
    o_ref[...] = acc.astype(o_ref.dtype)


def _tail_kernel(h_ref, w1_ref, b1_ref, w2_ref, b2_ref, wh_ref, bh_ref, o_ref):
    """Fused classifier tail: fc1+Swish -> fc2+Swish -> merged mu/logvar head."""
    h1 = jnp.dot(h_ref[...], w1_ref[...], preferred_element_type=jnp.float32)
    h1 = h1 + b1_ref[...]
    h1 = h1 * jax.nn.sigmoid(h1)
    h2 = jnp.dot(h1.astype(jnp.bfloat16), w2_ref[...],
                 preferred_element_type=jnp.float32)
    h2 = h2 + b2_ref[...]
    h2 = h2 * jax.nn.sigmoid(h2)
    out = jnp.dot(h2.astype(jnp.bfloat16), wh_ref[...],
                  preferred_element_type=jnp.float32)
    o_ref[...] = out + bh_ref[...]


# ------------------------------ pallas wrappers -------------------------------
def matmul_bias_swish(a, w, b, *, out_dtype=jnp.bfloat16):
    """y = swish(a @ w + b). a:(M,K) bf16, w:(K,N) bf16, b:(1,N) f32.

    M is tiled (TM<=256, padded to a tile multiple); K and N are full-extent
    blocks, so no K/N padding of activations is needed.
    """
    M, K = a.shape
    Kw, N = w.shape
    assert K == Kw
    TM, Mp = _m_tile(M)
    if Mp != M:
        a = jnp.pad(a, ((0, Mp - M), (0, 0)))
    out = pl.pallas_call(
        _mm_bias_swish_kernel,
        out_shape=jax.ShapeDtypeStruct((Mp, N), out_dtype),
        grid_spec=pltpu.PrefetchScalarGridSpec(
            num_scalar_prefetch=0,
            grid=(Mp // TM,),
            in_specs=[
                pl.BlockSpec((TM, K), lambda i: (i, 0)),
                pl.BlockSpec((K, N), lambda i: (0, 0)),
                pl.BlockSpec((1, N), lambda i: (0, 0)),
            ],
            out_specs=pl.BlockSpec((TM, N), lambda i: (i, 0)),
        ),
        compiler_params=pltpu.CompilerParams(
            dimension_semantics=("parallel",)),
    )(a, w, b)
    return out[:M] if Mp != M else out


def classifier_heads(h, kp):
    """h:(B,2048) bf16 -> (B, Nh) f32 via one fused tail kernel (weights in VMEM)."""
    B, D = h.shape
    nh = kp["head_w"].shape[1]
    TB, Bp = _m_tile(B)
    if Bp != B:
        h = jnp.pad(h, ((0, Bp - B), (0, 0)))
    out = pl.pallas_call(
        _tail_kernel,
        out_shape=jax.ShapeDtypeStruct((Bp, nh), jnp.float32),
        grid_spec=pltpu.PrefetchScalarGridSpec(
            num_scalar_prefetch=0,
            grid=(Bp // TB,),
            in_specs=[
                pl.BlockSpec((TB, D), lambda i: (i, 0)),
                pl.BlockSpec((D, 1024), lambda i: (0, 0)),
                pl.BlockSpec((1, 1024), lambda i: (0, 0)),
                pl.BlockSpec((1024, 512), lambda i: (0, 0)),
                pl.BlockSpec((1, 512), lambda i: (0, 0)),
                pl.BlockSpec((512, nh), lambda i: (0, 0)),
                pl.BlockSpec((1, nh), lambda i: (0, 0)),
            ],
            out_specs=pl.BlockSpec((TB, nh), lambda i: (i, 0)),
        ),
        compiler_params=pltpu.CompilerParams(
            dimension_semantics=("parallel",),
            vmem_limit_bytes=48 * 1024 * 1024,   # tail weights resident; safe on v5e/v6e/v7x
        ),
    )(h, kp["fc1_w"], kp["fc1_b"], kp["fc2_w"], kp["fc2_b"],
      kp["head_w"], kp["head_b"])
    return out[:B] if Bp != B else out


# ------------------------------- conv glue ------------------------------------
def _im2col_nhwc(x, k, s, p):
    """NHWC x:(B,H,W,C) -> (B*Ho*Wo, k*k*C) patches in (kh,kw,c) column order."""
    B, H, W, C = x.shape
    Ho = (H + 2 * p - k) // s + 1
    Wo = (W + 2 * p - k) // s + 1
    xp = jnp.pad(x, ((0, 0), (p, p), (p, p), (0, 0)))
    cols = [xp[:, i:i + s * (Ho - 1) + 1:s, j:j + s * (Wo - 1) + 1:s, :]
            for i in range(k) for j in range(k)]
    patches = jnp.concatenate(cols, axis=-1)          # (B, Ho, Wo, k*k*C), no transpose
    return patches.reshape(B * Ho * Wo, k * k * C), Ho, Wo


def conv_swish(x, w_packed, b_row):
    """Conv2d(4,2,1)+Swish on NHWC x with pre-packed (k*k*Cin, Cout) bf16 weight."""
    # NOTE: im2col is materialized but immediately streamed through the M-tiled,
    # pipelined Pallas kernel (only (TM,K) blocks live in VMEM at a time).
    B = x.shape[0]
    cout = w_packed.shape[1]
    a, Ho, Wo = _im2col_nhwc(x, 4, 2, 1)
    y = matmul_bias_swish(a, w_packed, b_row, out_dtype=jnp.bfloat16)
    return y.reshape(B, Ho, Wo, cout)


# ------------------------------ model / params --------------------------------
def init_params(key, latent_dim):
    """PyTorch-layout parameters, uniform(-1/sqrt(fan_in), 1/sqrt(fan_in))."""
    def u(k, shape, fan_in):
        bound = 1.0 / math.sqrt(fan_in)
        return jax.random.uniform(k, shape, jnp.float32, -bound, bound)

    ks = jax.random.split(key, 14)
    p = {}
    p["conv1_w"] = u(ks[0], (32, 3, 4, 4), 3 * 16)
    p["conv1_b"] = u(ks[1], (32,), 3 * 16)
    p["conv2_w"] = u(ks[2], (64, 32, 4, 4), 32 * 16)
    p["conv2_b"] = u(ks[3], (64,), 32 * 16)
    p["conv3_w"] = u(ks[4], (128, 64, 4, 4), 64 * 16)
    p["conv3_b"] = u(ks[5], (128,), 64 * 16)
    p["fc1_w"] = u(ks[6], (1024, 2048), 2048)     # (out, in), acts on NCHW flatten
    p["fc1_b"] = u(ks[7], (1024,), 2048)
    p["fc2_w"] = u(ks[8], (512, 1024), 1024)
    p["fc2_b"] = u(ks[9], (512,), 1024)
    p["mu_w"] = u(ks[10], (latent_dim, 512), 512)
    p["mu_b"] = u(ks[11], (latent_dim,), 512)
    p["lv_w"] = u(ks[12], (latent_dim, 512), 512)
    p["lv_b"] = u(ks[13], (latent_dim,), 512)
    return p


def pack_params(p, latent_dim):
    """One-time conversion to kernel layout (bf16 weights, f32 row-biases)."""
    def conv_pack(w):          # (Cout,Cin,kh,kw) -> (kh*kw*Cin, Cout), im2col order
        cout, cin, kh, kw = w.shape
        return (jnp.transpose(w, (2, 3, 1, 0))
                .reshape(kh * kw * cin, cout).astype(jnp.bfloat16))

    def b_row(b):
        return b.reshape(1, -1).astype(jnp.float32)

    kp = {}
    kp["conv1_w"], kp["conv1_b"] = conv_pack(p["conv1_w"]), b_row(p["conv1_b"])
    kp["conv2_w"], kp["conv2_b"] = conv_pack(p["conv2_w"]), b_row(p["conv2_b"])
    kp["conv3_w"], kp["conv3_b"] = conv_pack(p["conv3_w"]), b_row(p["conv3_b"])

    # fc1 acts on torch's NCHW .view(B,-1) of (B,128,4,4); our flatten is NHWC,
    # so permute the input rows (c,h,w) -> (h,w,c) once here to preserve semantics.
    w1 = p["fc1_w"].reshape(1024, 128, 4, 4)               # (out, c, h, w)
    w1 = jnp.transpose(w1, (2, 3, 1, 0)).reshape(2048, 1024)
    kp["fc1_w"] = w1.astype(jnp.bfloat16)
    kp["fc1_b"] = b_row(p["fc1_b"])
    kp["fc2_w"] = p["fc2_w"].T.astype(jnp.bfloat16)        # (1024, 512)
    kp["fc2_b"] = b_row(p["fc2_b"])

    # Merged mu/logvar head, N padded once to a lane-dense multiple of 128.
    wh = jnp.concatenate([p["mu_w"], p["lv_w"]], axis=0).T  # (512, 2L)
    bh = jnp.concatenate([p["mu_b"], p["lv_b"]], axis=0)    # (2L,)
    nh = _round_up(2 * latent_dim, 128)
    kp["head_w"] = jnp.pad(wh, ((0, 0), (0, nh - 2 * latent_dim))).astype(jnp.bfloat16)
    kp["head_b"] = jnp.pad(bh, (0, nh - 2 * latent_dim)).reshape(1, nh).astype(jnp.float32)
    return kp


def svhn_encoder(kp, x, *, latent_dim):
    """x: (B, 3, 32, 32) NCHW f32 -> (mu, logvar), each (B, latent_dim) f32."""
    B = x.shape[0]
    h = jnp.transpose(x, (0, 2, 3, 1)).astype(jnp.bfloat16)  # NCHW -> NHWC, once
    h = conv_swish(h, kp["conv1_w"], kp["conv1_b"])           # (B, 16, 16, 32)
    h = conv_swish(h, kp["conv2_w"], kp["conv2_b"])           # (B, 8, 8, 64)
    h = conv_swish(h, kp["conv3_w"], kp["conv3_b"])           # (B, 4, 4, 128)
    h = h.reshape(B, -1)                                      # NHWC flatten (fc1_w permuted to match)
    out = classifier_heads(h, kp)                             # (B, Nh) f32
    return out[:, :latent_dim], out[:, latent_dim:2 * latent_dim]


if __name__ == "__main__":
    latent_dim = 20
    key = jax.random.PRNGKey(0)
    pkey, xkey = jax.random.split(key)

    params = init_params(pkey, latent_dim)       # PyTorch-layout parameters
    packed = pack_params(params, latent_dim)     # one-time kernel-layout packing

    # SVHN images: batch=2, 3 channels, 32x32 (32x32 required so flatten = 2048)
    x = jax.random.normal(xkey, (2, 3, 32, 32), dtype=jnp.float32)

    fwd = jax.jit(functools.partial(svhn_encoder, latent_dim=latent_dim))
    mu, logvar = fwd(packed, x)
    jax.block_until_ready((mu, logvar))

    assert mu.shape == (2, latent_dim), mu.shape
    assert logvar.shape == (2, latent_dim), logvar.shape
    assert mu.dtype == jnp.float32 and logvar.dtype == jnp.float32
    assert bool(jnp.all(jnp.isfinite(mu))) and bool(jnp.all(jnp.isfinite(logvar)))
    print("KERNEL_OK")
</pallas_src>

<mosaic_0001>
module attributes {stable_mosaic.version = 11 : i64} {
  func.func @_mm_bias_swish_kernel(%arg0: i32, %arg1: memref<256x48xbf16, #tpu.memory_space<vmem>>, %arg2: memref<48x32xbf16, #tpu.memory_space<vmem>>, %arg3: memref<1x32xf32, #tpu.memory_space<vmem>>, %arg4: memref<256x32xbf16, #tpu.memory_space<vmem>>) attributes {dimension_semantics = [#tpu.dimension_semantics<parallel>], iteration_bounds = array<i64: 2>, scalar_prefetch = 0 : i64, scratch_operands = 0 : i64, tpu.core_type = #tpu.core_type<tc>, window_params = [{transform_indices = @transform_0, window_bounds = array<i64: 256, 48>}, {pipeline_mode = #tpu.pipeline_mode<synchronous>, transform_indices = @transform_1, window_bounds = array<i64: 48, 32>}, {pipeline_mode = #tpu.pipeline_mode<synchronous>, transform_indices = @transform_2, window_bounds = array<i64: 1, 32>}, {transform_indices = @transform_3, window_bounds = array<i64: 256, 32>}]} {
    %c0 = arith.constant 0 : index
    %c0_0 = arith.constant 0 : index
    %0 = vector.load %arg1[%c0, %c0_0] : memref<256x48xbf16, #tpu.memory_space<vmem>>, vector<256x48xbf16>
    %c0_1 = arith.constant 0 : index
    %c0_2 = arith.constant 0 : index
    %1 = vector.load %arg2[%c0_1, %c0_2] : memref<48x32xbf16, #tpu.memory_space<vmem>>, vector<48x32xbf16>
    %cst = arith.constant dense<0.000000e+00> : vector<256x32xf32>
    %2 = tpu.matmul %0, %1, %cst {dimension_numbers = #tpu.dot_dimension_numbers<[1], [0], [0], [1], [0, 0, 1, 1], [], []>} : vector<256x48xbf16>, vector<48x32xbf16>, vector<256x32xf32> -> vector<256x32xf32>
    %c0_3 = arith.constant 0 : index
    %c0_4 = arith.constant 0 : index
    %3 = vector.load %arg3[%c0_3, %c0_4] : memref<1x32xf32, #tpu.memory_space<vmem>>, vector<1x32xf32>
    %4 = vector.broadcast %3 : vector<1x32xf32> to vector<256x32xf32>
    %5 = arith.addf %2, %4 : vector<256x32xf32>
    %6 = arith.negf %5 : vector<256x32xf32>
    %7 = math.exp %6 : vector<256x32xf32>
    %cst_5 = arith.constant 1.000000e+00 : f32
    %8 = vector.broadcast %cst_5 : f32 to vector<256x32xf32>
    %9 = arith.addf %8, %7 : vector<256x32xf32>
    %10 = arith.divf %8, %9 : vector<256x32xf32>
    %11 = arith.mulf %5, %10 : vector<256x32xf32>
    %12 = arith.truncf %11 : vector<256x32xf32> to vector<256x32xbf16>
    %c0_6 = arith.constant 0 : index
    %c0_7 = arith.constant 0 : index
    %13 = vector.load %arg4[%c0_6, %c0_7] : memref<256x32xbf16, #tpu.memory_space<vmem>>, vector<256x32xbf16>
    tpu.vector_store %arg4[%c0_6, %c0_7], %12 {strides = array<i32>} : memref<256x32xbf16, #tpu.memory_space<vmem>>, vector<256x32xbf16>,
    return
  }
  func.func @transform_0(%arg0: i32) -> (i32, i32) {
    %c0_i32 = arith.constant 0 : i32
    %c0_i32_0 = arith.constant 0 : i32
    return %arg0, %c0_i32 : i32, i32
  }
  func.func @transform_1(%arg0: i32) -> (i32, i32) {
    %c0_i32 = arith.constant 0 : i32
    %c0_i32_0 = arith.constant 0 : i32
    %c0_i32_1 = arith.constant 0 : i32
    return %c0_i32, %c0_i32_0 : i32, i32
  }
  func.func @transform_2(%arg0: i32) -> (i32, i32) {
    %c0_i32 = arith.constant 0 : i32
    %c0_i32_0 = arith.constant 0 : i32
    %c0_i32_1 = arith.constant 0 : i32
    return %c0_i32, %c0_i32_0 : i32, i32
  }
  func.func @transform_3(%arg0: i32) -> (i32, i32) {
    %c0_i32 = arith.constant 0 : i32
    %c0_i32_0 = arith.constant 0 : i32
    return %arg0, %c0_i32 : i32, i32
  }
}

module attributes {stable_mosaic.version = 11 : i64} {
  func.func @_mm_bias_swish_kernel(%arg0: i32, %arg1: memref<128x512xbf16, #tpu.memory_space<vmem>>, %arg2: memref<512x64xbf16, #tpu.memory_space<vmem>>, %arg3: memref<1x64xf32, #tpu.memory_space<vmem>>, %arg4: memref<128x64xbf16, #tpu.memory_space<vmem>>) attributes {dimension_semantics = [#tpu.dimension_semantics<parallel>], iteration_bounds = array<i64: 1>, scalar_prefetch = 0 : i64, scratch_operands = 0 : i64, tpu.core_type = #tpu.core_type<tc>, window_params = [{transform_indices = @transform_0, window_bounds = array<i64: 128, 512>}, {pipeline_mode = #tpu.pipeline_mode<synchronous>, transform_indices = @transform_1, window_bounds = array<i64: 512, 64>}, {pipeline_mode = #tpu.pipeline_mode<synchronous>, transform_indices = @transform_2, window_bounds = array<i64: 1, 64>}, {transform_indices = @transform_3, window_bounds = array<i64: 128, 64>}]} {
    %c0 = arith.constant 0 : index
    %c0_0 = arith.constant 0 : index
    %0 = vector.load %arg1[%c0, %c0_0] : memref<128x512xbf16, #tpu.memory_space<vmem>>, vector<128x512xbf16>
    %c0_1 = arith.constant 0 : index
    %c0_2 = arith.constant 0 : index
    %1 = vector.load %arg2[%c0_1, %c0_2] : memref<512x64xbf16, #tpu.memory_space<vmem>>, vector<512x64xbf16>
    %cst = arith.constant dense<0.000000e+00> : vector<128x64xf32>
    %2 = tpu.matmul %0, %1, %cst {dimension_numbers = #tpu.dot_dimension_numbers<[1], [0], [0], [1], [0, 0, 1, 1], [], []>} : vector<128x512xbf16>, vector<512x64xbf16>, vector<128x64xf32> -> vector<128x64xf32>
    %c0_3 = arith.constant 0 : index
    %c0_4 = arith.constant 0 : index
    %3 = vector.load %arg3[%c0_3, %c0_4] : memref<1x64xf32, #tpu.memory_space<vmem>>, vector<1x64xf32>
    %4 = vector.broadcast %3 : vector<1x64xf32> to vector<128x64xf32>
    %5 = arith.addf %2, %4 : vector<128x64xf32>
    %6 = arith.negf %5 : vector<128x64xf32>
    %7 = math.exp %6 : vector<128x64xf32>
    %cst_5 = arith.constant 1.000000e+00 : f32
    %8 = vector.broadcast %cst_5 : f32 to vector<128x64xf32>
    %9 = arith.addf %8, %7 : vector<128x64xf32>
    %10 = arith.divf %8, %9 : vector<128x64xf32>
    %11 = arith.mulf %5, %10 : vector<128x64xf32>
    %12 = arith.truncf %11 : vector<128x64xf32> to vector<128x64xbf16>
    %c0_6 = arith.constant 0 : index
    %c0_7 = arith.constant 0 : index
    %13 = vector.load %arg4[%c0_6, %c0_7] : memref<128x64xbf16, #tpu.memory_space<vmem>>, vector<128x64xbf16>
    tpu.vector_store %arg4[%c0_6, %c0_7], %12 {strides = array<i32>} : memref<128x64xbf16, #tpu.memory_space<vmem>>, vector<128x64xbf16>,
    return
  }
  func.func @transform_0(%arg0: i32) -> (i32, i32) {
    %c0_i32 = arith.constant 0 : i32
    %c0_i32_0 = arith.constant 0 : i32
    return %arg0, %c0_i32 : i32, i32
  }
  func.func @transform_1(%arg0: i32) -> (i32, i32) {
    %c0_i32 = arith.constant 0 : i32
    %c0_i32_0 = arith.constant 0 : i32
    %c0_i32_1 = arith.constant 0 : i32
    return %c0_i32, %c0_i32_0 : i32, i32
  }
  func.func @transform_2(%arg0: i32) -> (i32, i32) {
    %c0_i32 = arith.constant 0 : i32
    %c0_i32_0 = arith.constant 0 : i32
    %c0_i32_1 = arith.constant 0 : i32
    return %c0_i32, %c0_i32_0 : i32, i32
  }
  func.func @transform_3(%arg0: i32) -> (i32, i32) {
    %c0_i32 = arith.constant 0 : i32
    %c0_i32_0 = arith.constant 0 : i32
    return %arg0, %c0_i32 : i32, i32
  }
}

module attributes {stable_mosaic.version = 11 : i64} {
  func.func @_mm_bias_swish_kernel(%arg0: i32, %arg1: memref<32x1024xbf16, #tpu.memory_space<vmem>>, %arg2: memref<1024x128xbf16, #tpu.memory_space<vmem>>, %arg3: memref<1x128xf32, #tpu.memory_space<vmem>>, %arg4: memref<32x128xbf16, #tpu.memory_space<vmem>>) attributes {dimension_semantics = [#tpu.dimension_semantics<parallel>], iteration_bounds = array<i64: 1>, scalar_prefetch = 0 : i64, scratch_operands = 0 : i64, tpu.core_type = #tpu.core_type<tc>, window_params = [{transform_indices = @transform_0, window_bounds = array<i64: 32, 1024>}, {pipeline_mode = #tpu.pipeline_mode<synchronous>, transform_indices = @transform_1, window_bounds = array<i64: 1024, 128>}, {pipeline_mode = #tpu.pipeline_mode<synchronous>, transform_indices = @transform_2, window_bounds = array<i64: 1, 128>}, {transform_indices = @transform_3, window_bounds = array<i64: 32, 128>}]} {
    %c0 = arith.constant 0 : index
    %c0_0 = arith.constant 0 : index
    %0 = vector.load %arg1[%c0, %c0_0] : memref<32x1024xbf16, #tpu.memory_space<vmem>>, vector<32x1024xbf16>
    %c0_1 = arith.constant 0 : index
    %c0_2 = arith.constant 0 : index
    %1 = vector.load %arg2[%c0_1, %c0_2] : memref<1024x128xbf16, #tpu.memory_space<vmem>>, vector<1024x128xbf16>
    %cst = arith.constant dense<0.000000e+00> : vector<32x128xf32>
    %2 = tpu.matmul %0, %1, %cst {dimension_numbers = #tpu.dot_dimension_numbers<[1], [0], [0], [1], [0, 0, 1, 1], [], []>} : vector<32x1024xbf16>, vector<1024x128xbf16>, vector<32x128xf32> -> vector<32x128xf32>
    %c0_3 = arith.constant 0 : index
    %c0_4 = arith.constant 0 : index
    %3 = vector.load %arg3[%c0_3, %c0_4] : memref<1x128xf32, #tpu.memory_space<vmem>>, vector<1x128xf32>
    %4 = vector.broadcast %3 : vector<1x128xf32> to vector<32x128xf32>
    %5 = arith.addf %2, %4 : vector<32x128xf32>
    %6 = arith.negf %5 : vector<32x128xf32>
    %7 = math.exp %6 : vector<32x128xf32>
    %cst_5 = arith.constant 1.000000e+00 : f32
    %8 = vector.broadcast %cst_5 : f32 to vector<32x128xf32>
    %9 = arith.addf %8, %7 : vector<32x128xf32>
    %10 = arith.divf %8, %9 : vector<32x128xf32>
    %11 = arith.mulf %5, %10 : vector<32x128xf32>
    %12 = arith.truncf %11 : vector<32x128xf32> to vector<32x128xbf16>
    %c0_6 = arith.constant 0 : index
    %c0_7 = arith.constant 0 : index
    %13 = vector.load %arg4[%c0_6, %c0_7] : memref<32x128xbf16, #tpu.memory_space<vmem>>, vector<32x128xbf16>
    tpu.vector_store %arg4[%c0_6, %c0_7], %12 {strides = array<i32>} : memref<32x128xbf16, #tpu.memory_space<vmem>>, vector<32x128xbf16>,
    return
  }
  func.func @transform_0(%arg0: i32) -> (i32, i32) {
    %c0_i32 = arith.constant 0 : i32
    %c0_i32_0 = arith.constant 0 : i32
    return %arg0, %c0_i32 : i32, i32
  }
  func.func @transform_1(%arg0: i32) -> (i32, i32) {
    %c0_i32 = arith.constant 0 : i32
    %c0_i32_0 = arith.constant 0 : i32
    %c0_i32_1 = arith.constant 0 : i32
    return %c0_i32, %c0_i32_0 : i32, i32
  }
  func.func @transform_2(%arg0: i32) -> (i32, i32) {
    %c0_i32 = arith.constant 0 : i32
    %c0_i32_0 = arith.constant 0 : i32
    %c0_i32_1 = arith.constant 0 : i32
    return %c0_i32, %c0_i32_0 : i32, i32
  }
  func.func @transform_3(%arg0: i32) -> (i32, i32) {
    %c0_i32 = arith.constant 0 : i32
    %c0_i32_0 = arith.constant 0 : i32
    return %arg0, %c0_i32 : i32, i32
  }
}

module attributes {stable_mosaic.version = 11 : i64} {
  func.func @_tail_kernel(%arg0: i32, %arg1: memref<8x2048xbf16, #tpu.memory_space<vmem>>, %arg2: memref<2048x1024xbf16, #tpu.memory_space<vmem>>, %arg3: memref<1x1024xf32, #tpu.memory_space<vmem>>, %arg4: memref<1024x512xbf16, #tpu.memory_space<vmem>>, %arg5: memref<1x512xf32, #tpu.memory_space<vmem>>, %arg6: memref<512x128xbf16, #tpu.memory_space<vmem>>, %arg7: memref<1x128xf32, #tpu.memory_space<vmem>>, %arg8: memref<8x128xf32, #tpu.memory_space<vmem>>) attributes {dimension_semantics = [#tpu.dimension_semantics<parallel>], iteration_bounds = array<i64: 1>, scalar_prefetch = 0 : i64, scratch_operands = 0 : i64, tpu.core_type = #tpu.core_type<tc>, window_params = [{transform_indices = @transform_0, window_bounds = array<i64: 8, 2048>}, {pipeline_mode = #tpu.pipeline_mode<synchronous>, transform_indices = @transform_1, window_bounds = array<i64: 2048, 1024>}, {pipeline_mode = #tpu.pipeline_mode<synchronous>, transform_indices = @transform_2, window_bounds = array<i64: 1, 1024>}, {pipeline_mode = #tpu.pipeline_mode<synchronous>, transform_indices = @transform_3, window_bounds = array<i64: 1024, 512>}, {pipeline_mode = #tpu.pipeline_mode<synchronous>, transform_indices = @transform_4, window_bounds = array<i64: 1, 512>}, {pipeline_mode = #tpu.pipeline_mode<synchronous>, transform_indices = @transform_5, window_bounds = array<i64: 512, 128>}, {pipeline_mode = #tpu.pipeline_mode<synchronous>, transform_indices = @transform_6, window_bounds = array<i64: 1, 128>}, {transform_indices = @transform_7, window_bounds = array<i64: 8, 128>}]} {
    %c0 = arith.constant 0 : index
    %c0_0 = arith.constant 0 : index
    %0 = vector.load %arg1[%c0, %c0_0] : memref<8x2048xbf16, #tpu.memory_space<vmem>>, vector<8x2048xbf16>
    %c0_1 = arith.constant 0 : index
    %c0_2 = arith.constant 0 : index
    %1 = vector.load %arg2[%c0_1, %c0_2] : memref<2048x1024xbf16, #tpu.memory_space<vmem>>, vector<2048x1024xbf16>
    %cst = arith.constant dense<0.000000e+00> : vector<8x1024xf32>
    %2 = tpu.matmul %0, %1, %cst {dimension_numbers = #tpu.dot_dimension_numbers<[1], [0], [0], [1], [0, 0, 1, 1], [], []>} : vector<8x2048xbf16>, vector<2048x1024xbf16>, vector<8x1024xf32> -> vector<8x1024xf32>
    %c0_3 = arith.constant 0 : index
    %c0_4 = arith.constant 0 : index
    %3 = vector.load %arg3[%c0_3, %c0_4] : memref<1x1024xf32, #tpu.memory_space<vmem>>, vector<1x1024xf32>
    %4 = vector.broadcast %3 : vector<1x1024xf32> to vector<8x1024xf32>
    %5 = arith.addf %2, %4 : vector<8x1024xf32>
    %6 = arith.negf %5 : vector<8x1024xf32>
    %7 = math.exp %6 : vector<8x1024xf32>
    %cst_5 = arith.constant 1.000000e+00 : f32
    %8 = vector.broadcast %cst_5 : f32 to vector<8x1024xf32>
    %9 = arith.addf %8, %7 : vector<8x1024xf32>
    %10 = arith.divf %8, %9 : vector<8x1024xf32>
    %11 = arith.mulf %5, %10 : vector<8x1024xf32>
    %12 = arith.truncf %11 : vector<8x1024xf32> to vector<8x1024xbf16>
    %c0_6 = arith.constant 0 : index
    %c0_7 = arith.constant 0 : index
    %13 = vector.load %arg4[%c0_6, %c0_7] : memref<1024x512xbf16, #tpu.memory_space<vmem>>, vector<1024x512xbf16>
    %cst_8 = arith.constant dense<0.000000e+00> : vector<8x512xf32>
    %14 = tpu.matmul %12, %13, %cst_8 {dimension_numbers = #tpu.dot_dimension_numbers<[1], [0], [0], [1], [0, 0, 1, 1], [], []>} : vector<8x1024xbf16>, vector<1024x512xbf16>, vector<8x512xf32> -> vector<8x512xf32>
    %c0_9 = arith.constant 0 : index
    %c0_10 = arith.constant 0 : index
    %15 = vector.load %arg5[%c0_9, %c0_10] : memref<1x512xf32, #tpu.memory_space<vmem>>, vector<1x512xf32>
    %16 = vector.broadcast %15 : vector<1x512xf32> to vector<8x512xf32>
    %17 = arith.addf %14, %16 : vector<8x512xf32>
    %18 = arith.negf %17 : vector<8x512xf32>
    %19 = math.exp %18 : vector<8x512xf32>
    %cst_11 = arith.constant 1.000000e+00 : f32
    %20 = vector.broadcast %cst_11 : f32 to vector<8x512xf32>
    %21 = arith.addf %20, %19 : vector<8x512xf32>
    %22 = arith.divf %20, %21 : vector<8x512xf32>
    %23 = arith.mulf %17, %22 : vector<8x512xf32>
    %24 = arith.truncf %23 : vector<8x512xf32> to vector<8x512xbf16>
    %c0_12 = arith.constant 0 : index
    %c0_13 = arith.constant 0 : index
    %25 = vector.load %arg6[%c0_12, %c0_13] : memref<512x128xbf16, #tpu.memory_space<vmem>>, vector<512x128xbf16>
    %cst_14 = arith.constant dense<0.000000e+00> : vector<8x128xf32>
    %26 = tpu.matmul %24, %25, %cst_14 {dimension_numbers = #tpu.dot_dimension_numbers<[1], [0], [0], [1], [0, 0, 1, 1], [], []>} : vector<8x512xbf16>, vector<512x128xbf16>, vector<8x128xf32> -> vector<8x128xf32>
    %c0_15 = arith.constant 0 : index
    %c0_16 = arith.constant 0 : index
    %27 = vector.load %arg7[%c0_15, %c0_16] : memref<1x128xf32, #tpu.memory_space<vmem>>, vector<1x128xf32>
    %28 = vector.broadcast %27 : vector<1x128xf32> to vector<8x128xf32>
    %29 = arith.addf %26, %28 : vector<8x128xf32>
    %c0_17 = arith.constant 0 : index
    %c0_18 = arith.constant 0 : index
    %30 = vector.load %arg8[%c0_17, %c0_18] : memref<8x128xf32, #tpu.memory_space<vmem>>, vector<8x128xf32>
    tpu.vector_store %arg8[%c0_17, %c0_18], %29 {strides = array<i32>} : memref<8x128xf32, #tpu.memory_space<vmem>>, vector<8x128xf32>,
    return
  }
  func.func @transform_0(%arg0: i32) -> (i32, i32) {
    %c0_i32 = arith.constant 0 : i32
    %c0_i32_0 = arith.constant 0 : i32
    return %arg0, %c0_i32 : i32, i32
  }
  func.func @transform_1(%arg0: i32) -> (i32, i32) {
    %c0_i32 = arith.constant 0 : i32
    %c0_i32_0 = arith.constant 0 : i32
    %c0_i32_1 = arith.constant 0 : i32
    return %c0_i32, %c0_i32_0 : i32, i32
  }
  func.func @transform_2(%arg0: i32) -> (i32, i32) {
    %c0_i32 = arith.constant 0 : i32
    %c0_i32_0 = arith.constant 0 : i32
    %c0_i32_1 = arith.constant 0 : i32
    return %c0_i32, %c0_i32_0 : i32, i32
  }
  func.func @transform_3(%arg0: i32) -> (i32, i32) {
    %c0_i32 = arith.constant 0 : i32
    %c0_i32_0 = arith.constant 0 : i32
    %c0_i32_1 = arith.constant 0 : i32
    return %c0_i32, %c0_i32_0 : i32, i32
  }
  func.func @transform_4(%arg0: i32) -> (i32, i32) {
    %c0_i32 = arith.constant 0 : i32
    %c0_i32_0 = arith.constant 0 : i32
    %c0_i32_1 = arith.constant 0 : i32
    return %c0_i32, %c0_i32_0 : i32, i32
  }
  func.func @transform_5(%arg0: i32) -> (i32, i32) {
    %c0_i32 = arith.constant 0 : i32
    %c0_i32_0 = arith.constant 0 : i32
    %c0_i32_1 = arith.constant 0 : i32
    return %c0_i32, %c0_i32_0 : i32, i32
  }
  func.func @transform_6(%arg0: i32) -> (i32, i32) {
    %c0_i32 = arith.constant 0 : i32
    %c0_i32_0 = arith.constant 0 : i32
    %c0_i32_1 = arith.constant 0 : i32
    return %c0_i32, %c0_i32_0 : i32, i32
  }
  func.func @transform_7(%arg0: i32) -> (i32, i32) {
    %c0_i32 = arith.constant 0 : i32
    %c0_i32_0 = arith.constant 0 : i32
    return %arg0, %c0_i32 : i32, i32
  }
}

</mosaic_0001>

<bundles_post_ra>
// kernel: svhn_encoder.4
= control target key start
LH: loop header
LB: loop body
LE: loop exit
PB: predicated region body
PF: predicated region fallthrough
CT: control target
= control target key end

     0   :  { %s1358_s12 = smov 0   ;;  %s1674_s0 = inlined_call_operand.vmem [shape: bf16[512,48], index: 0, kind: input, shape index: {}]   ;;  %s1675_s1 = inlined_call_operand.vmem [shape: bf16[48,32], index: 1, kind: input, shape index: {}]   ;;  %s1676_s2 = inlined_call_operand.vmem [shape: f32[1,32], index: 2, kind: input, shape index: {}]   ;;  %s1677_s3 = inlined_call_operand.vmem [shape: bf16[512,32], index: 3, kind: output, shape index: {}]  }
   0x1 LB: > { %s969_s13 = sadd.s32 4294967295, %s1336_s12   ;;  %p973_p0 = scmp.ge.s32.totalorder %s1336_s12, 1  ;;  %s1336_s12 = sphi %s1358_s12, %s13_s12  }
   0x2   : > { %p138_p1 = scmp.lt.s32.totalorder %s1336_s12, 3 }
   0x4   : > { %p139_p2 = pnand %p973_p0, %p138_p1 }
   0x5   : > { %v1183_v0 = vld [vmem:[%s1675_s1] sm:$0xff] (!%p139_p2)   ;;  %s974_s16 = sshll.u32 (!%p139_p2), %s969_s13, 5  ;;  %v1184_v1 = vld [vmem:[%s1675_s1 + $0x8] sm:$0xff] (!%p139_p2)   ;;  %v1185_v2 = vld [vmem:[%s1675_s1 + $0x10] sm:$0xff] (!%p139_p2)   ;;  %vm318_vm0 = vcmask (!%p139_p2), 392192   ;;  %vm880_vm1 = vcmask (!%p139_p2), 257024  }
   0x6   : > { %142 = sbr.rel (%p139_p2) target bundleno = 322 (0x142), region = 32  ;;  %p163_p3 = scmp.lt.s32.totalorder (!%p139_p2), %s974_s16, 63  ;;  %1131 = vmatprep.subr.bf16.mxu0 (!%p139_p2), %v1183_v0  ;;  %1169 = vmatprep.subr.bf16.mxu1 (!%p139_p2), %v1183_v0  ;;  %v1420_v19 = vld [vmem:[%s1676_s2] ss:$0 sm:$0xff] (!%p139_p2) }
   0x7   : > { %1132 = vmatpush3.bf16.msra.mxu0 (!%p139_p2), %v1183_v0  ;;  %1172 = vmatpush3.bf16.msra.mxu1 (!%p139_p2), %v1183_v0 }
   0x8   : > { %1133 = vmatprep.subr.bf16.mxu0 (!%p139_p2), %v1184_v1  ;;  %1170 = vmatprep.subr.bf16.mxu1 (!%p139_p2), %v1184_v1 }
   0xb   : > { %1134 = vmatpush3.bf16.msra.mxu0 (!%p139_p2), %v1184_v1  ;;  %1173 = vmatpush3.bf16.msra.mxu1 (!%p139_p2), %v1184_v1 }
   0xc   : > { %1135 = vmatprep.subr.bf16.mxu0 (!%p139_p2), %v1185_v2  ;;  %1171 = vmatprep.subr.bf16.mxu1 (!%p139_p2), %v1185_v2 }
   0xd   : > { %s1679_s16 = smov (!%p163_p3, %s974_s16), 63 }
   0xe   : > { %s975_s21 = sshll.u32 %s1679_s16, 2 }
   0xf   : > { %s1383_s24 = scalar_lea.vmem %s1674_s0, %s975_s21  ;;  %1136 = vmatpush3.bf16.msra.mxu0 %v1185_v2  ;;  %1174 = vmatpush3.bf16.msra.mxu1 %v1185_v2  ;;  %s1525_s29 = scalar_lea.vmem %s1677_s3, %s975_s21 }
  0x10   : > { %v1186_v3 = vld [vmem:[%s1383_s24] sm:$0xff]   ;;  %v1188_v5 = vld [vmem:[%s1383_s24 + $0x8] sm:$0xff]   ;;  %v1190_v7 = vld [vmem:[%s1383_s24 + $0x10] sm:$0xff]  }
  0x11   : > { %v1187_v4 = vld [vmem:[%s1383_s24 + $0x40] sm:$0xff]   ;;  %1137 = vmatprep.mubr.msk.bf16.mxu0 %vm318_vm0, %v1186_v3  ;;  %v1189_v6 = vld [vmem:[%s1383_s24 + $0x48] sm:$0xff]   ;;  %v1191_v8 = vld [vmem:[%s1383_s24 + $0x50] sm:$0xff]  }
  0x12   : > { %1153 = vmatprep.mubr.msk.bf16.mxu1 %vm318_vm0, %v1187_v4  ;;  %1138 = vmatmul.mubr.msk.bf16.vlgmr.msra.gmra.mrb[0].mxu0 %vm318_vm0, %v1188_v5  ;;  %v1192_v9 = vld [vmem:[%s1383_s24 + $0x18] sm:$0xff]   ;;  %v1194_v11 = vld [vmem:[%s1383_s24 + $0x20] sm:$0xff]   ;;  %v1196_v13 = vld [vmem:[%s1383_s24 + $0x28] sm:$0xff]  }
  0x13   : > { %1154 = vmatmul.mubr.msk.bf16.vlgmr.msra.gmra.mrb[0].mxu1 %vm318_vm0, %v1189_v6  ;;  %1141 = vmatprep.mubr.msk.bf16.mxu0 %vm318_vm0, %v1190_v7  ;;  %v1193_v10 = vld [vmem:[%s1383_s24 + $0x58] sm:$0xff]   ;;  %v1195_v12 = vld [vmem:[%s1383_s24 + $0x60] sm:$0xff]   ;;  %v1197_v14 = vld [vmem:[%s1383_s24 + $0x68] sm:$0xff]  }
  0x14   : > { %1157 = vmatprep.mubr.msk.bf16.mxu1 %vm318_vm0, %v1191_v8  ;;  %v1198_v15 = vld [vmem:[%s1383_s24 + $0x30] sm:$0xff]   ;;  %v1200_v17 = vld [vmem:[%s1383_s24 + $0x38] sm:$0xff]  }
  0x15   : > { %v1199_v16 = vld [vmem:[%s1383_s24 + $0x70] sm:$0xff]   ;;  %v1201_v18 = vld [vmem:[%s1383_s24 + $0x78] sm:$0xff]  }
  0x1a   : > { %1142 = vmatmul.mubr.msk.bf16.gmra.mrb[4].mxu0 %vm318_vm0, %v1192_v9 }
  0x1b   : > { %1158 = vmatmul.mubr.msk.bf16.gmra.mrb[4].mxu1 %vm318_vm0, %v1193_v10  ;;  %1145 = vmatprep.mubr.msk.bf16.mxu0 %vm318_vm0, %v1194_v11 }
  0x1c   : > { %1161 = vmatprep.mubr.msk.bf16.mxu1 %vm318_vm0, %v1195_v12 }
  0x22   : > { %1146 = vmatmul.mubr.msk.bf16.gmra.mrb[8].mxu0 %vm318_vm0, %v1196_v13 }
  0x23   : > { %1162 = vmatmul.mubr.msk.bf16.gmra.mrb[8].mxu1 %vm318_vm0, %v1197_v14  ;;  %1149 = vmatprep.mubr.msk.bf16.mxu0 %vm318_vm0, %v1198_v15 }
  0x24   : > { %1165 = vmatprep.mubr.msk.bf16.mxu1 %vm318_vm0, %v1199_v16 }
  0x2a   : > { %1150 = vmatmul.mubr.msk.bf16.gmra.mrb[12].mxu0 %vm318_vm0, %v1200_v17 }
  0x2b   : > { %1166 = vmatmul.mubr.msk.bf16.gmra.mrb[12].mxu1 %vm318_vm0, %v1201_v18 }
  0xe5   : > { %v1139_v20 = vpop.f32.mrb[0].mxu0 }
  0xe6   : > { %v1155_v21 = vpop.f32.mrb[0].mxu1  ;;  %v1423_v22 = vadd.f32 %v1139_v20, %v1420_v19  ;;  %v401_v24 = vpop.f32.mrb[1].mxu0 }
  0xe7   : > { %v1426_v23 = vadd.f32 %v1155_v21, %v1420_v19  ;;  %v465_v25 = vpop.f32.mrb[1].mxu1  ;;  %v1429_v26 = vadd.f32 %v1420_v19, %v401_v24  ;;  %v1140_v28 = vpop.f32.mrb[2].mxu0 }
  0xe8   : > { %v1432_v27 = vadd.f32 %v1420_v19, %v465_v25  ;;  %v1156_v29 = vpop.f32.mrb[2].mxu1  ;;  %v1016_v30 = vmul.f32 -1.442695, %v1423_v22  ;;  %v1437_v32 = vadd.f32 %v1140_v28, %v1420_v19  ;;  %v404_v34 = vpop.f32.mrb[3].mxu0 }
  0xe9   : > { %v1032_v31 = vmul.f32 -1.442695, %v1426_v23  ;;  %v1440_v33 = vadd.f32 %v1156_v29, %v1420_v19  ;;  %v468_v35 = vpop.f32.mrb[3].mxu1  ;;  %v1014_v36 = vmul.f32 -1.442695, %v1429_v26  ;;  %v1445_v38 = vadd.f32 %v1420_v19, %v404_v34 }
  0xea   : > { %v1030_v37 = vmul.f32 -1.442695, %v1432_v27  ;;  %v1448_v39 = vadd.f32 %v1420_v19, %v468_v35  ;;  %1202 = vpow2.f32 %v1016_v30  ;;  %v1017_v40 = vmul.f32 -1.442695, %v1437_v32 }
  0xeb   : > { %1204 = vpow2.f32 %v1032_v31  ;;  %v1033_v41 = vmul.f32 -1.442695, %v1440_v33  ;;  %v1015_v42 = vmul.f32 -1.442695, %v1445_v38 }
  0xec   : > { %1206 = vpow2.f32 %v1014_v36  ;;  %v1031_v43 = vmul.f32 -1.442695, %v1448_v39 }
  0xed   : > { %1208 = vpow2.f32 %v1030_v37  ;;  %v1143_v44 = vpop.f32.mrb[4].mxu0 }
  0xee   : > { %v1159_v45 = vpop.f32.mrb[4].mxu1  ;;  %1210 = vpow2.f32 %v1017_v40  ;;  %v1455_v46 = vadd.f32 %v1143_v44, %v1420_v19  ;;  %v417_v48 = vpop.f32.mrb[5].mxu0 }
  0xef   : > { %v1458_v47 = vadd.f32 %v1159_v45, %v1420_v19  ;;  %v481_v49 = vpop.f32.mrb[5].mxu1  ;;  %1212 = vpow2.f32 %v1033_v41  ;;  %v1461_v50 = vadd.f32 %v1420_v19, %v417_v48  ;;  %v1144_v52 = vpop.f32.mrb[6].mxu0 }
  0xf0   : > { %v1464_v51 = vadd.f32 %v1420_v19, %v481_v49  ;;  %v1160_v53 = vpop.f32.mrb[6].mxu1  ;;  %1214 = vpow2.f32 %v1015_v42  ;;  %v1020_v54 = vmul.f32 -1.442695, %v1455_v46  ;;  %v1469_v56 = vadd.f32 %v1144_v52, %v1420_v19  ;;  %v420_v57 = vpop.f32.mrb[7].mxu0 }
  0xf1   : > { %v1036_v55 = vmul.f32 -1.442695, %v1458_v47  ;;  %v484_v58 = vpop.f32.mrb[7].mxu1  ;;  %1216 = vpow2.f32 %v1031_v43  ;;  %v1018_v59 = vmul.f32 -1.442695, %v1461_v50  ;;  %v1475_v16 = vadd.f32 %v1160_v53, %v1420_v19 }
  0xf2   : > { %v1034_v60 = vmul.f32 -1.442695, %v1464_v51  ;;  %1218 = vpow2.f32 %v1020_v54  ;;  %v1021_v61 = vmul.f32 -1.442695, %v1469_v56  ;;  %v1478_v21 = vadd.f32 %v1420_v19, %v420_v57 }
  0xf3   : > { %1220 = vpow2.f32 %v1036_v55  ;;  %v1481_v28 = vadd.f32 %v1420_v19, %v484_v58  ;;  %v1037_v36 = vmul.f32 -1.442695, %v1475_v16 }
  0xf4   : > { %v1203_v62 = vpop.eup %1202  ;;  %1222 = vpow2.f32 %v1018_v59  ;;  %v1019_v43 = vmul.f32 -1.442695, %v1478_v21 }
  0xf5   : > { %v1205_v63 = vpop.eup %1204  ;;  %v626_v0 = vadd.f32 1.0, %v1203_v62  ;;  %1224 = vpow2.f32 %v1034_v60  ;;  %v1147_v1 = vpop.f32.mrb[8].mxu0  ;;  %v1035_v53 = vmul.f32 -1.442695, %v1481_v28 }
  0xf6   : > { %v1163_v2 = vpop.f32.mrb[8].mxu1  ;;  %v1207_v3 = vpop.eup %1206  ;;  %v642_v4 = vadd.f32 1.0, %v1205_v63  ;;  %1226 = vpow2.f32 %v1021_v61  ;;  %v1484_v31 = vadd.f32 %v1147_v1, %v1420_v19 }
  0xf7   : > { %v433_v5 = vpop.f32.mrb[9].mxu0  ;;  %v497_v6 = vpop.f32.mrb[9].mxu1  ;;  %1228 = vrcp.f32 %v626_v0  ;;  %v624_v8 = vadd.f32 1.0, %v1207_v3  ;;  %v1488_v37 = vadd.f32 %v1163_v2, %v1420_v19 }
  0xf8   : > { %v1209_v7 = vpop.eup %1208  ;;  %v1148_v9 = vpop.f32.mrb[10].mxu0  ;;  %1230 = vrcp.f32 %v642_v4  ;;  %v1492_v44 = vadd.f32 %v1420_v19, %v433_v5  ;;  %v1498_v54 = vadd.f32 %v1420_v19, %v497_v6  ;;  %v1024_v60 = vmul.f32 -1.442695, %v1484_v31 }
  0xf9   : > { %v1164_v10 = vpop.f32.mrb[10].mxu1  ;;  %v1211_v11 = vpop.eup %1210  ;;  %v640_v12 = vadd.f32 1.0, %v1209_v7  ;;  %1232 = vrcp.f32 %v624_v8  ;;  %v1040_v1 = vmul.f32 -1.442695, %v1488_v37  ;;  %v1511_v2 = vadd.f32 %v1148_v9, %v1420_v19 }
  0xfa   : > { %v436_v13 = vpop.f32.mrb[11].mxu0  ;;  %v1213_v14 = vpop.eup %1212  ;;  %v627_v15 = vadd.f32 1.0, %v1211_v11  ;;  %v1022_v6 = vmul.f32 -1.442695, %v1492_v44  ;;  %v1518_v7 = vadd.f32 %v1164_v10, %v1420_v19  ;;  %v1038_v11 = vmul.f32 -1.442695, %v1498_v54 }
  0xfb   : > { %v500_v17 = vpop.f32.mrb[11].mxu1  ;;  %v1215_v18 = vpop.eup %1214  ;;  %1234 = vrcp.f32 %v640_v12  ;;  %v643_v20 = vadd.f32 1.0, %v1213_v14 }
  0xfc   : > { %v1217_v24 = vpop.eup %1216  ;;  %1236 = vrcp.f32 %v627_v15  ;;  %v625_v25 = vadd.f32 1.0, %v1215_v18  ;;  %v1534_v15 = vadd.f32 %v1420_v19, %v500_v17 }
  0xfd   : > { %v1219_v29 = vpop.eup %1218  ;;  %1238 = vrcp.f32 %v643_v20  ;;  %v641_v30 = vadd.f32 1.0, %v1217_v24  ;;  %v1151_v40 = vpop.f32.mrb[12].mxu0 }
  0xfe   : > { %v1221_v34 = vpop.eup %1220  ;;  %1240 = vrcp.f32 %v625_v25  ;;  %v630_v35 = vadd.f32 1.0, %v1219_v29  ;;  %v1167_v45 = vpop.f32.mrb[12].mxu1 }
  0xff   : > { %v1223_v41 = vpop.eup %1222  ;;  %1242 = vrcp.f32 %v641_v30  ;;  %v646_v42 = vadd.f32 1.0, %v1221_v34  ;;  %v1494_v48 = vpop.f32.mrb[13].mxu0  ;;  %v1546_v34 = vadd.f32 %v1151_v40, %v1420_v19 }
 0x100   : > { %v1225_v49 = vpop.eup %1224  ;;  %1244 = vrcp.f32 %v630_v35  ;;  %v628_v52 = vadd.f32 1.0, %v1223_v41  ;;  %v1500_v55 = vpop.f32.mrb[13].mxu1  ;;  %v1552_v41 = vadd.f32 %v1167_v45, %v1420_v19  ;;  %v1039_v45 = vmul.f32 -1.442695, %v1534_v15 }
 0x101   : > { %v1502_v57 = vpop.f32.mrb[14].mxu0  ;;  %v1227_v58 = vpop.eup %1226  ;;  %1246 = vrcp.f32 %v646_v42  ;;  %v644_v59 = vadd.f32 1.0, %v1225_v49 }
 0x102   : > { %v1505_v61 = vpop.f32.mrb[14].mxu1  ;;  %v1507_v62 = vpop.f32.mrb[15].mxu0  ;;  %1248 = vrcp.f32 %v628_v52  ;;  %v631_v0 = vadd.f32 1.0, %v1227_v58 }
 0x103   : > { %v1229_v63 = vpop.eup %1228  ;;  %v1513_v3 = vpop.f32.mrb[15].mxu1  ;;  %1250 = vrcp.f32 %v644_v59  ;;  %v1028_v59 = vmul.f32 -1.442695, %v1546_v34 }
 0x104   : > { %v1231_v4 = vpop.eup %1230  ;;  %v722_v5 = vmul.f32 %v1229_v63, %v1423_v22  ;;  %1252 = vrcp.f32 %v631_v0  ;;  %v1530_v22 = vadd.f32 %v1420_v19, %v436_v13  ;;  %v1044_v0 = vmul.f32 -1.442695, %v1552_v41 }
 0x105   : > { %v1233_v8 = vpop.eup %1232  ;;  %v738_v9 = vmul.f32 %v1231_v4, %v1426_v23  ;;  %1254 = vpow2.f32 %v1037_v36  ;;  %v1025_v23 = vmul.f32 -1.442695, %v1511_v2 }
 0x106   : > { %v1235_v12 = vpop.eup %1234  ;;  %v1082_v14 = vpack.c.bf16 %v722_v5, %v722_v5  ;;  %v720_v10 = vmul.f32 %v1233_v8, %v1429_v26  ;;  %1256 = vpow2.f32 %v1019_v43  ;;  %v1041_v26 = vmul.f32 -1.442695, %v1518_v7 }
 0x107   : > { %v1237_v18 = vpop.eup %1236  ;;  %v1098_v20 = vpack.c.bf16 %v738_v9, %v738_v9  ;;  %v736_v24 = vmul.f32 %v1235_v12, %v1432_v27  ;;  %1258 = vpow2.f32 %v1035_v53  ;;  %v1023_v40 = vmul.f32 -1.442695, %v1530_v22 }
 0x108   : > { %v1239_v25 = vpop.eup %1238  ;;  %883 = vst.msk [vmem:[%s1525_s29 + $0x8] sm:$0xf] %vm880_vm1, %v1082_v14  ;;  %v1080_v13 = vpack.c.bf16 %v720_v10, %v720_v10  ;;  %v723_v29 = vmul.f32 %v1237_v18, %v1437_v32  ;;  %1260 = vpow2.f32 %v1024_v60 }
 0x109   : > { %v1241_v17 = vpop.eup %1240  ;;  %899 = vst.msk [vmem:[%s1525_s29 + $0x48] sm:$0xf] %vm880_vm1, %v1098_v20  ;;  %v1096_v30 = vpack.c.bf16 %v736_v24, %v736_v24  ;;  %v739_v27 = vmul.f32 %v1239_v25, %v1440_v33  ;;  %1262 = vpow2.f32 %v1040_v1 }
 0x10a   : > { %v1243_v35 = vpop.eup %1242  ;;  %881 = vst.msk [vmem:[%s1525_s29] sm:$0xf] %vm880_vm1, %v1080_v13  ;;  %v1083_v36 = vpack.c.bf16 %v723_v29, %v723_v29  ;;  %v721_v32 = vmul.f32 %v1241_v17, %v1445_v38  ;;  %1264 = vpow2.f32 %v1022_v6 }
 0x10b   : > { %v1245_v42 = vpop.eup %1244  ;;  %897 = vst.msk [vmem:[%s1525_s29 + $0x40] sm:$0xf] %vm880_vm1, %v1096_v30  ;;  %v1099_v33 = vpack.c.bf16 %v739_v27, %v739_v27  ;;  %v737_v43 = vmul.f32 %v1243_v35, %v1448_v39  ;;  %1266 = vpow2.f32 %v1038_v11  ;;  %v1586_v27 = vadd.f32 %v1420_v19, %v1494_v48 }
 0x10c   : > { %v1247_v49 = vpop.eup %1246  ;;  %884 = vst.msk [vmem:[%s1525_s29 + $0xc] sm:$0xf] %vm880_vm1, %v1083_v36  ;;  %v1081_v52 = vpack.c.bf16 %v721_v32, %v721_v32  ;;  %v726_v38 = vmul.f32 %v1245_v42, %v1455_v46  ;;  %1268 = vpow2.f32 %v1025_v23  ;;  %v1590_v32 = vadd.f32 %v1420_v19, %v1500_v55 }
 0x10d   : > { %v1249_v53 = vpop.eup %1248  ;;  %900 = vst.msk [vmem:[%s1525_s29 + $0x4c] sm:$0xf] %vm880_vm1, %v1099_v33  ;;  %v1097_v58 = vpack.c.bf16 %v737_v43, %v737_v43  ;;  %v742_v39 = vmul.f32 %v1247_v49, %v1458_v47  ;;  %1270 = vpow2.f32 %v1041_v26  ;;  %v1594_v43 = vadd.f32 %v1502_v57, %v1420_v19 }
 0x10e   : > { %v1251_v60 = vpop.eup %1250  ;;  %882 = vst.msk [vmem:[%s1525_s29 + $0x4] sm:$0xf] %vm880_vm1, %v1081_v52  ;;  %v1086_v63 = vpack.c.bf16 %v726_v38, %v726_v38  ;;  %v724_v46 = vmul.f32 %v1249_v53, %v1461_v50  ;;  %1272 = vpow2.f32 %v1023_v40  ;;  %v1598_v48 = vadd.f32 %v1505_v61, %v1420_v19 }
 0x10f   : > { %v1253_v1 = vpop.eup %1252  ;;  %898 = vst.msk [vmem:[%s1525_s29 + $0x44] sm:$0xf] %vm880_vm1, %v1097_v58  ;;  %v1102_v4 = vpack.c.bf16 %v742_v39, %v742_v39  ;;  %v740_v47 = vmul.f32 %v1251_v60, %v1464_v51  ;;  %1274 = vpow2.f32 %v1039_v45  ;;  %v1026_v55 = vmul.f32 -1.442695, %v1586_v27 }
 0x110   : > { %v1255_v5 = vpop.eup %1254  ;;  %887 = vst.msk [vmem:[%s1525_s29 + $0x18] sm:$0xf] %vm880_vm1, %v1086_v63  ;;  %v1084_v6 = vpack.c.bf16 %v724_v46, %v724_v46  ;;  %v727_v8 = vmul.f32 %v1253_v1, %v1469_v56  ;;  %1276 = vpow2.f32 %v1028_v59  ;;  %v1603_v45 = vadd.f32 %v1420_v19, %v1507_v62 }
 0x111   : > { %v1257_v50 = vpop.eup %1256  ;;  %903 = vst.msk [vmem:[%s1525_s29 + $0x58] sm:$0xf] %vm880_vm1, %v1102_v4  ;;  %v1100_v9 = vpack.c.bf16 %v740_v47, %v740_v47  ;;  %v647_v11 = vadd.f32 1.0, %v1255_v5  ;;  %1278 = vpow2.f32 %v1044_v0  ;;  %v1042_v58 = vmul.f32 -1.442695, %v1590_v32 }
 0x112   : > { %v1259_v12 = vpop.eup %1258  ;;  %885 = vst.msk [vmem:[%s1525_s29 + $0x10] sm:$0xf] %vm880_vm1, %v1084_v6  ;;  %v1087_v51 = vpack.c.bf16 %v727_v8, %v727_v8  ;;  %v629_v14 = vadd.f32 1.0, %v1257_v50  ;;  %v1608_v39 = vadd.f32 %v1420_v19, %v1513_v3  ;;  %v1029_v60 = vmul.f32 -1.442695, %v1594_v43 }
 0x113   : > { %v1261_v10 = vpop.eup %1260  ;;  %901 = vst.msk [vmem:[%s1525_s29 + $0x50] sm:$0xf] %vm880_vm1, %v1100_v9  ;;  %1280 = vrcp.f32 %v647_v11  ;;  %v645_v18 = vadd.f32 1.0, %v1259_v12  ;;  %v1045_v46 = vmul.f32 -1.442695, %v1598_v48 }
 0x114   : > { %v1263_v56 = vpop.eup %1262  ;;  %888 = vst.msk [vmem:[%s1525_s29 + $0x1c] sm:$0xf] %vm880_vm1, %v1087_v51  ;;  %1282 = vrcp.f32 %v629_v14  ;;  %v634_v20 = vadd.f32 1.0, %v1261_v10  ;;  %v1027_v19 = vmul.f32 -1.442695, %v1603_v45 }
 0x115   : > { %v1265_v24 = vpop.eup %1264  ;;  %1284 = vrcp.f32 %v645_v18  ;;  %v650_v23 = vadd.f32 1.0, %v1263_v56  ;;  %v1043_v5 = vmul.f32 -1.442695, %v1608_v39 }
 0x116   : > { %v1267_v25 = vpop.eup %1266  ;;  %1286 = vrcp.f32 %v634_v20  ;;  %v632_v13 = vadd.f32 1.0, %v1265_v24 }
 0x117   : > { %v1269_v29 = vpop.eup %1268  ;;  %1288 = vrcp.f32 %v650_v23  ;;  %v648_v26 = vadd.f32 1.0, %v1267_v25 }
 0x118   : > { %v1271_v17 = vpop.eup %1270  ;;  %1290 = vrcp.f32 %v632_v13  ;;  %v635_v30 = vadd.f32 1.0, %v1269_v29 }
 0x119   : > { %v1273_v35 = vpop.eup %1272  ;;  %1292 = vrcp.f32 %v648_v26  ;;  %v651_v36 = vadd.f32 1.0, %v1271_v17 }
 0x11a   : > { %v1275_v42 = vpop.eup %1274  ;;  %1294 = vrcp.f32 %v635_v30  ;;  %v633_v33 = vadd.f32 1.0, %v1273_v35 }
 0x11b   : > { %v1277_v40 = vpop.eup %1276  ;;  %1296 = vrcp.f32 %v651_v36  ;;  %v649_v49 = vadd.f32 1.0, %v1275_v42 }
 0x11c   : > { %v1279_v52 = vpop.eup %1278  ;;  %1298 = vrcp.f32 %v633_v33  ;;  %v638_v38 = vadd.f32 1.0, %v1277_v40 }
 0x11d   : > { %v1281_v53 = vpop.eup %1280  ;;  %1300 = vrcp.f32 %v649_v49  ;;  %v654_v57 = vadd.f32 1.0, %v1279_v52 }
 0x11e   : > { %v1283_v61 = vpop.eup %1282  ;;  %v743_v59 = vmul.f32 %v1281_v53, %v1475_v16  ;;  %1302 = vrcp.f32 %v638_v38 }
 0x11f   : > { %v1285_v63 = vpop.eup %1284  ;;  %v725_v62 = vmul.f32 %v1283_v61, %v1478_v21  ;;  %1304 = vrcp.f32 %v654_v57 }
 0x120   : > { %v1287_v0 = vpop.eup %1286  ;;  %v1103_v1 = vpack.c.bf16 %v743_v59, %v743_v59  ;;  %v741_v4 = vmul.f32 %v1285_v63, %v1481_v28  ;;  %1306 = vpow2.f32 %v1026_v55 }
 0x121   : > { %v1289_v3 = vpop.eup %1288  ;;  %v1085_v16 = vpack.c.bf16 %v725_v62, %v725_v62  ;;  %v730_v47 = vmul.f32 %v1287_v0, %v1484_v31  ;;  %1308 = vpow2.f32 %v1042_v58 }
 0x122   : > { %v1291_v21 = vpop.eup %1290  ;;  %904 = vst.msk [vmem:[%s1525_s29 + $0x5c] sm:$0xf] %vm880_vm1, %v1103_v1  ;;  %v1101_v6 = vpack.c.bf16 %v741_v4, %v741_v4  ;;  %v746_v8 = vmul.f32 %v1289_v3, %v1488_v37  ;;  %1310 = vpow2.f32 %v1029_v60 }
 0x123   : > { %v1293_v28 = vpop.eup %1292  ;;  %886 = vst.msk [vmem:[%s1525_s29 + $0x14] sm:$0xf] %vm880_vm1, %v1085_v16  ;;  %v1090_v50 = vpack.c.bf16 %v730_v47, %v730_v47  ;;  %v728_v9 = vmul.f32 %v1291_v21, %v1492_v44  ;;  %1312 = vpow2.f32 %v1045_v46 }
 0x124   : > { %v1295_v31 = vpop.eup %1294  ;;  %902 = vst.msk [vmem:[%s1525_s29 + $0x54] sm:$0xf] %vm880_vm1, %v1101_v6  ;;  %v1106_v11 = vpack.c.bf16 %v746_v8, %v746_v8  ;;  %v744_v12 = vmul.f32 %v1293_v28, %v1498_v54  ;;  %1314 = vpow2.f32 %v1027_v19 }
 0x125   : > { %v1297_v51 = vpop.eup %1296  ;;  %891 = vst.msk [vmem:[%s1525_s29 + $0x28] sm:$0xf] %vm880_vm1, %v1090_v50  ;;  %v1088_v37 = vpack.c.bf16 %v728_v9, %v728_v9  ;;  %v731_v14 = vmul.f32 %v1295_v31, %v1511_v2  ;;  %1316 = vpow2.f32 %v1043_v5 }
 0x126   : > { %v1299_v10 = vpop.eup %1298  ;;  %907 = vst.msk [vmem:[%s1525_s29 + $0x68] sm:$0xf] %vm880_vm1, %v1106_v11  ;;  %v1104_v44 = vpack.c.bf16 %v744_v12, %v744_v12  ;;  %v747_v18 = vmul.f32 %v1297_v51, %v1518_v7 }
 0x127   : > { %v1301_v56 = vpop.eup %1300  ;;  %889 = vst.msk [vmem:[%s1525_s29 + $0x20] sm:$0xf] %vm880_vm1, %v1088_v37  ;;  %v1091_v54 = vpack.c.bf16 %v731_v14, %v731_v14  ;;  %v729_v20 = vmul.f32 %v1299_v10, %v1530_v22 }
 0x128   : > { %v1303_v24 = vpop.eup %1302  ;;  %905 = vst.msk [vmem:[%s1525_s29 + $0x60] sm:$0xf] %vm880_vm1, %v1104_v44  ;;  %v1107_v2 = vpack.c.bf16 %v747_v18, %v747_v18  ;;  %v745_v23 = vmul.f32 %v1301_v56, %v1534_v15 }
 0x129   : > { %v1305_v25 = vpop.eup %1304  ;;  %892 = vst.msk [vmem:[%s1525_s29 + $0x2c] sm:$0xf] %vm880_vm1, %v1091_v54  ;;  %v1089_v13 = vpack.c.bf16 %v729_v20, %v729_v20  ;;  %v734_v7 = vmul.f32 %v1303_v24, %v1546_v34 }
 0x12a   : > { %v1307_v29 = vpop.eup %1306  ;;  %908 = vst.msk [vmem:[%s1525_s29 + $0x6c] sm:$0xf] %vm880_vm1, %v1107_v2  ;;  %v1105_v26 = vpack.c.bf16 %v745_v23, %v745_v23  ;;  %v750_v22 = vmul.f32 %v1305_v25, %v1552_v41 }
 0x12b   : > { %v1309_v17 = vpop.eup %1308  ;;  %890 = vst.msk [vmem:[%s1525_s29 + $0x24] sm:$0xf] %vm880_vm1, %v1089_v13  ;;  %v1094_v30 = vpack.c.bf16 %v734_v7, %v734_v7  ;;  %v636_v35 = vadd.f32 1.0, %v1307_v29 }
 0x12c   : > { %v1311_v15 = vpop.eup %1310  ;;  %906 = vst.msk [vmem:[%s1525_s29 + $0x64] sm:$0xf] %vm880_vm1, %v1105_v26  ;;  %v1110_v36 = vpack.c.bf16 %v750_v22, %v750_v22  ;;  %v652_v42 = vadd.f32 1.0, %v1309_v17 }
 0x12d   : > { %v1313_v33 = vpop.eup %1312  ;;  %895 = vst.msk [vmem:[%s1525_s29 + $0x38] sm:$0xf] %vm880_vm1, %v1094_v30  ;;  %1318 = vrcp.f32 %v636_v35  ;;  %v639_v34 = vadd.f32 1.0, %v1311_v15 }
 0x12e   : > { %v1315_v40 = vpop.eup %1314  ;;  %911 = vst.msk [vmem:[%s1525_s29 + $0x78] sm:$0xf] %vm880_vm1, %v1110_v36  ;;  %1320 = vrcp.f32 %v652_v42  ;;  %v655_v41 = vadd.f32 1.0, %v1313_v33 }
 0x12f   : > { %v1317_v49 = vpop.eup %1316  ;;  %1322 = vrcp.f32 %v639_v34  ;;  %v637_v52 = vadd.f32 1.0, %v1315_v40 }
 0x130   : > { %1324 = vrcp.f32 %v655_v41  ;;  %v653_v38 = vadd.f32 1.0, %v1317_v49 }
 0x131   : > { %1326 = vrcp.f32 %v637_v52 }
 0x132   : > { %1328 = vrcp.f32 %v653_v38 }
 0x137   : > { %v1319_v55 = vpop.eup %1318 }
 0x138   : > { %v1321_v53 = vpop.eup %1320  ;;  %v732_v57 = vmul.f32 %v1319_v55, %v1586_v27 }
 0x139   : > { %v1323_v58 = vpop.eup %1322  ;;  %v748_v61 = vmul.f32 %v1321_v53, %v1590_v32 }
 0x13a   : > { %v1325_v59 = vpop.eup %1324  ;;  %v1092_v60 = vpack.c.bf16 %v732_v57, %v732_v57  ;;  %v735_v63 = vmul.f32 %v1323_v58, %v1594_v43 }
 0x13b   : > { %v1327_v62 = vpop.eup %1326  ;;  %v1108_v46 = vpack.c.bf16 %v748_v61, %v748_v61  ;;  %v751_v0 = vmul.f32 %v1325_v59, %v1598_v48 }
 0x13c   : > { %v1329_v1 = vpop.eup %1328  ;;  %893 = vst.msk [vmem:[%s1525_s29 + $0x30] sm:$0xf] %vm880_vm1, %v1092_v60  ;;  %v1095_v4 = vpack.c.bf16 %v735_v63, %v735_v63  ;;  %v733_v27 = vmul.f32 %v1327_v62, %v1603_v45 }
 0x13d   : > { %909 = vst.msk [vmem:[%s1525_s29 + $0x70] sm:$0xf] %vm880_vm1, %v1108_v46  ;;  %v1111_v32 = vpack.c.bf16 %v751_v0, %v751_v0  ;;  %v749_v19 = vmul.f32 %v1329_v1, %v1608_v39 }
 0x13e   : > { %896 = vst.msk [vmem:[%s1525_s29 + $0x3c] sm:$0xf] %vm880_vm1, %v1095_v4  ;;  %v1093_v3 = vpack.c.bf16 %v733_v27, %v733_v27 }
 0x13f   : > { %912 = vst.msk [vmem:[%s1525_s29 + $0x7c] sm:$0xf] %vm880_vm1, %v1111_v32  ;;  %v1109_v43 = vpack.c.bf16 %v749_v19, %v749_v19 }
 0x140   : > { %894 = vst.msk [vmem:[%s1525_s29 + $0x34] sm:$0xf] %vm880_vm1, %v1093_v3 }
 0x141   : > { %910 = vst.msk [vmem:[%s1525_s29 + $0x74] sm:$0xf] %vm880_vm1, %v1109_v43 }
 0x142 PF: > { %s13_s12 = sadd.s32 1, %s1336_s12  }
 0x143   : > { %p10_p4 = scmp.ge.s32.totalorder %s13_s12, 4  }
 0x145   :  { %12 = sbr.rel (!%p10_p4) target bundleno = 1 (0x1), region = 62 }

// kernel: svhn_encoder.5
= control target key start
LH: loop header
LB: loop body
LE: loop exit
PB: predicated region body
PF: predicated region fallthrough
CT: control target
= control target key end

     0   :  { %vm840_vm0 = vcmask 519168   ;;  %s1599_s1 = inlined_call_operand.vmem [shape: bf16[512,64], index: 1, kind: input, shape index: {}]   ;;  %s1600_s0 = inlined_call_operand.vmem [shape: bf16[128,512], index: 0, kind: input, shape index: {}]   ;;  %s1601_s2 = inlined_call_operand.vmem [shape: f32[1,64], index: 2, kind: input, shape index: {}]   ;;  %s1602_s3 = inlined_call_operand.vmem [shape: bf16[128,64], index: 3, kind: output, shape index: {}]  }
   0x1   :  { %v1102_v0 = vld [vmem:[%s1599_s1 + $0x40] sm:$0xff]   ;;  %v1106_v4 = vld [vmem:[%s1599_s1 + $0x48] sm:$0xff]   ;;  %v1110_v8 = vld [vmem:[%s1599_s1 + $0x50] sm:$0xff]  }
   0x2   :  { %v1103_v1 = vld [vmem:[%s1599_s1 + $0xc0] sm:$0xff]   ;;  %974 = vmatprep.subr.bf16.mxu0 %v1102_v0  ;;  %v1107_v5 = vld [vmem:[%s1599_s1 + $0xc8] sm:$0xff]   ;;  %v1111_v9 = vld [vmem:[%s1599_s1 + $0xd0] sm:$0xff]  }
   0x3   :  { %v1104_v2 = vld [vmem:[%s1599_s1] sm:$0xff]   ;;  %1038 = vmatprep.subr.bf16.mxu1 %v1103_v1  ;;  %v1108_v6 = vld [vmem:[%s1599_s1 + $0x8] sm:$0xff]   ;;  %v1112_v10 = vld [vmem:[%s1599_s1 + $0x10] sm:$0xff]  }
   0x4   :  { %v1105_v3 = vld [vmem:[%s1599_s1 + $0x80] sm:$0xff]   ;;  %975 = vmatpush3.bf16.msra.mxu0 %v1104_v2  ;;  %v1109_v7 = vld [vmem:[%s1599_s1 + $0x88] sm:$0xff]   ;;  %v1113_v11 = vld [vmem:[%s1599_s1 + $0x90] sm:$0xff]  }
   0x5   :  { %1039 = vmatpush3.bf16.msra.mxu1 %v1105_v3  ;;  %976 = vmatprep.subr.bf16.mxu0 %v1106_v4  ;;  %v1114_v12 = vld [vmem:[%s1599_s1 + $0x58] sm:$0xff]   ;;  %v1118_v16 = vld [vmem:[%s1599_s1 + $0x60] sm:$0xff]   ;;  %v1122_v20 = vld [vmem:[%s1599_s1 + $0x68] sm:$0xff]  }
   0x6   :  { %1040 = vmatprep.subr.bf16.mxu1 %v1107_v5  ;;  %v1115_v13 = vld [vmem:[%s1599_s1 + $0xd8] sm:$0xff]   ;;  %v1119_v17 = vld [vmem:[%s1599_s1 + $0xe0] sm:$0xff]   ;;  %v1123_v21 = vld [vmem:[%s1599_s1 + $0xe8] sm:$0xff]  }
   0x7   :  { %v1116_v14 = vld [vmem:[%s1599_s1 + $0x18] sm:$0xff]   ;;  %v1120_v18 = vld [vmem:[%s1599_s1 + $0x20] sm:$0xff]   ;;  %v1124_v22 = vld [vmem:[%s1599_s1 + $0x28] sm:$0xff]  }
   0x8   :  { %977 = vmatpush3.bf16.msra.mxu0 %v1108_v6  ;;  %v1117_v15 = vld [vmem:[%s1599_s1 + $0x98] sm:$0xff]   ;;  %v1121_v19 = vld [vmem:[%s1599_s1 + $0xa0] sm:$0xff]   ;;  %v1125_v23 = vld [vmem:[%s1599_s1 + $0xa8] sm:$0xff]  }
   0x9   :  { %1041 = vmatpush3.bf16.msra.mxu1 %v1109_v7  ;;  %978 = vmatprep.subr.bf16.mxu0 %v1110_v8  ;;  %v1126_v24 = vld [vmem:[%s1599_s1 + $0x70] sm:$0xff]   ;;  %v1130_v28 = vld [vmem:[%s1599_s1 + $0x78] sm:$0xff]   ;;  %v1461_v2 = vld [vmem:[%s1601_s2] ss:$0 sm:$0xff] }
   0xa   :  { %1042 = vmatprep.subr.bf16.mxu1 %v1111_v9  ;;  %v1127_v25 = vld [vmem:[%s1599_s1 + $0xf0] sm:$0xff]   ;;  %v1131_v29 = vld [vmem:[%s1599_s1 + $0xf8] sm:$0xff]  }
   0xb   :  { %v1128_v26 = vld [vmem:[%s1599_s1 + $0x30] sm:$0xff]   ;;  %v1132_v30 = vld [vmem:[%s1599_s1 + $0x38] sm:$0xff]  }
   0xc   :  { %979 = vmatpush3.bf16.msra.mxu0 %v1112_v10  ;;  %v1129_v27 = vld [vmem:[%s1599_s1 + $0xb0] sm:$0xff]   ;;  %v1133_v31 = vld [vmem:[%s1599_s1 + $0xb8] sm:$0xff]  }
   0xd   :  { %1043 = vmatpush3.bf16.msra.mxu1 %v1113_v11  ;;  %980 = vmatprep.subr.bf16.mxu0 %v1114_v12  ;;  %v1134_v32 = vld [vmem:[%s1600_s0] ss:$16 sps:$4 sm:$0xff]   ;;  %v1136_v33 = vld [vmem:[%s1600_s0 + $0x4] ss:$16 sps:$4 sm:$0xff]   ;;  %v1137_v34 = vld [vmem:[%s1600_s0 + $0x8] ss:$16 sps:$4 sm:$0xff]  }
   0xe   :  { %1044 = vmatprep.subr.bf16.mxu1 %v1115_v13  ;;  %v1139_v35 = vld [vmem:[%s1600_s0 + $0xc] ss:$16 sps:$4 sm:$0xff]   ;;  %502 = vmatprep.mubr.bf16.mxu0 %v1136_v33  ;;  %v1140_v36 = vld [vmem:[%s1600_s0 + $0x24] ss:$16 sps:$4 sm:$0xff]   ;;  %v1144_v38 = vld [vmem:[%s1600_s0 + $0x20] ss:$16 sps:$4 sm:$0xff]  }
   0xf   :  { %599 = vmatprep.mubr.bf16.mxu1 %v1139_v35  ;;  %v1142_v37 = vld [vmem:[%s1600_s0 + $0x2c] ss:$16 sps:$4 sm:$0xff]   ;;  %v1145_v39 = vld [vmem:[%s1600_s0 + $0x28] ss:$16 sps:$4 sm:$0xff]   ;;  %v1146_v40 = vld [vmem:[%s1600_s0 + $0x44] ss:$16 sps:$4 sm:$0xff]  }
  0x10   :  { %981 = vmatpush3.bf16.msra.mxu0 %v1116_v14  ;;  %v1148_v41 = vld [vmem:[%s1600_s0 + $0x4c] ss:$16 sps:$4 sm:$0xff]   ;;  %v1150_v42 = vld [vmem:[%s1600_s0 + $0x40] ss:$16 sps:$4 sm:$0xff]   ;;  %v1151_v43 = vld [vmem:[%s1600_s0 + $0x48] ss:$16 sps:$4 sm:$0xff]  }
  0x11   :  { %1045 = vmatpush3.bf16.msra.mxu1 %v1117_v15  ;;  %982 = vmatprep.subr.bf16.mxu0 %v1118_v16  ;;  %v1152_v44 = vld [vmem:[%s1600_s0 + $0x64] ss:$16 sps:$4 sm:$0xff]   ;;  %v1154_v45 = vld [vmem:[%s1600_s0 + $0x6c] ss:$16 sps:$4 sm:$0xff]   ;;  %v1156_v46 = vld [vmem:[%s1600_s0 + $0x60] ss:$16 sps:$4 sm:$0xff]  }
  0x12   :  { %1046 = vmatprep.subr.bf16.mxu1 %v1119_v17  ;;  %v1157_v47 = vld [vmem:[%s1600_s0 + $0x68] ss:$16 sps:$4 sm:$0xff]   ;;  %v1158_v48 = vld [vmem:[%s1600_s0 + $0x84] ss:$16 sps:$4 sm:$0xff]   ;;  %v1160_v49 = vld [vmem:[%s1600_s0 + $0x8c] ss:$16 sps:$4 sm:$0xff]  }
  0x13   :  { %v1162_v50 = vld [vmem:[%s1600_s0 + $0x80] ss:$16 sps:$4 sm:$0xff]   ;;  %v1163_v51 = vld [vmem:[%s1600_s0 + $0x88] ss:$16 sps:$4 sm:$0xff]   ;;  %v1164_v52 = vld [vmem:[%s1600_s0 + $0xa4] ss:$16 sps:$4 sm:$0xff]  }
  0x14   :  { %983 = vmatpush3.bf16.msra.mxu0 %v1120_v18  ;;  %v1166_v53 = vld [vmem:[%s1600_s0 + $0xac] ss:$16 sps:$4 sm:$0xff]   ;;  %v1168_v54 = vld [vmem:[%s1600_s0 + $0xa0] ss:$16 sps:$4 sm:$0xff]   ;;  %v1169_v55 = vld [vmem:[%s1600_s0 + $0xa8] ss:$16 sps:$4 sm:$0xff]  }
  0x15   :  { %1047 = vmatpush3.bf16.msra.mxu1 %v1121_v19  ;;  %984 = vmatprep.subr.bf16.mxu0 %v1122_v20  ;;  %v1170_v56 = vld [vmem:[%s1600_s0 + $0xc4] ss:$16 sps:$4 sm:$0xff]   ;;  %v1172_v57 = vld [vmem:[%s1600_s0 + $0xcc] ss:$16 sps:$4 sm:$0xff]   ;;  %v1174_v58 = vld [vmem:[%s1600_s0 + $0xc0] ss:$16 sps:$4 sm:$0xff]  }
  0x16   :  { %1048 = vmatprep.subr.bf16.mxu1 %v1123_v21  ;;  %v1175_v59 = vld [vmem:[%s1600_s0 + $0xc8] ss:$16 sps:$4 sm:$0xff]   ;;  %v1176_v60 = vld [vmem:[%s1600_s0 + $0xe4] ss:$16 sps:$4 sm:$0xff]   ;;  %v1178_v61 = vld [vmem:[%s1600_s0 + $0xec] ss:$16 sps:$4 sm:$0xff]  }
  0x17   :  { %v1180_v62 = vld [vmem:[%s1600_s0 + $0xe0] ss:$16 sps:$4 sm:$0xff]   ;;  %v1181_v63 = vld [vmem:[%s1600_s0 + $0xe8] ss:$16 sps:$4 sm:$0xff]  }
  0x18   :  { %985 = vmatpush3.bf16.msra.mxu0 %v1124_v22 }
  0x19   :  { %1049 = vmatpush3.bf16.msra.mxu1 %v1125_v23  ;;  %986 = vmatprep.subr.bf16.mxu0 %v1126_v24 }
  0x1a   :  { %1050 = vmatprep.subr.bf16.mxu1 %v1127_v25 }
  0x1c   :  { %987 = vmatpush3.bf16.msra.mxu0 %v1128_v26 }
  0x1d   :  { %1051 = vmatpush3.bf16.msra.mxu1 %v1129_v27  ;;  %988 = vmatprep.subr.bf16.mxu0 %v1130_v28 }
  0x1e   :  { %1052 = vmatprep.subr.bf16.mxu1 %v1131_v29 }
  0x20   :  { %989 = vmatpush3.bf16.msra.mxu0 %v1132_v30 }
  0x21   :  { %1053 = vmatpush3.bf16.msra.mxu1 %v1133_v31 }
  0x23   :  { %503 = vmatmul.mubr.bf16.vlgmr.msra.gmra.mrb[0].mxu0 %v1134_v32 }
  0x24   :  { %600 = vmatmul.mubr.bf16.vlgmr.msra.gmra.mrb[0].mxu1 %v1137_v34  ;;  %510 = vmatprep.mubr.bf16.mxu0 %v1140_v36 }
  0x25   :  { %607 = vmatprep.mubr.bf16.mxu1 %v1142_v37 }
  0x2b   :  { %511 = vmatmul.mubr.bf16.gmra.mrb[4].mxu0 %v1144_v38 }
  0x2c   :  { %608 = vmatmul.mubr.bf16.gmra.mrb[4].mxu1 %v1145_v39  ;;  %518 = vmatprep.mubr.bf16.mxu0 %v1146_v40 }
  0x2d   :  { %615 = vmatprep.mubr.bf16.mxu1 %v1148_v41 }
  0x33   :  { %519 = vmatmul.mubr.bf16.gmra.mrb[8].mxu0 %v1150_v42 }
  0x34   :  { %616 = vmatmul.mubr.bf16.gmra.mrb[8].mxu1 %v1151_v43  ;;  %526 = vmatprep.mubr.bf16.mxu0 %v1152_v44 }
  0x35   :  { %623 = vmatprep.mubr.bf16.mxu1 %v1154_v45 }
  0x3b   :  { %527 = vmatmul.mubr.bf16.gmra.mrb[12].mxu0 %v1156_v46 }
  0x3c   :  { %624 = vmatmul.mubr.bf16.gmra.mrb[12].mxu1 %v1157_v47  ;;  %534 = vmatprep.mubr.bf16.mxu0 %v1158_v48 }
  0x3d   :  { %631 = vmatprep.mubr.bf16.mxu1 %v1160_v49 }
  0x43   :  { %535 = vmatmul.mubr.bf16.gmra.mrb[16].mxu0 %v1162_v50 }
  0x44   :  { %632 = vmatmul.mubr.bf16.gmra.mrb[16].mxu1 %v1163_v51  ;;  %542 = vmatprep.mubr.bf16.mxu0 %v1164_v52 }
  0x45   :  { %639 = vmatprep.mubr.bf16.mxu1 %v1166_v53 }
  0x4b   :  { %543 = vmatmul.mubr.bf16.gmra.mrb[20].mxu0 %v1168_v54 }
  0x4c   :  { %640 = vmatmul.mubr.bf16.gmra.mrb[20].mxu1 %v1169_v55  ;;  %550 = vmatprep.mubr.bf16.mxu0 %v1170_v56 }
  0x4d   :  { %647 = vmatprep.mubr.bf16.mxu1 %v1172_v57 }
  0x53   :  { %551 = vmatmul.mubr.bf16.gmra.mrb[24].mxu0 %v1174_v58 }
  0x54   :  { %648 = vmatmul.mubr.bf16.gmra.mrb[24].mxu1 %v1175_v59  ;;  %558 = vmatprep.mubr.bf16.mxu0 %v1176_v60 }
  0x55   :  { %655 = vmatprep.mubr.bf16.mxu1 %v1178_v61 }
  0x5b   :  { %559 = vmatmul.mubr.bf16.gmra.mrb[28].mxu0 %v1180_v62 }
  0x5c   :  { %656 = vmatmul.mubr.bf16.gmra.mrb[28].mxu1 %v1181_v63 }
  0xf6   :  { %v990_v0 = vpop.f32.mrb[0].mxu0 }
  0xf7   :  { %v1054_v1 = vpop.f32.mrb[0].mxu1  ;;  %v991_v3 = vpop.f32.mrb[1].mxu0 }
  0xf8   :  { %v992_v4 = vadd.f32 %v991_v3, %v990_v0  ;;  %v1055_v5 = vpop.f32.mrb[1].mxu1  ;;  %v993_v6 = vpop.f32.mrb[2].mxu0 }
  0xf9   :  { %v1056_v7 = vadd.f32 %v1055_v5, %v1054_v1  ;;  %v1057_v8 = vpop.f32.mrb[2].mxu1  ;;  %v994_v9 = vpop.f32.mrb[3].mxu0 }
  0xfa   :  { %v505_v10 = vadd.f32 %v992_v4, %v1461_v2  ;;  %v995_v11 = vadd.f32 %v994_v9, %v993_v6  ;;  %v1058_v12 = vpop.f32.mrb[3].mxu1 }
  0xfb   :  { %v1059_v13 = vadd.f32 %v1058_v12, %v1057_v8 }
  0xfc   :  { %v1464_v14 = vadd.f32 %v1056_v7, %v505_v10  ;;  %v508_v15 = vadd.f32 %v995_v11, %v1461_v2 }
  0xfe   :  { %v926_v16 = vmul.f32 -1.442695, %v1464_v14  ;;  %v1468_v17 = vadd.f32 %v1059_v13, %v508_v15  ;;  %v996_v18 = vpop.f32.mrb[4].mxu0 }
  0xff   :  { %v1060_v19 = vpop.f32.mrb[4].mxu1  ;;  %v997_v20 = vpop.f32.mrb[5].mxu0 }
 0x100   :  { %1182 = vpow2.f32 %v926_v16  ;;  %v927_v21 = vmul.f32 -1.442695, %v1468_v17  ;;  %v998_v22 = vadd.f32 %v997_v20, %v996_v18  ;;  %v1061_v23 = vpop.f32.mrb[5].mxu1  ;;  %v999_v24 = vpop.f32.mrb[6].mxu0 }
 0x101   :  { %v1062_v25 = vadd.f32 %v1061_v23, %v1060_v19  ;;  %v1063_v26 = vpop.f32.mrb[6].mxu1  ;;  %v1000_v27 = vpop.f32.mrb[7].mxu0 }
 0x102   :  { %1184 = vpow2.f32 %v927_v21  ;;  %v513_v28 = vadd.f32 %v998_v22, %v1461_v2  ;;  %v1001_v29 = vadd.f32 %v1000_v27, %v999_v24  ;;  %v1064_v30 = vpop.f32.mrb[7].mxu1 }
 0x103   :  { %v1065_v31 = vadd.f32 %v1064_v30, %v1063_v26 }
 0x104   :  { %v1472_v32 = vadd.f32 %v1062_v25, %v513_v28  ;;  %v516_v33 = vadd.f32 %v1001_v29, %v1461_v2 }
 0x106   :  { %v928_v34 = vmul.f32 -1.442695, %v1472_v32  ;;  %v1476_v35 = vadd.f32 %v1065_v31, %v516_v33  ;;  %v1002_v36 = vpop.f32.mrb[8].mxu0 }
 0x107   :  { %v1066_v37 = vpop.f32.mrb[8].mxu1  ;;  %v1003_v38 = vpop.f32.mrb[9].mxu0 }
 0x108   :  { %1186 = vpow2.f32 %v928_v34  ;;  %v929_v39 = vmul.f32 -1.442695, %v1476_v35  ;;  %v1004_v40 = vadd.f32 %v1003_v38, %v1002_v36  ;;  %v1067_v41 = vpop.f32.mrb[9].mxu1  ;;  %v1005_v42 = vpop.f32.mrb[10].mxu0 }
 0x109   :  { %v1068_v43 = vadd.f32 %v1067_v41, %v1066_v37  ;;  %v1069_v44 = vpop.f32.mrb[10].mxu1  ;;  %v1006_v45 = vpop.f32.mrb[11].mxu0 }
 0x10a   :  { %v1183_v46 = vpop.eup %1182  ;;  %1188 = vpow2.f32 %v929_v39  ;;  %v521_v47 = vadd.f32 %v1004_v40, %v1461_v2  ;;  %v1007_v48 = vadd.f32 %v1006_v45, %v1005_v42  ;;  %v1070_v49 = vpop.f32.mrb[11].mxu1 }
 0x10b   :  { %v712_v50 = vadd.f32 1.0, %v1183_v46  ;;  %v1071_v51 = vadd.f32 %v1070_v49, %v1069_v44 }
 0x10c   :  { %v1185_v52 = vpop.eup %1184  ;;  %v1480_v53 = vadd.f32 %v1068_v43, %v521_v47  ;;  %v524_v54 = vadd.f32 %v1007_v48, %v1461_v2 }
 0x10d   :  { %1190 = vrcp.f32 %v712_v50  ;;  %v713_v55 = vadd.f32 1.0, %v1185_v52 }
 0x10e   :  { %v930_v56 = vmul.f32 -1.442695, %v1480_v53  ;;  %v1484_v57 = vadd.f32 %v1071_v51, %v524_v54  ;;  %v1008_v58 = vpop.f32.mrb[12].mxu0 }
 0x10f   :  { %1192 = vrcp.f32 %v713_v55  ;;  %v1072_v59 = vpop.f32.mrb[12].mxu1  ;;  %v1009_v60 = vpop.f32.mrb[13].mxu0 }
 0x110   :  { %1194 = vpow2.f32 %v930_v56  ;;  %v931_v61 = vmul.f32 -1.442695, %v1484_v57  ;;  %v1010_v62 = vadd.f32 %v1009_v60, %v1008_v58  ;;  %v1073_v63 = vpop.f32.mrb[13].mxu1  ;;  %v1011_v0 = vpop.f32.mrb[14].mxu0 }
 0x111   :  { %v1074_v1 = vadd.f32 %v1073_v63, %v1072_v59  ;;  %v1075_v3 = vpop.f32.mrb[14].mxu1  ;;  %v1012_v4 = vpop.f32.mrb[15].mxu0 }
 0x112   :  { %v1187_v5 = vpop.eup %1186  ;;  %1196 = vpow2.f32 %v931_v61  ;;  %v529_v6 = vadd.f32 %v1010_v62, %v1461_v2  ;;  %v1013_v7 = vadd.f32 %v1012_v4, %v1011_v0  ;;  %v1076_v8 = vpop.f32.mrb[15].mxu1 }
 0x113   :  { %v714_v9 = vadd.f32 1.0, %v1187_v5  ;;  %v1077_v10 = vadd.f32 %v1076_v8, %v1075_v3 }
 0x114   :  { %v1189_v11 = vpop.eup %1188  ;;  %v1488_v12 = vadd.f32 %v1074_v1, %v529_v6  ;;  %v532_v13 = vadd.f32 %v1013_v7, %v1461_v2 }
 0x115   :  { %1198 = vrcp.f32 %v714_v9  ;;  %v715_v15 = vadd.f32 1.0, %v1189_v11 }
 0x116   :  { %v932_v16 = vmul.f32 -1.442695, %v1488_v12  ;;  %v1492_v18 = vadd.f32 %v1077_v10, %v532_v13  ;;  %v1014_v19 = vpop.f32.mrb[16].mxu0 }
 0x117   :  { %v1191_v20 = vpop.eup %1190  ;;  %1200 = vrcp.f32 %v715_v15  ;;  %v1078_v21 = vpop.f32.mrb[16].mxu1 }
 0x118   :  { %v1015_v22 = vpop.f32.mrb[17].mxu0  ;;  %v760_v23 = vmul.f32 %v1191_v20, %v1464_v14  ;;  %1202 = vpow2.f32 %v932_v16  ;;  %v933_v24 = vmul.f32 -1.442695, %v1492_v18  ;;  %v1079_v26 = vpop.f32.mrb[17].mxu1 }
 0x119   :  { %v1016_v25 = vadd.f32 %v1015_v22, %v1014_v19  ;;  %v1017_v27 = vpop.f32.mrb[18].mxu0  ;;  %v1193_v28 = vpop.eup %1192  ;;  %v1080_v29 = vadd.f32 %v1079_v26, %v1078_v21 }
 0x11a   :  { %v1081_v30 = vpop.f32.mrb[18].mxu1  ;;  %v1018_v31 = vpop.f32.mrb[19].mxu0  ;;  %v958_v34 = vpack.c.bf16 %v760_v23, %v760_v23  ;;  %v761_v36 = vmul.f32 %v1193_v28, %v1468_v17  ;;  %1204 = vpow2.f32 %v933_v24 }
 0x11b   :  { %v1195_v33 = vpop.eup %1194  ;;  %v537_v37 = vadd.f32 %v1016_v25, %v1461_v2  ;;  %v1082_v38 = vpop.f32.mrb[19].mxu1  ;;  %v1019_v39 = vadd.f32 %v1018_v31, %v1017_v27 }
 0x11c   :  { %v716_v14 = vadd.f32 1.0, %v1195_v33  ;;  %v1083_v40 = vadd.f32 %v1082_v38, %v1081_v30  ;;  %v1197_v41 = vpop.eup %1196  ;;  %841 = vst.msk [vmem:[%s1602_s3] sm:$0xf] %vm840_vm0, %v958_v34  ;;  %v959_v42 = vpack.c.bf16 %v761_v36, %v761_v36 }
 0x11d   :  { %v1502_v43 = vadd.f32 %v1080_v29, %v537_v37  ;;  %v717_v44 = vadd.f32 1.0, %v1197_v41  ;;  %v540_v17 = vadd.f32 %v1019_v39, %v1461_v2 }
 0x11e   :  { %1206 = vrcp.f32 %v716_v14  ;;  %842 = vst.msk [vmem:[%s1602_s3 + $0x4] sm:$0xf] %vm840_vm0, %v959_v42  ;;  %v1020_v46 = vpop.f32.mrb[20].mxu0 }
 0x11f   :  { %v934_v45 = vmul.f32 -1.442695, %v1502_v43  ;;  %v1199_v47 = vpop.eup %1198  ;;  %1208 = vrcp.f32 %v717_v44  ;;  %v1510_v48 = vadd.f32 %v1083_v40, %v540_v17  ;;  %v1084_v49 = vpop.f32.mrb[20].mxu1 }
 0x120   :  { %v1021_v50 = vpop.f32.mrb[21].mxu0  ;;  %v762_v51 = vmul.f32 %v1199_v47, %v1472_v32  ;;  %v1085_v54 = vpop.f32.mrb[21].mxu1 }
 0x121   :  { %1210 = vpow2.f32 %v934_v45  ;;  %v1022_v52 = vadd.f32 %v1021_v50, %v1020_v46  ;;  %v1023_v55 = vpop.f32.mrb[22].mxu0  ;;  %v1201_v56 = vpop.eup %1200  ;;  %v935_v58 = vmul.f32 -1.442695, %v1510_v48  ;;  %v1086_v59 = vadd.f32 %v1085_v54, %v1084_v49 }
 0x122   :  { %v1087_v60 = vpop.f32.mrb[22].mxu1  ;;  %v1024_v61 = vpop.f32.mrb[23].mxu0  ;;  %v960_v63 = vpack.c.bf16 %v762_v51, %v762_v51  ;;  %v763_v0 = vmul.f32 %v1201_v56, %v1476_v35 }
 0x123   :  { %v1203_v62 = vpop.eup %1202  ;;  %v545_v1 = vadd.f32 %v1022_v52, %v1461_v2  ;;  %v1025_v3 = vadd.f32 %v1024_v61, %v1023_v55  ;;  %v1088_v4 = vpop.f32.mrb[23].mxu1  ;;  %1212 = vpow2.f32 %v935_v58 }
 0x124   :  { %v718_v5 = vadd.f32 1.0, %v1203_v62  ;;  %v1089_v32 = vadd.f32 %v1088_v4, %v1087_v60  ;;  %v1205_v6 = vpop.eup %1204  ;;  %843 = vst.msk [vmem:[%s1602_s3 + $0x8] sm:$0xf] %vm840_vm0, %v960_v63  ;;  %v961_v7 = vpack.c.bf16 %v763_v0, %v763_v0 }
 0x125   :  { %v1520_v8 = vadd.f32 %v1086_v59, %v545_v1  ;;  %v548_v9 = vadd.f32 %v1025_v3, %v1461_v2  ;;  %v719_v35 = vadd.f32 1.0, %v1205_v6 }
 0x126   :  { %1214 = vrcp.f32 %v718_v5  ;;  %844 = vst.msk [vmem:[%s1602_s3 + $0xc] sm:$0xf] %vm840_vm0, %v961_v7  ;;  %v1026_v13 = vpop.f32.mrb[24].mxu0 }
 0x127   :  { %v936_v10 = vmul.f32 -1.442695, %v1520_v8  ;;  %v1528_v11 = vadd.f32 %v1089_v32, %v548_v9  ;;  %1216 = vrcp.f32 %v719_v35  ;;  %v1090_v16 = vpop.f32.mrb[24].mxu1  ;;  %v1027_v19 = vpop.f32.mrb[25].mxu0 }
 0x128   :  { %v1207_v15 = vpop.eup %1206  ;;  %v1028_v22 = vadd.f32 %v1027_v19, %v1026_v13  ;;  %v1091_v23 = vpop.f32.mrb[25].mxu1 }
 0x129   :  { %v764_v20 = vmul.f32 %v1207_v15, %v1480_v53  ;;  %1218 = vpow2.f32 %v936_v10  ;;  %v937_v21 = vmul.f32 -1.442695, %v1528_v11  ;;  %v1029_v24 = vpop.f32.mrb[26].mxu0  ;;  %v1209_v25 = vpop.eup %1208  ;;  %v1092_v26 = vadd.f32 %v1091_v23, %v1090_v16 }
 0x12a   :  { %v1093_v27 = vpop.f32.mrb[26].mxu1  ;;  %v1030_v28 = vpop.f32.mrb[27].mxu0  ;;  %v765_v31 = vmul.f32 %v1209_v25, %v1484_v57  ;;  %v553_v33 = vadd.f32 %v1028_v22, %v1461_v2 }
 0x12b   :  { %v1211_v29 = vpop.eup %1210  ;;  %v962_v30 = vpack.c.bf16 %v764_v20, %v764_v20  ;;  %1220 = vpow2.f32 %v937_v21  ;;  %v1094_v34 = vpop.f32.mrb[27].mxu1  ;;  %v1031_v53 = vadd.f32 %v1030_v28, %v1029_v24 }
 0x12c   :  { %v720_v36 = vadd.f32 1.0, %v1211_v29  ;;  %v1095_v37 = vadd.f32 %v1094_v34, %v1093_v27  ;;  %v963_v38 = vpack.c.bf16 %v765_v31, %v765_v31  ;;  %v1538_v14 = vadd.f32 %v1092_v26, %v553_v33 }
 0x12d   :  { %845 = vst.msk [vmem:[%s1602_s3 + $0x10] sm:$0xf] %vm840_vm0, %v962_v30  ;;  %v1213_v39 = vpop.eup %1212  ;;  %v556_v40 = vadd.f32 %v1031_v53, %v1461_v2 }
 0x12e   :  { %1222 = vrcp.f32 %v720_v36  ;;  %846 = vst.msk [vmem:[%s1602_s3 + $0x14] sm:$0xf] %vm840_vm0, %v963_v38  ;;  %v721_v57 = vadd.f32 1.0, %v1213_v39  ;;  %v938_v41 = vmul.f32 -1.442695, %v1538_v14  ;;  %v1032_v42 = vpop.f32.mrb[28].mxu0 }
 0x12f   :  { %v1546_v17 = vadd.f32 %v1095_v37, %v556_v40  ;;  %v1096_v45 = vpop.f32.mrb[28].mxu1  ;;  %v1033_v46 = vpop.f32.mrb[29].mxu0 }
 0x130   :  { %v1215_v44 = vpop.eup %1214  ;;  %1224 = vrcp.f32 %v721_v57  ;;  %v1034_v49 = vadd.f32 %v1033_v46, %v1032_v42  ;;  %v1097_v50 = vpop.f32.mrb[29].mxu1 }
 0x131   :  { %v766_v47 = vmul.f32 %v1215_v44, %v1488_v12  ;;  %v1035_v51 = vpop.f32.mrb[30].mxu0  ;;  %v1217_v52 = vpop.eup %1216  ;;  %1226 = vpow2.f32 %v938_v41  ;;  %v939_v54 = vmul.f32 -1.442695, %v1546_v17  ;;  %v1098_v55 = vadd.f32 %v1097_v50, %v1096_v45 }
 0x132   :  { %v1099_v56 = vpop.f32.mrb[30].mxu1  ;;  %v1036_v58 = vpop.f32.mrb[31].mxu0  ;;  %v767_v61 = vmul.f32 %v1217_v52, %v1492_v18  ;;  %v561_v62 = vadd.f32 %v1034_v49, %v1461_v2 }
 0x133   :  { %v1219_v59 = vpop.eup %1218  ;;  %v964_v60 = vpack.c.bf16 %v766_v47, %v766_v47  ;;  %v1037_v63 = vadd.f32 %v1036_v58, %v1035_v51  ;;  %v1100_v0 = vpop.f32.mrb[31].mxu1  ;;  %1228 = vpow2.f32 %v939_v54 }
 0x134   :  { %v722_v12 = vadd.f32 1.0, %v1219_v59  ;;  %v1101_v1 = vadd.f32 %v1100_v0, %v1099_v56  ;;  %v965_v4 = vpack.c.bf16 %v767_v61, %v767_v61  ;;  %v658_v5 = vadd.f32 %v1098_v55, %v561_v62 }
 0x135   :  { %v1221_v3 = vpop.eup %1220  ;;  %847 = vst.msk [vmem:[%s1602_s3 + $0x18] sm:$0xf] %vm840_vm0, %v964_v60  ;;  %v564_v32 = vadd.f32 %v1037_v63, %v1461_v2 }
 0x136   :  { %1230 = vrcp.f32 %v722_v12  ;;  %v723_v6 = vadd.f32 1.0, %v1221_v3  ;;  %848 = vst.msk [vmem:[%s1602_s3 + $0x1c] sm:$0xf] %vm840_vm0, %v965_v4  ;;  %v940_v18 = vmul.f32 -1.442695, %v658_v5 }
 0x137   :  { %v661_v7 = vadd.f32 %v1101_v1, %v564_v32 }
 0x138   :  { %v1223_v9 = vpop.eup %1222  ;;  %1232 = vrcp.f32 %v723_v6 }
 0x139   :  { %v768_v35 = vmul.f32 %v1223_v9, %v1502_v43  ;;  %1234 = vpow2.f32 %v940_v18  ;;  %v941_v10 = vmul.f32 -1.442695, %v661_v7 }
 0x13a   :  { %v1225_v13 = vpop.eup %1224 }
 0x13b   :  { %v966_v15 = vpack.c.bf16 %v768_v35, %v768_v35  ;;  %1236 = vpow2.f32 %v941_v10  ;;  %v1227_v16 = vpop.eup %1226  ;;  %v769_v2 = vmul.f32 %v1225_v13, %v1510_v48 }
 0x13c   :  { %v724_v19 = vadd.f32 1.0, %v1227_v16 }
 0x13d   :  { %849 = vst.msk [vmem:[%s1602_s3 + $0x20] sm:$0xf] %vm840_vm0, %v966_v15  ;;  %v1229_v20 = vpop.eup %1228  ;;  %v967_v21 = vpack.c.bf16 %v769_v2, %v769_v2 }
 0x13e   :  { %1238 = vrcp.f32 %v724_v19  ;;  %v725_v22 = vadd.f32 1.0, %v1229_v20 }
 0x13f   :  { %850 = vst.msk [vmem:[%s1602_s3 + $0x24] sm:$0xf] %vm840_vm0, %v967_v21 }
 0x140   :  { %v1231_v23 = vpop.eup %1230  ;;  %1240 = vrcp.f32 %v725_v22 }
 0x141   :  { %v770_v43 = vmul.f32 %v1231_v23, %v1520_v8 }
 0x142   :  { %v1233_v48 = vpop.eup %1232 }
 0x143   :  { %v1235_v24 = vpop.eup %1234  ;;  %v968_v25 = vpack.c.bf16 %v770_v43, %v770_v43  ;;  %v771_v26 = vmul.f32 %v1233_v48, %v1528_v11 }
 0x144   :  { %v726_v27 = vadd.f32 1.0, %v1235_v24 }
 0x145   :  { %v1237_v28 = vpop.eup %1236  ;;  %851 = vst.msk [vmem:[%s1602_s3 + $0x28] sm:$0xf] %vm840_vm0, %v968_v25  ;;  %v969_v29 = vpack.c.bf16 %v771_v26, %v771_v26 }
 0x146   :  { %1242 = vrcp.f32 %v726_v27  ;;  %v727_v30 = vadd.f32 1.0, %v1237_v28 }
 0x147   :  { %852 = vst.msk [vmem:[%s1602_s3 + $0x2c] sm:$0xf] %vm840_vm0, %v969_v29 }
 0x148   :  { %1244 = vrcp.f32 %v727_v30  ;;  %v1239_v8 = vpop.eup %1238 }
 0x149   :  { %v772_v31 = vmul.f32 %v1239_v8, %v1538_v14 }
 0x14a   :  { %v1241_v11 = vpop.eup %1240 }
 0x14b   :  { %v970_v33 = vpack.c.bf16 %v772_v31, %v772_v31  ;;  %v773_v34 = vmul.f32 %v1241_v11, %v1546_v17 }
 0x14d   :  { %853 = vst.msk [vmem:[%s1602_s3 + $0x30] sm:$0xf] %vm840_vm0, %v970_v33  ;;  %v971_v36 = vpack.c.bf16 %v773_v34, %v773_v34 }
 0x14f   :  { %854 = vst.msk [vmem:[%s1602_s3 + $0x34] sm:$0xf] %vm840_vm0, %v971_v36 }
 0x150   :  { %v1243_v53 = vpop.eup %1242 }
 0x151   :  { %v774_v37 = vmul.f32 %v1243_v53, %v658_v5 }
 0x152   :  { %v1245_v38 = vpop.eup %1244 }
 0x153   :  { %v972_v39 = vpack.c.bf16 %v774_v37, %v774_v37  ;;  %v775_v14 = vmul.f32 %v1245_v38, %v661_v7 }
 0x155   :  { %855 = vst.msk [vmem:[%s1602_s3 + $0x38] sm:$0xf] %vm840_vm0, %v972_v39  ;;  %v973_v40 = vpack.c.bf16 %v775_v14, %v775_v14 }
 0x157   :  { %856 = vst.msk [vmem:[%s1602_s3 + $0x3c] sm:$0xf] %vm840_vm0, %v973_v40 }

// kernel: svhn_encoder.6
= control target key start
LH: loop header
LB: loop body
LE: loop exit
PB: predicated region body
PF: predicated region fallthrough
CT: control target
= control target key end

     0   :  { %s1443_s1 = inlined_call_operand.vmem [shape: bf16[1024,128], index: 1, kind: input, shape index: {}]   ;;  %s1444_s0 = inlined_call_operand.vmem [shape: bf16[32,1024], index: 0, kind: input, shape index: {}]   ;;  %s1445_s2 = inlined_call_operand.vmem [shape: f32[1,128], index: 2, kind: input, shape index: {}]   ;;  %s1446_s3 = inlined_call_operand.vmem [shape: bf16[32,128], index: 3, kind: output, shape index: {}]  }
   0x1   :  { %v1094_v0 = vld [vmem:[%s1443_s1 + $0x40] sm:$0xff]   ;;  %v1098_v4 = vld [vmem:[%s1443_s1 + $0x48] sm:$0xff]   ;;  %v1102_v8 = vld [vmem:[%s1443_s1 + $0x50] sm:$0xff]  }
   0x2   :  { %v1095_v1 = vld [vmem:[%s1443_s1 + $0xc0] sm:$0xff]   ;;  %982 = vmatprep.subr.bf16.mxu0 %v1094_v0  ;;  %v1099_v5 = vld [vmem:[%s1443_s1 + $0xc8] sm:$0xff]   ;;  %v1103_v9 = vld [vmem:[%s1443_s1 + $0xd0] sm:$0xff]  }
   0x3   :  { %v1096_v2 = vld [vmem:[%s1443_s1] sm:$0xff]   ;;  %1010 = vmatprep.subr.bf16.mxu1 %v1095_v1  ;;  %v1100_v6 = vld [vmem:[%s1443_s1 + $0x8] sm:$0xff]   ;;  %v1104_v10 = vld [vmem:[%s1443_s1 + $0x10] sm:$0xff]  }
   0x4   :  { %v1097_v3 = vld [vmem:[%s1443_s1 + $0x80] sm:$0xff]   ;;  %983 = vmatpush3.bf16.msra.mxu0 %v1096_v2  ;;  %v1101_v7 = vld [vmem:[%s1443_s1 + $0x88] sm:$0xff]   ;;  %v1105_v11 = vld [vmem:[%s1443_s1 + $0x90] sm:$0xff]  }
   0x5   :  { %1011 = vmatpush3.bf16.msra.mxu1 %v1097_v3  ;;  %984 = vmatprep.subr.bf16.mxu0 %v1098_v4  ;;  %v1106_v12 = vld [vmem:[%s1443_s1 + $0x58] sm:$0xff]   ;;  %v1110_v16 = vld [vmem:[%s1443_s1 + $0x60] sm:$0xff]   ;;  %v1114_v20 = vld [vmem:[%s1443_s1 + $0x68] sm:$0xff]  }
   0x6   :  { %1012 = vmatprep.subr.bf16.mxu1 %v1099_v5  ;;  %v1107_v13 = vld [vmem:[%s1443_s1 + $0xd8] sm:$0xff]   ;;  %v1111_v17 = vld [vmem:[%s1443_s1 + $0xe0] sm:$0xff]   ;;  %v1115_v21 = vld [vmem:[%s1443_s1 + $0xe8] sm:$0xff]  }
   0x7   :  { %v1108_v14 = vld [vmem:[%s1443_s1 + $0x18] sm:$0xff]   ;;  %v1112_v18 = vld [vmem:[%s1443_s1 + $0x20] sm:$0xff]   ;;  %v1116_v22 = vld [vmem:[%s1443_s1 + $0x28] sm:$0xff]  }
   0x8   :  { %985 = vmatpush3.bf16.msra.mxu0 %v1100_v6  ;;  %v1109_v15 = vld [vmem:[%s1443_s1 + $0x98] sm:$0xff]   ;;  %v1113_v19 = vld [vmem:[%s1443_s1 + $0xa0] sm:$0xff]   ;;  %v1117_v23 = vld [vmem:[%s1443_s1 + $0xa8] sm:$0xff]  }
   0x9   :  { %1013 = vmatpush3.bf16.msra.mxu1 %v1101_v7  ;;  %986 = vmatprep.subr.bf16.mxu0 %v1102_v8  ;;  %v1118_v24 = vld [vmem:[%s1443_s1 + $0x70] sm:$0xff]   ;;  %v1122_v28 = vld [vmem:[%s1443_s1 + $0x78] sm:$0xff]   ;;  %v15_v32 = vld [vmem:[%s1444_s0] sm:$0xff] }
   0xa   :  { %1014 = vmatprep.subr.bf16.mxu1 %v1103_v9  ;;  %v1119_v25 = vld [vmem:[%s1443_s1 + $0xf0] sm:$0xff]   ;;  %v1123_v29 = vld [vmem:[%s1443_s1 + $0xf8] sm:$0xff]   ;;  %v19_v33 = vld [vmem:[%s1444_s0 + $0x20] sm:$0xff] }
   0xb   :  { %v1120_v26 = vld [vmem:[%s1443_s1 + $0x30] sm:$0xff]   ;;  %v1124_v30 = vld [vmem:[%s1443_s1 + $0x38] sm:$0xff]   ;;  %v16_v34 = vld [vmem:[%s1444_s0 + $0x8] sm:$0xff]  ;;  %v879_v35 = vcombine.low %v15_v32, %v19_v33  ;;  %v880_v36 = vcombine.high %v15_v32, %v19_v33 }
   0xc   :  { %987 = vmatpush3.bf16.msra.mxu0 %v1104_v10  ;;  %v1121_v27 = vld [vmem:[%s1443_s1 + $0xb0] sm:$0xff]   ;;  %v1125_v31 = vld [vmem:[%s1443_s1 + $0xb8] sm:$0xff]   ;;  %v20_v37 = vld [vmem:[%s1444_s0 + $0x28] sm:$0xff] }
   0xd   :  { %1015 = vmatpush3.bf16.msra.mxu1 %v1105_v11  ;;  %988 = vmatprep.subr.bf16.mxu0 %v1106_v12  ;;  %v881_v38 = vcombine.low %v16_v34, %v20_v37  ;;  %v882_v39 = vcombine.high %v16_v34, %v20_v37  ;;  %v1126_v40 = vld [vmem:[%s1443_s1 + $0x140] sm:$0xff]   ;;  %v1130_v44 = vld [vmem:[%s1443_s1 + $0x148] sm:$0xff]   ;;  %v1134_v48 = vld [vmem:[%s1443_s1 + $0x150] sm:$0xff]  }
   0xe   :  { %1016 = vmatprep.subr.bf16.mxu1 %v1107_v13  ;;  %662 = vmatprep.mubr.bf16.mxu0 %v880_v36  ;;  %v1127_v41 = vld [vmem:[%s1443_s1 + $0x1c0] sm:$0xff]   ;;  %v1131_v45 = vld [vmem:[%s1443_s1 + $0x1c8] sm:$0xff]   ;;  %v1135_v49 = vld [vmem:[%s1443_s1 + $0x1d0] sm:$0xff]  }
   0xf   :  { %711 = vmatprep.mubr.bf16.mxu1 %v882_v39  ;;  %v1128_v42 = vld [vmem:[%s1443_s1 + $0x100] sm:$0xff]   ;;  %v1132_v46 = vld [vmem:[%s1443_s1 + $0x108] sm:$0xff]   ;;  %v1136_v50 = vld [vmem:[%s1443_s1 + $0x110] sm:$0xff]  }
  0x10   :  { %989 = vmatpush3.bf16.msra.mxu0 %v1108_v14  ;;  %v1129_v43 = vld [vmem:[%s1443_s1 + $0x180] sm:$0xff]   ;;  %v1133_v47 = vld [vmem:[%s1443_s1 + $0x188] sm:$0xff]   ;;  %v1137_v51 = vld [vmem:[%s1443_s1 + $0x190] sm:$0xff]  }
  0x11   :  { %1017 = vmatpush3.bf16.msra.mxu1 %v1109_v15  ;;  %990 = vmatprep.subr.bf16.mxu0 %v1110_v16  ;;  %v1138_v52 = vld [vmem:[%s1443_s1 + $0x158] sm:$0xff]   ;;  %v1142_v56 = vld [vmem:[%s1443_s1 + $0x160] sm:$0xff]   ;;  %v1146_v63 = vld [vmem:[%s1443_s1 + $0x168] sm:$0xff]  }
  0x12   :  { %1018 = vmatprep.subr.bf16.mxu1 %v1111_v17  ;;  %v1139_v53 = vld [vmem:[%s1443_s1 + $0x1d8] sm:$0xff]   ;;  %v1143_v57 = vld [vmem:[%s1443_s1 + $0x1e0] sm:$0xff]   ;;  %v1147_v1 = vld [vmem:[%s1443_s1 + $0x1e8] sm:$0xff]  }
  0x13   :  { %v1140_v54 = vld [vmem:[%s1443_s1 + $0x118] sm:$0xff]   ;;  %v1144_v58 = vld [vmem:[%s1443_s1 + $0x120] sm:$0xff]   ;;  %v1148_v2 = vld [vmem:[%s1443_s1 + $0x128] sm:$0xff]  }
  0x14   :  { %991 = vmatpush3.bf16.msra.mxu0 %v1112_v18  ;;  %v1141_v55 = vld [vmem:[%s1443_s1 + $0x198] sm:$0xff]   ;;  %v1145_v59 = vld [vmem:[%s1443_s1 + $0x1a0] sm:$0xff]   ;;  %v1149_v3 = vld [vmem:[%s1443_s1 + $0x1a8] sm:$0xff]  }
  0x15   :  { %1019 = vmatpush3.bf16.msra.mxu1 %v1113_v19  ;;  %992 = vmatprep.subr.bf16.mxu0 %v1114_v20  ;;  %v23_v60 = vld [vmem:[%s1444_s0 + $0x40] sm:$0xff]  ;;  %v24_v4 = vld [vmem:[%s1444_s0 + $0x48] sm:$0xff]  ;;  %v1150_v8 = vld [vmem:[%s1443_s1 + $0x170] sm:$0xff]  }
  0x16   :  { %1020 = vmatprep.subr.bf16.mxu1 %v1115_v21  ;;  %v27_v61 = vld [vmem:[%s1444_s0 + $0x60] sm:$0xff]  ;;  %v28_v5 = vld [vmem:[%s1444_s0 + $0x68] sm:$0xff]  ;;  %v1151_v9 = vld [vmem:[%s1443_s1 + $0x1f0] sm:$0xff]  }
  0x17   :  { %v888_v62 = vcombine.high %v23_v60, %v27_v61  ;;  %v887_v0 = vcombine.low %v23_v60, %v27_v61  ;;  %v890_v6 = vcombine.high %v24_v4, %v28_v5  ;;  %v889_v7 = vcombine.low %v24_v4, %v28_v5  ;;  %v1152_v10 = vld [vmem:[%s1443_s1 + $0x130] sm:$0xff]   ;;  %v1154_v12 = vld [vmem:[%s1443_s1 + $0x178] sm:$0xff]   ;;  %v878_v34 = vld [vmem:[%s1445_s2] ss:$0 sm:$0xff] }
  0x18   :  { %993 = vmatpush3.bf16.msra.mxu0 %v1116_v22  ;;  %v1153_v11 = vld [vmem:[%s1443_s1 + $0x1b0] sm:$0xff]   ;;  %v1155_v13 = vld [vmem:[%s1443_s1 + $0x1f8] sm:$0xff]  }
  0x19   :  { %1021 = vmatpush3.bf16.msra.mxu1 %v1117_v23  ;;  %994 = vmatprep.subr.bf16.mxu0 %v1118_v24  ;;  %v1156_v14 = vld [vmem:[%s1443_s1 + $0x138] sm:$0xff]   ;;  %v17_v16 = vld [vmem:[%s1444_s0 + $0x10] sm:$0xff] }
  0x1a   :  { %1022 = vmatprep.subr.bf16.mxu1 %v1119_v25  ;;  %v1157_v15 = vld [vmem:[%s1443_s1 + $0x1b8] sm:$0xff]   ;;  %v21_v17 = vld [vmem:[%s1444_s0 + $0x30] sm:$0xff] }
  0x1b   :  { %v18_v18 = vld [vmem:[%s1444_s0 + $0x18] sm:$0xff]  ;;  %v883_v20 = vcombine.low %v17_v16, %v21_v17  ;;  %v884_v21 = vcombine.high %v17_v16, %v21_v17  ;;  %v25_v24 = vld [vmem:[%s1444_s0 + $0x50] sm:$0xff] }
  0x1c   :  { %995 = vmatpush3.bf16.msra.mxu0 %v1120_v26  ;;  %v22_v19 = vld [vmem:[%s1444_s0 + $0x38] sm:$0xff]  ;;  %v29_v25 = vld [vmem:[%s1444_s0 + $0x70] sm:$0xff] }
  0x1d   :  { %1023 = vmatpush3.bf16.msra.mxu1 %v1121_v27  ;;  %996 = vmatprep.subr.bf16.mxu0 %v1122_v28  ;;  %v885_v22 = vcombine.low %v18_v18, %v22_v19  ;;  %v886_v23 = vcombine.high %v18_v18, %v22_v19  ;;  %v26_v26 = vld [vmem:[%s1444_s0 + $0x58] sm:$0xff]  ;;  %v892_v27 = vcombine.high %v25_v24, %v29_v25 }
  0x1e   :  { %1024 = vmatprep.subr.bf16.mxu1 %v1123_v29  ;;  %v30_v28 = vld [vmem:[%s1444_s0 + $0x78] sm:$0xff] }
  0x1f   :  { %v894_v29 = vcombine.high %v26_v26, %v30_v28 }
  0x20   :  { %997 = vmatpush3.bf16.msra.mxu0 %v1124_v30  ;;  %v891_v30 = vcombine.low %v25_v24, %v29_v25 }
  0x21   :  { %1025 = vmatpush3.bf16.msra.mxu1 %v1125_v31  ;;  %1038 = vmatprep.subr.bf16.mxu0 %v1126_v40  ;;  %v893_v31 = vcombine.low %v26_v26, %v30_v28 }
  0x22   :  { %1066 = vmatprep.subr.bf16.mxu1 %v1127_v41 }
  0x23   :  { %663 = vmatmul.mubr.bf16.vlgmr.msra.gmra.mrb[0].mxu0 %v879_v35 }
  0x24   :  { %712 = vmatmul.mubr.bf16.vlgmr.msra.gmra.mrb[0].mxu1 %v881_v38  ;;  %1039 = vmatpush3.bf16.msra.mxu0 %v1128_v42 }
  0x25   :  { %1067 = vmatpush3.bf16.msra.mxu1 %v1129_v43  ;;  %1040 = vmatprep.subr.bf16.mxu0 %v1130_v44 }
  0x26   :  { %1068 = vmatprep.subr.bf16.mxu1 %v1131_v45  ;;  %670 = vmatprep.mubr.bf16.mxu0 %v888_v62 }
  0x27   :  { %719 = vmatprep.mubr.bf16.mxu1 %v890_v6 }
  0x28   :  { %1041 = vmatpush3.bf16.msra.mxu0 %v1132_v46 }
  0x29   :  { %1069 = vmatpush3.bf16.msra.mxu1 %v1133_v47  ;;  %1042 = vmatprep.subr.bf16.mxu0 %v1134_v48 }
  0x2a   :  { %1070 = vmatprep.subr.bf16.mxu1 %v1135_v49 }
  0x2b   :  { %671 = vmatmul.mubr.bf16.gmra.mrb[4].mxu0 %v887_v0 }
  0x2c   :  { %1043 = vmatpush3.bf16.msra.mxu0 %v1136_v50  ;;  %720 = vmatmul.mubr.bf16.gmra.mrb[4].mxu1 %v889_v7 }
  0x2d   :  { %1071 = vmatpush3.bf16.msra.mxu1 %v1137_v51  ;;  %1044 = vmatprep.subr.bf16.mxu0 %v1138_v52 }
  0x2e   :  { %1072 = vmatprep.subr.bf16.mxu1 %v1139_v53  ;;  %760 = vmatprep.mubr.bf16.mxu0 %v884_v21 }
  0x2f   :  { %809 = vmatprep.mubr.bf16.mxu1 %v886_v23 }
  0x30   :  { %1045 = vmatpush3.bf16.msra.mxu0 %v1140_v54 }
  0x31   :  { %1073 = vmatpush3.bf16.msra.mxu1 %v1141_v55  ;;  %1046 = vmatprep.subr.bf16.mxu0 %v1142_v56 }
  0x32   :  { %1074 = vmatprep.subr.bf16.mxu1 %v1143_v57 }
  0x34   :  { %1047 = vmatpush3.bf16.msra.mxu0 %v1144_v58 }
  0x35   :  { %1075 = vmatpush3.bf16.msra.mxu1 %v1145_v59  ;;  %1048 = vmatprep.subr.bf16.mxu0 %v1146_v63 }
  0x36   :  { %1076 = vmatprep.subr.bf16.mxu1 %v1147_v1 }
  0x38   :  { %1049 = vmatpush3.bf16.msra.mxu0 %v1148_v2 }
  0x39   :  { %1077 = vmatpush3.bf16.msra.mxu1 %v1149_v3  ;;  %1050 = vmatprep.subr.bf16.mxu0 %v1150_v8 }
  0x3a   :  { %1078 = vmatprep.subr.bf16.mxu1 %v1151_v9 }
  0x3c   :  { %1051 = vmatpush3.bf16.msra.mxu0 %v1152_v10 }
  0x3d   :  { %1079 = vmatpush3.bf16.msra.mxu1 %v1153_v11  ;;  %1052 = vmatprep.subr.bf16.mxu0 %v1154_v12 }
  0x3e   :  { %1080 = vmatprep.subr.bf16.mxu1 %v1155_v13 }
  0x40   :  { %1053 = vmatpush3.bf16.msra.mxu0 %v1156_v14 }
  0x41   :  { %1081 = vmatpush3.bf16.msra.mxu1 %v1157_v15 }
  0x43   :  { %761 = vmatmul.mubr.bf16.vlgmr.msra.gmra.mrb[8].mxu0 %v883_v20 }
  0x44   :  { %810 = vmatmul.mubr.bf16.vlgmr.msra.gmra.mrb[8].mxu1 %v885_v22  ;;  %768 = vmatprep.mubr.bf16.mxu0 %v892_v27 }
  0x45   :  { %817 = vmatprep.mubr.bf16.mxu1 %v894_v29 }
  0x4b   :  { %769 = vmatmul.mubr.bf16.gmra.mrb[12].mxu0 %v891_v30 }
  0x4c   :  { %818 = vmatmul.mubr.bf16.gmra.mrb[12].mxu1 %v893_v31 }
  0xf6   :  { %v998_v32 = vpop.f32.mrb[0].mxu0 }
  0xf7   :  { %v1026_v33 = vpop.f32.mrb[0].mxu1  ;;  %v999_v35 = vpop.f32.mrb[1].mxu0 }
  0xf8   :  { %v1000_v36 = vadd.f32 %v999_v35, %v998_v32  ;;  %v1027_v37 = vpop.f32.mrb[1].mxu1  ;;  %v1001_v38 = vpop.f32.mrb[2].mxu0 }
  0xf9   :  { %v1028_v39 = vadd.f32 %v1027_v37, %v1026_v33  ;;  %v1029_v40 = vpop.f32.mrb[2].mxu1  ;;  %v1002_v41 = vpop.f32.mrb[3].mxu0 }
  0xfa   :  { %v665_v42 = vadd.f32 %v1000_v36, %v878_v34  ;;  %v1003_v43 = vadd.f32 %v1002_v41, %v1001_v38  ;;  %v1030_v44 = vpop.f32.mrb[3].mxu1 }
  0xfb   :  { %v1031_v45 = vadd.f32 %v1030_v44, %v1029_v40 }
  0xfc   :  { %v714_v46 = vadd.f32 %v1028_v39, %v665_v42  ;;  %v668_v47 = vadd.f32 %v1003_v43, %v878_v34 }
  0xfe   :  { %v717_v48 = vadd.f32 %v1031_v45, %v668_v47  ;;  %v1004_v49 = vpop.f32.mrb[4].mxu0 }
  0xff   :  { %v1005_v50 = vpop.f32.mrb[5].mxu0  ;;  %v1032_v56 = vpop.f32.mrb[4].mxu1 }
 0x100   :  { %v1006_v51 = vadd.f32 %v1005_v50, %v1004_v49  ;;  %v1007_v52 = vpop.f32.mrb[6].mxu0  ;;  %v1033_v57 = vpop.f32.mrb[5].mxu1 }
 0x101   :  { %v1008_v53 = vpop.f32.mrb[7].mxu0  ;;  %v1034_v59 = vadd.f32 %v1033_v57, %v1032_v56  ;;  %v1035_v60 = vpop.f32.mrb[6].mxu1 }
 0x102   :  { %v1009_v54 = vadd.f32 %v1008_v53, %v1007_v52  ;;  %v673_v55 = vadd.f32 %v1006_v51, %v878_v34  ;;  %v1036_v61 = vpop.f32.mrb[7].mxu1 }
 0x103   :  { %v1037_v63 = vadd.f32 %v1036_v61, %v1035_v60 }
 0x104   :  { %v676_v58 = vadd.f32 %v1009_v54, %v878_v34  ;;  %v722_v62 = vadd.f32 %v1034_v59, %v673_v55 }
 0x106   :  { %v725_v0 = vadd.f32 %v1037_v63, %v676_v58 }
 0x116   :  { %v1054_v1 = vpop.f32.mrb[8].mxu0 }
 0x117   :  { %v1082_v2 = vpop.f32.mrb[8].mxu1  ;;  %v1055_v3 = vpop.f32.mrb[9].mxu0 }
 0x118   :  { %v1083_v4 = vpop.f32.mrb[9].mxu1  ;;  %v1056_v5 = vadd.f32 %v1055_v3, %v1054_v1  ;;  %v1057_v7 = vpop.f32.mrb[10].mxu0 }
 0x119   :  { %v1084_v6 = vadd.f32 %v1083_v4, %v1082_v2  ;;  %v1085_v8 = vpop.f32.mrb[10].mxu1  ;;  %v1058_v9 = vpop.f32.mrb[11].mxu0 }
 0x11a   :  { %v1086_v10 = vpop.f32.mrb[11].mxu1  ;;  %v763_v11 = vadd.f32 %v1056_v5, %v714_v46  ;;  %v1059_v12 = vadd.f32 %v1058_v9, %v1057_v7 }
 0x11b   :  { %v1087_v13 = vadd.f32 %v1086_v10, %v1085_v8 }
 0x11c   :  { %v812_v14 = vadd.f32 %v1084_v6, %v763_v11  ;;  %v766_v15 = vadd.f32 %v1059_v12, %v717_v48 }
 0x11e   :  { %v959_v16 = vmul.f32 -1.442695, %v812_v14  ;;  %v815_v17 = vadd.f32 %v1087_v13, %v766_v15  ;;  %v1060_v18 = vpop.f32.mrb[12].mxu0 }
 0x11f   :  { %v1088_v19 = vpop.f32.mrb[12].mxu1  ;;  %v1061_v20 = vpop.f32.mrb[13].mxu0 }
 0x120   :  { %v1089_v21 = vpop.f32.mrb[13].mxu1  ;;  %1158 = vpow2.f32 %v959_v16  ;;  %v960_v22 = vmul.f32 -1.442695, %v815_v17  ;;  %v1062_v23 = vadd.f32 %v1061_v20, %v1060_v18  ;;  %v1063_v25 = vpop.f32.mrb[14].mxu0 }
 0x121   :  { %v1090_v24 = vadd.f32 %v1089_v21, %v1088_v19  ;;  %v1091_v26 = vpop.f32.mrb[14].mxu1  ;;  %v1064_v27 = vpop.f32.mrb[15].mxu0 }
 0x122   :  { %v1092_v28 = vpop.f32.mrb[15].mxu1  ;;  %1160 = vpow2.f32 %v960_v22  ;;  %v771_v29 = vadd.f32 %v1062_v23, %v722_v62  ;;  %v1065_v30 = vadd.f32 %v1064_v27, %v1063_v25 }
 0x123   :  { %v1093_v31 = vadd.f32 %v1092_v28, %v1091_v26 }
 0x124   :  { %v820_v32 = vadd.f32 %v1090_v24, %v771_v29  ;;  %v774_v33 = vadd.f32 %v1065_v30, %v725_v0 }
 0x126   :  { %v961_v34 = vmul.f32 -1.442695, %v820_v32  ;;  %v823_v35 = vadd.f32 %v1093_v31, %v774_v33 }
 0x128   :  { %1162 = vpow2.f32 %v961_v34  ;;  %v962_v36 = vmul.f32 -1.442695, %v823_v35 }
 0x12a   :  { %v1159_v37 = vpop.eup %1158  ;;  %1164 = vpow2.f32 %v962_v36 }
 0x12b   :  { %v838_v38 = vadd.f32 1.0, %v1159_v37 }
 0x12c   :  { %v1161_v39 = vpop.eup %1160 }
 0x12d   :  { %1166 = vrcp.f32 %v838_v38  ;;  %v839_v40 = vadd.f32 1.0, %v1161_v39 }
 0x12f   :  { %1168 = vrcp.f32 %v839_v40 }
 0x132   :  { %v1163_v41 = vpop.eup %1162 }
 0x133   :  { %v840_v42 = vadd.f32 1.0, %v1163_v41 }
 0x134   :  { %v1165_v43 = vpop.eup %1164 }
 0x135   :  { %1170 = vrcp.f32 %v840_v42  ;;  %v841_v44 = vadd.f32 1.0, %v1165_v43 }
 0x137   :  { %v1167_v45 = vpop.eup %1166  ;;  %1172 = vrcp.f32 %v841_v44 }
 0x138   :  { %v850_v47 = vmul.f32 %v1167_v45, %v812_v14 }
 0x139   :  { %v1169_v46 = vpop.eup %1168 }
 0x13a   :  { %v851_v48 = vmul.f32 %v1169_v46, %v815_v17 }
 0x13c   :  { %v974_v49 = vpack.c.bf16 %v851_v48, %v850_v47 }
 0x13e   :  { %975 = vst [vmem:[%s1446_s3] sm:$0xff] %v974_v49  }
 0x13f   :  { %v1171_v50 = vpop.eup %1170 }
 0x140   :  { %v852_v52 = vmul.f32 %v1171_v50, %v820_v32 }
 0x141   :  { %v1173_v51 = vpop.eup %1172 }
 0x142   :  { %v853_v53 = vmul.f32 %v1173_v51, %v823_v35 }
 0x144   :  { %v979_v54 = vpack.c.bf16 %v853_v53, %v852_v52 }
 0x146   :  { %981 = vst [vmem:[%s1446_s3 + $0x8] sm:$0xff] %v979_v54  }

// kernel: svhn_encoder.7
= control target key start
LH: loop header
LB: loop body
LE: loop exit
PB: predicated region body
PF: predicated region fallthrough
CT: control target
= control target key end

     0   :  { %s16165_s1 = inlined_call_operand.vmem [shape: bf16[2048,1024], index: 1, kind: input, shape index: {}]   ;;  %s16166_s0 = inlined_call_operand.vmem [shape: bf16[8,2048], index: 0, kind: input, shape index: {}]   ;;  %s16167_s3 = inlined_call_operand.vmem [shape: bf16[1024,512], index: 3, kind: input, shape index: {}]   ;;  %s16168_s2 = inlined_call_operand.vmem [shape: f32[1,1024], index: 2, kind: input, shape index: {}]   ;;  %s16169_s5 = inlined_call_operand.vmem [shape: bf16[512,128], index: 5, kind: input, shape index: {}]   ;;  %s16170_s4 = inlined_call_operand.vmem [shape: f32[1,512], index: 4, kind: input, shape index: {}]   ;;  %s16171_s6 = inlined_call_operand.vmem [shape: f32[1,128], index: 6, kind: input, shape index: {}]   ;;  %s16172_s7 = inlined_call_operand.vmem [shape: f32[8,128], index: 7, kind: output, shape index: {}]  }
   0x1   :  { %v35_v0 = vld [vmem:[%s16165_s1] sm:$0xff]  ;;  %v36_v2 = vld [vmem:[%s16165_s1 + $0x8] sm:$0xff] }
   0x2   :  { %v39_v1 = vld [vmem:[%s16165_s1 + $0x20] sm:$0xff]  ;;  %v40_v4 = vld [vmem:[%s16165_s1 + $0x28] sm:$0xff] }
   0x3   :  { %v9936_v3 = vcombine.high %v35_v0, %v39_v1  ;;  %v9935_v5 = vcombine.low %v35_v0, %v39_v1  ;;  %v43_v6 = vld [vmem:[%s16165_s1 + $0x40] sm:$0xff]  ;;  %v9938_v8 = vcombine.high %v36_v2, %v40_v4  ;;  %v9937_v9 = vcombine.low %v36_v2, %v40_v4  ;;  %v44_v11 = vld [vmem:[%s16165_s1 + $0x48] sm:$0xff] }
   0x4   :  { %v47_v7 = vld [vmem:[%s16165_s1 + $0x60] sm:$0xff]  ;;  %v48_v12 = vld [vmem:[%s16165_s1 + $0x68] sm:$0xff] }
   0x5   :  { %v9944_v10 = vcombine.high %v43_v6, %v47_v7  ;;  %v51_v13 = vld [vmem:[%s16165_s1 + $0x80] sm:$0xff]  ;;  %6277 = vmatprep.subr.bf16.mxu0 %v9936_v3  ;;  %v9946_v14 = vcombine.high %v44_v11, %v48_v12  ;;  %v52_v16 = vld [vmem:[%s16165_s1 + $0x88] sm:$0xff]  ;;  %6605 = vmatprep.subr.bf16.mxu1 %v9938_v8  ;;  %v9943_v18 = vcombine.low %v43_v6, %v47_v7 }
   0x6   :  { %v55_v15 = vld [vmem:[%s16165_s1 + $0xa0] sm:$0xff]  ;;  %v56_v17 = vld [vmem:[%s16165_s1 + $0xa8] sm:$0xff]  ;;  %6278 = vmatpush1.bf16.msra.mxu0 %v9935_v5  ;;  %6606 = vmatpush1.bf16.msra.mxu1 %v9937_v9  ;;  %v9945_v19 = vcombine.low %v44_v11, %v48_v12 }
   0x7   :  { %6279 = vmatprep.subr.bf16.mxu0 %v9944_v10  ;;  %v9952_v20 = vcombine.high %v51_v13, %v55_v15  ;;  %6607 = vmatprep.subr.bf16.mxu1 %v9946_v14  ;;  %v9954_v21 = vcombine.high %v52_v16, %v56_v17  ;;  %v59_v22 = vld [vmem:[%s16165_s1 + $0xc0] sm:$0xff]  ;;  %v60_v24 = vld [vmem:[%s16165_s1 + $0xc8] sm:$0xff]  ;;  %v9951_v26 = vcombine.low %v51_v13, %v55_v15 }
   0x8   :  { %v63_v23 = vld [vmem:[%s16165_s1 + $0xe0] sm:$0xff]  ;;  %v64_v25 = vld [vmem:[%s16165_s1 + $0xe8] sm:$0xff]  ;;  %v9953_v27 = vcombine.low %v52_v16, %v56_v17 }
   0x9   :  { %v9960_v28 = vcombine.high %v59_v22, %v63_v23  ;;  %v9962_v29 = vcombine.high %v60_v24, %v64_v25  ;;  %v67_v30 = vld [vmem:[%s16165_s1 + $0x100] sm:$0xff]  ;;  %v68_v32 = vld [vmem:[%s16165_s1 + $0x108] sm:$0xff]  ;;  %v9959_v34 = vcombine.low %v59_v22, %v63_v23  ;;  %v9961_v35 = vcombine.low %v60_v24, %v64_v25 }
   0xa   :  { %6280 = vmatpush1.bf16.msra.mxu0 %v9943_v18  ;;  %6608 = vmatpush1.bf16.msra.mxu1 %v9945_v19  ;;  %v71_v31 = vld [vmem:[%s16165_s1 + $0x120] sm:$0xff]  ;;  %v72_v33 = vld [vmem:[%s16165_s1 + $0x128] sm:$0xff] }
   0xb   :  { %6281 = vmatprep.subr.bf16.mxu0 %v9952_v20  ;;  %6609 = vmatprep.subr.bf16.mxu1 %v9954_v21  ;;  %v9968_v36 = vcombine.high %v67_v30, %v71_v31  ;;  %v9970_v37 = vcombine.high %v68_v32, %v72_v33  ;;  %v75_v38 = vld [vmem:[%s16165_s1 + $0x140] sm:$0xff]  ;;  %v76_v40 = vld [vmem:[%s16165_s1 + $0x148] sm:$0xff]  ;;  %v9967_v42 = vcombine.low %v67_v30, %v71_v31 }
   0xc   :  { %v79_v39 = vld [vmem:[%s16165_s1 + $0x160] sm:$0xff]  ;;  %v80_v41 = vld [vmem:[%s16165_s1 + $0x168] sm:$0xff]  ;;  %v9969_v43 = vcombine.low %v68_v32, %v72_v33 }
   0xd   :  { %v9976_v44 = vcombine.high %v75_v38, %v79_v39  ;;  %v9978_v45 = vcombine.high %v76_v40, %v80_v41  ;;  %v83_v46 = vld [vmem:[%s16165_s1 + $0x180] sm:$0xff]  ;;  %v84_v48 = vld [vmem:[%s16165_s1 + $0x188] sm:$0xff]  ;;  %v9975_v50 = vcombine.low %v75_v38, %v79_v39  ;;  %v9977_v51 = vcombine.low %v76_v40, %v80_v41 }
   0xe   :  { %6282 = vmatpush1.bf16.msra.mxu0 %v9951_v26  ;;  %6610 = vmatpush1.bf16.msra.mxu1 %v9953_v27  ;;  %v87_v47 = vld [vmem:[%s16165_s1 + $0x1a0] sm:$0xff]  ;;  %v88_v49 = vld [vmem:[%s16165_s1 + $0x1a8] sm:$0xff] }
   0xf   :  { %6283 = vmatprep.subr.bf16.mxu0 %v9960_v28  ;;  %6611 = vmatprep.subr.bf16.mxu1 %v9962_v29  ;;  %v9984_v52 = vcombine.high %v83_v46, %v87_v47  ;;  %v12060_v53 = vld [vmem:[%s16166_s0] sm:$0xff]  ;;  %v9986_v54 = vcombine.high %v84_v48, %v88_v49  ;;  %v92_v58 = vld [vmem:[%s16165_s1 + $0x1c8] sm:$0xff]  ;;  %v9983_v60 = vcombine.low %v83_v46, %v87_v47 }
  0x10   :  { %v91_v55 = vld [vmem:[%s16165_s1 + $0x1c0] sm:$0xff]  ;;  %v12070_v57 = vcombine.high %v12060_v53, %v12060_v53  ;;  %v96_v59 = vld [vmem:[%s16165_s1 + $0x1e8] sm:$0xff]  ;;  %v9985_v61 = vcombine.low %v84_v48, %v88_v49 }
  0x11   :  { %v95_v56 = vld [vmem:[%s16165_s1 + $0x1e0] sm:$0xff]  ;;  %v9994_v63 = vcombine.high %v92_v58, %v96_v59  ;;  %v100_v2 = vld [vmem:[%s16165_s1 + $0x208] sm:$0xff]  ;;  %v9993_v5 = vcombine.low %v92_v58, %v96_v59 }
  0x12   :  { %6284 = vmatpush1.bf16.msra.mxu0 %v9959_v34  ;;  %6612 = vmatpush1.bf16.msra.mxu1 %v9961_v35  ;;  %v9992_v62 = vcombine.high %v91_v55, %v95_v56  ;;  %v99_v0 = vld [vmem:[%s16165_s1 + $0x200] sm:$0xff]  ;;  %v104_v3 = vld [vmem:[%s16165_s1 + $0x228] sm:$0xff]  ;;  %v9991_v4 = vcombine.low %v91_v55, %v95_v56 }
  0x13   :  { %6285 = vmatprep.subr.bf16.mxu0 %v9968_v36  ;;  %6613 = vmatprep.subr.bf16.mxu1 %v9970_v37  ;;  %v103_v1 = vld [vmem:[%s16165_s1 + $0x220] sm:$0xff]  ;;  %v10002_v7 = vcombine.high %v100_v2, %v104_v3  ;;  %v108_v10 = vld [vmem:[%s16165_s1 + $0x248] sm:$0xff]  ;;  %v10001_v13 = vcombine.low %v100_v2, %v104_v3 }
  0x14   :  { %6309 = vmatprep.mubr.bf16.mxu0 %v12070_v57  ;;  %6637 = vmatprep.mubr.bf16.mxu1 %v12070_v57  ;;  %v10000_v6 = vcombine.high %v99_v0, %v103_v1  ;;  %v107_v8 = vld [vmem:[%s16165_s1 + $0x240] sm:$0xff]  ;;  %v112_v11 = vld [vmem:[%s16165_s1 + $0x268] sm:$0xff]  ;;  %v9999_v12 = vcombine.low %v99_v0, %v103_v1 }
  0x15   :  { %v111_v9 = vld [vmem:[%s16165_s1 + $0x260] sm:$0xff]  ;;  %v10010_v15 = vcombine.high %v108_v10, %v112_v11  ;;  %v116_v18 = vld [vmem:[%s16165_s1 + $0x288] sm:$0xff]  ;;  %v10009_v21 = vcombine.low %v108_v10, %v112_v11 }
  0x16   :  { %6286 = vmatpush1.bf16.msra.mxu0 %v9967_v42  ;;  %6614 = vmatpush1.bf16.msra.mxu1 %v9969_v43  ;;  %v10008_v14 = vcombine.high %v107_v8, %v111_v9  ;;  %v115_v16 = vld [vmem:[%s16165_s1 + $0x280] sm:$0xff]  ;;  %v120_v19 = vld [vmem:[%s16165_s1 + $0x2a8] sm:$0xff]  ;;  %v10007_v20 = vcombine.low %v107_v8, %v111_v9 }
  0x17   :  { %6287 = vmatprep.subr.bf16.mxu0 %v9976_v44  ;;  %6615 = vmatprep.subr.bf16.mxu1 %v9978_v45  ;;  %v119_v17 = vld [vmem:[%s16165_s1 + $0x2a0] sm:$0xff]  ;;  %v10018_v23 = vcombine.high %v116_v18, %v120_v19  ;;  %v124_v26 = vld [vmem:[%s16165_s1 + $0x2c8] sm:$0xff]  ;;  %v10017_v29 = vcombine.low %v116_v18, %v120_v19 }
  0x18   :  { %v10016_v22 = vcombine.high %v115_v16, %v119_v17  ;;  %v123_v24 = vld [vmem:[%s16165_s1 + $0x2c0] sm:$0xff]  ;;  %v128_v27 = vld [vmem:[%s16165_s1 + $0x2e8] sm:$0xff]  ;;  %v10015_v28 = vcombine.low %v115_v16, %v119_v17 }
  0x19   :  { %v127_v25 = vld [vmem:[%s16165_s1 + $0x2e0] sm:$0xff]  ;;  %v10026_v31 = vcombine.high %v124_v26, %v128_v27  ;;  %v132_v34 = vld [vmem:[%s16165_s1 + $0x308] sm:$0xff]  ;;  %v10025_v37 = vcombine.low %v124_v26, %v128_v27 }
  0x1a   :  { %6288 = vmatpush1.bf16.msra.mxu0 %v9975_v50  ;;  %6616 = vmatpush1.bf16.msra.mxu1 %v9977_v51  ;;  %v10024_v30 = vcombine.high %v123_v24, %v127_v25  ;;  %v131_v32 = vld [vmem:[%s16165_s1 + $0x300] sm:$0xff]  ;;  %v136_v35 = vld [vmem:[%s16165_s1 + $0x328] sm:$0xff]  ;;  %v10023_v36 = vcombine.low %v123_v24, %v127_v25 }
  0x1b   :  { %6289 = vmatprep.subr.bf16.mxu0 %v9984_v52  ;;  %6617 = vmatprep.subr.bf16.mxu1 %v9986_v54  ;;  %v135_v33 = vld [vmem:[%s16165_s1 + $0x320] sm:$0xff]  ;;  %v10034_v39 = vcombine.high %v132_v34, %v136_v35  ;;  %v140_v42 = vld [vmem:[%s16165_s1 + $0x348] sm:$0xff]  ;;  %v10033_v45 = vcombine.low %v132_v34, %v136_v35 }
  0x1c   :  { %v10032_v38 = vcombine.high %v131_v32, %v135_v33  ;;  %v139_v40 = vld [vmem:[%s16165_s1 + $0x340] sm:$0xff]  ;;  %v144_v43 = vld [vmem:[%s16165_s1 + $0x368] sm:$0xff]  ;;  %v10031_v44 = vcombine.low %v131_v32, %v135_v33 }
  0x1d   :  { %v143_v41 = vld [vmem:[%s16165_s1 + $0x360] sm:$0xff]  ;;  %v10042_v47 = vcombine.high %v140_v42, %v144_v43  ;;  %v148_v50 = vld [vmem:[%s16165_s1 + $0x388] sm:$0xff]  ;;  %v10041_v54 = vcombine.low %v140_v42, %v144_v43 }
  0x1e   :  { %6290 = vmatpush1.bf16.msra.mxu0 %v9983_v60  ;;  %6618 = vmatpush1.bf16.msra.mxu1 %v9985_v61  ;;  %v10040_v46 = vcombine.high %v139_v40, %v143_v41  ;;  %v147_v48 = vld [vmem:[%s16165_s1 + $0x380] sm:$0xff]  ;;  %v152_v51 = vld [vmem:[%s16165_s1 + $0x3a8] sm:$0xff]  ;;  %v10039_v52 = vcombine.low %v139_v40, %v143_v41 }
  0x1f   :  { %6291 = vmatprep.subr.bf16.mxu0 %v9992_v62  ;;  %6619 = vmatprep.subr.bf16.mxu1 %v9994_v63  ;;  %v151_v49 = vld [vmem:[%s16165_s1 + $0x3a0] sm:$0xff]  ;;  %v10050_v56 = vcombine.high %v148_v50, %v152_v51  ;;  %v156_v60 = vld [vmem:[%s16165_s1 + $0x3c8] sm:$0xff]  ;;  %v10049_v63 = vcombine.low %v148_v50, %v152_v51 }
  0x20   :  { %v10048_v55 = vcombine.high %v147_v48, %v151_v49  ;;  %v155_v58 = vld [vmem:[%s16165_s1 + $0x3c0] sm:$0xff]  ;;  %v160_v61 = vld [vmem:[%s16165_s1 + $0x3e8] sm:$0xff]  ;;  %v10047_v62 = vcombine.low %v147_v48, %v151_v49 }
  0x21   :  { %v159_v59 = vld [vmem:[%s16165_s1 + $0x3e0] sm:$0xff]  ;;  %v10058_v1 = vcombine.high %v156_v60, %v160_v61 }
  0x22   :  { %6292 = vmatpush1.bf16.msra.mxu0 %v9991_v4  ;;  %6620 = vmatpush1.bf16.msra.mxu1 %v9993_v5  ;;  %v10056_v0 = vcombine.high %v155_v58, %v159_v59  ;;  %v163_v2 = vld [vmem:[%s16165_s1 + $0x400] sm:$0xff]  ;;  %v164_v4 = vld [vmem:[%s16165_s1 + $0x408] sm:$0xff] }
  0x23   :  { %6293 = vmatprep.subr.bf16.mxu0 %v10000_v6  ;;  %6621 = vmatprep.subr.bf16.mxu1 %v10002_v7  ;;  %v167_v3 = vld [vmem:[%s16165_s1 + $0x420] sm:$0xff]  ;;  %v168_v5 = vld [vmem:[%s16165_s1 + $0x428] sm:$0xff]  ;;  %v10055_v6 = vcombine.low %v155_v58, %v159_v59  ;;  %v10057_v7 = vcombine.low %v156_v60, %v160_v61 }
  0x24   :  { %v10064_v8 = vcombine.high %v163_v2, %v167_v3  ;;  %v10066_v9 = vcombine.high %v164_v4, %v168_v5  ;;  %v171_v10 = vld [vmem:[%s16165_s1 + $0x440] sm:$0xff]  ;;  %v10063_v16 = vcombine.low %v163_v2, %v167_v3  ;;  %v10065_v17 = vcombine.low %v164_v4, %v168_v5 }
  0x25   :  { %v175_v11 = vld [vmem:[%s16165_s1 + $0x460] sm:$0xff] }
  0x26   :  { %6294 = vmatpush1.bf16.msra.mxu0 %v9999_v12  ;;  %6622 = vmatpush1.bf16.msra.mxu1 %v10001_v13  ;;  %v12196_v12 = vcombine.low %v12060_v53, %v12060_v53  ;;  %v172_v13 = vld [vmem:[%s16165_s1 + $0x448] sm:$0xff]  ;;  %v10072_v53 = vcombine.high %v171_v10, %v175_v11  ;;  %v179_v19 = vld [vmem:[%s16165_s1 + $0x480] sm:$0xff]  ;;  %v10071_v24 = vcombine.low %v171_v10, %v175_v11 }
  0x27   :  { %6295 = vmatprep.subr.bf16.mxu0 %v10008_v14  ;;  %6623 = vmatprep.subr.bf16.mxu1 %v10010_v15  ;;  %v176_v14 = vld [vmem:[%s16165_s1 + $0x468] sm:$0xff] }
  0x28   :  { %v12207_v15 = vld [vmem:[%s16166_s0 + $0x8] sm:$0xff]  ;;  %v10074_v18 = vcombine.high %v172_v13, %v176_v14  ;;  %v10073_v25 = vcombine.low %v172_v13, %v176_v14 }
  0x2a   :  { %6296 = vmatpush1.bf16.msra.mxu0 %v10007_v20  ;;  %6624 = vmatpush1.bf16.msra.mxu1 %v10009_v21  ;;  %v183_v20 = vld [vmem:[%s16165_s1 + $0x4a0] sm:$0xff]  ;;  %v12217_v21 = vcombine.high %v12207_v15, %v12207_v15 }
  0x2b   :  { %6297 = vmatprep.subr.bf16.mxu0 %v10016_v22  ;;  %6625 = vmatprep.subr.bf16.mxu1 %v10018_v23  ;;  %v180_v22 = vld [vmem:[%s16165_s1 + $0x488] sm:$0xff]  ;;  %v10080_v26 = vcombine.high %v179_v19, %v183_v20  ;;  %v10079_v32 = vcombine.low %v179_v19, %v183_v20 }
  0x2c   :  { %v184_v23 = vld [vmem:[%s16165_s1 + $0x4a8] sm:$0xff] }
  0x2d   :  { %v10082_v27 = vcombine.high %v180_v22, %v184_v23  ;;  %v10081_v33 = vcombine.low %v180_v22, %v184_v23 }
  0x2e   :  { %6298 = vmatpush1.bf16.msra.mxu0 %v10015_v28  ;;  %6626 = vmatpush1.bf16.msra.mxu1 %v10017_v29  ;;  %v187_v28 = vld [vmem:[%s16165_s1 + $0x4c0] sm:$0xff] }
  0x2f   :  { %6299 = vmatprep.subr.bf16.mxu0 %v10024_v30  ;;  %6627 = vmatprep.subr.bf16.mxu1 %v10026_v31  ;;  %v191_v29 = vld [vmem:[%s16165_s1 + $0x4e0] sm:$0xff]  ;;  %v188_v30 = vld [vmem:[%s16165_s1 + $0x4c8] sm:$0xff] }
  0x30   :  { %v192_v31 = vld [vmem:[%s16165_s1 + $0x4e8] sm:$0xff]  ;;  %v10088_v34 = vcombine.high %v187_v28, %v191_v29  ;;  %v10087_v40 = vcombine.low %v187_v28, %v191_v29 }
  0x31   :  { %v10090_v35 = vcombine.high %v188_v30, %v192_v31  ;;  %v10089_v41 = vcombine.low %v188_v30, %v192_v31 }
  0x32   :  { %6300 = vmatpush1.bf16.msra.mxu0 %v10023_v36  ;;  %6628 = vmatpush1.bf16.msra.mxu1 %v10025_v37  ;;  %v195_v36 = vld [vmem:[%s16165_s1 + $0x500] sm:$0xff] }
  0x33   :  { %6301 = vmatprep.subr.bf16.mxu0 %v10032_v38  ;;  %6629 = vmatprep.subr.bf16.mxu1 %v10034_v39  ;;  %v199_v37 = vld [vmem:[%s16165_s1 + $0x520] sm:$0xff]  ;;  %v196_v38 = vld [vmem:[%s16165_s1 + $0x508] sm:$0xff] }
  0x34   :  { %v200_v39 = vld [vmem:[%s16165_s1 + $0x528] sm:$0xff]  ;;  %v10096_v42 = vcombine.high %v195_v36, %v199_v37  ;;  %v10095_v48 = vcombine.low %v195_v36, %v199_v37 }
  0x35   :  { %v10098_v43 = vcombine.high %v196_v38, %v200_v39  ;;  %v10097_v49 = vcombine.low %v196_v38, %v200_v39 }
  0x36   :  { %6302 = vmatpush1.bf16.msra.mxu0 %v10031_v44  ;;  %6630 = vmatpush1.bf16.msra.mxu1 %v10033_v45  ;;  %v203_v44 = vld [vmem:[%s16165_s1 + $0x540] sm:$0xff] }
  0x37   :  { %6303 = vmatprep.subr.bf16.mxu0 %v10040_v46  ;;  %6631 = vmatprep.subr.bf16.mxu1 %v10042_v47  ;;  %v207_v45 = vld [vmem:[%s16165_s1 + $0x560] sm:$0xff]  ;;  %v204_v46 = vld [vmem:[%s16165_s1 + $0x548] sm:$0xff] }
  0x38   :  { %v208_v47 = vld [vmem:[%s16165_s1 + $0x568] sm:$0xff]  ;;  %v10104_v50 = vcombine.high %v203_v44, %v207_v45  ;;  %v10103_v58 = vcombine.low %v203_v44, %v207_v45 }
  0x39   :  { %v10106_v51 = vcombine.high %v204_v46, %v208_v47  ;;  %v10105_v59 = vcombine.low %v204_v46, %v208_v47 }
  0x3a   :  { %6304 = vmatpush1.bf16.msra.mxu0 %v10039_v52  ;;  %6632 = vmatpush1.bf16.msra.mxu1 %v10041_v54  ;;  %v211_v52 = vld [vmem:[%s16165_s1 + $0x580] sm:$0xff] }
  0x3b   :  { %6305 = vmatprep.subr.bf16.mxu0 %v10048_v55  ;;  %6633 = vmatprep.subr.bf16.mxu1 %v10050_v56  ;;  %v215_v54 = vld [vmem:[%s16165_s1 + $0x5a0] sm:$0xff]  ;;  %v212_v55 = vld [vmem:[%s16165_s1 + $0x588] sm:$0xff] }
  0x3c   :  { %v216_v56 = vld [vmem:[%s16165_s1 + $0x5a8] sm:$0xff]  ;;  %v10112_v60 = vcombine.high %v211_v52, %v215_v54  ;;  %v10111_v2 = vcombine.low %v211_v52, %v215_v54 }
  0x3d   :  { %v10114_v61 = vcombine.high %v212_v55, %v216_v56  ;;  %v10113_v3 = vcombine.low %v212_v55, %v216_v56 }
  0x3e   :  { %6306 = vmatpush1.bf16.msra.mxu0 %v10047_v62  ;;  %6634 = vmatpush1.bf16.msra.mxu1 %v10049_v63  ;;  %v219_v62 = vld [vmem:[%s16165_s1 + $0x5c0] sm:$0xff] }
  0x3f   :  { %6307 = vmatprep.subr.bf16.mxu0 %v10056_v0  ;;  %6635 = vmatprep.subr.bf16.mxu1 %v10058_v1  ;;  %v223_v63 = vld [vmem:[%s16165_s1 + $0x5e0] sm:$0xff]  ;;  %v220_v0 = vld [vmem:[%s16165_s1 + $0x5c8] sm:$0xff] }
  0x40   :  { %v224_v1 = vld [vmem:[%s16165_s1 + $0x5e8] sm:$0xff]  ;;  %v10120_v4 = vcombine.high %v219_v62, %v223_v63  ;;  %v10119_v10 = vcombine.low %v219_v62, %v223_v63 }
  0x41   :  { %v10122_v5 = vcombine.high %v220_v0, %v224_v1  ;;  %v10121_v11 = vcombine.low %v220_v0, %v224_v1 }
  0x42   :  { %6308 = vmatpush1.bf16.msra.mxu0 %v10055_v6  ;;  %6636 = vmatpush1.bf16.msra.mxu1 %v10057_v7  ;;  %v227_v6 = vld [vmem:[%s16165_s1 + $0x600] sm:$0xff] }
  0x43   :  { %6318 = vmatprep.subr.bf16.mxu0 %v10064_v8  ;;  %6646 = vmatprep.subr.bf16.mxu1 %v10066_v9  ;;  %v231_v7 = vld [vmem:[%s16165_s1 + $0x620] sm:$0xff]  ;;  %v228_v8 = vld [vmem:[%s16165_s1 + $0x608] sm:$0xff] }
  0x44   :  { %v232_v9 = vld [vmem:[%s16165_s1 + $0x628] sm:$0xff]  ;;  %v10128_v13 = vcombine.high %v227_v6, %v231_v7  ;;  %v10127_v19 = vcombine.low %v227_v6, %v231_v7 }
  0x45   :  { %6310 = vmatmul.mubr.bf16.vlgmr.msra.gmra.mrb[0].mxu0 %v12196_v12  ;;  %6638 = vmatmul.mubr.bf16.vlgmr.msra.gmra.mrb[0].mxu1 %v12196_v12  ;;  %v10130_v14 = vcombine.high %v228_v8, %v232_v9  ;;  %v10129_v20 = vcombine.low %v228_v8, %v232_v9 }
  0x46   :  { %6319 = vmatpush1.bf16.msra.mxu0 %v10063_v16  ;;  %6647 = vmatpush1.bf16.msra.mxu1 %v10065_v17  ;;  %v235_v16 = vld [vmem:[%s16165_s1 + $0x640] sm:$0xff] }
  0x47   :  { %6320 = vmatprep.subr.bf16.mxu0 %v10072_v53  ;;  %6648 = vmatprep.subr.bf16.mxu1 %v10074_v18  ;;  %v239_v17 = vld [vmem:[%s16165_s1 + $0x660] sm:$0xff]  ;;  %v236_v53 = vld [vmem:[%s16165_s1 + $0x648] sm:$0xff] }
  0x48   :  { %6350 = vmatprep.mubr.bf16.mxu0 %v12217_v21  ;;  %6678 = vmatprep.mubr.bf16.mxu1 %v12217_v21  ;;  %v240_v18 = vld [vmem:[%s16165_s1 + $0x668] sm:$0xff]  ;;  %v10136_v22 = vcombine.high %v235_v16, %v239_v17  ;;  %v10135_v28 = vcombine.low %v235_v16, %v239_v17 }
  0x49   :  { %v10138_v23 = vcombine.high %v236_v53, %v240_v18  ;;  %v10137_v29 = vcombine.low %v236_v53, %v240_v18 }
  0x4a   :  { %6321 = vmatpush1.bf16.msra.mxu0 %v10071_v24  ;;  %6649 = vmatpush1.bf16.msra.mxu1 %v10073_v25  ;;  %v243_v24 = vld [vmem:[%s16165_s1 + $0x680] sm:$0xff] }
  0x4b   :  { %6322 = vmatprep.subr.bf16.mxu0 %v10080_v26  ;;  %6650 = vmatprep.subr.bf16.mxu1 %v10082_v27  ;;  %v247_v25 = vld [vmem:[%s16165_s1 + $0x6a0] sm:$0xff]  ;;  %v244_v26 = vld [vmem:[%s16165_s1 + $0x688] sm:$0xff] }
  0x4c   :  { %v248_v27 = vld [vmem:[%s16165_s1 + $0x6a8] sm:$0xff]  ;;  %v10144_v30 = vcombine.high %v243_v24, %v247_v25  ;;  %v10143_v36 = vcombine.low %v243_v24, %v247_v25  ;;  %v12416_v25 = vld [vmem:[%s16166_s0 + $0x10] sm:$0xff] }
  0x4d   :  { %v10146_v31 = vcombine.high %v244_v26, %v248_v27  ;;  %v10145_v37 = vcombine.low %v244_v26, %v248_v27  ;;  %v304_v24 = vld [vmem:[%s16165_s1 + $0x868] sm:$0xff] }
  0x4e   :  { %6323 = vmatpush1.bf16.msra.mxu0 %v10079_v32  ;;  %6651 = vmatpush1.bf16.msra.mxu1 %v10081_v33  ;;  %v251_v32 = vld [vmem:[%s16165_s1 + $0x6c0] sm:$0xff] }
  0x4f   :  { %6324 = vmatprep.subr.bf16.mxu0 %v10088_v34  ;;  %6652 = vmatprep.subr.bf16.mxu1 %v10090_v35  ;;  %v255_v33 = vld [vmem:[%s16165_s1 + $0x6e0] sm:$0xff]  ;;  %v252_v34 = vld [vmem:[%s16165_s1 + $0x6c8] sm:$0xff] }
  0x50   :  { %v256_v35 = vld [vmem:[%s16165_s1 + $0x6e8] sm:$0xff]  ;;  %v10152_v38 = vcombine.high %v251_v32, %v255_v33  ;;  %v10151_v44 = vcombine.low %v251_v32, %v255_v33 }
  0x51   :  { %v10154_v39 = vcombine.high %v252_v34, %v256_v35  ;;  %v10153_v45 = vcombine.low %v252_v34, %v256_v35  ;;  %v308_v32 = vld [vmem:[%s16165_s1 + $0x888] sm:$0xff] }
  0x52   :  { %6325 = vmatpush1.bf16.msra.mxu0 %v10087_v40  ;;  %6653 = vmatpush1.bf16.msra.mxu1 %v10089_v41  ;;  %v259_v40 = vld [vmem:[%s16165_s1 + $0x700] sm:$0xff]  ;;  %v312_v33 = vld [vmem:[%s16165_s1 + $0x8a8] sm:$0xff] }
  0x53   :  { %6326 = vmatprep.subr.bf16.mxu0 %v10096_v42  ;;  %6654 = vmatprep.subr.bf16.mxu1 %v10098_v43  ;;  %v263_v41 = vld [vmem:[%s16165_s1 + $0x720] sm:$0xff]  ;;  %v260_v42 = vld [vmem:[%s16165_s1 + $0x708] sm:$0xff] }
  0x54   :  { %v264_v43 = vld [vmem:[%s16165_s1 + $0x728] sm:$0xff]  ;;  %v10160_v46 = vcombine.high %v259_v40, %v263_v41  ;;  %v10159_v52 = vcombine.low %v259_v40, %v263_v41 }
  0x55   :  { %v10162_v47 = vcombine.high %v260_v42, %v264_v43  ;;  %v10161_v54 = vcombine.low %v260_v42, %v264_v43  ;;  %v316_v40 = vld [vmem:[%s16165_s1 + $0x8c8] sm:$0xff]  ;;  %v10209_v43 = vcombine.low %v308_v32, %v312_v33 }
  0x56   :  { %6327 = vmatpush1.bf16.msra.mxu0 %v10095_v48  ;;  %6655 = vmatpush1.bf16.msra.mxu1 %v10097_v49  ;;  %v267_v48 = vld [vmem:[%s16165_s1 + $0x740] sm:$0xff]  ;;  %v320_v41 = vld [vmem:[%s16165_s1 + $0x8e8] sm:$0xff] }
  0x57   :  { %6328 = vmatprep.subr.bf16.mxu0 %v10104_v50  ;;  %6656 = vmatprep.subr.bf16.mxu1 %v10106_v51  ;;  %v271_v49 = vld [vmem:[%s16165_s1 + $0x760] sm:$0xff]  ;;  %v268_v50 = vld [vmem:[%s16165_s1 + $0x748] sm:$0xff] }
  0x58   :  { %v272_v51 = vld [vmem:[%s16165_s1 + $0x768] sm:$0xff]  ;;  %v10168_v55 = vcombine.high %v267_v48, %v271_v49  ;;  %v10167_v62 = vcombine.low %v267_v48, %v271_v49 }
  0x59   :  { %v10170_v56 = vcombine.high %v268_v50, %v272_v51  ;;  %v10169_v63 = vcombine.low %v268_v50, %v272_v51  ;;  %v324_v48 = vld [vmem:[%s16165_s1 + $0x908] sm:$0xff]  ;;  %v10217_v51 = vcombine.low %v316_v40, %v320_v41 }
  0x5a   :  { %6329 = vmatpush1.bf16.msra.mxu0 %v10103_v58  ;;  %6657 = vmatpush1.bf16.msra.mxu1 %v10105_v59  ;;  %v275_v58 = vld [vmem:[%s16165_s1 + $0x780] sm:$0xff]  ;;  %v328_v49 = vld [vmem:[%s16165_s1 + $0x928] sm:$0xff] }
  0x5b   :  { %6330 = vmatprep.subr.bf16.mxu0 %v10112_v60  ;;  %6658 = vmatprep.subr.bf16.mxu1 %v10114_v61  ;;  %v279_v59 = vld [vmem:[%s16165_s1 + $0x7a0] sm:$0xff]  ;;  %v276_v60 = vld [vmem:[%s16165_s1 + $0x788] sm:$0xff] }
  0x5c   :  { %v280_v61 = vld [vmem:[%s16165_s1 + $0x7a8] sm:$0xff]  ;;  %v10176_v0 = vcombine.high %v275_v58, %v279_v59  ;;  %v10175_v6 = vcombine.low %v275_v58, %v279_v59 }
  0x5d   :  { %v10178_v1 = vcombine.high %v276_v60, %v280_v61  ;;  %v10177_v7 = vcombine.low %v276_v60, %v280_v61  ;;  %v332_v58 = vld [vmem:[%s16165_s1 + $0x948] sm:$0xff]  ;;  %v10225_v61 = vcombine.low %v324_v48, %v328_v49 }
  0x5e   :  { %6331 = vmatpush1.bf16.msra.mxu0 %v10111_v2  ;;  %6659 = vmatpush1.bf16.msra.mxu1 %v10113_v3  ;;  %v283_v2 = vld [vmem:[%s16165_s1 + $0x7c0] sm:$0xff]  ;;  %v336_v59 = vld [vmem:[%s16165_s1 + $0x968] sm:$0xff] }
  0x5f   :  { %6332 = vmatprep.subr.bf16.mxu0 %v10120_v4  ;;  %6660 = vmatprep.subr.bf16.mxu1 %v10122_v5  ;;  %v287_v3 = vld [vmem:[%s16165_s1 + $0x7e0] sm:$0xff]  ;;  %v284_v4 = vld [vmem:[%s16165_s1 + $0x7c8] sm:$0xff] }
  0x60   :  { %v288_v5 = vld [vmem:[%s16165_s1 + $0x7e8] sm:$0xff]  ;;  %v10184_v8 = vcombine.high %v283_v2, %v287_v3  ;;  %v10183_v16 = vcombine.low %v283_v2, %v287_v3 }
  0x61   :  { %v10186_v9 = vcombine.high %v284_v4, %v288_v5  ;;  %v10185_v17 = vcombine.low %v284_v4, %v288_v5  ;;  %v340_v2 = vld [vmem:[%s16165_s1 + $0x988] sm:$0xff]  ;;  %v10233_v5 = vcombine.low %v332_v58, %v336_v59 }
  0x62   :  { %6333 = vmatpush1.bf16.msra.mxu0 %v10119_v10  ;;  %6661 = vmatpush1.bf16.msra.mxu1 %v10121_v11  ;;  %v291_v10 = vld [vmem:[%s16165_s1 + $0x800] sm:$0xff]  ;;  %v344_v3 = vld [vmem:[%s16165_s1 + $0x9a8] sm:$0xff] }
  0x63   :  { %6334 = vmatprep.subr.bf16.mxu0 %v10128_v13  ;;  %6662 = vmatprep.subr.bf16.mxu1 %v10130_v14  ;;  %v295_v11 = vld [vmem:[%s16165_s1 + $0x820] sm:$0xff]  ;;  %v292_v13 = vld [vmem:[%s16165_s1 + $0x808] sm:$0xff] }
  0x64   :  { %v296_v14 = vld [vmem:[%s16165_s1 + $0x828] sm:$0xff]  ;;  %v10192_v53 = vcombine.high %v291_v10, %v295_v11  ;;  %v10191_v26 = vcombine.low %v291_v10, %v295_v11 }
  0x65   :  { %v10194_v18 = vcombine.high %v292_v13, %v296_v14  ;;  %v10193_v27 = vcombine.low %v292_v13, %v296_v14  ;;  %v348_v10 = vld [vmem:[%s16165_s1 + $0x9c8] sm:$0xff]  ;;  %v10241_v14 = vcombine.low %v340_v2, %v344_v3 }
  0x66   :  { %6335 = vmatpush1.bf16.msra.mxu0 %v10127_v19  ;;  %6663 = vmatpush1.bf16.msra.mxu1 %v10129_v20  ;;  %v299_v19 = vld [vmem:[%s16165_s1 + $0x840] sm:$0xff]  ;;  %v352_v11 = vld [vmem:[%s16165_s1 + $0x9e8] sm:$0xff] }
  0x67   :  { %6336 = vmatprep.subr.bf16.mxu0 %v10136_v22  ;;  %6664 = vmatprep.subr.bf16.mxu1 %v10138_v23  ;;  %v303_v20 = vld [vmem:[%s16165_s1 + $0x860] sm:$0xff]  ;;  %v12405_v22 = vcombine.low %v12207_v15, %v12207_v15  ;;  %v300_v23 = vld [vmem:[%s16165_s1 + $0x848] sm:$0xff] }
  0x68   :  { %v10200_v15 = vcombine.high %v299_v19, %v303_v20  ;;  %v10199_v34 = vcombine.low %v299_v19, %v303_v20  ;;  %v10201_v35 = vcombine.low %v300_v23, %v304_v24  ;;  %v356_v19 = vld [vmem:[%s16165_s1 + $0xa08] sm:$0xff] }
  0x69   :  { %v360_v20 = vld [vmem:[%s16165_s1 + $0xa28] sm:$0xff] }
  0x6a   :  { %6337 = vmatpush1.bf16.msra.mxu0 %v10135_v28  ;;  %6665 = vmatpush1.bf16.msra.mxu1 %v10137_v29  ;;  %v10202_v28 = vcombine.high %v300_v23, %v304_v24  ;;  %v307_v29 = vld [vmem:[%s16165_s1 + $0x880] sm:$0xff]  ;;  %v10249_v24 = vcombine.low %v348_v10, %v352_v11 }
  0x6b   :  { %6338 = vmatprep.subr.bf16.mxu0 %v10144_v30  ;;  %6666 = vmatprep.subr.bf16.mxu1 %v10146_v31  ;;  %v311_v30 = vld [vmem:[%s16165_s1 + $0x8a0] sm:$0xff]  ;;  %v12426_v31 = vcombine.high %v12416_v25, %v12416_v25 }
  0x6c   :  { %v10207_v42 = vcombine.low %v307_v29, %v311_v30 }
  0x6e   :  { %6339 = vmatpush1.bf16.msra.mxu0 %v10143_v36  ;;  %6667 = vmatpush1.bf16.msra.mxu1 %v10145_v37  ;;  %v10208_v36 = vcombine.high %v307_v29, %v311_v30  ;;  %v10210_v37 = vcombine.high %v308_v32, %v312_v33  ;;  %v364_v29 = vld [vmem:[%s16165_s1 + $0xa48] sm:$0xff]  ;;  %v10257_v33 = vcombine.low %v356_v19, %v360_v20 }
  0x6f   :  { %6340 = vmatprep.subr.bf16.mxu0 %v10152_v38  ;;  %6668 = vmatprep.subr.bf16.mxu1 %v10154_v39  ;;  %v315_v38 = vld [vmem:[%s16165_s1 + $0x8c0] sm:$0xff]  ;;  %v368_v30 = vld [vmem:[%s16165_s1 + $0xa68] sm:$0xff] }
  0x70   :  { %v319_v39 = vld [vmem:[%s16165_s1 + $0x8e0] sm:$0xff] }
  0x71   :  { %v10215_v50 = vcombine.low %v315_v38, %v319_v39 }
  0x72   :  { %6341 = vmatpush1.bf16.msra.mxu0 %v10151_v44  ;;  %6669 = vmatpush1.bf16.msra.mxu1 %v10153_v45  ;;  %v10216_v44 = vcombine.high %v315_v38, %v319_v39  ;;  %v10218_v45 = vcombine.high %v316_v40, %v320_v41  ;;  %v372_v38 = vld [vmem:[%s16165_s1 + $0xa88] sm:$0xff]  ;;  %v10265_v41 = vcombine.low %v364_v29, %v368_v30 }
  0x73   :  { %6342 = vmatprep.subr.bf16.mxu0 %v10160_v46  ;;  %6670 = vmatprep.subr.bf16.mxu1 %v10162_v47  ;;  %v323_v46 = vld [vmem:[%s16165_s1 + $0x900] sm:$0xff]  ;;  %v376_v39 = vld [vmem:[%s16165_s1 + $0xaa8] sm:$0xff] }
  0x74   :  { %v327_v47 = vld [vmem:[%s16165_s1 + $0x920] sm:$0xff] }
  0x75   :  { %v10223_v60 = vcombine.low %v323_v46, %v327_v47 }
  0x76   :  { %6343 = vmatpush1.bf16.msra.mxu0 %v10159_v52  ;;  %6671 = vmatpush1.bf16.msra.mxu1 %v10161_v54  ;;  %v10224_v52 = vcombine.high %v323_v46, %v327_v47  ;;  %v10226_v54 = vcombine.high %v324_v48, %v328_v49  ;;  %v380_v46 = vld [vmem:[%s16165_s1 + $0xac8] sm:$0xff]  ;;  %v10273_v49 = vcombine.low %v372_v38, %v376_v39 }
  0x77   :  { %6344 = vmatprep.subr.bf16.mxu0 %v10168_v55  ;;  %6672 = vmatprep.subr.bf16.mxu1 %v10170_v56  ;;  %v331_v55 = vld [vmem:[%s16165_s1 + $0x940] sm:$0xff]  ;;  %v384_v47 = vld [vmem:[%s16165_s1 + $0xae8] sm:$0xff] }
  0x78   :  { %v335_v56 = vld [vmem:[%s16165_s1 + $0x960] sm:$0xff] }
  0x79   :  { %v10231_v4 = vcombine.low %v331_v55, %v335_v56 }
  0x7a   :  { %6345 = vmatpush1.bf16.msra.mxu0 %v10167_v62  ;;  %6673 = vmatpush1.bf16.msra.mxu1 %v10169_v63  ;;  %v10232_v62 = vcombine.high %v331_v55, %v335_v56  ;;  %v10234_v63 = vcombine.high %v332_v58, %v336_v59  ;;  %v388_v55 = vld [vmem:[%s16165_s1 + $0xb08] sm:$0xff]  ;;  %v10281_v59 = vcombine.low %v380_v46, %v384_v47 }
  0x7b   :  { %6346 = vmatprep.subr.bf16.mxu0 %v10176_v0  ;;  %6674 = vmatprep.subr.bf16.mxu1 %v10178_v1  ;;  %v339_v0 = vld [vmem:[%s16165_s1 + $0x980] sm:$0xff]  ;;  %v392_v56 = vld [vmem:[%s16165_s1 + $0xb28] sm:$0xff] }
  0x7c   :  { %v343_v1 = vld [vmem:[%s16165_s1 + $0x9a0] sm:$0xff] }
  0x7d   :  { %v10239_v13 = vcombine.low %v339_v0, %v343_v1 }
  0x7e   :  { %6347 = vmatpush1.bf16.msra.mxu0 %v10175_v6  ;;  %6675 = vmatpush1.bf16.msra.mxu1 %v10177_v7  ;;  %v10240_v6 = vcombine.high %v339_v0, %v343_v1  ;;  %v10242_v7 = vcombine.high %v340_v2, %v344_v3  ;;  %v396_v0 = vld [vmem:[%s16165_s1 + $0xb48] sm:$0xff]  ;;  %v10289_v3 = vcombine.low %v388_v55, %v392_v56 }
  0x7f   :  { %6348 = vmatprep.subr.bf16.mxu0 %v10184_v8  ;;  %6676 = vmatprep.subr.bf16.mxu1 %v10186_v9  ;;  %v347_v8 = vld [vmem:[%s16165_s1 + $0x9c0] sm:$0xff]  ;;  %v400_v1 = vld [vmem:[%s16165_s1 + $0xb68] sm:$0xff] }
  0x80   :  { %v351_v9 = vld [vmem:[%s16165_s1 + $0x9e0] sm:$0xff] }
  0x81   :  { %v10247_v23 = vcombine.low %v347_v8, %v351_v9 }
  0x82   :  { %6349 = vmatpush1.bf16.msra.mxu0 %v10183_v16  ;;  %6677 = vmatpush1.bf16.msra.mxu1 %v10185_v17  ;;  %v10248_v16 = vcombine.high %v347_v8, %v351_v9  ;;  %v10250_v17 = vcombine.high %v348_v10, %v352_v11  ;;  %v404_v8 = vld [vmem:[%s16165_s1 + $0xb88] sm:$0xff]  ;;  %v10297_v11 = vcombine.low %v396_v0, %v400_v1 }
  0x83   :  { %6359 = vmatprep.subr.bf16.mxu0 %v10192_v53  ;;  %6687 = vmatprep.subr.bf16.mxu1 %v10194_v18  ;;  %v355_v53 = vld [vmem:[%s16165_s1 + $0xa00] sm:$0xff]  ;;  %v408_v9 = vld [vmem:[%s16165_s1 + $0xba8] sm:$0xff] }
  0x84   :  { %v359_v18 = vld [vmem:[%s16165_s1 + $0xa20] sm:$0xff] }
  0x85   :  { %6351 = vmatmul.mubr.bf16.vlgmr.msra.gmra.mrb[0].mxu0 %v12405_v22  ;;  %6679 = vmatmul.mubr.bf16.vlgmr.msra.gmra.mrb[0].mxu1 %v12405_v22  ;;  %v10255_v32 = vcombine.low %v355_v53, %v359_v18 }
  0x86   :  { %6360 = vmatpush1.bf16.msra.mxu0 %v10191_v26  ;;  %6688 = vmatpush1.bf16.msra.mxu1 %v10193_v27  ;;  %v10256_v26 = vcombine.high %v355_v53, %v359_v18  ;;  %v10258_v27 = vcombine.high %v356_v19, %v360_v20  ;;  %v412_v53 = vld [vmem:[%s16165_s1 + $0xbc8] sm:$0xff]  ;;  %v10305_v20 = vcombine.low %v404_v8, %v408_v9 }
  0x87   :  { %6361 = vmatprep.subr.bf16.mxu0 %v10200_v15  ;;  %6689 = vmatprep.subr.bf16.mxu1 %v10202_v28  ;;  %v363_v15 = vld [vmem:[%s16165_s1 + $0xa40] sm:$0xff]  ;;  %v416_v18 = vld [vmem:[%s16165_s1 + $0xbe8] sm:$0xff] }
  0x88   :  { %6391 = vmatprep.mubr.bf16.mxu0 %v12426_v31  ;;  %6719 = vmatprep.mubr.bf16.mxu1 %v12426_v31  ;;  %v367_v28 = vld [vmem:[%s16165_s1 + $0xa60] sm:$0xff] }
  0x89   :  { %v10263_v40 = vcombine.low %v363_v15, %v367_v28 }
  0x8a   :  { %6362 = vmatpush1.bf16.msra.mxu0 %v10199_v34  ;;  %6690 = vmatpush1.bf16.msra.mxu1 %v10201_v35  ;;  %v10264_v34 = vcombine.high %v363_v15, %v367_v28  ;;  %v10266_v35 = vcombine.high %v364_v29, %v368_v30  ;;  %v420_v15 = vld [vmem:[%s16165_s1 + $0xc08] sm:$0xff]  ;;  %v10313_v30 = vcombine.low %v412_v53, %v416_v18 }
  0x8b   :  { %6363 = vmatprep.subr.bf16.mxu0 %v10208_v36  ;;  %6691 = vmatprep.subr.bf16.mxu1 %v10210_v37  ;;  %v371_v36 = vld [vmem:[%s16165_s1 + $0xa80] sm:$0xff]  ;;  %v424_v28 = vld [vmem:[%s16165_s1 + $0xc28] sm:$0xff] }
  0x8c   :  { %v375_v37 = vld [vmem:[%s16165_s1 + $0xaa0] sm:$0xff] }
  0x8d   :  { %v10271_v48 = vcombine.low %v371_v36, %v375_v37 }
  0x8e   :  { %6364 = vmatpush1.bf16.msra.mxu0 %v10207_v42  ;;  %6692 = vmatpush1.bf16.msra.mxu1 %v10209_v43  ;;  %v10272_v42 = vcombine.high %v371_v36, %v375_v37  ;;  %v10274_v43 = vcombine.high %v372_v38, %v376_v39  ;;  %v12614_v36 = vcombine.low %v12416_v25, %v12416_v25  ;;  %v428_v37 = vld [vmem:[%s16165_s1 + $0xc48] sm:$0xff]  ;;  %v12625_v39 = vld [vmem:[%s16166_s0 + $0x18] sm:$0xff] }
  0x8f   :  { %6365 = vmatprep.subr.bf16.mxu0 %v10216_v44  ;;  %6693 = vmatprep.subr.bf16.mxu1 %v10218_v45  ;;  %v379_v44 = vld [vmem:[%s16165_s1 + $0xac0] sm:$0xff]  ;;  %v432_v38 = vld [vmem:[%s16165_s1 + $0xc68] sm:$0xff] }
  0x90   :  { %v383_v45 = vld [vmem:[%s16165_s1 + $0xae0] sm:$0xff] }
  0x91   :  { %v10279_v58 = vcombine.low %v379_v44, %v383_v45 }
  0x92   :  { %6366 = vmatpush1.bf16.msra.mxu0 %v10215_v50  ;;  %6694 = vmatpush1.bf16.msra.mxu1 %v10217_v51  ;;  %v10280_v50 = vcombine.high %v379_v44, %v383_v45  ;;  %v10282_v51 = vcombine.high %v380_v46, %v384_v47  ;;  %v439_v44 = vld [vmem:[%s16165_s1 + $0xca0] sm:$0xff]  ;;  %v12635_v45 = vcombine.high %v12625_v39, %v12625_v39  ;;  %v436_v46 = vld [vmem:[%s16165_s1 + $0xc88] sm:$0xff] }
  0x93   :  { %6367 = vmatprep.subr.bf16.mxu0 %v10224_v52  ;;  %6695 = vmatprep.subr.bf16.mxu1 %v10226_v54  ;;  %v387_v52 = vld [vmem:[%s16165_s1 + $0xb00] sm:$0xff]  ;;  %v440_v47 = vld [vmem:[%s16165_s1 + $0xca8] sm:$0xff] }
  0x94   :  { %v391_v54 = vld [vmem:[%s16165_s1 + $0xb20] sm:$0xff] }
  0x95   :  { %v10287_v2 = vcombine.low %v387_v52, %v391_v54 }
  0x96   :  { %6368 = vmatpush1.bf16.msra.mxu0 %v10223_v60  ;;  %6696 = vmatpush1.bf16.msra.mxu1 %v10225_v61  ;;  %v10288_v60 = vcombine.high %v387_v52, %v391_v54  ;;  %v10290_v61 = vcombine.high %v388_v55, %v392_v56  ;;  %v443_v52 = vld [vmem:[%s16165_s1 + $0xcc0] sm:$0xff]  ;;  %v444_v55 = vld [vmem:[%s16165_s1 + $0xcc8] sm:$0xff] }
  0x97   :  { %6369 = vmatprep.subr.bf16.mxu0 %v10232_v62  ;;  %6697 = vmatprep.subr.bf16.mxu1 %v10234_v63  ;;  %v395_v62 = vld [vmem:[%s16165_s1 + $0xb40] sm:$0xff]  ;;  %v448_v56 = vld [vmem:[%s16165_s1 + $0xce8] sm:$0xff] }
  0x98   :  { %v399_v63 = vld [vmem:[%s16165_s1 + $0xb60] sm:$0xff] }
  0x99   :  { %v10295_v10 = vcombine.low %v395_v62, %v399_v63  ;;  %v447_v54 = vld [vmem:[%s16165_s1 + $0xce0] sm:$0xff] }
  0x9a   :  { %6370 = vmatpush1.bf16.msra.mxu0 %v10231_v4  ;;  %6698 = vmatpush1.bf16.msra.mxu1 %v10233_v5  ;;  %v10296_v4 = vcombine.high %v395_v62, %v399_v63  ;;  %v10298_v5 = vcombine.high %v396_v0, %v400_v1  ;;  %v451_v62 = vld [vmem:[%s16165_s1 + $0xd00] sm:$0xff]  ;;  %v452_v0 = vld [vmem:[%s16165_s1 + $0xd08] sm:$0xff] }
  0x9b   :  { %6371 = vmatprep.subr.bf16.mxu0 %v10240_v6  ;;  %6699 = vmatprep.subr.bf16.mxu1 %v10242_v7  ;;  %v403_v6 = vld [vmem:[%s16165_s1 + $0xb80] sm:$0xff]  ;;  %v456_v1 = vld [vmem:[%s16165_s1 + $0xd28] sm:$0xff] }
  0x9c   :  { %v407_v7 = vld [vmem:[%s16165_s1 + $0xba0] sm:$0xff] }
  0x9d   :  { %v10303_v19 = vcombine.low %v403_v6, %v407_v7  ;;  %v455_v63 = vld [vmem:[%s16165_s1 + $0xd20] sm:$0xff] }
  0x9e   :  { %6372 = vmatpush1.bf16.msra.mxu0 %v10239_v13  ;;  %6700 = vmatpush1.bf16.msra.mxu1 %v10241_v14  ;;  %v10304_v13 = vcombine.high %v403_v6, %v407_v7  ;;  %v10306_v14 = vcombine.high %v404_v8, %v408_v9  ;;  %v459_v6 = vld [vmem:[%s16165_s1 + $0xd40] sm:$0xff]  ;;  %v460_v8 = vld [vmem:[%s16165_s1 + $0xd48] sm:$0xff] }
  0x9f   :  { %6373 = vmatprep.subr.bf16.mxu0 %v10248_v16  ;;  %6701 = vmatprep.subr.bf16.mxu1 %v10250_v17  ;;  %v411_v16 = vld [vmem:[%s16165_s1 + $0xbc0] sm:$0xff]  ;;  %v464_v9 = vld [vmem:[%s16165_s1 + $0xd68] sm:$0xff] }
  0xa0   :  { %v415_v17 = vld [vmem:[%s16165_s1 + $0xbe0] sm:$0xff] }
  0xa1   :  { %v10311_v29 = vcombine.low %v411_v16, %v415_v17  ;;  %v463_v7 = vld [vmem:[%s16165_s1 + $0xd60] sm:$0xff] }
  0xa2   :  { %6374 = vmatpush1.bf16.msra.mxu0 %v10247_v23  ;;  %6702 = vmatpush1.bf16.msra.mxu1 %v10249_v24  ;;  %v10312_v23 = vcombine.high %v411_v16, %v415_v17  ;;  %v10314_v24 = vcombine.high %v412_v53, %v416_v18  ;;  %v467_v16 = vld [vmem:[%s16165_s1 + $0xd80] sm:$0xff]  ;;  %v468_v53 = vld [vmem:[%s16165_s1 + $0xd88] sm:$0xff] }
  0xa3   :  { %6375 = vmatprep.subr.bf16.mxu0 %v10256_v26  ;;  %6703 = vmatprep.subr.bf16.mxu1 %v10258_v27  ;;  %v419_v26 = vld [vmem:[%s16165_s1 + $0xc00] sm:$0xff]  ;;  %v472_v18 = vld [vmem:[%s16165_s1 + $0xda8] sm:$0xff] }
  0xa4   :  { %v423_v27 = vld [vmem:[%s16165_s1 + $0xc20] sm:$0xff] }
  0xa5   :  { %v471_v17 = vld [vmem:[%s16165_s1 + $0xda0] sm:$0xff] }
  0xa6   :  { %6376 = vmatpush1.bf16.msra.mxu0 %v10255_v32  ;;  %6704 = vmatpush1.bf16.msra.mxu1 %v10257_v33  ;;  %v10320_v32 = vcombine.high %v419_v26, %v423_v27  ;;  %v10322_v33 = vcombine.high %v420_v15, %v424_v28 }
  0xa7   :  { %6377 = vmatprep.subr.bf16.mxu0 %v10264_v34  ;;  %6705 = vmatprep.subr.bf16.mxu1 %v10266_v35  ;;  %v427_v34 = vld [vmem:[%s16165_s1 + $0xc40] sm:$0xff] }
  0xa8   :  { %v431_v35 = vld [vmem:[%s16165_s1 + $0xc60] sm:$0xff] }
  0xa9   :  { %v10328_v25 = vcombine.high %v427_v34, %v431_v35 }
  0xaa   :  { %6378 = vmatpush1.bf16.msra.mxu0 %v10263_v40  ;;  %6706 = vmatpush1.bf16.msra.mxu1 %v10265_v41  ;;  %v10319_v40 = vcombine.low %v419_v26, %v423_v27  ;;  %v10321_v41 = vcombine.low %v420_v15, %v424_v28  ;;  %v475_v26 = vld [vmem:[%s16165_s1 + $0xdc0] sm:$0xff]  ;;  %v476_v15 = vld [vmem:[%s16165_s1 + $0xdc8] sm:$0xff] }
  0xab   :  { %6379 = vmatprep.subr.bf16.mxu0 %v10272_v42  ;;  %6707 = vmatprep.subr.bf16.mxu1 %v10274_v43  ;;  %v10330_v42 = vcombine.high %v428_v37, %v432_v38  ;;  %v435_v43 = vld [vmem:[%s16165_s1 + $0xc80] sm:$0xff]  ;;  %v480_v28 = vld [vmem:[%s16165_s1 + $0xde8] sm:$0xff] }
  0xac   :  { %v479_v27 = vld [vmem:[%s16165_s1 + $0xde0] sm:$0xff] }
  0xae   :  { %6380 = vmatpush1.bf16.msra.mxu0 %v10271_v48  ;;  %6708 = vmatpush1.bf16.msra.mxu1 %v10273_v49  ;;  %v10327_v48 = vcombine.low %v427_v34, %v431_v35  ;;  %v10329_v49 = vcombine.low %v428_v37, %v432_v38  ;;  %v483_v34 = vld [vmem:[%s16165_s1 + $0xe00] sm:$0xff]  ;;  %v484_v37 = vld [vmem:[%s16165_s1 + $0xe08] sm:$0xff] }
  0xaf   :  { %6381 = vmatprep.subr.bf16.mxu0 %v10280_v50  ;;  %6709 = vmatprep.subr.bf16.mxu1 %v10282_v51  ;;  %v10336_v50 = vcombine.high %v435_v43, %v439_v44  ;;  %v10338_v51 = vcombine.high %v436_v46, %v440_v47  ;;  %v487_v35 = vld [vmem:[%s16165_s1 + $0xe20] sm:$0xff]  ;;  %v488_v38 = vld [vmem:[%s16165_s1 + $0xe28] sm:$0xff] }
  0xb2   :  { %6382 = vmatpush1.bf16.msra.mxu0 %v10279_v58  ;;  %6710 = vmatpush1.bf16.msra.mxu1 %v10281_v59  ;;  %v10335_v58 = vcombine.low %v435_v43, %v439_v44  ;;  %v10337_v59 = vcombine.low %v436_v46, %v440_v47  ;;  %v491_v43 = vld [vmem:[%s16165_s1 + $0xe40] sm:$0xff]  ;;  %v492_v46 = vld [vmem:[%s16165_s1 + $0xe48] sm:$0xff] }
  0xb3   :  { %6383 = vmatprep.subr.bf16.mxu0 %v10288_v60  ;;  %6711 = vmatprep.subr.bf16.mxu1 %v10290_v61  ;;  %v10344_v60 = vcombine.high %v443_v52, %v447_v54  ;;  %v10346_v61 = vcombine.high %v444_v55, %v448_v56  ;;  %v495_v44 = vld [vmem:[%s16165_s1 + $0xe60] sm:$0xff]  ;;  %v496_v47 = vld [vmem:[%s16165_s1 + $0xe68] sm:$0xff] }
  0xb6   :  { %6384 = vmatpush1.bf16.msra.mxu0 %v10287_v2  ;;  %6712 = vmatpush1.bf16.msra.mxu1 %v10289_v3  ;;  %v10343_v2 = vcombine.low %v443_v52, %v447_v54  ;;  %v10345_v3 = vcombine.low %v444_v55, %v448_v56  ;;  %v499_v52 = vld [vmem:[%s16165_s1 + $0xe80] sm:$0xff]  ;;  %v500_v55 = vld [vmem:[%s16165_s1 + $0xe88] sm:$0xff] }
  0xb7   :  { %6385 = vmatprep.subr.bf16.mxu0 %v10296_v4  ;;  %6713 = vmatprep.subr.bf16.mxu1 %v10298_v5  ;;  %v10352_v4 = vcombine.high %v451_v62, %v455_v63  ;;  %v10354_v5 = vcombine.high %v452_v0, %v456_v1  ;;  %v503_v54 = vld [vmem:[%s16165_s1 + $0xea0] sm:$0xff]  ;;  %v504_v56 = vld [vmem:[%s16165_s1 + $0xea8] sm:$0xff] }
  0xba   :  { %6386 = vmatpush1.bf16.msra.mxu0 %v10295_v10  ;;  %6714 = vmatpush1.bf16.msra.mxu1 %v10297_v11  ;;  %v10351_v10 = vcombine.low %v451_v62, %v455_v63  ;;  %v10353_v11 = vcombine.low %v452_v0, %v456_v1  ;;  %v507_v62 = vld [vmem:[%s16165_s1 + $0xec0] sm:$0xff]  ;;  %v508_v0 = vld [vmem:[%s16165_s1 + $0xec8] sm:$0xff] }
  0xbb   :  { %6387 = vmatprep.subr.bf16.mxu0 %v10304_v13  ;;  %6715 = vmatprep.subr.bf16.mxu1 %v10306_v14  ;;  %v10360_v13 = vcombine.high %v459_v6, %v463_v7  ;;  %v10362_v14 = vcombine.high %v460_v8, %v464_v9  ;;  %v511_v63 = vld [vmem:[%s16165_s1 + $0xee0] sm:$0xff]  ;;  %v512_v1 = vld [vmem:[%s16165_s1 + $0xee8] sm:$0xff] }
  0xbe   :  { %6388 = vmatpush1.bf16.msra.mxu0 %v10303_v19  ;;  %6716 = vmatpush1.bf16.msra.mxu1 %v10305_v20  ;;  %v10359_v19 = vcombine.low %v459_v6, %v463_v7  ;;  %v10361_v20 = vcombine.low %v460_v8, %v464_v9  ;;  %v515_v6 = vld [vmem:[%s16165_s1 + $0xf00] sm:$0xff]  ;;  %v516_v8 = vld [vmem:[%s16165_s1 + $0xf08] sm:$0xff] }
  0xbf   :  { %6389 = vmatprep.subr.bf16.mxu0 %v10312_v23  ;;  %6717 = vmatprep.subr.bf16.mxu1 %v10314_v24  ;;  %v10368_v23 = vcombine.high %v467_v16, %v471_v17  ;;  %v10370_v24 = vcombine.high %v468_v53, %v472_v18  ;;  %v519_v7 = vld [vmem:[%s16165_s1 + $0xf20] sm:$0xff]  ;;  %v520_v9 = vld [vmem:[%s16165_s1 + $0xf28] sm:$0xff] }
  0xc2   :  { %6390 = vmatpush1.bf16.msra.mxu0 %v10311_v29  ;;  %6718 = vmatpush1.bf16.msra.mxu1 %v10313_v30  ;;  %v10367_v29 = vcombine.low %v467_v16, %v471_v17  ;;  %v10369_v30 = vcombine.low %v468_v53, %v472_v18  ;;  %v523_v16 = vld [vmem:[%s16165_s1 + $0xf40] sm:$0xff]  ;;  %v524_v53 = vld [vmem:[%s16165_s1 + $0xf48] sm:$0xff] }
  0xc3   :  { %6400 = vmatprep.subr.bf16.mxu0 %v10320_v32  ;;  %6728 = vmatprep.subr.bf16.mxu1 %v10322_v33  ;;  %v10376_v32 = vcombine.high %v475_v26, %v479_v27  ;;  %v10378_v33 = vcombine.high %v476_v15, %v480_v28  ;;  %v527_v17 = vld [vmem:[%s16165_s1 + $0xf60] sm:$0xff]  ;;  %v528_v18 = vld [vmem:[%s16165_s1 + $0xf68] sm:$0xff] }
  0xc5   :  { %6392 = vmatmul.mubr.bf16.vlgmr.msra.gmra.mrb[0].mxu0 %v12614_v36  ;;  %6720 = vmatmul.mubr.bf16.vlgmr.msra.gmra.mrb[0].mxu1 %v12614_v36 }
  0xc6   :  { %6401 = vmatpush1.bf16.msra.mxu0 %v10319_v40  ;;  %6729 = vmatpush1.bf16.msra.mxu1 %v10321_v41  ;;  %v10375_v40 = vcombine.low %v475_v26, %v479_v27  ;;  %v10377_v41 = vcombine.low %v476_v15, %v480_v28  ;;  %v531_v26 = vld [vmem:[%s16165_s1 + $0xf80] sm:$0xff]  ;;  %v532_v15 = vld [vmem:[%s16165_s1 + $0xf88] sm:$0xff] }
  0xc7   :  { %6402 = vmatprep.subr.bf16.mxu0 %v10328_v25  ;;  %6730 = vmatprep.subr.bf16.mxu1 %v10330_v42  ;;  %v10384_v25 = vcombine.high %v483_v34, %v487_v35  ;;  %v10386_v42 = vcombine.high %v484_v37, %v488_v38  ;;  %v535_v27 = vld [vmem:[%s16165_s1 + $0xfa0] sm:$0xff]  ;;  %v536_v28 = vld [vmem:[%s16165_s1 + $0xfa8] sm:$0xff] }
  0xc8   :  { %6432 = vmatprep.mubr.bf16.mxu0 %v12635_v45  ;;  %6760 = vmatprep.mubr.bf16.mxu1 %v12635_v45 }
  0xca   :  { %6403 = vmatpush1.bf16.msra.mxu0 %v10327_v48  ;;  %6731 = vmatpush1.bf16.msra.mxu1 %v10329_v49  ;;  %v10383_v48 = vcombine.low %v483_v34, %v487_v35  ;;  %v10385_v49 = vcombine.low %v484_v37, %v488_v38  ;;  %v539_v34 = vld [vmem:[%s16165_s1 + $0xfc0] sm:$0xff]  ;;  %v540_v37 = vld [vmem:[%s16165_s1 + $0xfc8] sm:$0xff] }
  0xcb   :  { %6404 = vmatprep.subr.bf16.mxu0 %v10336_v50  ;;  %6732 = vmatprep.subr.bf16.mxu1 %v10338_v51  ;;  %v10392_v50 = vcombine.high %v491_v43, %v495_v44  ;;  %v10394_v51 = vcombine.high %v492_v46, %v496_v47  ;;  %v543_v35 = vld [vmem:[%s16165_s1 + $0xfe0] sm:$0xff]  ;;  %v544_v38 = vld [vmem:[%s16165_s1 + $0xfe8] sm:$0xff] }
  0xce   :  { %6405 = vmatpush1.bf16.msra.mxu0 %v10335_v58  ;;  %6733 = vmatpush1.bf16.msra.mxu1 %v10337_v59  ;;  %v10391_v58 = vcombine.low %v491_v43, %v495_v44  ;;  %v10393_v59 = vcombine.low %v492_v46, %v496_v47  ;;  %v547_v43 = vld [vmem:[%s16165_s1 + $0x1000] sm:$0xff]  ;;  %v548_v46 = vld [vmem:[%s16165_s1 + $0x1008] sm:$0xff] }
  0xcf   :  { %6406 = vmatprep.subr.bf16.mxu0 %v10344_v60  ;;  %6734 = vmatprep.subr.bf16.mxu1 %v10346_v61  ;;  %v10400_v60 = vcombine.high %v499_v52, %v503_v54  ;;  %v10402_v61 = vcombine.high %v500_v55, %v504_v56  ;;  %v551_v44 = vld [vmem:[%s16165_s1 + $0x1020] sm:$0xff]  ;;  %v552_v47 = vld [vmem:[%s16165_s1 + $0x1028] sm:$0xff] }
  0xd2   :  { %6407 = vmatpush1.bf16.msra.mxu0 %v10343_v2  ;;  %6735 = vmatpush1.bf16.msra.mxu1 %v10345_v3  ;;  %v10399_v2 = vcombine.low %v499_v52, %v503_v54  ;;  %v10401_v3 = vcombine.low %v500_v55, %v504_v56  ;;  %v555_v52 = vld [vmem:[%s16165_s1 + $0x1040] sm:$0xff]  ;;  %v12823_v55 = vcombine.low %v12625_v39, %v12625_v39  ;;  %v556_v56 = vld [vmem:[%s16165_s1 + $0x1048] sm:$0xff] }
  0xd3   :  { %6408 = vmatprep.subr.bf16.mxu0 %v10352_v4  ;;  %6736 = vmatprep.subr.bf16.mxu1 %v10354_v5  ;;  %v10408_v4 = vcombine.high %v507_v62, %v511_v63  ;;  %v10410_v5 = vcombine.high %v508_v0, %v512_v1  ;;  %v559_v54 = vld [vmem:[%s16165_s1 + $0x1060] sm:$0xff] }
  0xd4   :  { %v10456_v39 = vcombine.high %v555_v52, %v559_v54 }
  0xd6   :  { %6409 = vmatpush1.bf16.msra.mxu0 %v10351_v10  ;;  %6737 = vmatpush1.bf16.msra.mxu1 %v10353_v11  ;;  %v10407_v10 = vcombine.low %v507_v62, %v511_v63  ;;  %v10409_v11 = vcombine.low %v508_v0, %v512_v1  ;;  %v563_v63 = vld [vmem:[%s16165_s1 + $0x1080] sm:$0xff] }
  0xd7   :  { %6410 = vmatprep.subr.bf16.mxu0 %v10360_v13  ;;  %6738 = vmatprep.subr.bf16.mxu1 %v10362_v14  ;;  %v10416_v13 = vcombine.high %v515_v6, %v519_v7  ;;  %v10418_v14 = vcombine.high %v516_v8, %v520_v9  ;;  %v567_v0 = vld [vmem:[%s16165_s1 + $0x10a0] sm:$0xff] }
  0xda   :  { %6411 = vmatpush1.bf16.msra.mxu0 %v10359_v19  ;;  %6739 = vmatpush1.bf16.msra.mxu1 %v10361_v20  ;;  %v10415_v19 = vcombine.low %v515_v6, %v519_v7  ;;  %v10417_v20 = vcombine.low %v516_v8, %v520_v9  ;;  %v10464_v6 = vcombine.high %v563_v63, %v567_v0  ;;  %v571_v8 = vld [vmem:[%s16165_s1 + $0x10c0] sm:$0xff] }
  0xdb   :  { %6412 = vmatprep.subr.bf16.mxu0 %v10368_v23  ;;  %6740 = vmatprep.subr.bf16.mxu1 %v10370_v24  ;;  %v10424_v23 = vcombine.high %v523_v16, %v527_v17  ;;  %v10426_v24 = vcombine.high %v524_v53, %v528_v18  ;;  %v575_v9 = vld [vmem:[%s16165_s1 + $0x10e0] sm:$0xff] }
  0xde   :  { %6413 = vmatpush1.bf16.msra.mxu0 %v10367_v29  ;;  %6741 = vmatpush1.bf16.msra.mxu1 %v10369_v30  ;;  %v10423_v29 = vcombine.low %v523_v16, %v527_v17  ;;  %v10425_v30 = vcombine.low %v524_v53, %v528_v18  ;;  %v10472_v16 = vcombine.high %v571_v8, %v575_v9  ;;  %v579_v53 = vld [vmem:[%s16165_s1 + $0x1100] sm:$0xff] }
  0xdf   :  { %6414 = vmatprep.subr.bf16.mxu0 %v10376_v32  ;;  %6742 = vmatprep.subr.bf16.mxu1 %v10378_v33  ;;  %v10432_v32 = vcombine.high %v531_v26, %v535_v27  ;;  %v10434_v33 = vcombine.high %v532_v15, %v536_v28  ;;  %v583_v18 = vld [vmem:[%s16165_s1 + $0x1120] sm:$0xff] }
  0xe2   :  { %6415 = vmatpush1.bf16.msra.mxu0 %v10375_v40  ;;  %6743 = vmatpush1.bf16.msra.mxu1 %v10377_v41  ;;  %v10431_v40 = vcombine.low %v531_v26, %v535_v27  ;;  %v10433_v41 = vcombine.low %v532_v15, %v536_v28  ;;  %v10480_v26 = vcombine.high %v579_v53, %v583_v18  ;;  %v587_v15 = vld [vmem:[%s16165_s1 + $0x1140] sm:$0xff] }
  0xe3   :  { %6416 = vmatprep.subr.bf16.mxu0 %v10384_v25  ;;  %6744 = vmatprep.subr.bf16.mxu1 %v10386_v42  ;;  %v10440_v25 = vcombine.high %v539_v34, %v543_v35  ;;  %v10442_v42 = vcombine.high %v540_v37, %v544_v38  ;;  %v591_v28 = vld [vmem:[%s16165_s1 + $0x1160] sm:$0xff] }
  0xe6   :  { %6417 = vmatpush1.bf16.msra.mxu0 %v10383_v48  ;;  %6745 = vmatpush1.bf16.msra.mxu1 %v10385_v49  ;;  %v10439_v48 = vcombine.low %v539_v34, %v543_v35  ;;  %v10441_v49 = vcombine.low %v540_v37, %v544_v38  ;;  %v10488_v34 = vcombine.high %v587_v15, %v591_v28  ;;  %v595_v37 = vld [vmem:[%s16165_s1 + $0x1180] sm:$0xff] }
  0xe7   :  { %6418 = vmatprep.subr.bf16.mxu0 %v10392_v50  ;;  %6746 = vmatprep.subr.bf16.mxu1 %v10394_v51  ;;  %v10448_v50 = vcombine.high %v547_v43, %v551_v44  ;;  %v10450_v51 = vcombine.high %v548_v46, %v552_v47  ;;  %v599_v38 = vld [vmem:[%s16165_s1 + $0x11a0] sm:$0xff] }
  0xea   :  { %6419 = vmatpush1.bf16.msra.mxu0 %v10391_v58  ;;  %6747 = vmatpush1.bf16.msra.mxu1 %v10393_v59  ;;  %v560_v58 = vld [vmem:[%s16165_s1 + $0x1068] sm:$0xff]  ;;  %v12834_v59 = vld [vmem:[%s16166_s0 + $0x20] sm:$0xff] }
  0xeb   :  { %6420 = vmatprep.subr.bf16.mxu0 %v10400_v60  ;;  %6748 = vmatprep.subr.bf16.mxu1 %v10402_v61  ;;  %v10447_v60 = vcombine.low %v547_v43, %v551_v44  ;;  %v10449_v61 = vcombine.low %v548_v46, %v552_v47  ;;  %v10458_v62 = vcombine.high %v556_v56, %v560_v58  ;;  %v603_v46 = vld [vmem:[%s16165_s1 + $0x11c0] sm:$0xff] }
  0xec   :  { %v12844_v1 = vcombine.high %v12834_v59, %v12834_v59  ;;  %v10496_v43 = vcombine.high %v595_v37, %v599_v38  ;;  %v607_v47 = vld [vmem:[%s16165_s1 + $0x11e0] sm:$0xff] }
  0xee   :  { %6421 = vmatpush1.bf16.msra.mxu0 %v10399_v2  ;;  %6749 = vmatpush1.bf16.msra.mxu1 %v10401_v3  ;;  %v564_v2 = vld [vmem:[%s16165_s1 + $0x1088] sm:$0xff] }
  0xef   :  { %6422 = vmatprep.subr.bf16.mxu0 %v10408_v4  ;;  %6750 = vmatprep.subr.bf16.mxu1 %v10410_v5  ;;  %v568_v3 = vld [vmem:[%s16165_s1 + $0x10a8] sm:$0xff]  ;;  %v10455_v4 = vcombine.low %v555_v52, %v559_v54  ;;  %v10457_v5 = vcombine.low %v556_v56, %v560_v58  ;;  %v10504_v52 = vcombine.high %v603_v46, %v607_v47  ;;  %v611_v56 = vld [vmem:[%s16165_s1 + $0x1200] sm:$0xff] }
  0xf0   :  { %v10466_v7 = vcombine.high %v564_v2, %v568_v3  ;;  %v615_v58 = vld [vmem:[%s16165_s1 + $0x1220] sm:$0xff] }
  0xf2   :  { %6423 = vmatpush1.bf16.msra.mxu0 %v10407_v10  ;;  %6751 = vmatpush1.bf16.msra.mxu1 %v10409_v11  ;;  %v572_v10 = vld [vmem:[%s16165_s1 + $0x10c8] sm:$0xff] }
  0xf3   :  { %6424 = vmatprep.subr.bf16.mxu0 %v10416_v13  ;;  %6752 = vmatprep.subr.bf16.mxu1 %v10418_v14  ;;  %v576_v11 = vld [vmem:[%s16165_s1 + $0x10e8] sm:$0xff]  ;;  %v10463_v13 = vcombine.low %v563_v63, %v567_v0  ;;  %v10465_v14 = vcombine.low %v564_v2, %v568_v3  ;;  %v10512_v63 = vcombine.high %v611_v56, %v615_v58  ;;  %v619_v2 = vld [vmem:[%s16165_s1 + $0x1240] sm:$0xff] }
  0xf4   :  { %v10474_v17 = vcombine.high %v572_v10, %v576_v11  ;;  %v623_v3 = vld [vmem:[%s16165_s1 + $0x1260] sm:$0xff] }
  0xf6   :  { %6425 = vmatpush1.bf16.msra.mxu0 %v10415_v19  ;;  %6753 = vmatpush1.bf16.msra.mxu1 %v10417_v20  ;;  %v580_v19 = vld [vmem:[%s16165_s1 + $0x1108] sm:$0xff] }
  0xf7   :  { %6426 = vmatprep.subr.bf16.mxu0 %v10424_v23  ;;  %6754 = vmatprep.subr.bf16.mxu1 %v10426_v24  ;;  %v584_v20 = vld [vmem:[%s16165_s1 + $0x1128] sm:$0xff]  ;;  %v10471_v23 = vcombine.low %v571_v8, %v575_v9  ;;  %v10473_v24 = vcombine.low %v572_v10, %v576_v11  ;;  %v10520_v8 = vcombine.high %v619_v2, %v623_v3  ;;  %v627_v10 = vld [vmem:[%s16165_s1 + $0x1280] sm:$0xff] }
  0xf8   :  { %v10482_v27 = vcombine.high %v580_v19, %v584_v20  ;;  %v631_v11 = vld [vmem:[%s16165_s1 + $0x12a0] sm:$0xff] }
  0xfa   :  { %6427 = vmatpush1.bf16.msra.mxu0 %v10423_v29  ;;  %6755 = vmatpush1.bf16.msra.mxu1 %v10425_v30  ;;  %v588_v29 = vld [vmem:[%s16165_s1 + $0x1148] sm:$0xff] }
  0xfb   :  { %6428 = vmatprep.subr.bf16.mxu0 %v10432_v32  ;;  %6756 = vmatprep.subr.bf16.mxu1 %v10434_v33  ;;  %v592_v30 = vld [vmem:[%s16165_s1 + $0x1168] sm:$0xff]  ;;  %v10479_v32 = vcombine.low %v579_v53, %v583_v18  ;;  %v10481_v33 = vcombine.low %v580_v19, %v584_v20  ;;  %v10528_v53 = vcombine.high %v627_v10, %v631_v11  ;;  %v635_v19 = vld [vmem:[%s16165_s1 + $0x12c0] sm:$0xff] }
  0xfc   :  { %v10490_v35 = vcombine.high %v588_v29, %v592_v30  ;;  %v639_v20 = vld [vmem:[%s16165_s1 + $0x12e0] sm:$0xff] }
  0xfe   :  { %6429 = vmatpush1.bf16.msra.mxu0 %v10431_v40  ;;  %6757 = vmatpush1.bf16.msra.mxu1 %v10433_v41  ;;  %v596_v40 = vld [vmem:[%s16165_s1 + $0x1188] sm:$0xff] }
  0xff   :  { %6430 = vmatprep.subr.bf16.mxu0 %v10440_v25  ;;  %6758 = vmatprep.subr.bf16.mxu1 %v10442_v42  ;;  %v600_v41 = vld [vmem:[%s16165_s1 + $0x11a8] sm:$0xff]  ;;  %v10487_v25 = vcombine.low %v587_v15, %v591_v28  ;;  %v10489_v42 = vcombine.low %v588_v29, %v592_v30  ;;  %v10536_v15 = vcombine.high %v635_v19, %v639_v20  ;;  %v643_v29 = vld [vmem:[%s16165_s1 + $0x1300] sm:$0xff] }
 0x100   :  { %v10498_v44 = vcombine.high %v596_v40, %v600_v41  ;;  %v647_v30 = vld [vmem:[%s16165_s1 + $0x1320] sm:$0xff] }
 0x102   :  { %6431 = vmatpush1.bf16.msra.mxu0 %v10439_v48  ;;  %6759 = vmatpush1.bf16.msra.mxu1 %v10441_v49  ;;  %v604_v48 = vld [vmem:[%s16165_s1 + $0x11c8] sm:$0xff] }
 0x103   :  { %6441 = vmatprep.subr.bf16.mxu0 %v10448_v50  ;;  %6769 = vmatprep.subr.bf16.mxu1 %v10450_v51  ;;  %v608_v49 = vld [vmem:[%s16165_s1 + $0x11e8] sm:$0xff]  ;;  %v10495_v50 = vcombine.low %v595_v37, %v599_v38  ;;  %v10497_v51 = vcombine.low %v596_v40, %v600_v41  ;;  %v10544_v37 = vcombine.high %v643_v29, %v647_v30  ;;  %v651_v40 = vld [vmem:[%s16165_s1 + $0x1340] sm:$0xff] }
 0x104   :  { %v10506_v54 = vcombine.high %v604_v48, %v608_v49  ;;  %v655_v41 = vld [vmem:[%s16165_s1 + $0x1360] sm:$0xff] }
 0x105   :  { %6433 = vmatmul.mubr.bf16.vlgmr.msra.gmra.mrb[0].mxu0 %v12823_v55  ;;  %6761 = vmatmul.mubr.bf16.vlgmr.msra.gmra.mrb[0].mxu1 %v12823_v55 }
 0x106   :  { %6442 = vmatpush1.bf16.msra.mxu0 %v10447_v60  ;;  %6770 = vmatpush1.bf16.msra.mxu1 %v10449_v61  ;;  %v612_v60 = vld [vmem:[%s16165_s1 + $0x1208] sm:$0xff] }
 0x107   :  { %6443 = vmatprep.subr.bf16.mxu0 %v10456_v39  ;;  %6771 = vmatprep.subr.bf16.mxu1 %v10458_v62  ;;  %v616_v61 = vld [vmem:[%s16165_s1 + $0x1228] sm:$0xff]  ;;  %v10503_v39 = vcombine.low %v603_v46, %v607_v47  ;;  %v10505_v62 = vcombine.low %v604_v48, %v608_v49  ;;  %v10552_v46 = vcombine.high %v651_v40, %v655_v41  ;;  %v659_v48 = vld [vmem:[%s16165_s1 + $0x1380] sm:$0xff] }
 0x108   :  { %6473 = vmatprep.mubr.bf16.mxu0 %v12844_v1  ;;  %6801 = vmatprep.mubr.bf16.mxu1 %v12844_v1  ;;  %v10514_v0 = vcombine.high %v612_v60, %v616_v61  ;;  %v663_v49 = vld [vmem:[%s16165_s1 + $0x13a0] sm:$0xff] }
 0x10a   :  { %6444 = vmatpush1.bf16.msra.mxu0 %v10455_v4  ;;  %6772 = vmatpush1.bf16.msra.mxu1 %v10457_v5  ;;  %v620_v4 = vld [vmem:[%s16165_s1 + $0x1248] sm:$0xff] }
 0x10b   :  { %6445 = vmatprep.subr.bf16.mxu0 %v10464_v6  ;;  %6773 = vmatprep.subr.bf16.mxu1 %v10466_v7  ;;  %v624_v5 = vld [vmem:[%s16165_s1 + $0x1268] sm:$0xff]  ;;  %v10511_v6 = vcombine.low %v611_v56, %v615_v58  ;;  %v10513_v7 = vcombine.low %v612_v60, %v616_v61  ;;  %v10560_v56 = vcombine.high %v659_v48, %v663_v49  ;;  %v667_v60 = vld [vmem:[%s16165_s1 + $0x13c0] sm:$0xff] }
 0x10c   :  { %v10522_v9 = vcombine.high %v620_v4, %v624_v5  ;;  %v671_v61 = vld [vmem:[%s16165_s1 + $0x13e0] sm:$0xff] }
 0x10e   :  { %6446 = vmatpush1.bf16.msra.mxu0 %v10463_v13  ;;  %6774 = vmatpush1.bf16.msra.mxu1 %v10465_v14  ;;  %v628_v13 = vld [vmem:[%s16165_s1 + $0x1288] sm:$0xff] }
 0x10f   :  { %6447 = vmatprep.subr.bf16.mxu0 %v10472_v16  ;;  %6775 = vmatprep.subr.bf16.mxu1 %v10474_v17  ;;  %v632_v14 = vld [vmem:[%s16165_s1 + $0x12a8] sm:$0xff]  ;;  %v10519_v16 = vcombine.low %v619_v2, %v623_v3  ;;  %v10521_v17 = vcombine.low %v620_v4, %v624_v5  ;;  %v10568_v2 = vcombine.high %v667_v60, %v671_v61  ;;  %v675_v4 = vld [vmem:[%s16165_s1 + $0x1400] sm:$0xff] }
 0x110   :  { %v10530_v18 = vcombine.high %v628_v13, %v632_v14  ;;  %v679_v5 = vld [vmem:[%s16165_s1 + $0x1420] sm:$0xff] }
 0x112   :  { %6448 = vmatpush1.bf16.msra.mxu0 %v10471_v23  ;;  %6776 = vmatpush1.bf16.msra.mxu1 %v10473_v24  ;;  %v636_v23 = vld [vmem:[%s16165_s1 + $0x12c8] sm:$0xff] }
 0x113   :  { %6449 = vmatprep.subr.bf16.mxu0 %v10480_v26  ;;  %6777 = vmatprep.subr.bf16.mxu1 %v10482_v27  ;;  %v640_v24 = vld [vmem:[%s16165_s1 + $0x12e8] sm:$0xff]  ;;  %v10527_v26 = vcombine.low %v627_v10, %v631_v11  ;;  %v10529_v27 = vcombine.low %v628_v13, %v632_v14  ;;  %v10576_v10 = vcombine.high %v675_v4, %v679_v5  ;;  %v683_v13 = vld [vmem:[%s16165_s1 + $0x1440] sm:$0xff] }
 0x114   :  { %v10538_v28 = vcombine.high %v636_v23, %v640_v24  ;;  %v687_v14 = vld [vmem:[%s16165_s1 + $0x1460] sm:$0xff] }
 0x116   :  { %6450 = vmatpush1.bf16.msra.mxu0 %v10479_v32  ;;  %6778 = vmatpush1.bf16.msra.mxu1 %v10481_v33  ;;  %v644_v32 = vld [vmem:[%s16165_s1 + $0x1308] sm:$0xff] }
 0x117   :  { %6451 = vmatprep.subr.bf16.mxu0 %v10488_v34  ;;  %6779 = vmatprep.subr.bf16.mxu1 %v10490_v35  ;;  %v648_v33 = vld [vmem:[%s16165_s1 + $0x1328] sm:$0xff]  ;;  %v10535_v34 = vcombine.low %v635_v19, %v639_v20  ;;  %v10537_v35 = vcombine.low %v636_v23, %v640_v24  ;;  %v10575_v19 = vcombine.low %v675_v4, %v679_v5  ;;  %v691_v24 = vld [vmem:[%s16165_s1 + $0x1480] sm:$0xff] }
 0x118   :  { %v10546_v38 = vcombine.high %v644_v32, %v648_v33 }
 0x11a   :  { %6452 = vmatpush1.bf16.msra.mxu0 %v10487_v25  ;;  %6780 = vmatpush1.bf16.msra.mxu1 %v10489_v42  ;;  %v652_v25 = vld [vmem:[%s16165_s1 + $0x1348] sm:$0xff] }
 0x11b   :  { %6453 = vmatprep.subr.bf16.mxu0 %v10496_v43  ;;  %6781 = vmatprep.subr.bf16.mxu1 %v10498_v44  ;;  %v656_v42 = vld [vmem:[%s16165_s1 + $0x1368] sm:$0xff]  ;;  %v10543_v43 = vcombine.low %v643_v29, %v647_v30  ;;  %v10545_v44 = vcombine.low %v644_v32, %v648_v33  ;;  %v10583_v29 = vcombine.low %v683_v13, %v687_v14 }
 0x11c   :  { %v10554_v47 = vcombine.high %v652_v25, %v656_v42 }
 0x11e   :  { %6454 = vmatpush1.bf16.msra.mxu0 %v10495_v50  ;;  %6782 = vmatpush1.bf16.msra.mxu1 %v10497_v51  ;;  %v660_v50 = vld [vmem:[%s16165_s1 + $0x1388] sm:$0xff] }
 0x11f   :  { %6455 = vmatprep.subr.bf16.mxu0 %v10504_v52  ;;  %6783 = vmatprep.subr.bf16.mxu1 %v10506_v54  ;;  %v664_v51 = vld [vmem:[%s16165_s1 + $0x13a8] sm:$0xff]  ;;  %v10551_v52 = vcombine.low %v651_v40, %v655_v41  ;;  %v10553_v54 = vcombine.low %v652_v25, %v656_v42 }
 0x120   :  { %v10562_v58 = vcombine.high %v660_v50, %v664_v51 }
 0x122   :  { %6456 = vmatpush1.bf16.msra.mxu0 %v10503_v39  ;;  %6784 = vmatpush1.bf16.msra.mxu1 %v10505_v62  ;;  %v668_v39 = vld [vmem:[%s16165_s1 + $0x13c8] sm:$0xff] }
 0x123   :  { %6457 = vmatprep.subr.bf16.mxu0 %v10512_v63  ;;  %6785 = vmatprep.subr.bf16.mxu1 %v10514_v0  ;;  %v672_v62 = vld [vmem:[%s16165_s1 + $0x13e8] sm:$0xff]  ;;  %v10559_v63 = vcombine.low %v659_v48, %v663_v49  ;;  %v10561_v0 = vcombine.low %v660_v50, %v664_v51 }
 0x124   :  { %v10570_v3 = vcombine.high %v668_v39, %v672_v62 }
 0x126   :  { %6458 = vmatpush1.bf16.msra.mxu0 %v10511_v6  ;;  %6786 = vmatpush1.bf16.msra.mxu1 %v10513_v7  ;;  %v676_v6 = vld [vmem:[%s16165_s1 + $0x1408] sm:$0xff] }
 0x127   :  { %6459 = vmatprep.subr.bf16.mxu0 %v10520_v8  ;;  %6787 = vmatprep.subr.bf16.mxu1 %v10522_v9  ;;  %v680_v7 = vld [vmem:[%s16165_s1 + $0x1428] sm:$0xff]  ;;  %v10567_v8 = vcombine.low %v667_v60, %v671_v61  ;;  %v10569_v9 = vcombine.low %v668_v39, %v672_v62 }
 0x128   :  { %v10578_v11 = vcombine.high %v676_v6, %v680_v7  ;;  %v10577_v20 = vcombine.low %v676_v6, %v680_v7 }
 0x12a   :  { %6460 = vmatpush1.bf16.msra.mxu0 %v10519_v16  ;;  %6788 = vmatpush1.bf16.msra.mxu1 %v10521_v17  ;;  %v13032_v16 = vcombine.low %v12834_v59, %v12834_v59  ;;  %v684_v17 = vld [vmem:[%s16165_s1 + $0x1448] sm:$0xff]  ;;  %v10584_v59 = vcombine.high %v683_v13, %v687_v14 }
 0x12b   :  { %6461 = vmatprep.subr.bf16.mxu0 %v10528_v53  ;;  %6789 = vmatprep.subr.bf16.mxu1 %v10530_v18  ;;  %v688_v53 = vld [vmem:[%s16165_s1 + $0x1468] sm:$0xff] }
 0x12c   :  { %v13043_v18 = vld [vmem:[%s16166_s0 + $0x28] sm:$0xff]  ;;  %v10586_v23 = vcombine.high %v684_v17, %v688_v53  ;;  %v10585_v30 = vcombine.low %v684_v17, %v688_v53 }
 0x12e   :  { %6462 = vmatpush1.bf16.msra.mxu0 %v10527_v26  ;;  %6790 = vmatpush1.bf16.msra.mxu1 %v10529_v27  ;;  %v695_v26 = vld [vmem:[%s16165_s1 + $0x14a0] sm:$0xff]  ;;  %v13053_v27 = vcombine.high %v13043_v18, %v13043_v18 }
 0x12f   :  { %6463 = vmatprep.subr.bf16.mxu0 %v10536_v15  ;;  %6791 = vmatprep.subr.bf16.mxu1 %v10538_v28  ;;  %v692_v15 = vld [vmem:[%s16165_s1 + $0x1488] sm:$0xff]  ;;  %v10592_v32 = vcombine.high %v691_v24, %v695_v26  ;;  %v10591_v40 = vcombine.low %v691_v24, %v695_v26 }
 0x130   :  { %v696_v28 = vld [vmem:[%s16165_s1 + $0x14a8] sm:$0xff] }
 0x131   :  { %v10594_v33 = vcombine.high %v692_v15, %v696_v28  ;;  %v10593_v41 = vcombine.low %v692_v15, %v696_v28 }
 0x132   :  { %6464 = vmatpush1.bf16.msra.mxu0 %v10535_v34  ;;  %6792 = vmatpush1.bf16.msra.mxu1 %v10537_v35  ;;  %v699_v34 = vld [vmem:[%s16165_s1 + $0x14c0] sm:$0xff] }
 0x133   :  { %6465 = vmatprep.subr.bf16.mxu0 %v10544_v37  ;;  %6793 = vmatprep.subr.bf16.mxu1 %v10546_v38  ;;  %v703_v35 = vld [vmem:[%s16165_s1 + $0x14e0] sm:$0xff]  ;;  %v700_v37 = vld [vmem:[%s16165_s1 + $0x14c8] sm:$0xff] }
 0x134   :  { %v704_v38 = vld [vmem:[%s16165_s1 + $0x14e8] sm:$0xff]  ;;  %v10600_v25 = vcombine.high %v699_v34, %v703_v35  ;;  %v10599_v48 = vcombine.low %v699_v34, %v703_v35 }
 0x135   :  { %v10602_v42 = vcombine.high %v700_v37, %v704_v38  ;;  %v10601_v49 = vcombine.low %v700_v37, %v704_v38 }
 0x136   :  { %6466 = vmatpush1.bf16.msra.mxu0 %v10543_v43  ;;  %6794 = vmatpush1.bf16.msra.mxu1 %v10545_v44  ;;  %v707_v43 = vld [vmem:[%s16165_s1 + $0x1500] sm:$0xff] }
 0x137   :  { %6467 = vmatprep.subr.bf16.mxu0 %v10552_v46  ;;  %6795 = vmatprep.subr.bf16.mxu1 %v10554_v47  ;;  %v711_v44 = vld [vmem:[%s16165_s1 + $0x1520] sm:$0xff]  ;;  %v708_v46 = vld [vmem:[%s16165_s1 + $0x1508] sm:$0xff] }
 0x138   :  { %v712_v47 = vld [vmem:[%s16165_s1 + $0x1528] sm:$0xff]  ;;  %v10608_v50 = vcombine.high %v707_v43, %v711_v44  ;;  %v10607_v60 = vcombine.low %v707_v43, %v711_v44 }
 0x139   :  { %v10610_v51 = vcombine.high %v708_v46, %v712_v47  ;;  %v10609_v61 = vcombine.low %v708_v46, %v712_v47 }
 0x13a   :  { %6468 = vmatpush1.bf16.msra.mxu0 %v10551_v52  ;;  %6796 = vmatpush1.bf16.msra.mxu1 %v10553_v54  ;;  %v715_v52 = vld [vmem:[%s16165_s1 + $0x1540] sm:$0xff] }
 0x13b   :  { %6469 = vmatprep.subr.bf16.mxu0 %v10560_v56  ;;  %6797 = vmatprep.subr.bf16.mxu1 %v10562_v58  ;;  %v719_v54 = vld [vmem:[%s16165_s1 + $0x1560] sm:$0xff]  ;;  %v716_v56 = vld [vmem:[%s16165_s1 + $0x1548] sm:$0xff] }
 0x13c   :  { %v720_v58 = vld [vmem:[%s16165_s1 + $0x1568] sm:$0xff]  ;;  %v10616_v39 = vcombine.high %v715_v52, %v719_v54  ;;  %v10615_v4 = vcombine.low %v715_v52, %v719_v54 }
 0x13d   :  { %v10618_v62 = vcombine.high %v716_v56, %v720_v58  ;;  %v10617_v5 = vcombine.low %v716_v56, %v720_v58 }
 0x13e   :  { %6470 = vmatpush1.bf16.msra.mxu0 %v10559_v63  ;;  %6798 = vmatpush1.bf16.msra.mxu1 %v10561_v0  ;;  %v723_v63 = vld [vmem:[%s16165_s1 + $0x1580] sm:$0xff] }
 0x13f   :  { %6471 = vmatprep.subr.bf16.mxu0 %v10568_v2  ;;  %6799 = vmatprep.subr.bf16.mxu1 %v10570_v3  ;;  %v727_v0 = vld [vmem:[%s16165_s1 + $0x15a0] sm:$0xff]  ;;  %v724_v2 = vld [vmem:[%s16165_s1 + $0x1588] sm:$0xff] }
 0x140   :  { %v728_v3 = vld [vmem:[%s16165_s1 + $0x15a8] sm:$0xff]  ;;  %v10624_v6 = vcombine.high %v723_v63, %v727_v0  ;;  %v10623_v13 = vcombine.low %v723_v63, %v727_v0 }
 0x141   :  { %v10626_v7 = vcombine.high %v724_v2, %v728_v3  ;;  %v10625_v14 = vcombine.low %v724_v2, %v728_v3 }
 0x142   :  { %6472 = vmatpush1.bf16.msra.mxu0 %v10567_v8  ;;  %6800 = vmatpush1.bf16.msra.mxu1 %v10569_v9  ;;  %v731_v8 = vld [vmem:[%s16165_s1 + $0x15c0] sm:$0xff] }
 0x143   :  { %6482 = vmatprep.subr.bf16.mxu0 %v10576_v10  ;;  %6810 = vmatprep.subr.bf16.mxu1 %v10578_v11  ;;  %v735_v9 = vld [vmem:[%s16165_s1 + $0x15e0] sm:$0xff]  ;;  %v732_v10 = vld [vmem:[%s16165_s1 + $0x15c8] sm:$0xff] }
 0x144   :  { %v736_v11 = vld [vmem:[%s16165_s1 + $0x15e8] sm:$0xff]  ;;  %v10632_v17 = vcombine.high %v731_v8, %v735_v9  ;;  %v10631_v24 = vcombine.low %v731_v8, %v735_v9 }
 0x145   :  { %6474 = vmatmul.mubr.bf16.vlgmr.msra.gmra.mrb[0].mxu0 %v13032_v16  ;;  %6802 = vmatmul.mubr.bf16.vlgmr.msra.gmra.mrb[0].mxu1 %v13032_v16  ;;  %v10634_v53 = vcombine.high %v732_v10, %v736_v11  ;;  %v10633_v26 = vcombine.low %v732_v10, %v736_v11 }
 0x146   :  { %6483 = vmatpush1.bf16.msra.mxu0 %v10575_v19  ;;  %6811 = vmatpush1.bf16.msra.mxu1 %v10577_v20  ;;  %v739_v19 = vld [vmem:[%s16165_s1 + $0x1600] sm:$0xff] }
 0x147   :  { %6484 = vmatprep.subr.bf16.mxu0 %v10584_v59  ;;  %6812 = vmatprep.subr.bf16.mxu1 %v10586_v23  ;;  %v743_v20 = vld [vmem:[%s16165_s1 + $0x1620] sm:$0xff]  ;;  %v740_v59 = vld [vmem:[%s16165_s1 + $0x1608] sm:$0xff] }
 0x148   :  { %6514 = vmatprep.mubr.bf16.mxu0 %v13053_v27  ;;  %6842 = vmatprep.mubr.bf16.mxu1 %v13053_v27  ;;  %v744_v23 = vld [vmem:[%s16165_s1 + $0x1628] sm:$0xff]  ;;  %v10640_v15 = vcombine.high %v739_v19, %v743_v20  ;;  %v10639_v34 = vcombine.low %v739_v19, %v743_v20 }
 0x149   :  { %v10642_v28 = vcombine.high %v740_v59, %v744_v23  ;;  %v10641_v35 = vcombine.low %v740_v59, %v744_v23 }
 0x14a   :  { %6485 = vmatpush1.bf16.msra.mxu0 %v10583_v29  ;;  %6813 = vmatpush1.bf16.msra.mxu1 %v10585_v30  ;;  %v747_v29 = vld [vmem:[%s16165_s1 + $0x1640] sm:$0xff] }
 0x14b   :  { %6486 = vmatprep.subr.bf16.mxu0 %v10592_v32  ;;  %6814 = vmatprep.subr.bf16.mxu1 %v10594_v33  ;;  %v751_v30 = vld [vmem:[%s16165_s1 + $0x1660] sm:$0xff]  ;;  %v748_v32 = vld [vmem:[%s16165_s1 + $0x1648] sm:$0xff] }
 0x14c   :  { %v752_v33 = vld [vmem:[%s16165_s1 + $0x1668] sm:$0xff]  ;;  %v10648_v37 = vcombine.high %v747_v29, %v751_v30  ;;  %v10647_v43 = vcombine.low %v747_v29, %v751_v30 }
 0x14d   :  { %v10650_v38 = vcombine.high %v748_v32, %v752_v33  ;;  %v10649_v44 = vcombine.low %v748_v32, %v752_v33 }
 0x14e   :  { %6487 = vmatpush1.bf16.msra.mxu0 %v10591_v40  ;;  %6815 = vmatpush1.bf16.msra.mxu1 %v10593_v41  ;;  %v755_v40 = vld [vmem:[%s16165_s1 + $0x1680] sm:$0xff] }
 0x14f   :  { %6488 = vmatprep.subr.bf16.mxu0 %v10600_v25  ;;  %6816 = vmatprep.subr.bf16.mxu1 %v10602_v42  ;;  %v759_v41 = vld [vmem:[%s16165_s1 + $0x16a0] sm:$0xff]  ;;  %v756_v25 = vld [vmem:[%s16165_s1 + $0x1688] sm:$0xff] }
 0x150   :  { %v760_v42 = vld [vmem:[%s16165_s1 + $0x16a8] sm:$0xff]  ;;  %v10656_v46 = vcombine.high %v755_v40, %v759_v41  ;;  %v10655_v52 = vcombine.low %v755_v40, %v759_v41 }
 0x151   :  { %v10658_v47 = vcombine.high %v756_v25, %v760_v42  ;;  %v10657_v54 = vcombine.low %v756_v25, %v760_v42 }
 0x152   :  { %6489 = vmatpush1.bf16.msra.mxu0 %v10599_v48  ;;  %6817 = vmatpush1.bf16.msra.mxu1 %v10601_v49  ;;  %v763_v48 = vld [vmem:[%s16165_s1 + $0x16c0] sm:$0xff] }
 0x153   :  { %6490 = vmatprep.subr.bf16.mxu0 %v10608_v50  ;;  %6818 = vmatprep.subr.bf16.mxu1 %v10610_v51  ;;  %v767_v49 = vld [vmem:[%s16165_s1 + $0x16e0] sm:$0xff]  ;;  %v764_v50 = vld [vmem:[%s16165_s1 + $0x16c8] sm:$0xff] }
 0x154   :  { %v768_v51 = vld [vmem:[%s16165_s1 + $0x16e8] sm:$0xff]  ;;  %v10664_v56 = vcombine.high %v763_v48, %v767_v49  ;;  %v10663_v63 = vcombine.low %v763_v48, %v767_v49  ;;  %v13252_v49 = vld [vmem:[%s16166_s0 + $0x30] sm:$0xff] }
 0x155   :  { %v10666_v58 = vcombine.high %v764_v50, %v768_v51  ;;  %v10665_v0 = vcombine.low %v764_v50, %v768_v51  ;;  %v816_v48 = vld [vmem:[%s16165_s1 + $0x1868] sm:$0xff] }
 0x156   :  { %6491 = vmatpush1.bf16.msra.mxu0 %v10607_v60  ;;  %6819 = vmatpush1.bf16.msra.mxu1 %v10609_v61  ;;  %v771_v60 = vld [vmem:[%s16165_s1 + $0x1700] sm:$0xff] }
 0x157   :  { %6492 = vmatprep.subr.bf16.mxu0 %v10616_v39  ;;  %6820 = vmatprep.subr.bf16.mxu1 %v10618_v62  ;;  %v775_v61 = vld [vmem:[%s16165_s1 + $0x1720] sm:$0xff]  ;;  %v772_v39 = vld [vmem:[%s16165_s1 + $0x1708] sm:$0xff] }
 0x158   :  { %v776_v62 = vld [vmem:[%s16165_s1 + $0x1728] sm:$0xff]  ;;  %v10672_v2 = vcombine.high %v771_v60, %v775_v61  ;;  %v10671_v8 = vcombine.low %v771_v60, %v775_v61 }
 0x159   :  { %v10674_v3 = vcombine.high %v772_v39, %v776_v62  ;;  %v10673_v9 = vcombine.low %v772_v39, %v776_v62  ;;  %v820_v60 = vld [vmem:[%s16165_s1 + $0x1888] sm:$0xff] }
 0x15a   :  { %6493 = vmatpush1.bf16.msra.mxu0 %v10615_v4  ;;  %6821 = vmatpush1.bf16.msra.mxu1 %v10617_v5  ;;  %v779_v4 = vld [vmem:[%s16165_s1 + $0x1740] sm:$0xff]  ;;  %v824_v61 = vld [vmem:[%s16165_s1 + $0x18a8] sm:$0xff] }
 0x15b   :  { %6494 = vmatprep.subr.bf16.mxu0 %v10624_v6  ;;  %6822 = vmatprep.subr.bf16.mxu1 %v10626_v7  ;;  %v783_v5 = vld [vmem:[%s16165_s1 + $0x1760] sm:$0xff]  ;;  %v780_v6 = vld [vmem:[%s16165_s1 + $0x1748] sm:$0xff] }
 0x15c   :  { %v784_v7 = vld [vmem:[%s16165_s1 + $0x1768] sm:$0xff]  ;;  %v10680_v10 = vcombine.high %v779_v4, %v783_v5  ;;  %v10679_v19 = vcombine.low %v779_v4, %v783_v5 }
 0x15d   :  { %v10682_v11 = vcombine.high %v780_v6, %v784_v7  ;;  %v10681_v20 = vcombine.low %v780_v6, %v784_v7  ;;  %v828_v4 = vld [vmem:[%s16165_s1 + $0x18c8] sm:$0xff]  ;;  %v10721_v7 = vcombine.low %v820_v60, %v824_v61 }
 0x15e   :  { %6495 = vmatpush1.bf16.msra.mxu0 %v10623_v13  ;;  %6823 = vmatpush1.bf16.msra.mxu1 %v10625_v14  ;;  %v787_v13 = vld [vmem:[%s16165_s1 + $0x1780] sm:$0xff]  ;;  %v832_v5 = vld [vmem:[%s16165_s1 + $0x18e8] sm:$0xff] }
 0x15f   :  { %6496 = vmatprep.subr.bf16.mxu0 %v10632_v17  ;;  %6824 = vmatprep.subr.bf16.mxu1 %v10634_v53  ;;  %v791_v14 = vld [vmem:[%s16165_s1 + $0x17a0] sm:$0xff]  ;;  %v788_v17 = vld [vmem:[%s16165_s1 + $0x1788] sm:$0xff] }
 0x160   :  { %v792_v53 = vld [vmem:[%s16165_s1 + $0x17a8] sm:$0xff]  ;;  %v10688_v59 = vcombine.high %v787_v13, %v791_v14  ;;  %v10687_v29 = vcombine.low %v787_v13, %v791_v14 }
 0x161   :  { %v10690_v23 = vcombine.high %v788_v17, %v792_v53  ;;  %v10689_v30 = vcombine.low %v788_v17, %v792_v53  ;;  %v836_v13 = vld [vmem:[%s16165_s1 + $0x1908] sm:$0xff]  ;;  %v10729_v53 = vcombine.low %v828_v4, %v832_v5 }
 0x162   :  { %6497 = vmatpush1.bf16.msra.mxu0 %v10631_v24  ;;  %6825 = vmatpush1.bf16.msra.mxu1 %v10633_v26  ;;  %v795_v24 = vld [vmem:[%s16165_s1 + $0x17c0] sm:$0xff]  ;;  %v840_v14 = vld [vmem:[%s16165_s1 + $0x1928] sm:$0xff] }
 0x163   :  { %6498 = vmatprep.subr.bf16.mxu0 %v10640_v15  ;;  %6826 = vmatprep.subr.bf16.mxu1 %v10642_v28  ;;  %v799_v26 = vld [vmem:[%s16165_s1 + $0x17e0] sm:$0xff]  ;;  %v796_v15 = vld [vmem:[%s16165_s1 + $0x17c8] sm:$0xff] }
 0x164   :  { %v800_v28 = vld [vmem:[%s16165_s1 + $0x17e8] sm:$0xff]  ;;  %v10696_v32 = vcombine.high %v795_v24, %v799_v26  ;;  %v10695_v40 = vcombine.low %v795_v24, %v799_v26 }
 0x165   :  { %v10698_v33 = vcombine.high %v796_v15, %v800_v28  ;;  %v10697_v41 = vcombine.low %v796_v15, %v800_v28  ;;  %v844_v24 = vld [vmem:[%s16165_s1 + $0x1948] sm:$0xff]  ;;  %v10737_v28 = vcombine.low %v836_v13, %v840_v14 }
 0x166   :  { %6499 = vmatpush1.bf16.msra.mxu0 %v10639_v34  ;;  %6827 = vmatpush1.bf16.msra.mxu1 %v10641_v35  ;;  %v803_v34 = vld [vmem:[%s16165_s1 + $0x1800] sm:$0xff]  ;;  %v848_v26 = vld [vmem:[%s16165_s1 + $0x1968] sm:$0xff] }
 0x167   :  { %6500 = vmatprep.subr.bf16.mxu0 %v10648_v37  ;;  %6828 = vmatprep.subr.bf16.mxu1 %v10650_v38  ;;  %v807_v35 = vld [vmem:[%s16165_s1 + $0x1820] sm:$0xff]  ;;  %v804_v37 = vld [vmem:[%s16165_s1 + $0x1808] sm:$0xff] }
 0x168   :  { %v808_v38 = vld [vmem:[%s16165_s1 + $0x1828] sm:$0xff]  ;;  %v10704_v25 = vcombine.high %v803_v34, %v807_v35  ;;  %v10703_v50 = vcombine.low %v803_v34, %v807_v35 }
 0x169   :  { %v10706_v42 = vcombine.high %v804_v37, %v808_v38  ;;  %v10705_v51 = vcombine.low %v804_v37, %v808_v38  ;;  %v852_v34 = vld [vmem:[%s16165_s1 + $0x1988] sm:$0xff]  ;;  %v10745_v38 = vcombine.low %v844_v24, %v848_v26 }
 0x16a   :  { %6501 = vmatpush1.bf16.msra.mxu0 %v10647_v43  ;;  %6829 = vmatpush1.bf16.msra.mxu1 %v10649_v44  ;;  %v811_v43 = vld [vmem:[%s16165_s1 + $0x1840] sm:$0xff]  ;;  %v856_v35 = vld [vmem:[%s16165_s1 + $0x19a8] sm:$0xff] }
 0x16b   :  { %6502 = vmatprep.subr.bf16.mxu0 %v10656_v46  ;;  %6830 = vmatprep.subr.bf16.mxu1 %v10658_v47  ;;  %v815_v44 = vld [vmem:[%s16165_s1 + $0x1860] sm:$0xff]  ;;  %v13241_v46 = vcombine.low %v13043_v18, %v13043_v18  ;;  %v812_v47 = vld [vmem:[%s16165_s1 + $0x1848] sm:$0xff] }
 0x16c   :  { %v10712_v18 = vcombine.high %v811_v43, %v815_v44  ;;  %v10711_v39 = vcombine.low %v811_v43, %v815_v44  ;;  %v10713_v62 = vcombine.low %v812_v47, %v816_v48  ;;  %v860_v43 = vld [vmem:[%s16165_s1 + $0x19c8] sm:$0xff] }
 0x16d   :  { %v864_v44 = vld [vmem:[%s16165_s1 + $0x19e8] sm:$0xff] }
 0x16e   :  { %6503 = vmatpush1.bf16.msra.mxu0 %v10655_v52  ;;  %6831 = vmatpush1.bf16.msra.mxu1 %v10657_v54  ;;  %v10714_v52 = vcombine.high %v812_v47, %v816_v48  ;;  %v819_v54 = vld [vmem:[%s16165_s1 + $0x1880] sm:$0xff]  ;;  %v10753_v48 = vcombine.low %v852_v34, %v856_v35 }
 0x16f   :  { %6504 = vmatprep.subr.bf16.mxu0 %v10664_v56  ;;  %6832 = vmatprep.subr.bf16.mxu1 %v10666_v58  ;;  %v823_v56 = vld [vmem:[%s16165_s1 + $0x18a0] sm:$0xff]  ;;  %v13262_v58 = vcombine.high %v13252_v49, %v13252_v49 }
 0x170   :  { %v10719_v6 = vcombine.low %v819_v54, %v823_v56 }
 0x172   :  { %6505 = vmatpush1.bf16.msra.mxu0 %v10663_v63  ;;  %6833 = vmatpush1.bf16.msra.mxu1 %v10665_v0  ;;  %v10720_v63 = vcombine.high %v819_v54, %v823_v56  ;;  %v10722_v0 = vcombine.high %v820_v60, %v824_v61  ;;  %v868_v54 = vld [vmem:[%s16165_s1 + $0x1a08] sm:$0xff]  ;;  %v10761_v61 = vcombine.low %v860_v43, %v864_v44 }
 0x173   :  { %6506 = vmatprep.subr.bf16.mxu0 %v10672_v2  ;;  %6834 = vmatprep.subr.bf16.mxu1 %v10674_v3  ;;  %v827_v2 = vld [vmem:[%s16165_s1 + $0x18c0] sm:$0xff]  ;;  %v872_v56 = vld [vmem:[%s16165_s1 + $0x1a28] sm:$0xff] }
 0x174   :  { %v831_v3 = vld [vmem:[%s16165_s1 + $0x18e0] sm:$0xff] }
 0x175   :  { %v10727_v17 = vcombine.low %v827_v2, %v831_v3 }
 0x176   :  { %6507 = vmatpush1.bf16.msra.mxu0 %v10671_v8  ;;  %6835 = vmatpush1.bf16.msra.mxu1 %v10673_v9  ;;  %v10728_v8 = vcombine.high %v827_v2, %v831_v3  ;;  %v10730_v9 = vcombine.high %v828_v4, %v832_v5  ;;  %v876_v2 = vld [vmem:[%s16165_s1 + $0x1a48] sm:$0xff]  ;;  %v10769_v5 = vcombine.low %v868_v54, %v872_v56 }
 0x177   :  { %6508 = vmatprep.subr.bf16.mxu0 %v10680_v10  ;;  %6836 = vmatprep.subr.bf16.mxu1 %v10682_v11  ;;  %v835_v10 = vld [vmem:[%s16165_s1 + $0x1900] sm:$0xff]  ;;  %v880_v3 = vld [vmem:[%s16165_s1 + $0x1a68] sm:$0xff] }
 0x178   :  { %v839_v11 = vld [vmem:[%s16165_s1 + $0x1920] sm:$0xff] }
 0x179   :  { %v10735_v15 = vcombine.low %v835_v10, %v839_v11 }
 0x17a   :  { %6509 = vmatpush1.bf16.msra.mxu0 %v10679_v19  ;;  %6837 = vmatpush1.bf16.msra.mxu1 %v10681_v20  ;;  %v10736_v19 = vcombine.high %v835_v10, %v839_v11  ;;  %v10738_v20 = vcombine.high %v836_v13, %v840_v14  ;;  %v884_v10 = vld [vmem:[%s16165_s1 + $0x1a88] sm:$0xff]  ;;  %v10777_v14 = vcombine.low %v876_v2, %v880_v3 }
 0x17b   :  { %6510 = vmatprep.subr.bf16.mxu0 %v10688_v59  ;;  %6838 = vmatprep.subr.bf16.mxu1 %v10690_v23  ;;  %v843_v59 = vld [vmem:[%s16165_s1 + $0x1940] sm:$0xff]  ;;  %v888_v11 = vld [vmem:[%s16165_s1 + $0x1aa8] sm:$0xff] }
 0x17c   :  { %v847_v23 = vld [vmem:[%s16165_s1 + $0x1960] sm:$0xff] }
 0x17d   :  { %v10743_v37 = vcombine.low %v843_v59, %v847_v23 }
 0x17e   :  { %6511 = vmatpush1.bf16.msra.mxu0 %v10687_v29  ;;  %6839 = vmatpush1.bf16.msra.mxu1 %v10689_v30  ;;  %v10744_v29 = vcombine.high %v843_v59, %v847_v23  ;;  %v10746_v30 = vcombine.high %v844_v24, %v848_v26  ;;  %v892_v59 = vld [vmem:[%s16165_s1 + $0x1ac8] sm:$0xff]  ;;  %v10785_v26 = vcombine.low %v884_v10, %v888_v11 }
 0x17f   :  { %6512 = vmatprep.subr.bf16.mxu0 %v10696_v32  ;;  %6840 = vmatprep.subr.bf16.mxu1 %v10698_v33  ;;  %v851_v32 = vld [vmem:[%s16165_s1 + $0x1980] sm:$0xff]  ;;  %v896_v23 = vld [vmem:[%s16165_s1 + $0x1ae8] sm:$0xff] }
 0x180   :  { %v855_v33 = vld [vmem:[%s16165_s1 + $0x19a0] sm:$0xff] }
 0x181   :  { %v10751_v47 = vcombine.low %v851_v32, %v855_v33 }
 0x182   :  { %6513 = vmatpush1.bf16.msra.mxu0 %v10695_v40  ;;  %6841 = vmatpush1.bf16.msra.mxu1 %v10697_v41  ;;  %v10752_v40 = vcombine.high %v851_v32, %v855_v33  ;;  %v10754_v41 = vcombine.high %v852_v34, %v856_v35  ;;  %v900_v32 = vld [vmem:[%s16165_s1 + $0x1b08] sm:$0xff]  ;;  %v10793_v35 = vcombine.low %v892_v59, %v896_v23 }
 0x183   :  { %6523 = vmatprep.subr.bf16.mxu0 %v10704_v25  ;;  %6851 = vmatprep.subr.bf16.mxu1 %v10706_v42  ;;  %v859_v25 = vld [vmem:[%s16165_s1 + $0x19c0] sm:$0xff]  ;;  %v904_v33 = vld [vmem:[%s16165_s1 + $0x1b28] sm:$0xff] }
 0x184   :  { %v863_v42 = vld [vmem:[%s16165_s1 + $0x19e0] sm:$0xff] }
 0x185   :  { %6515 = vmatmul.mubr.bf16.vlgmr.msra.gmra.mrb[0].mxu0 %v13241_v46  ;;  %6843 = vmatmul.mubr.bf16.vlgmr.msra.gmra.mrb[0].mxu1 %v13241_v46  ;;  %v10759_v60 = vcombine.low %v859_v25, %v863_v42 }
 0x186   :  { %6524 = vmatpush1.bf16.msra.mxu0 %v10703_v50  ;;  %6852 = vmatpush1.bf16.msra.mxu1 %v10705_v51  ;;  %v10760_v50 = vcombine.high %v859_v25, %v863_v42  ;;  %v10762_v51 = vcombine.high %v860_v43, %v864_v44  ;;  %v908_v25 = vld [vmem:[%s16165_s1 + $0x1b48] sm:$0xff]  ;;  %v10801_v44 = vcombine.low %v900_v32, %v904_v33 }
 0x187   :  { %6525 = vmatprep.subr.bf16.mxu0 %v10712_v18  ;;  %6853 = vmatprep.subr.bf16.mxu1 %v10714_v52  ;;  %v867_v18 = vld [vmem:[%s16165_s1 + $0x1a00] sm:$0xff]  ;;  %v912_v42 = vld [vmem:[%s16165_s1 + $0x1b68] sm:$0xff] }
 0x188   :  { %6555 = vmatprep.mubr.bf16.mxu0 %v13262_v58  ;;  %6883 = vmatprep.mubr.bf16.mxu1 %v13262_v58  ;;  %v871_v52 = vld [vmem:[%s16165_s1 + $0x1a20] sm:$0xff] }
 0x189   :  { %v10767_v4 = vcombine.low %v867_v18, %v871_v52 }
 0x18a   :  { %6526 = vmatpush1.bf16.msra.mxu0 %v10711_v39  ;;  %6854 = vmatpush1.bf16.msra.mxu1 %v10713_v62  ;;  %v10768_v39 = vcombine.high %v867_v18, %v871_v52  ;;  %v10770_v62 = vcombine.high %v868_v54, %v872_v56  ;;  %v916_v18 = vld [vmem:[%s16165_s1 + $0x1b88] sm:$0xff]  ;;  %v10809_v56 = vcombine.low %v908_v25, %v912_v42 }
 0x18b   :  { %6527 = vmatprep.subr.bf16.mxu0 %v10720_v63  ;;  %6855 = vmatprep.subr.bf16.mxu1 %v10722_v0  ;;  %v875_v63 = vld [vmem:[%s16165_s1 + $0x1a40] sm:$0xff]  ;;  %v920_v52 = vld [vmem:[%s16165_s1 + $0x1ba8] sm:$0xff] }
 0x18c   :  { %v879_v0 = vld [vmem:[%s16165_s1 + $0x1a60] sm:$0xff] }
 0x18d   :  { %v10775_v13 = vcombine.low %v875_v63, %v879_v0 }
 0x18e   :  { %6528 = vmatpush1.bf16.msra.mxu0 %v10719_v6  ;;  %6856 = vmatpush1.bf16.msra.mxu1 %v10721_v7  ;;  %v10776_v6 = vcombine.high %v875_v63, %v879_v0  ;;  %v10778_v7 = vcombine.high %v876_v2, %v880_v3  ;;  %v924_v63 = vld [vmem:[%s16165_s1 + $0x1bc8] sm:$0xff]  ;;  %v10817_v3 = vcombine.low %v916_v18, %v920_v52 }
 0x18f   :  { %6529 = vmatprep.subr.bf16.mxu0 %v10728_v8  ;;  %6857 = vmatprep.subr.bf16.mxu1 %v10730_v9  ;;  %v883_v8 = vld [vmem:[%s16165_s1 + $0x1a80] sm:$0xff]  ;;  %v928_v0 = vld [vmem:[%s16165_s1 + $0x1be8] sm:$0xff] }
 0x190   :  { %v887_v9 = vld [vmem:[%s16165_s1 + $0x1aa0] sm:$0xff] }
 0x191   :  { %v10783_v24 = vcombine.low %v883_v8, %v887_v9 }
 0x192   :  { %6530 = vmatpush1.bf16.msra.mxu0 %v10727_v17  ;;  %6858 = vmatpush1.bf16.msra.mxu1 %v10729_v53  ;;  %v10784_v17 = vcombine.high %v883_v8, %v887_v9  ;;  %v10786_v53 = vcombine.high %v884_v10, %v888_v11  ;;  %v932_v8 = vld [vmem:[%s16165_s1 + $0x1c08] sm:$0xff]  ;;  %v10825_v11 = vcombine.low %v924_v63, %v928_v0 }
 0x193   :  { %6531 = vmatprep.subr.bf16.mxu0 %v10736_v19  ;;  %6859 = vmatprep.subr.bf16.mxu1 %v10738_v20  ;;  %v891_v19 = vld [vmem:[%s16165_s1 + $0x1ac0] sm:$0xff]  ;;  %v936_v9 = vld [vmem:[%s16165_s1 + $0x1c28] sm:$0xff] }
 0x194   :  { %v895_v20 = vld [vmem:[%s16165_s1 + $0x1ae0] sm:$0xff] }
 0x195   :  { %v10791_v34 = vcombine.low %v891_v19, %v895_v20 }
 0x196   :  { %6532 = vmatpush1.bf16.msra.mxu0 %v10735_v15  ;;  %6860 = vmatpush1.bf16.msra.mxu1 %v10737_v28  ;;  %v10792_v15 = vcombine.high %v891_v19, %v895_v20  ;;  %v10794_v28 = vcombine.high %v892_v59, %v896_v23  ;;  %v13450_v19 = vcombine.low %v13252_v49, %v13252_v49  ;;  %v940_v20 = vld [vmem:[%s16165_s1 + $0x1c48] sm:$0xff]  ;;  %v13461_v23 = vld [vmem:[%s16166_s0 + $0x38] sm:$0xff] }
 0x197   :  { %6533 = vmatprep.subr.bf16.mxu0 %v10744_v29  ;;  %6861 = vmatprep.subr.bf16.mxu1 %v10746_v30  ;;  %v899_v29 = vld [vmem:[%s16165_s1 + $0x1b00] sm:$0xff]  ;;  %v944_v59 = vld [vmem:[%s16165_s1 + $0x1c68] sm:$0xff] }
 0x198   :  { %v903_v30 = vld [vmem:[%s16165_s1 + $0x1b20] sm:$0xff] }
 0x199   :  { %v10799_v43 = vcombine.low %v899_v29, %v903_v30 }
 0x19a   :  { %6534 = vmatpush1.bf16.msra.mxu0 %v10743_v37  ;;  %6862 = vmatpush1.bf16.msra.mxu1 %v10745_v38  ;;  %v10800_v37 = vcombine.high %v899_v29, %v903_v30  ;;  %v10802_v38 = vcombine.high %v900_v32, %v904_v33  ;;  %v951_v29 = vld [vmem:[%s16165_s1 + $0x1ca0] sm:$0xff]  ;;  %v13471_v30 = vcombine.high %v13461_v23, %v13461_v23  ;;  %v948_v32 = vld [vmem:[%s16165_s1 + $0x1c88] sm:$0xff] }
 0x19b   :  { %6535 = vmatprep.subr.bf16.mxu0 %v10752_v40  ;;  %6863 = vmatprep.subr.bf16.mxu1 %v10754_v41  ;;  %v907_v40 = vld [vmem:[%s16165_s1 + $0x1b40] sm:$0xff]  ;;  %v952_v33 = vld [vmem:[%s16165_s1 + $0x1ca8] sm:$0xff] }
 0x19c   :  { %v911_v41 = vld [vmem:[%s16165_s1 + $0x1b60] sm:$0xff] }
 0x19d   :  { %v10807_v54 = vcombine.low %v907_v40, %v911_v41 }
 0x19e   :  { %6536 = vmatpush1.bf16.msra.mxu0 %v10751_v47  ;;  %6864 = vmatpush1.bf16.msra.mxu1 %v10753_v48  ;;  %v10808_v47 = vcombine.high %v907_v40, %v911_v41  ;;  %v10810_v48 = vcombine.high %v908_v25, %v912_v42  ;;  %v955_v40 = vld [vmem:[%s16165_s1 + $0x1cc0] sm:$0xff]  ;;  %v956_v25 = vld [vmem:[%s16165_s1 + $0x1cc8] sm:$0xff] }
 0x19f   :  { %6537 = vmatprep.subr.bf16.mxu0 %v10760_v50  ;;  %6865 = vmatprep.subr.bf16.mxu1 %v10762_v51  ;;  %v915_v50 = vld [vmem:[%s16165_s1 + $0x1b80] sm:$0xff]  ;;  %v960_v42 = vld [vmem:[%s16165_s1 + $0x1ce8] sm:$0xff] }
 0x1a0   :  { %v919_v51 = vld [vmem:[%s16165_s1 + $0x1ba0] sm:$0xff] }
 0x1a1   :  { %v10815_v2 = vcombine.low %v915_v50, %v919_v51  ;;  %v959_v41 = vld [vmem:[%s16165_s1 + $0x1ce0] sm:$0xff] }
 0x1a2   :  { %6538 = vmatpush1.bf16.msra.mxu0 %v10759_v60  ;;  %6866 = vmatpush1.bf16.msra.mxu1 %v10761_v61  ;;  %v10816_v60 = vcombine.high %v915_v50, %v919_v51  ;;  %v10818_v61 = vcombine.high %v916_v18, %v920_v52  ;;  %v963_v50 = vld [vmem:[%s16165_s1 + $0x1d00] sm:$0xff]  ;;  %v964_v18 = vld [vmem:[%s16165_s1 + $0x1d08] sm:$0xff] }
 0x1a3   :  { %6539 = vmatprep.subr.bf16.mxu0 %v10768_v39  ;;  %6867 = vmatprep.subr.bf16.mxu1 %v10770_v62  ;;  %v923_v39 = vld [vmem:[%s16165_s1 + $0x1bc0] sm:$0xff]  ;;  %v968_v52 = vld [vmem:[%s16165_s1 + $0x1d28] sm:$0xff] }
 0x1a4   :  { %v927_v62 = vld [vmem:[%s16165_s1 + $0x1be0] sm:$0xff] }
 0x1a5   :  { %v10823_v10 = vcombine.low %v923_v39, %v927_v62  ;;  %v967_v51 = vld [vmem:[%s16165_s1 + $0x1d20] sm:$0xff] }
 0x1a6   :  { %6540 = vmatpush1.bf16.msra.mxu0 %v10767_v4  ;;  %6868 = vmatpush1.bf16.msra.mxu1 %v10769_v5  ;;  %v10824_v4 = vcombine.high %v923_v39, %v927_v62  ;;  %v10826_v5 = vcombine.high %v924_v63, %v928_v0  ;;  %v971_v39 = vld [vmem:[%s16165_s1 + $0x1d40] sm:$0xff]  ;;  %v972_v63 = vld [vmem:[%s16165_s1 + $0x1d48] sm:$0xff] }
 0x1a7   :  { %6541 = vmatprep.subr.bf16.mxu0 %v10776_v6  ;;  %6869 = vmatprep.subr.bf16.mxu1 %v10778_v7  ;;  %v931_v6 = vld [vmem:[%s16165_s1 + $0x1c00] sm:$0xff]  ;;  %v976_v0 = vld [vmem:[%s16165_s1 + $0x1d68] sm:$0xff] }
 0x1a8   :  { %v935_v7 = vld [vmem:[%s16165_s1 + $0x1c20] sm:$0xff] }
 0x1a9   :  { %v975_v62 = vld [vmem:[%s16165_s1 + $0x1d60] sm:$0xff] }
 0x1aa   :  { %6542 = vmatpush1.bf16.msra.mxu0 %v10775_v13  ;;  %6870 = vmatpush1.bf16.msra.mxu1 %v10777_v14  ;;  %v10832_v13 = vcombine.high %v931_v6, %v935_v7  ;;  %v10834_v14 = vcombine.high %v932_v8, %v936_v9 }
 0x1ab   :  { %6543 = vmatprep.subr.bf16.mxu0 %v10784_v17  ;;  %6871 = vmatprep.subr.bf16.mxu1 %v10786_v53  ;;  %v939_v17 = vld [vmem:[%s16165_s1 + $0x1c40] sm:$0xff] }
 0x1ac   :  { %v943_v53 = vld [vmem:[%s16165_s1 + $0x1c60] sm:$0xff] }
 0x1ad   :  { %v10840_v49 = vcombine.high %v939_v17, %v943_v53 }
 0x1ae   :  { %6544 = vmatpush1.bf16.msra.mxu0 %v10783_v24  ;;  %6872 = vmatpush1.bf16.msra.mxu1 %v10785_v26  ;;  %v10831_v24 = vcombine.low %v931_v6, %v935_v7  ;;  %v10833_v26 = vcombine.low %v932_v8, %v936_v9  ;;  %v979_v6 = vld [vmem:[%s16165_s1 + $0x1d80] sm:$0xff]  ;;  %v980_v8 = vld [vmem:[%s16165_s1 + $0x1d88] sm:$0xff] }
 0x1af   :  { %6545 = vmatprep.subr.bf16.mxu0 %v10792_v15  ;;  %6873 = vmatprep.subr.bf16.mxu1 %v10794_v28  ;;  %v10842_v15 = vcombine.high %v940_v20, %v944_v59  ;;  %v947_v28 = vld [vmem:[%s16165_s1 + $0x1c80] sm:$0xff]  ;;  %v984_v9 = vld [vmem:[%s16165_s1 + $0x1da8] sm:$0xff] }
 0x1b0   :  { %v983_v7 = vld [vmem:[%s16165_s1 + $0x1da0] sm:$0xff] }
 0x1b2   :  { %6546 = vmatpush1.bf16.msra.mxu0 %v10791_v34  ;;  %6874 = vmatpush1.bf16.msra.mxu1 %v10793_v35  ;;  %v10839_v34 = vcombine.low %v939_v17, %v943_v53  ;;  %v10841_v35 = vcombine.low %v940_v20, %v944_v59  ;;  %v987_v17 = vld [vmem:[%s16165_s1 + $0x1dc0] sm:$0xff]  ;;  %v988_v20 = vld [vmem:[%s16165_s1 + $0x1dc8] sm:$0xff] }
 0x1b3   :  { %6547 = vmatprep.subr.bf16.mxu0 %v10800_v37  ;;  %6875 = vmatprep.subr.bf16.mxu1 %v10802_v38  ;;  %v10848_v37 = vcombine.high %v947_v28, %v951_v29  ;;  %v10850_v38 = vcombine.high %v948_v32, %v952_v33  ;;  %v991_v53 = vld [vmem:[%s16165_s1 + $0x1de0] sm:$0xff]  ;;  %v992_v59 = vld [vmem:[%s16165_s1 + $0x1de8] sm:$0xff] }
 0x1b6   :  { %6548 = vmatpush1.bf16.msra.mxu0 %v10799_v43  ;;  %6876 = vmatpush1.bf16.msra.mxu1 %v10801_v44  ;;  %v10847_v43 = vcombine.low %v947_v28, %v951_v29  ;;  %v10849_v44 = vcombine.low %v948_v32, %v952_v33  ;;  %v995_v28 = vld [vmem:[%s16165_s1 + $0x1e00] sm:$0xff]  ;;  %v996_v32 = vld [vmem:[%s16165_s1 + $0x1e08] sm:$0xff] }
 0x1b7   :  { %6549 = vmatprep.subr.bf16.mxu0 %v10808_v47  ;;  %6877 = vmatprep.subr.bf16.mxu1 %v10810_v48  ;;  %v10856_v47 = vcombine.high %v955_v40, %v959_v41  ;;  %v10858_v48 = vcombine.high %v956_v25, %v960_v42  ;;  %v999_v29 = vld [vmem:[%s16165_s1 + $0x1e20] sm:$0xff]  ;;  %v1000_v33 = vld [vmem:[%s16165_s1 + $0x1e28] sm:$0xff] }
 0x1ba   :  { %6550 = vmatpush1.bf16.msra.mxu0 %v10807_v54  ;;  %6878 = vmatpush1.bf16.msra.mxu1 %v10809_v56  ;;  %v10855_v54 = vcombine.low %v955_v40, %v959_v41  ;;  %v10857_v56 = vcombine.low %v956_v25, %v960_v42  ;;  %v1003_v40 = vld [vmem:[%s16165_s1 + $0x1e40] sm:$0xff]  ;;  %v1004_v25 = vld [vmem:[%s16165_s1 + $0x1e48] sm:$0xff] }
 0x1bb   :  { %6551 = vmatprep.subr.bf16.mxu0 %v10816_v60  ;;  %6879 = vmatprep.subr.bf16.mxu1 %v10818_v61  ;;  %v10864_v60 = vcombine.high %v963_v50, %v967_v51  ;;  %v10866_v61 = vcombine.high %v964_v18, %v968_v52  ;;  %v1007_v41 = vld [vmem:[%s16165_s1 + $0x1e60] sm:$0xff]  ;;  %v1008_v42 = vld [vmem:[%s16165_s1 + $0x1e68] sm:$0xff] }
 0x1be   :  { %6552 = vmatpush1.bf16.msra.mxu0 %v10815_v2  ;;  %6880 = vmatpush1.bf16.msra.mxu1 %v10817_v3  ;;  %v10863_v2 = vcombine.low %v963_v50, %v967_v51  ;;  %v10865_v3 = vcombine.low %v964_v18, %v968_v52  ;;  %v1011_v50 = vld [vmem:[%s16165_s1 + $0x1e80] sm:$0xff]  ;;  %v1012_v18 = vld [vmem:[%s16165_s1 + $0x1e88] sm:$0xff] }
 0x1bf   :  { %6553 = vmatprep.subr.bf16.mxu0 %v10824_v4  ;;  %6881 = vmatprep.subr.bf16.mxu1 %v10826_v5  ;;  %v10872_v4 = vcombine.high %v971_v39, %v975_v62  ;;  %v10874_v5 = vcombine.high %v972_v63, %v976_v0  ;;  %v1015_v51 = vld [vmem:[%s16165_s1 + $0x1ea0] sm:$0xff]  ;;  %v1016_v52 = vld [vmem:[%s16165_s1 + $0x1ea8] sm:$0xff] }
 0x1c2   :  { %6554 = vmatpush1.bf16.msra.mxu0 %v10823_v10  ;;  %6882 = vmatpush1.bf16.msra.mxu1 %v10825_v11  ;;  %v10871_v10 = vcombine.low %v971_v39, %v975_v62  ;;  %v10873_v11 = vcombine.low %v972_v63, %v976_v0  ;;  %v1019_v39 = vld [vmem:[%s16165_s1 + $0x1ec0] sm:$0xff]  ;;  %v1020_v63 = vld [vmem:[%s16165_s1 + $0x1ec8] sm:$0xff] }
 0x1c3   :  { %6564 = vmatprep.subr.bf16.mxu0 %v10832_v13  ;;  %6892 = vmatprep.subr.bf16.mxu1 %v10834_v14  ;;  %v10880_v13 = vcombine.high %v979_v6, %v983_v7  ;;  %v10882_v14 = vcombine.high %v980_v8, %v984_v9  ;;  %v1023_v62 = vld [vmem:[%s16165_s1 + $0x1ee0] sm:$0xff]  ;;  %v1024_v0 = vld [vmem:[%s16165_s1 + $0x1ee8] sm:$0xff] }
 0x1c5   :  { %6556 = vmatmul.mubr.bf16.vlgmr.msra.gmra.mrb[0].mxu0 %v13450_v19  ;;  %6884 = vmatmul.mubr.bf16.vlgmr.msra.gmra.mrb[0].mxu1 %v13450_v19 }
 0x1c6   :  { %6565 = vmatpush1.bf16.msra.mxu0 %v10831_v24  ;;  %6893 = vmatpush1.bf16.msra.mxu1 %v10833_v26  ;;  %v10879_v24 = vcombine.low %v979_v6, %v983_v7  ;;  %v10881_v26 = vcombine.low %v980_v8, %v984_v9  ;;  %v1027_v6 = vld [vmem:[%s16165_s1 + $0x1f00] sm:$0xff]  ;;  %v1028_v8 = vld [vmem:[%s16165_s1 + $0x1f08] sm:$0xff] }
 0x1c7   :  { %6566 = vmatprep.subr.bf16.mxu0 %v10840_v49  ;;  %6894 = vmatprep.subr.bf16.mxu1 %v10842_v15  ;;  %v10888_v49 = vcombine.high %v987_v17, %v991_v53  ;;  %v10890_v15 = vcombine.high %v988_v20, %v992_v59  ;;  %v1031_v7 = vld [vmem:[%s16165_s1 + $0x1f20] sm:$0xff]  ;;  %v1032_v9 = vld [vmem:[%s16165_s1 + $0x1f28] sm:$0xff] }
 0x1c8   :  { %6596 = vmatprep.mubr.bf16.mxu0 %v13471_v30  ;;  %6924 = vmatprep.mubr.bf16.mxu1 %v13471_v30 }
 0x1ca   :  { %6567 = vmatpush1.bf16.msra.mxu0 %v10839_v34  ;;  %6895 = vmatpush1.bf16.msra.mxu1 %v10841_v35  ;;  %v10887_v34 = vcombine.low %v987_v17, %v991_v53  ;;  %v10889_v35 = vcombine.low %v988_v20, %v992_v59  ;;  %v1035_v17 = vld [vmem:[%s16165_s1 + $0x1f40] sm:$0xff]  ;;  %v1036_v20 = vld [vmem:[%s16165_s1 + $0x1f48] sm:$0xff] }
 0x1cb   :  { %6568 = vmatprep.subr.bf16.mxu0 %v10848_v37  ;;  %6896 = vmatprep.subr.bf16.mxu1 %v10850_v38  ;;  %v10896_v37 = vcombine.high %v995_v28, %v999_v29  ;;  %v10898_v38 = vcombine.high %v996_v32, %v1000_v33  ;;  %v1039_v53 = vld [vmem:[%s16165_s1 + $0x1f60] sm:$0xff]  ;;  %v1040_v59 = vld [vmem:[%s16165_s1 + $0x1f68] sm:$0xff] }
 0x1ce   :  { %6569 = vmatpush1.bf16.msra.mxu0 %v10847_v43  ;;  %6897 = vmatpush1.bf16.msra.mxu1 %v10849_v44  ;;  %v10895_v43 = vcombine.low %v995_v28, %v999_v29  ;;  %v10897_v44 = vcombine.low %v996_v32, %v1000_v33  ;;  %v1043_v28 = vld [vmem:[%s16165_s1 + $0x1f80] sm:$0xff]  ;;  %v1044_v32 = vld [vmem:[%s16165_s1 + $0x1f88] sm:$0xff] }
 0x1cf   :  { %6570 = vmatprep.subr.bf16.mxu0 %v10856_v47  ;;  %6898 = vmatprep.subr.bf16.mxu1 %v10858_v48  ;;  %v10904_v47 = vcombine.high %v1003_v40, %v1007_v41  ;;  %v10906_v48 = vcombine.high %v1004_v25, %v1008_v42  ;;  %v1047_v29 = vld [vmem:[%s16165_s1 + $0x1fa0] sm:$0xff]  ;;  %v1048_v33 = vld [vmem:[%s16165_s1 + $0x1fa8] sm:$0xff] }
 0x1d2   :  { %6571 = vmatpush1.bf16.msra.mxu0 %v10855_v54  ;;  %6899 = vmatpush1.bf16.msra.mxu1 %v10857_v56  ;;  %v10903_v54 = vcombine.low %v1003_v40, %v1007_v41  ;;  %v10905_v56 = vcombine.low %v1004_v25, %v1008_v42  ;;  %v1051_v40 = vld [vmem:[%s16165_s1 + $0x1fc0] sm:$0xff]  ;;  %v1052_v25 = vld [vmem:[%s16165_s1 + $0x1fc8] sm:$0xff] }
 0x1d3   :  { %6572 = vmatprep.subr.bf16.mxu0 %v10864_v60  ;;  %6900 = vmatprep.subr.bf16.mxu1 %v10866_v61  ;;  %v10912_v60 = vcombine.high %v1011_v50, %v1015_v51  ;;  %v10914_v61 = vcombine.high %v1012_v18, %v1016_v52  ;;  %v1055_v41 = vld [vmem:[%s16165_s1 + $0x1fe0] sm:$0xff]  ;;  %v1056_v42 = vld [vmem:[%s16165_s1 + $0x1fe8] sm:$0xff] }
 0x1d6   :  { %6573 = vmatpush1.bf16.msra.mxu0 %v10863_v2  ;;  %6901 = vmatpush1.bf16.msra.mxu1 %v10865_v3  ;;  %v10911_v2 = vcombine.low %v1011_v50, %v1015_v51  ;;  %v10913_v3 = vcombine.low %v1012_v18, %v1016_v52  ;;  %v37_v50 = vld [vmem:[%s16165_s1 + $0x10] sm:$0xff]  ;;  %v38_v18 = vld [vmem:[%s16165_s1 + $0x18] sm:$0xff] }
 0x1d7   :  { %6574 = vmatprep.subr.bf16.mxu0 %v10872_v4  ;;  %6902 = vmatprep.subr.bf16.mxu1 %v10874_v5  ;;  %v10920_v4 = vcombine.high %v1019_v39, %v1023_v62  ;;  %v10922_v5 = vcombine.high %v1020_v63, %v1024_v0  ;;  %v41_v51 = vld [vmem:[%s16165_s1 + $0x30] sm:$0xff]  ;;  %v42_v52 = vld [vmem:[%s16165_s1 + $0x38] sm:$0xff] }
 0x1da   :  { %6575 = vmatpush1.bf16.msra.mxu0 %v10871_v10  ;;  %6903 = vmatpush1.bf16.msra.mxu1 %v10873_v11  ;;  %v10919_v10 = vcombine.low %v1019_v39, %v1023_v62  ;;  %v10921_v11 = vcombine.low %v1020_v63, %v1024_v0  ;;  %v45_v39 = vld [vmem:[%s16165_s1 + $0x50] sm:$0xff]  ;;  %v13659_v63 = vcombine.low %v13461_v23, %v13461_v23  ;;  %v46_v0 = vld [vmem:[%s16165_s1 + $0x58] sm:$0xff] }
 0x1db   :  { %6576 = vmatprep.subr.bf16.mxu0 %v10880_v13  ;;  %6904 = vmatprep.subr.bf16.mxu1 %v10882_v14  ;;  %v10928_v13 = vcombine.high %v1027_v6, %v1031_v7  ;;  %v10930_v14 = vcombine.high %v1028_v8, %v1032_v9  ;;  %v49_v62 = vld [vmem:[%s16165_s1 + $0x70] sm:$0xff] }
 0x1dc   :  { %v53_v23 = vld [vmem:[%s16165_s1 + $0x90] sm:$0xff] }
 0x1de   :  { %6577 = vmatpush1.bf16.msra.mxu0 %v10879_v24  ;;  %6905 = vmatpush1.bf16.msra.mxu1 %v10881_v26  ;;  %v10927_v24 = vcombine.low %v1027_v6, %v1031_v7  ;;  %v10929_v26 = vcombine.low %v1028_v8, %v1032_v9  ;;  %v57_v7 = vld [vmem:[%s16165_s1 + $0xb0] sm:$0xff]  ;;  %v54_v8 = vld [vmem:[%s16165_s1 + $0x98] sm:$0xff] }
 0x1df   :  { %6578 = vmatprep.subr.bf16.mxu0 %v10888_v49  ;;  %6906 = vmatprep.subr.bf16.mxu1 %v10890_v15  ;;  %v10936_v49 = vcombine.high %v1035_v17, %v1039_v53  ;;  %v10938_v15 = vcombine.high %v1036_v20, %v1040_v59  ;;  %v58_v9 = vld [vmem:[%s16165_s1 + $0xb8] sm:$0xff] }
 0x1e2   :  { %6579 = vmatpush1.bf16.msra.mxu0 %v10887_v34  ;;  %6907 = vmatpush1.bf16.msra.mxu1 %v10889_v35  ;;  %v10935_v34 = vcombine.low %v1035_v17, %v1039_v53  ;;  %v10937_v35 = vcombine.low %v1036_v20, %v1040_v59  ;;  %v61_v17 = vld [vmem:[%s16165_s1 + $0xd0] sm:$0xff]  ;;  %v62_v20 = vld [vmem:[%s16165_s1 + $0xd8] sm:$0xff] }
 0x1e3   :  { %6580 = vmatprep.subr.bf16.mxu0 %v10896_v37  ;;  %6908 = vmatprep.subr.bf16.mxu1 %v10898_v38  ;;  %v10944_v37 = vcombine.high %v1043_v28, %v1047_v29  ;;  %v10946_v38 = vcombine.high %v1044_v32, %v1048_v33  ;;  %v65_v53 = vld [vmem:[%s16165_s1 + $0xf0] sm:$0xff]  ;;  %v66_v59 = vld [vmem:[%s16165_s1 + $0xf8] sm:$0xff] }
 0x1e6   :  { %6581 = vmatpush1.bf16.msra.mxu0 %v10895_v43  ;;  %6909 = vmatpush1.bf16.msra.mxu1 %v10897_v44  ;;  %v10943_v43 = vcombine.low %v1043_v28, %v1047_v29  ;;  %v10945_v44 = vcombine.low %v1044_v32, %v1048_v33  ;;  %v69_v28 = vld [vmem:[%s16165_s1 + $0x110] sm:$0xff]  ;;  %v74_v32 = vld [vmem:[%s16165_s1 + $0x138] sm:$0xff]  ;;  %v9963_v33 = vcombine.low %v61_v17, %v65_v53 }
 0x1e7   :  { %6582 = vmatprep.subr.bf16.mxu0 %v10904_v47  ;;  %6910 = vmatprep.subr.bf16.mxu1 %v10906_v48  ;;  %v10952_v47 = vcombine.high %v1051_v40, %v1055_v41  ;;  %v10954_v48 = vcombine.high %v1052_v25, %v1056_v42  ;;  %v73_v29 = vld [vmem:[%s16165_s1 + $0x130] sm:$0xff] }
 0x1ea   :  { %6583 = vmatpush1.bf16.msra.mxu0 %v10903_v54  ;;  %6911 = vmatpush1.bf16.msra.mxu1 %v10905_v56  ;;  %v10951_v54 = vcombine.low %v1051_v40, %v1055_v41  ;;  %v10953_v56 = vcombine.low %v1052_v25, %v1056_v42  ;;  %v81_v40 = vld [vmem:[%s16165_s1 + $0x170] sm:$0xff]  ;;  %v78_v41 = vld [vmem:[%s16165_s1 + $0x158] sm:$0xff]  ;;  %v9971_v42 = vcombine.low %v69_v28, %v73_v29 }
 0x1eb   :  { %6584 = vmatprep.subr.bf16.mxu0 %v10912_v60  ;;  %6912 = vmatprep.subr.bf16.mxu1 %v10914_v61  ;;  %v9940_v60 = vcombine.high %v37_v50, %v41_v51  ;;  %v9942_v61 = vcombine.high %v38_v18, %v42_v52  ;;  %v82_v25 = vld [vmem:[%s16165_s1 + $0x178] sm:$0xff] }
 0x1ee   :  { %6585 = vmatpush1.bf16.msra.mxu0 %v10911_v2  ;;  %6913 = vmatpush1.bf16.msra.mxu1 %v10913_v3  ;;  %v50_v2 = vld [vmem:[%s16165_s1 + $0x78] sm:$0xff]  ;;  %v9939_v3 = vcombine.low %v37_v50, %v41_v51  ;;  %v89_v50 = vld [vmem:[%s16165_s1 + $0x1b0] sm:$0xff] }
 0x1ef   :  { %6586 = vmatprep.subr.bf16.mxu0 %v10920_v4  ;;  %6914 = vmatprep.subr.bf16.mxu1 %v10922_v5  ;;  %v9941_v4 = vcombine.low %v38_v18, %v42_v52  ;;  %v9948_v5 = vcombine.high %v45_v39, %v49_v62  ;;  %v9950_v6 = vcombine.high %v46_v0, %v50_v2  ;;  %v86_v51 = vld [vmem:[%s16165_s1 + $0x198] sm:$0xff] }
 0x1f0   :  { %v90_v18 = vld [vmem:[%s16165_s1 + $0x1b8] sm:$0xff] }
 0x1f2   :  { %6587 = vmatpush1.bf16.msra.mxu0 %v10919_v10  ;;  %6915 = vmatpush1.bf16.msra.mxu1 %v10921_v11  ;;  %v9947_v10 = vcombine.low %v45_v39, %v49_v62  ;;  %v9949_v11 = vcombine.low %v46_v0, %v50_v2  ;;  %v97_v39 = vld [vmem:[%s16165_s1 + $0x1f0] sm:$0xff]  ;;  %v94_v62 = vld [vmem:[%s16165_s1 + $0x1d8] sm:$0xff] }
 0x1f3   :  { %6588 = vmatprep.subr.bf16.mxu0 %v10928_v13  ;;  %6916 = vmatprep.subr.bf16.mxu1 %v10930_v14  ;;  %v9956_v13 = vcombine.high %v53_v23, %v57_v7  ;;  %v9958_v14 = vcombine.high %v54_v8, %v58_v9  ;;  %v98_v0 = vld [vmem:[%s16165_s1 + $0x1f8] sm:$0xff] }
 0x1f6   :  { %6589 = vmatpush1.bf16.msra.mxu0 %v10927_v24  ;;  %6917 = vmatpush1.bf16.msra.mxu1 %v10929_v26  ;;  %v9955_v24 = vcombine.low %v53_v23, %v57_v7  ;;  %v9957_v26 = vcombine.low %v54_v8, %v58_v9  ;;  %v105_v23 = vld [vmem:[%s16165_s1 + $0x230] sm:$0xff]  ;;  %v102_v7 = vld [vmem:[%s16165_s1 + $0x218] sm:$0xff] }
 0x1f7   :  { %6590 = vmatprep.subr.bf16.mxu0 %v10936_v49  ;;  %6918 = vmatprep.subr.bf16.mxu1 %v10938_v15  ;;  %v9964_v49 = vcombine.high %v61_v17, %v65_v53  ;;  %v9966_v15 = vcombine.high %v62_v20, %v66_v59  ;;  %v106_v8 = vld [vmem:[%s16165_s1 + $0x238] sm:$0xff]  ;;  %v113_v17 = vld [vmem:[%s16165_s1 + $0x270] sm:$0xff] }
 0x1f8   :  { %v110_v53 = vld [vmem:[%s16165_s1 + $0x258] sm:$0xff] }
 0x1fa   :  { %6591 = vmatpush1.bf16.msra.mxu0 %v10935_v34  ;;  %6919 = vmatpush1.bf16.msra.mxu1 %v10937_v35  ;;  %v9965_v34 = vcombine.low %v62_v20, %v66_v59  ;;  %v9972_v35 = vcombine.high %v69_v28, %v73_v29  ;;  %v114_v20 = vld [vmem:[%s16165_s1 + $0x278] sm:$0xff]  ;;  %v121_v28 = vld [vmem:[%s16165_s1 + $0x2b0] sm:$0xff] }
 0x1fb   :  { %6592 = vmatprep.subr.bf16.mxu0 %v10944_v37  ;;  %6920 = vmatprep.subr.bf16.mxu1 %v10946_v38  ;;  %v77_v38 = vld [vmem:[%s16165_s1 + $0x150] sm:$0xff]  ;;  %v118_v29 = vld [vmem:[%s16165_s1 + $0x298] sm:$0xff] }
 0x1fc   :  { %v9979_v52 = vcombine.low %v77_v38, %v81_v40 }
 0x1fe   :  { %6593 = vmatpush1.bf16.msra.mxu0 %v10943_v43  ;;  %6921 = vmatpush1.bf16.msra.mxu1 %v10945_v44  ;;  %v9980_v44 = vcombine.high %v77_v38, %v81_v40  ;;  %v129_v38 = vld [vmem:[%s16165_s1 + $0x2f0] sm:$0xff]  ;;  %v126_v40 = vld [vmem:[%s16165_s1 + $0x2d8] sm:$0xff] }
 0x1ff   :  { %6594 = vmatprep.subr.bf16.mxu0 %v10952_v47  ;;  %6922 = vmatprep.subr.bf16.mxu1 %v10954_v48  ;;  %v9982_v47 = vcombine.high %v78_v41, %v82_v25  ;;  %v85_v48 = vld [vmem:[%s16165_s1 + $0x190] sm:$0xff] }
 0x200   :  { %v9987_v2 = vcombine.low %v85_v48, %v89_v50 }
 0x202   :  { %6595 = vmatpush1.bf16.msra.mxu0 %v10951_v54  ;;  %6923 = vmatpush1.bf16.msra.mxu1 %v10953_v56  ;;  %v9981_v54 = vcombine.low %v78_v41, %v82_v25  ;;  %v9988_v56 = vcombine.high %v85_v48, %v89_v50  ;;  %v130_v41 = vld [vmem:[%s16165_s1 + $0x2f8] sm:$0xff]  ;;  %v137_v48 = vld [vmem:[%s16165_s1 + $0x330] sm:$0xff] }
 0x203   :  { %6933 = vmatprep.subr.bf16.mxu0 %v9940_v60  ;;  %7261 = vmatprep.subr.bf16.mxu1 %v9942_v61  ;;  %v9990_v60 = vcombine.high %v86_v51, %v90_v18  ;;  %v93_v61 = vld [vmem:[%s16165_s1 + $0x1d0] sm:$0xff]  ;;  %v134_v50 = vld [vmem:[%s16165_s1 + $0x318] sm:$0xff] }
 0x204   :  { %v9995_v9 = vcombine.low %v93_v61, %v97_v39 }
 0x205   :  { %6597 = vmatmul.mubr.bf16.vlgmr.msra.gmra.mrb[0].mxu0 %v13659_v63  ;;  %6925 = vmatmul.mubr.bf16.vlgmr.msra.gmra.mrb[0].mxu1 %v13659_v63 }
 0x206   :  { %6934 = vmatpush1.bf16.msra.mxu0 %v9939_v3  ;;  %7262 = vmatpush1.bf16.msra.mxu1 %v9941_v4  ;;  %v9989_v3 = vcombine.low %v86_v51, %v90_v18  ;;  %v9996_v4 = vcombine.high %v93_v61, %v97_v39  ;;  %v138_v51 = vld [vmem:[%s16165_s1 + $0x338] sm:$0xff]  ;;  %v145_v61 = vld [vmem:[%s16165_s1 + $0x370] sm:$0xff] }
 0x207   :  { %6935 = vmatprep.subr.bf16.mxu0 %v9948_v5  ;;  %7263 = vmatprep.subr.bf16.mxu1 %v9950_v6  ;;  %v9998_v5 = vcombine.high %v94_v62, %v98_v0  ;;  %v101_v6 = vld [vmem:[%s16165_s1 + $0x210] sm:$0xff]  ;;  %v142_v39 = vld [vmem:[%s16165_s1 + $0x358] sm:$0xff] }
 0x208   :  { %6965 = vmatprep.mubr.bf16.mxu0 %v12070_v57  ;;  %7293 = vmatprep.mubr.bf16.mxu1 %v12070_v57  ;;  %v70_v57 = vld [vmem:[%s16165_s1 + $0x118] sm:$0xff]  ;;  %v10003_v59 = vcombine.low %v101_v6, %v105_v23 }
 0x209   :  { %v9974_v37 = vcombine.high %v70_v57, %v74_v32  ;;  %v9973_v43 = vcombine.low %v70_v57, %v74_v32  ;;  %v122_v57 = vld [vmem:[%s16165_s1 + $0x2b8] sm:$0xff] }
 0x20a   :  { %6936 = vmatpush1.bf16.msra.mxu0 %v9947_v10  ;;  %7264 = vmatpush1.bf16.msra.mxu1 %v9949_v11  ;;  %v9997_v10 = vcombine.low %v94_v62, %v98_v0  ;;  %v10004_v11 = vcombine.high %v101_v6, %v105_v23  ;;  %v146_v62 = vld [vmem:[%s16165_s1 + $0x378] sm:$0xff]  ;;  %v153_v6 = vld [vmem:[%s16165_s1 + $0x3b0] sm:$0xff] }
 0x20b   :  { %6937 = vmatprep.subr.bf16.mxu0 %v9956_v13  ;;  %7265 = vmatprep.subr.bf16.mxu1 %v9958_v14  ;;  %v10006_v13 = vcombine.high %v102_v7, %v106_v8  ;;  %v109_v14 = vld [vmem:[%s16165_s1 + $0x250] sm:$0xff]  ;;  %v150_v23 = vld [vmem:[%s16165_s1 + $0x398] sm:$0xff] }
 0x20c   :  { %v10011_v32 = vcombine.low %v109_v14, %v113_v17 }
 0x20e   :  { %6938 = vmatpush1.bf16.msra.mxu0 %v9955_v24  ;;  %7266 = vmatpush1.bf16.msra.mxu1 %v9957_v26  ;;  %v10005_v24 = vcombine.low %v102_v7, %v106_v8  ;;  %v10012_v26 = vcombine.high %v109_v14, %v113_v17  ;;  %v154_v7 = vld [vmem:[%s16165_s1 + $0x3b8] sm:$0xff]  ;;  %v161_v14 = vld [vmem:[%s16165_s1 + $0x3f0] sm:$0xff] }
 0x20f   :  { %6939 = vmatprep.subr.bf16.mxu0 %v9964_v49  ;;  %7267 = vmatprep.subr.bf16.mxu1 %v9966_v15  ;;  %v10014_v49 = vcombine.high %v110_v53, %v114_v20  ;;  %v117_v15 = vld [vmem:[%s16165_s1 + $0x290] sm:$0xff]  ;;  %v158_v17 = vld [vmem:[%s16165_s1 + $0x3d8] sm:$0xff] }
 0x210   :  { %v10019_v25 = vcombine.low %v117_v15, %v121_v28 }
 0x212   :  { %6940 = vmatpush1.bf16.msra.mxu0 %v9963_v33  ;;  %7268 = vmatpush1.bf16.msra.mxu1 %v9965_v34  ;;  %v10013_v33 = vcombine.low %v110_v53, %v114_v20  ;;  %v10020_v34 = vcombine.high %v117_v15, %v121_v28  ;;  %v162_v53 = vld [vmem:[%s16165_s1 + $0x3f8] sm:$0xff]  ;;  %v169_v15 = vld [vmem:[%s16165_s1 + $0x430] sm:$0xff] }
 0x213   :  { %6941 = vmatprep.subr.bf16.mxu0 %v9972_v35  ;;  %7269 = vmatprep.subr.bf16.mxu1 %v9974_v37  ;;  %v10022_v35 = vcombine.high %v118_v29, %v122_v57  ;;  %v125_v37 = vld [vmem:[%s16165_s1 + $0x2d0] sm:$0xff]  ;;  %v166_v28 = vld [vmem:[%s16165_s1 + $0x418] sm:$0xff] }
 0x214   :  { %v10027_v18 = vcombine.low %v125_v37, %v129_v38 }
 0x216   :  { %6942 = vmatpush1.bf16.msra.mxu0 %v9971_v42  ;;  %7270 = vmatpush1.bf16.msra.mxu1 %v9973_v43  ;;  %v10021_v42 = vcombine.low %v118_v29, %v122_v57  ;;  %v10028_v43 = vcombine.high %v125_v37, %v129_v38  ;;  %v170_v29 = vld [vmem:[%s16165_s1 + $0x438] sm:$0xff]  ;;  %v177_v37 = vld [vmem:[%s16165_s1 + $0x470] sm:$0xff] }
 0x217   :  { %6943 = vmatprep.subr.bf16.mxu0 %v9980_v44  ;;  %7271 = vmatprep.subr.bf16.mxu1 %v9982_v47  ;;  %v10030_v44 = vcombine.high %v126_v40, %v130_v41  ;;  %v133_v47 = vld [vmem:[%s16165_s1 + $0x310] sm:$0xff]  ;;  %v174_v38 = vld [vmem:[%s16165_s1 + $0x458] sm:$0xff] }
 0x218   :  { %v10035_v0 = vcombine.low %v133_v47, %v137_v48 }
 0x21a   :  { %6944 = vmatpush1.bf16.msra.mxu0 %v9979_v52  ;;  %7272 = vmatpush1.bf16.msra.mxu1 %v9981_v54  ;;  %v10029_v52 = vcombine.low %v126_v40, %v130_v41  ;;  %v10036_v54 = vcombine.high %v133_v47, %v137_v48  ;;  %v178_v40 = vld [vmem:[%s16165_s1 + $0x478] sm:$0xff]  ;;  %v185_v47 = vld [vmem:[%s16165_s1 + $0x4b0] sm:$0xff] }
 0x21b   :  { %6945 = vmatprep.subr.bf16.mxu0 %v9988_v56  ;;  %7273 = vmatprep.subr.bf16.mxu1 %v9990_v60  ;;  %v10038_v56 = vcombine.high %v134_v50, %v138_v51  ;;  %v141_v60 = vld [vmem:[%s16165_s1 + $0x350] sm:$0xff]  ;;  %v182_v48 = vld [vmem:[%s16165_s1 + $0x498] sm:$0xff] }
 0x21c   :  { %v10043_v8 = vcombine.low %v141_v60, %v145_v61 }
 0x21e   :  { %6946 = vmatpush1.bf16.msra.mxu0 %v9987_v2  ;;  %7274 = vmatpush1.bf16.msra.mxu1 %v9989_v3  ;;  %v10037_v2 = vcombine.low %v134_v50, %v138_v51  ;;  %v10044_v3 = vcombine.high %v141_v60, %v145_v61  ;;  %v186_v50 = vld [vmem:[%s16165_s1 + $0x4b8] sm:$0xff]  ;;  %v193_v60 = vld [vmem:[%s16165_s1 + $0x4f0] sm:$0xff] }
 0x21f   :  { %6947 = vmatprep.subr.bf16.mxu0 %v9996_v4  ;;  %7275 = vmatprep.subr.bf16.mxu1 %v9998_v5  ;;  %v10046_v4 = vcombine.high %v142_v39, %v146_v62  ;;  %v149_v5 = vld [vmem:[%s16165_s1 + $0x390] sm:$0xff]  ;;  %v194_v61 = vld [vmem:[%s16165_s1 + $0x4f8] sm:$0xff] }
 0x220   :  { %v10051_v20 = vcombine.low %v149_v5, %v153_v6 }
 0x222   :  { %6948 = vmatpush1.bf16.msra.mxu0 %v9995_v9  ;;  %7276 = vmatpush1.bf16.msra.mxu1 %v9997_v10  ;;  %v10045_v9 = vcombine.low %v142_v39, %v146_v62  ;;  %v10052_v10 = vcombine.high %v149_v5, %v153_v6  ;;  %v10085_v62 = vcombine.low %v182_v48, %v186_v50  ;;  %v202_v5 = vld [vmem:[%s16165_s1 + $0x538] sm:$0xff] }
 0x223   :  { %6949 = vmatprep.subr.bf16.mxu0 %v10004_v11  ;;  %7277 = vmatprep.subr.bf16.mxu1 %v10006_v13  ;;  %v10054_v11 = vcombine.high %v150_v23, %v154_v7  ;;  %v157_v13 = vld [vmem:[%s16165_s1 + $0x3d0] sm:$0xff] }
 0x224   :  { %v10059_v57 = vcombine.low %v157_v13, %v161_v14 }
 0x226   :  { %6950 = vmatpush1.bf16.msra.mxu0 %v10003_v59  ;;  %7278 = vmatpush1.bf16.msra.mxu1 %v10005_v24  ;;  %v10053_v59 = vcombine.low %v150_v23, %v154_v7  ;;  %v10060_v24 = vcombine.high %v157_v13, %v161_v14  ;;  %v210_v13 = vld [vmem:[%s16165_s1 + $0x578] sm:$0xff] }
 0x227   :  { %6951 = vmatprep.subr.bf16.mxu0 %v10012_v26  ;;  %7279 = vmatprep.subr.bf16.mxu1 %v10014_v49  ;;  %v10062_v26 = vcombine.high %v158_v17, %v162_v53  ;;  %v165_v49 = vld [vmem:[%s16165_s1 + $0x410] sm:$0xff] }
 0x228   :  { %v10067_v41 = vcombine.low %v165_v49, %v169_v15 }
 0x22a   :  { %6952 = vmatpush1.bf16.msra.mxu0 %v10011_v32  ;;  %7280 = vmatpush1.bf16.msra.mxu1 %v10013_v33  ;;  %v10061_v32 = vcombine.low %v158_v17, %v162_v53  ;;  %v10068_v33 = vcombine.high %v165_v49, %v169_v15  ;;  %v218_v49 = vld [vmem:[%s16165_s1 + $0x5b8] sm:$0xff] }
 0x22b   :  { %6953 = vmatprep.subr.bf16.mxu0 %v10020_v34  ;;  %7281 = vmatprep.subr.bf16.mxu1 %v10022_v35  ;;  %v10070_v34 = vcombine.high %v166_v28, %v170_v29  ;;  %v173_v35 = vld [vmem:[%s16165_s1 + $0x450] sm:$0xff] }
 0x22c   :  { %v10075_v51 = vcombine.low %v173_v35, %v177_v37 }
 0x22e   :  { %6954 = vmatpush1.bf16.msra.mxu0 %v10019_v25  ;;  %7282 = vmatpush1.bf16.msra.mxu1 %v10021_v42  ;;  %v10069_v25 = vcombine.low %v166_v28, %v170_v29  ;;  %v10076_v42 = vcombine.high %v173_v35, %v177_v37  ;;  %v226_v35 = vld [vmem:[%s16165_s1 + $0x5f8] sm:$0xff] }
 0x22f   :  { %6955 = vmatprep.subr.bf16.mxu0 %v10028_v43  ;;  %7283 = vmatprep.subr.bf16.mxu1 %v10030_v44  ;;  %v10078_v43 = vcombine.high %v174_v38, %v178_v40  ;;  %v181_v44 = vld [vmem:[%s16165_s1 + $0x490] sm:$0xff] }
 0x230   :  { %v10083_v39 = vcombine.low %v181_v44, %v185_v47 }
 0x232   :  { %6956 = vmatpush1.bf16.msra.mxu0 %v10027_v18  ;;  %7284 = vmatpush1.bf16.msra.mxu1 %v10029_v52  ;;  %v10077_v18 = vcombine.low %v174_v38, %v178_v40  ;;  %v10084_v52 = vcombine.high %v181_v44, %v185_v47  ;;  %v234_v44 = vld [vmem:[%s16165_s1 + $0x638] sm:$0xff] }
 0x233   :  { %6957 = vmatprep.subr.bf16.mxu0 %v10036_v54  ;;  %7285 = vmatprep.subr.bf16.mxu1 %v10038_v56  ;;  %v10086_v54 = vcombine.high %v182_v48, %v186_v50  ;;  %v189_v56 = vld [vmem:[%s16165_s1 + $0x4d0] sm:$0xff] }
 0x234   :  { %v10091_v6 = vcombine.low %v189_v56, %v193_v60 }
 0x236   :  { %6958 = vmatpush1.bf16.msra.mxu0 %v10035_v0  ;;  %7286 = vmatpush1.bf16.msra.mxu1 %v10037_v2  ;;  %v10092_v0 = vcombine.high %v189_v56, %v193_v60  ;;  %v242_v56 = vld [vmem:[%s16165_s1 + $0x678] sm:$0xff] }
 0x237   :  { %6959 = vmatprep.subr.bf16.mxu0 %v10044_v3  ;;  %7287 = vmatprep.subr.bf16.mxu1 %v10046_v4  ;;  %v197_v3 = vld [vmem:[%s16165_s1 + $0x510] sm:$0xff] }
 0x238   :  { %v201_v4 = vld [vmem:[%s16165_s1 + $0x530] sm:$0xff] }
 0x239   :  { %v10100_v7 = vcombine.high %v197_v3, %v201_v4  ;;  %v10099_v14 = vcombine.low %v197_v3, %v201_v4  ;;  %v250_v3 = vld [vmem:[%s16165_s1 + $0x6b8] sm:$0xff] }
 0x23a   :  { %6960 = vmatpush1.bf16.msra.mxu0 %v10043_v8  ;;  %7288 = vmatpush1.bf16.msra.mxu1 %v10045_v9  ;;  %v205_v9 = vld [vmem:[%s16165_s1 + $0x550] sm:$0xff] }
 0x23b   :  { %6961 = vmatprep.subr.bf16.mxu0 %v10052_v10  ;;  %7289 = vmatprep.subr.bf16.mxu1 %v10054_v11  ;;  %v209_v10 = vld [vmem:[%s16165_s1 + $0x570] sm:$0xff]  ;;  %v206_v11 = vld [vmem:[%s16165_s1 + $0x558] sm:$0xff] }
 0x23c   :  { %v10108_v53 = vcombine.high %v205_v9, %v209_v10  ;;  %v10107_v15 = vcombine.low %v205_v9, %v209_v10  ;;  %v10109_v28 = vcombine.low %v206_v11, %v210_v13  ;;  %v258_v9 = vld [vmem:[%s16165_s1 + $0x6f8] sm:$0xff] }
 0x23e   :  { %6962 = vmatpush1.bf16.msra.mxu0 %v10051_v20  ;;  %7290 = vmatpush1.bf16.msra.mxu1 %v10053_v59  ;;  %v10110_v20 = vcombine.high %v206_v11, %v210_v13  ;;  %v213_v59 = vld [vmem:[%s16165_s1 + $0x590] sm:$0xff] }
 0x23f   :  { %6963 = vmatprep.subr.bf16.mxu0 %v10060_v24  ;;  %7291 = vmatprep.subr.bf16.mxu1 %v10062_v26  ;;  %v217_v24 = vld [vmem:[%s16165_s1 + $0x5b0] sm:$0xff]  ;;  %v214_v26 = vld [vmem:[%s16165_s1 + $0x598] sm:$0xff] }
 0x240   :  { %v10116_v29 = vcombine.high %v213_v59, %v217_v24  ;;  %v10115_v37 = vcombine.low %v213_v59, %v217_v24  ;;  %v10117_v38 = vcombine.low %v214_v26, %v218_v49  ;;  %v266_v59 = vld [vmem:[%s16165_s1 + $0x738] sm:$0xff] }
 0x242   :  { %6964 = vmatpush1.bf16.msra.mxu0 %v10059_v57  ;;  %7292 = vmatpush1.bf16.msra.mxu1 %v10061_v32  ;;  %v10118_v57 = vcombine.high %v214_v26, %v218_v49  ;;  %v221_v32 = vld [vmem:[%s16165_s1 + $0x5d0] sm:$0xff] }
 0x243   :  { %6974 = vmatprep.subr.bf16.mxu0 %v10068_v33  ;;  %7302 = vmatprep.subr.bf16.mxu1 %v10070_v34  ;;  %v225_v33 = vld [vmem:[%s16165_s1 + $0x5f0] sm:$0xff]  ;;  %v222_v34 = vld [vmem:[%s16165_s1 + $0x5d8] sm:$0xff] }
 0x244   :  { %v10124_v40 = vcombine.high %v221_v32, %v225_v33  ;;  %v10123_v47 = vcombine.low %v221_v32, %v225_v33  ;;  %v10125_v48 = vcombine.low %v222_v34, %v226_v35  ;;  %v274_v32 = vld [vmem:[%s16165_s1 + $0x778] sm:$0xff] }
 0x245   :  { %6966 = vmatmul.mubr.bf16.vlgmr.msra.gmra.mrb[4].mxu0 %v12196_v12  ;;  %7294 = vmatmul.mubr.bf16.vlgmr.msra.gmra.mrb[4].mxu1 %v12196_v12  ;;  %v190_v12 = vld [vmem:[%s16165_s1 + $0x4d8] sm:$0xff] }
 0x246   :  { %6975 = vmatpush1.bf16.msra.mxu0 %v10067_v41  ;;  %7303 = vmatpush1.bf16.msra.mxu1 %v10069_v25  ;;  %v10094_v2 = vcombine.high %v190_v12, %v194_v61  ;;  %v10093_v23 = vcombine.low %v190_v12, %v194_v61  ;;  %v10126_v41 = vcombine.high %v222_v34, %v226_v35  ;;  %v229_v25 = vld [vmem:[%s16165_s1 + $0x610] sm:$0xff] }
 0x247   :  { %6976 = vmatprep.subr.bf16.mxu0 %v10076_v42  ;;  %7304 = vmatprep.subr.bf16.mxu1 %v10078_v43  ;;  %v233_v42 = vld [vmem:[%s16165_s1 + $0x630] sm:$0xff]  ;;  %v230_v43 = vld [vmem:[%s16165_s1 + $0x618] sm:$0xff] }
 0x248   :  { %7006 = vmatprep.mubr.bf16.mxu0 %v12217_v21  ;;  %7334 = vmatprep.mubr.bf16.mxu1 %v12217_v21  ;;  %v198_v21 = vld [vmem:[%s16165_s1 + $0x518] sm:$0xff]  ;;  %v10132_v50 = vcombine.high %v229_v25, %v233_v42  ;;  %v10131_v60 = vcombine.low %v229_v25, %v233_v42  ;;  %v10133_v12 = vcombine.low %v230_v43, %v234_v44 }
 0x249   :  { %v10102_v8 = vcombine.high %v198_v21, %v202_v5  ;;  %v10101_v17 = vcombine.low %v198_v21, %v202_v5  ;;  %v282_v25 = vld [vmem:[%s16165_s1 + $0x7b8] sm:$0xff] }
 0x24a   :  { %6977 = vmatpush1.bf16.msra.mxu0 %v10075_v51  ;;  %7305 = vmatpush1.bf16.msra.mxu1 %v10077_v18  ;;  %v10134_v51 = vcombine.high %v230_v43, %v234_v44  ;;  %v237_v18 = vld [vmem:[%s16165_s1 + $0x650] sm:$0xff] }
 0x24b   :  { %6978 = vmatprep.subr.bf16.mxu0 %v10084_v52  ;;  %7306 = vmatprep.subr.bf16.mxu1 %v10086_v54  ;;  %v241_v52 = vld [vmem:[%s16165_s1 + $0x670] sm:$0xff]  ;;  %v238_v54 = vld [vmem:[%s16165_s1 + $0x658] sm:$0xff] }
 0x24c   :  { %v10140_v61 = vcombine.high %v237_v18, %v241_v52  ;;  %v10139_v4 = vcombine.low %v237_v18, %v241_v52  ;;  %v10141_v21 = vcombine.low %v238_v54, %v242_v56  ;;  %v290_v18 = vld [vmem:[%s16165_s1 + $0x7f8] sm:$0xff] }
 0x24e   :  { %6979 = vmatpush1.bf16.msra.mxu0 %v10083_v39  ;;  %7307 = vmatpush1.bf16.msra.mxu1 %v10085_v62  ;;  %v10142_v39 = vcombine.high %v238_v54, %v242_v56  ;;  %v245_v62 = vld [vmem:[%s16165_s1 + $0x690] sm:$0xff] }
 0x24f   :  { %6980 = vmatprep.subr.bf16.mxu0 %v10092_v0  ;;  %7308 = vmatprep.subr.bf16.mxu1 %v10094_v2  ;;  %v249_v0 = vld [vmem:[%s16165_s1 + $0x6b0] sm:$0xff]  ;;  %v246_v2 = vld [vmem:[%s16165_s1 + $0x698] sm:$0xff] }
 0x250   :  { %v10148_v5 = vcombine.high %v245_v62, %v249_v0  ;;  %v10147_v10 = vcombine.low %v245_v62, %v249_v0  ;;  %v10149_v11 = vcombine.low %v246_v2, %v250_v3  ;;  %v298_v62 = vld [vmem:[%s16165_s1 + $0x838] sm:$0xff] }
 0x252   :  { %6981 = vmatpush1.bf16.msra.mxu0 %v10091_v6  ;;  %7309 = vmatpush1.bf16.msra.mxu1 %v10093_v23  ;;  %v10150_v6 = vcombine.high %v246_v2, %v250_v3  ;;  %v253_v23 = vld [vmem:[%s16165_s1 + $0x6d0] sm:$0xff] }
 0x253   :  { %6982 = vmatprep.subr.bf16.mxu0 %v10100_v7  ;;  %7310 = vmatprep.subr.bf16.mxu1 %v10102_v8  ;;  %v257_v7 = vld [vmem:[%s16165_s1 + $0x6f0] sm:$0xff]  ;;  %v254_v8 = vld [vmem:[%s16165_s1 + $0x6d8] sm:$0xff] }
 0x254   :  { %v10156_v13 = vcombine.high %v253_v23, %v257_v7  ;;  %v10155_v24 = vcombine.low %v253_v23, %v257_v7  ;;  %v10157_v26 = vcombine.low %v254_v8, %v258_v9  ;;  %v306_v23 = vld [vmem:[%s16165_s1 + $0x878] sm:$0xff] }
 0x256   :  { %6983 = vmatpush1.bf16.msra.mxu0 %v10099_v14  ;;  %7311 = vmatpush1.bf16.msra.mxu1 %v10101_v17  ;;  %v10158_v14 = vcombine.high %v254_v8, %v258_v9  ;;  %v261_v17 = vld [vmem:[%s16165_s1 + $0x710] sm:$0xff] }
 0x257   :  { %6984 = vmatprep.subr.bf16.mxu0 %v10108_v53  ;;  %7312 = vmatprep.subr.bf16.mxu1 %v10110_v20  ;;  %v265_v53 = vld [vmem:[%s16165_s1 + $0x730] sm:$0xff]  ;;  %v262_v20 = vld [vmem:[%s16165_s1 + $0x718] sm:$0xff] }
 0x258   :  { %v10164_v49 = vcombine.high %v261_v17, %v265_v53  ;;  %v10163_v33 = vcombine.low %v261_v17, %v265_v53  ;;  %v10165_v34 = vcombine.low %v262_v20, %v266_v59  ;;  %v314_v17 = vld [vmem:[%s16165_s1 + $0x8b8] sm:$0xff] }
 0x25a   :  { %6985 = vmatpush1.bf16.msra.mxu0 %v10107_v15  ;;  %7313 = vmatpush1.bf16.msra.mxu1 %v10109_v28  ;;  %v10166_v15 = vcombine.high %v262_v20, %v266_v59  ;;  %v269_v28 = vld [vmem:[%s16165_s1 + $0x750] sm:$0xff] }
 0x25b   :  { %6986 = vmatprep.subr.bf16.mxu0 %v10116_v29  ;;  %7314 = vmatprep.subr.bf16.mxu1 %v10118_v57  ;;  %v273_v29 = vld [vmem:[%s16165_s1 + $0x770] sm:$0xff]  ;;  %v270_v57 = vld [vmem:[%s16165_s1 + $0x758] sm:$0xff] }
 0x25c   :  { %v10172_v35 = vcombine.high %v269_v28, %v273_v29  ;;  %v10171_v42 = vcombine.low %v269_v28, %v273_v29  ;;  %v10173_v43 = vcombine.low %v270_v57, %v274_v32 }
 0x25e   :  { %6987 = vmatpush1.bf16.msra.mxu0 %v10115_v37  ;;  %7315 = vmatpush1.bf16.msra.mxu1 %v10117_v38  ;;  %v10174_v37 = vcombine.high %v270_v57, %v274_v32  ;;  %v277_v38 = vld [vmem:[%s16165_s1 + $0x790] sm:$0xff] }
 0x25f   :  { %6988 = vmatprep.subr.bf16.mxu0 %v10124_v40  ;;  %7316 = vmatprep.subr.bf16.mxu1 %v10126_v41  ;;  %v281_v40 = vld [vmem:[%s16165_s1 + $0x7b0] sm:$0xff]  ;;  %v278_v41 = vld [vmem:[%s16165_s1 + $0x798] sm:$0xff] }
 0x260   :  { %v10180_v44 = vcombine.high %v277_v38, %v281_v40  ;;  %v10179_v52 = vcombine.low %v277_v38, %v281_v40  ;;  %v10181_v54 = vcombine.low %v278_v41, %v282_v25 }
 0x262   :  { %6989 = vmatpush1.bf16.msra.mxu0 %v10123_v47  ;;  %7317 = vmatpush1.bf16.msra.mxu1 %v10125_v48  ;;  %v10182_v47 = vcombine.high %v278_v41, %v282_v25  ;;  %v285_v48 = vld [vmem:[%s16165_s1 + $0x7d0] sm:$0xff] }
 0x263   :  { %6990 = vmatprep.subr.bf16.mxu0 %v10132_v50  ;;  %7318 = vmatprep.subr.bf16.mxu1 %v10134_v51  ;;  %v289_v50 = vld [vmem:[%s16165_s1 + $0x7f0] sm:$0xff]  ;;  %v286_v51 = vld [vmem:[%s16165_s1 + $0x7d8] sm:$0xff] }
 0x264   :  { %v10188_v56 = vcombine.high %v285_v48, %v289_v50  ;;  %v10187_v0 = vcombine.low %v285_v48, %v289_v50  ;;  %v10189_v2 = vcombine.low %v286_v51, %v290_v18  ;;  %v333_v25 = vld [vmem:[%s16165_s1 + $0x950] sm:$0xff] }
 0x266   :  { %6991 = vmatpush1.bf16.msra.mxu0 %v10131_v60  ;;  %7319 = vmatpush1.bf16.msra.mxu1 %v10133_v12  ;;  %v10190_v60 = vcombine.high %v286_v51, %v290_v18  ;;  %v293_v12 = vld [vmem:[%s16165_s1 + $0x810] sm:$0xff] }
 0x267   :  { %6992 = vmatprep.subr.bf16.mxu0 %v10140_v61  ;;  %7320 = vmatprep.subr.bf16.mxu1 %v10142_v39  ;;  %v297_v61 = vld [vmem:[%s16165_s1 + $0x830] sm:$0xff]  ;;  %v294_v39 = vld [vmem:[%s16165_s1 + $0x818] sm:$0xff] }
 0x268   :  { %v10196_v3 = vcombine.high %v293_v12, %v297_v61  ;;  %v10195_v7 = vcombine.low %v293_v12, %v297_v61  ;;  %v10197_v8 = vcombine.low %v294_v39, %v298_v62  ;;  %v341_v18 = vld [vmem:[%s16165_s1 + $0x990] sm:$0xff] }
 0x26a   :  { %6993 = vmatpush1.bf16.msra.mxu0 %v10139_v4  ;;  %7321 = vmatpush1.bf16.msra.mxu1 %v10141_v21  ;;  %v10198_v4 = vcombine.high %v294_v39, %v298_v62  ;;  %v301_v21 = vld [vmem:[%s16165_s1 + $0x850] sm:$0xff] }
 0x26b   :  { %6994 = vmatprep.subr.bf16.mxu0 %v10148_v5  ;;  %7322 = vmatprep.subr.bf16.mxu1 %v10150_v6  ;;  %v305_v5 = vld [vmem:[%s16165_s1 + $0x870] sm:$0xff]  ;;  %v302_v6 = vld [vmem:[%s16165_s1 + $0x858] sm:$0xff] }
 0x26c   :  { %v10204_v9 = vcombine.high %v301_v21, %v305_v5  ;;  %v10203_v53 = vcombine.low %v301_v21, %v305_v5  ;;  %v10205_v20 = vcombine.low %v302_v6, %v306_v23  ;;  %v349_v62 = vld [vmem:[%s16165_s1 + $0x9d0] sm:$0xff] }
 0x26e   :  { %6995 = vmatpush1.bf16.msra.mxu0 %v10147_v10  ;;  %7323 = vmatpush1.bf16.msra.mxu1 %v10149_v11  ;;  %v10206_v10 = vcombine.high %v302_v6, %v306_v23  ;;  %v309_v11 = vld [vmem:[%s16165_s1 + $0x890] sm:$0xff] }
 0x26f   :  { %6996 = vmatprep.subr.bf16.mxu0 %v10156_v13  ;;  %7324 = vmatprep.subr.bf16.mxu1 %v10158_v14  ;;  %v313_v13 = vld [vmem:[%s16165_s1 + $0x8b0] sm:$0xff]  ;;  %v310_v14 = vld [vmem:[%s16165_s1 + $0x898] sm:$0xff] }
 0x270   :  { %v10212_v59 = vcombine.high %v309_v11, %v313_v13  ;;  %v10211_v28 = vcombine.low %v309_v11, %v313_v13  ;;  %v10213_v29 = vcombine.low %v310_v14, %v314_v17  ;;  %v357_v23 = vld [vmem:[%s16165_s1 + $0xa10] sm:$0xff] }
 0x272   :  { %6997 = vmatpush1.bf16.msra.mxu0 %v10155_v24  ;;  %7325 = vmatpush1.bf16.msra.mxu1 %v10157_v26  ;;  %v10214_v24 = vcombine.high %v310_v14, %v314_v17  ;;  %v317_v26 = vld [vmem:[%s16165_s1 + $0x8d0] sm:$0xff] }
 0x273   :  { %6998 = vmatprep.subr.bf16.mxu0 %v10164_v49  ;;  %7326 = vmatprep.subr.bf16.mxu1 %v10166_v15  ;;  %v321_v49 = vld [vmem:[%s16165_s1 + $0x8f0] sm:$0xff]  ;;  %v322_v15 = vld [vmem:[%s16165_s1 + $0x8f8] sm:$0xff] }
 0x274   :  { %v10220_v57 = vcombine.high %v317_v26, %v321_v49  ;;  %v365_v17 = vld [vmem:[%s16165_s1 + $0xa50] sm:$0xff] }
 0x276   :  { %6999 = vmatpush1.bf16.msra.mxu0 %v10163_v33  ;;  %7327 = vmatpush1.bf16.msra.mxu1 %v10165_v34  ;;  %v325_v33 = vld [vmem:[%s16165_s1 + $0x910] sm:$0xff] }
 0x277   :  { %7000 = vmatprep.subr.bf16.mxu0 %v10172_v35  ;;  %7328 = vmatprep.subr.bf16.mxu1 %v10174_v37  ;;  %v329_v34 = vld [vmem:[%s16165_s1 + $0x930] sm:$0xff]  ;;  %v330_v35 = vld [vmem:[%s16165_s1 + $0x938] sm:$0xff]  ;;  %v10219_v37 = vcombine.low %v317_v26, %v321_v49 }
 0x278   :  { %v10228_v40 = vcombine.high %v325_v33, %v329_v34 }
 0x27a   :  { %7001 = vmatpush1.bf16.msra.mxu0 %v10171_v42  ;;  %7329 = vmatpush1.bf16.msra.mxu1 %v10173_v43  ;;  %v337_v42 = vld [vmem:[%s16165_s1 + $0x970] sm:$0xff]  ;;  %v334_v43 = vld [vmem:[%s16165_s1 + $0x958] sm:$0xff] }
 0x27b   :  { %7002 = vmatprep.subr.bf16.mxu0 %v10180_v44  ;;  %7330 = vmatprep.subr.bf16.mxu1 %v10182_v47  ;;  %v338_v44 = vld [vmem:[%s16165_s1 + $0x978] sm:$0xff]  ;;  %v10227_v47 = vcombine.low %v325_v33, %v329_v34  ;;  %v10236_v50 = vcombine.high %v333_v25, %v337_v42 }
 0x27c   :  { %v10238_v51 = vcombine.high %v334_v43, %v338_v44  ;;  %v10237_v12 = vcombine.low %v334_v43, %v338_v44  ;;  %v389_v44 = vld [vmem:[%s16165_s1 + $0xb10] sm:$0xff] }
 0x27e   :  { %7003 = vmatpush1.bf16.msra.mxu0 %v10179_v52  ;;  %7331 = vmatpush1.bf16.msra.mxu1 %v10181_v54  ;;  %v345_v52 = vld [vmem:[%s16165_s1 + $0x9b0] sm:$0xff]  ;;  %v342_v54 = vld [vmem:[%s16165_s1 + $0x998] sm:$0xff] }
 0x27f   :  { %7004 = vmatprep.subr.bf16.mxu0 %v10188_v56  ;;  %7332 = vmatprep.subr.bf16.mxu1 %v10190_v60  ;;  %v346_v56 = vld [vmem:[%s16165_s1 + $0x9b8] sm:$0xff]  ;;  %v10235_v60 = vcombine.low %v333_v25, %v337_v42  ;;  %v10244_v61 = vcombine.high %v341_v18, %v345_v52 }
 0x280   :  { %v10246_v39 = vcombine.high %v342_v54, %v346_v56  ;;  %v10245_v21 = vcombine.low %v342_v54, %v346_v56  ;;  %v397_v56 = vld [vmem:[%s16165_s1 + $0xb50] sm:$0xff] }
 0x282   :  { %7005 = vmatpush1.bf16.msra.mxu0 %v10187_v0  ;;  %7333 = vmatpush1.bf16.msra.mxu1 %v10189_v2  ;;  %v353_v0 = vld [vmem:[%s16165_s1 + $0x9f0] sm:$0xff]  ;;  %v350_v2 = vld [vmem:[%s16165_s1 + $0x9d8] sm:$0xff] }
 0x283   :  { %7015 = vmatprep.subr.bf16.mxu0 %v10196_v3  ;;  %7343 = vmatprep.subr.bf16.mxu1 %v10198_v4  ;;  %v354_v3 = vld [vmem:[%s16165_s1 + $0x9f8] sm:$0xff]  ;;  %v10243_v4 = vcombine.low %v341_v18, %v345_v52  ;;  %v10252_v5 = vcombine.high %v349_v62, %v353_v0 }
 0x284   :  { %v10254_v6 = vcombine.high %v350_v2, %v354_v3  ;;  %v10253_v11 = vcombine.low %v350_v2, %v354_v3  ;;  %v405_v3 = vld [vmem:[%s16165_s1 + $0xb90] sm:$0xff] }
 0x285   :  { %7007 = vmatmul.mubr.bf16.vlgmr.msra.gmra.mrb[4].mxu0 %v12405_v22  ;;  %7335 = vmatmul.mubr.bf16.vlgmr.msra.gmra.mrb[4].mxu1 %v12405_v22  ;;  %v318_v22 = vld [vmem:[%s16165_s1 + $0x8d8] sm:$0xff] }
 0x286   :  { %7016 = vmatpush1.bf16.msra.mxu0 %v10195_v7  ;;  %7344 = vmatpush1.bf16.msra.mxu1 %v10197_v8  ;;  %v10222_v32 = vcombine.high %v318_v22, %v322_v15  ;;  %v10221_v38 = vcombine.low %v318_v22, %v322_v15  ;;  %v361_v7 = vld [vmem:[%s16165_s1 + $0xa30] sm:$0xff]  ;;  %v358_v8 = vld [vmem:[%s16165_s1 + $0xa18] sm:$0xff] }
 0x287   :  { %7017 = vmatprep.subr.bf16.mxu0 %v10204_v9  ;;  %7345 = vmatprep.subr.bf16.mxu1 %v10206_v10  ;;  %v362_v9 = vld [vmem:[%s16165_s1 + $0xa38] sm:$0xff]  ;;  %v10251_v10 = vcombine.low %v349_v62, %v353_v0  ;;  %v10260_v13 = vcombine.high %v357_v23, %v361_v7  ;;  %v373_v15 = vld [vmem:[%s16165_s1 + $0xa90] sm:$0xff] }
 0x288   :  { %7047 = vmatprep.mubr.bf16.mxu0 %v12426_v31  ;;  %7375 = vmatprep.mubr.bf16.mxu1 %v12426_v31  ;;  %v326_v31 = vld [vmem:[%s16165_s1 + $0x918] sm:$0xff]  ;;  %v10262_v14 = vcombine.high %v358_v8, %v362_v9  ;;  %v10261_v26 = vcombine.low %v358_v8, %v362_v9  ;;  %v413_v9 = vld [vmem:[%s16165_s1 + $0xbd0] sm:$0xff] }
 0x289   :  { %v10230_v41 = vcombine.high %v326_v31, %v330_v35  ;;  %v10229_v48 = vcombine.low %v326_v31, %v330_v35  ;;  %v381_v35 = vld [vmem:[%s16165_s1 + $0xad0] sm:$0xff] }
 0x28a   :  { %7018 = vmatpush1.bf16.msra.mxu0 %v10203_v53  ;;  %7346 = vmatpush1.bf16.msra.mxu1 %v10205_v20  ;;  %v369_v53 = vld [vmem:[%s16165_s1 + $0xa70] sm:$0xff]  ;;  %v366_v20 = vld [vmem:[%s16165_s1 + $0xa58] sm:$0xff] }
 0x28b   :  { %7019 = vmatprep.subr.bf16.mxu0 %v10212_v59  ;;  %7347 = vmatprep.subr.bf16.mxu1 %v10214_v24  ;;  %v370_v59 = vld [vmem:[%s16165_s1 + $0xa78] sm:$0xff]  ;;  %v10259_v24 = vcombine.low %v357_v23, %v361_v7  ;;  %v10268_v49 = vcombine.high %v365_v17, %v369_v53 }
 0x28c   :  { %v10270_v22 = vcombine.high %v366_v20, %v370_v59  ;;  %v10269_v33 = vcombine.low %v366_v20, %v370_v59  ;;  %v421_v59 = vld [vmem:[%s16165_s1 + $0xc10] sm:$0xff] }
 0x28e   :  { %7020 = vmatpush1.bf16.msra.mxu0 %v10211_v28  ;;  %7348 = vmatpush1.bf16.msra.mxu1 %v10213_v29  ;;  %v377_v28 = vld [vmem:[%s16165_s1 + $0xab0] sm:$0xff]  ;;  %v374_v29 = vld [vmem:[%s16165_s1 + $0xa98] sm:$0xff] }
 0x28f   :  { %7021 = vmatprep.subr.bf16.mxu0 %v10220_v57  ;;  %7349 = vmatprep.subr.bf16.mxu1 %v10222_v32  ;;  %v378_v57 = vld [vmem:[%s16165_s1 + $0xab8] sm:$0xff]  ;;  %v10267_v32 = vcombine.low %v365_v17, %v369_v53  ;;  %v10276_v34 = vcombine.high %v373_v15, %v377_v28 }
 0x290   :  { %v10278_v31 = vcombine.high %v374_v29, %v378_v57  ;;  %v10277_v25 = vcombine.low %v374_v29, %v378_v57  ;;  %v429_v57 = vld [vmem:[%s16165_s1 + $0xc50] sm:$0xff] }
 0x292   :  { %7022 = vmatpush1.bf16.msra.mxu0 %v10219_v37  ;;  %7350 = vmatpush1.bf16.msra.mxu1 %v10221_v38  ;;  %v385_v37 = vld [vmem:[%s16165_s1 + $0xaf0] sm:$0xff]  ;;  %v382_v38 = vld [vmem:[%s16165_s1 + $0xad8] sm:$0xff] }
 0x293   :  { %7023 = vmatprep.subr.bf16.mxu0 %v10228_v40  ;;  %7351 = vmatprep.subr.bf16.mxu1 %v10230_v41  ;;  %v386_v40 = vld [vmem:[%s16165_s1 + $0xaf8] sm:$0xff]  ;;  %v10275_v41 = vcombine.low %v373_v15, %v377_v28  ;;  %v10284_v42 = vcombine.high %v381_v35, %v385_v37 }
 0x294   :  { %v10286_v43 = vcombine.high %v382_v38, %v386_v40  ;;  %v10285_v18 = vcombine.low %v382_v38, %v386_v40  ;;  %v437_v40 = vld [vmem:[%s16165_s1 + $0xc90] sm:$0xff] }
 0x296   :  { %7024 = vmatpush1.bf16.msra.mxu0 %v10227_v47  ;;  %7352 = vmatpush1.bf16.msra.mxu1 %v10229_v48  ;;  %v393_v47 = vld [vmem:[%s16165_s1 + $0xb30] sm:$0xff]  ;;  %v390_v48 = vld [vmem:[%s16165_s1 + $0xb18] sm:$0xff] }
 0x297   :  { %7025 = vmatprep.subr.bf16.mxu0 %v10236_v50  ;;  %7353 = vmatprep.subr.bf16.mxu1 %v10238_v51  ;;  %v394_v50 = vld [vmem:[%s16165_s1 + $0xb38] sm:$0xff]  ;;  %v10283_v51 = vcombine.low %v381_v35, %v385_v37  ;;  %v10292_v52 = vcombine.high %v389_v44, %v393_v47 }
 0x298   :  { %v10294_v54 = vcombine.high %v390_v48, %v394_v50  ;;  %v10293_v62 = vcombine.low %v390_v48, %v394_v50  ;;  %v445_v50 = vld [vmem:[%s16165_s1 + $0xcd0] sm:$0xff] }
 0x29a   :  { %7026 = vmatpush1.bf16.msra.mxu0 %v10235_v60  ;;  %7354 = vmatpush1.bf16.msra.mxu1 %v10237_v12  ;;  %v401_v60 = vld [vmem:[%s16165_s1 + $0xb70] sm:$0xff]  ;;  %v398_v12 = vld [vmem:[%s16165_s1 + $0xb58] sm:$0xff] }
 0x29b   :  { %7027 = vmatprep.subr.bf16.mxu0 %v10244_v61  ;;  %7355 = vmatprep.subr.bf16.mxu1 %v10246_v39  ;;  %v402_v61 = vld [vmem:[%s16165_s1 + $0xb78] sm:$0xff]  ;;  %v10291_v39 = vcombine.low %v389_v44, %v393_v47  ;;  %v10300_v0 = vcombine.high %v397_v56, %v401_v60 }
 0x29c   :  { %v10302_v2 = vcombine.high %v398_v12, %v402_v61  ;;  %v10301_v23 = vcombine.low %v398_v12, %v402_v61  ;;  %v453_v12 = vld [vmem:[%s16165_s1 + $0xd10] sm:$0xff] }
 0x29d   :  { %v457_v61 = vld [vmem:[%s16165_s1 + $0xd30] sm:$0xff] }
 0x29e   :  { %7028 = vmatpush1.bf16.msra.mxu0 %v10243_v4  ;;  %7356 = vmatpush1.bf16.msra.mxu1 %v10245_v21  ;;  %v409_v4 = vld [vmem:[%s16165_s1 + $0xbb0] sm:$0xff]  ;;  %v406_v21 = vld [vmem:[%s16165_s1 + $0xb98] sm:$0xff] }
 0x29f   :  { %7029 = vmatprep.subr.bf16.mxu0 %v10252_v5  ;;  %7357 = vmatprep.subr.bf16.mxu1 %v10254_v6  ;;  %v410_v5 = vld [vmem:[%s16165_s1 + $0xbb8] sm:$0xff]  ;;  %v10299_v6 = vcombine.low %v397_v56, %v401_v60  ;;  %v10308_v7 = vcombine.high %v405_v3, %v409_v4 }
 0x2a0   :  { %v10310_v8 = vcombine.high %v406_v21, %v410_v5  ;;  %v10309_v17 = vcombine.low %v406_v21, %v410_v5  ;;  %v465_v21 = vld [vmem:[%s16165_s1 + $0xd70] sm:$0xff]  ;;  %v462_v5 = vld [vmem:[%s16165_s1 + $0xd58] sm:$0xff] }
 0x2a2   :  { %7030 = vmatpush1.bf16.msra.mxu0 %v10251_v10  ;;  %7358 = vmatpush1.bf16.msra.mxu1 %v10253_v11  ;;  %v417_v10 = vld [vmem:[%s16165_s1 + $0xbf0] sm:$0xff]  ;;  %v414_v11 = vld [vmem:[%s16165_s1 + $0xbd8] sm:$0xff] }
 0x2a3   :  { %7031 = vmatprep.subr.bf16.mxu0 %v10260_v13  ;;  %7359 = vmatprep.subr.bf16.mxu1 %v10262_v14  ;;  %v418_v13 = vld [vmem:[%s16165_s1 + $0xbf8] sm:$0xff]  ;;  %v10307_v14 = vcombine.low %v405_v3, %v409_v4  ;;  %v10316_v53 = vcombine.high %v413_v9, %v417_v10  ;;  %v461_v4 = vld [vmem:[%s16165_s1 + $0xd50] sm:$0xff] }
 0x2a4   :  { %v10318_v20 = vcombine.high %v414_v11, %v418_v13  ;;  %v10317_v15 = vcombine.low %v414_v11, %v418_v13  ;;  %v473_v11 = vld [vmem:[%s16165_s1 + $0xdb0] sm:$0xff]  ;;  %v470_v13 = vld [vmem:[%s16165_s1 + $0xd98] sm:$0xff] }
 0x2a6   :  { %7032 = vmatpush1.bf16.msra.mxu0 %v10259_v24  ;;  %7360 = vmatpush1.bf16.msra.mxu1 %v10261_v26  ;;  %v425_v24 = vld [vmem:[%s16165_s1 + $0xc30] sm:$0xff]  ;;  %v422_v26 = vld [vmem:[%s16165_s1 + $0xc18] sm:$0xff] }
 0x2a7   :  { %7033 = vmatprep.subr.bf16.mxu0 %v10268_v49  ;;  %7361 = vmatprep.subr.bf16.mxu1 %v10270_v22  ;;  %v426_v49 = vld [vmem:[%s16165_s1 + $0xc38] sm:$0xff]  ;;  %v10315_v22 = vcombine.low %v413_v9, %v417_v10  ;;  %v10324_v28 = vcombine.high %v421_v59, %v425_v24  ;;  %v469_v10 = vld [vmem:[%s16165_s1 + $0xd90] sm:$0xff] }
 0x2a8   :  { %v10326_v29 = vcombine.high %v422_v26, %v426_v49  ;;  %v10325_v35 = vcombine.low %v422_v26, %v426_v49  ;;  %v477_v26 = vld [vmem:[%s16165_s1 + $0xdd0] sm:$0xff] }
 0x2a9   :  { %v481_v49 = vld [vmem:[%s16165_s1 + $0xdf0] sm:$0xff] }
 0x2aa   :  { %7034 = vmatpush1.bf16.msra.mxu0 %v10267_v32  ;;  %7362 = vmatpush1.bf16.msra.mxu1 %v10269_v33  ;;  %v433_v32 = vld [vmem:[%s16165_s1 + $0xc70] sm:$0xff]  ;;  %v430_v33 = vld [vmem:[%s16165_s1 + $0xc58] sm:$0xff] }
 0x2ab   :  { %7035 = vmatprep.subr.bf16.mxu0 %v10276_v34  ;;  %7363 = vmatprep.subr.bf16.mxu1 %v10278_v31  ;;  %v434_v34 = vld [vmem:[%s16165_s1 + $0xc78] sm:$0xff]  ;;  %v10323_v31 = vcombine.low %v421_v59, %v425_v24  ;;  %v10332_v37 = vcombine.high %v429_v57, %v433_v32 }
 0x2ac   :  { %v10334_v38 = vcombine.high %v430_v33, %v434_v34  ;;  %v10333_v44 = vcombine.low %v430_v33, %v434_v34  ;;  %v10371_v33 = vcombine.low %v469_v10, %v473_v11 }
 0x2ae   :  { %7036 = vmatpush1.bf16.msra.mxu0 %v10275_v41  ;;  %7364 = vmatpush1.bf16.msra.mxu1 %v10277_v25  ;;  %v441_v41 = vld [vmem:[%s16165_s1 + $0xcb0] sm:$0xff]  ;;  %v438_v25 = vld [vmem:[%s16165_s1 + $0xc98] sm:$0xff] }
 0x2af   :  { %7037 = vmatprep.subr.bf16.mxu0 %v10284_v42  ;;  %7365 = vmatprep.subr.bf16.mxu1 %v10286_v43  ;;  %v442_v42 = vld [vmem:[%s16165_s1 + $0xcb8] sm:$0xff]  ;;  %v10331_v43 = vcombine.low %v429_v57, %v433_v32  ;;  %v10340_v47 = vcombine.high %v437_v40, %v441_v41 }
 0x2b0   :  { %v10342_v48 = vcombine.high %v438_v25, %v442_v42 }
 0x2b2   :  { %7038 = vmatpush1.bf16.msra.mxu0 %v10283_v51  ;;  %7366 = vmatpush1.bf16.msra.mxu1 %v10285_v18  ;;  %v449_v51 = vld [vmem:[%s16165_s1 + $0xcf0] sm:$0xff]  ;;  %v450_v18 = vld [vmem:[%s16165_s1 + $0xcf8] sm:$0xff] }
 0x2b3   :  { %7039 = vmatprep.subr.bf16.mxu0 %v10292_v52  ;;  %7367 = vmatprep.subr.bf16.mxu1 %v10294_v54  ;;  %v10339_v52 = vcombine.low %v437_v40, %v441_v41  ;;  %v10341_v54 = vcombine.low %v438_v25, %v442_v42  ;;  %v10348_v56 = vcombine.high %v445_v50, %v449_v51  ;;  %v485_v41 = vld [vmem:[%s16165_s1 + $0xe10] sm:$0xff]  ;;  %v486_v42 = vld [vmem:[%s16165_s1 + $0xe18] sm:$0xff] }
 0x2b4   :  { %v489_v25 = vld [vmem:[%s16165_s1 + $0xe30] sm:$0xff] }
 0x2b6   :  { %7040 = vmatpush1.bf16.msra.mxu0 %v10291_v39  ;;  %7368 = vmatpush1.bf16.msra.mxu1 %v10293_v62  ;;  %v458_v39 = vld [vmem:[%s16165_s1 + $0xd38] sm:$0xff]  ;;  %v10347_v62 = vcombine.low %v445_v50, %v449_v51  ;;  %v493_v51 = vld [vmem:[%s16165_s1 + $0xe50] sm:$0xff] }
 0x2b7   :  { %7041 = vmatprep.subr.bf16.mxu0 %v10300_v0  ;;  %7369 = vmatprep.subr.bf16.mxu1 %v10302_v2  ;;  %v10356_v2 = vcombine.high %v453_v12, %v457_v61 }
 0x2ba   :  { %7042 = vmatpush1.bf16.msra.mxu0 %v10299_v6  ;;  %7370 = vmatpush1.bf16.msra.mxu1 %v10301_v23  ;;  %v466_v6 = vld [vmem:[%s16165_s1 + $0xd78] sm:$0xff]  ;;  %v10355_v23 = vcombine.low %v453_v12, %v457_v61  ;;  %v501_v61 = vld [vmem:[%s16165_s1 + $0xe90] sm:$0xff] }
 0x2bb   :  { %7043 = vmatprep.subr.bf16.mxu0 %v10308_v7  ;;  %7371 = vmatprep.subr.bf16.mxu1 %v10310_v8  ;;  %v10364_v8 = vcombine.high %v461_v4, %v465_v21  ;;  %v10366_v9 = vcombine.high %v462_v5, %v466_v6 }
 0x2be   :  { %7044 = vmatpush1.bf16.msra.mxu0 %v10307_v14  ;;  %7372 = vmatpush1.bf16.msra.mxu1 %v10309_v17  ;;  %v474_v14 = vld [vmem:[%s16165_s1 + $0xdb8] sm:$0xff]  ;;  %v10363_v17 = vcombine.low %v461_v4, %v465_v21  ;;  %v509_v21 = vld [vmem:[%s16165_s1 + $0xed0] sm:$0xff] }
 0x2bf   :  { %7045 = vmatprep.subr.bf16.mxu0 %v10316_v53  ;;  %7373 = vmatprep.subr.bf16.mxu1 %v10318_v20  ;;  %v10365_v53 = vcombine.low %v462_v5, %v466_v6  ;;  %v10372_v20 = vcombine.high %v469_v10, %v473_v11  ;;  %v10374_v24 = vcombine.high %v470_v13, %v474_v14  ;;  %v513_v5 = vld [vmem:[%s16165_s1 + $0xef0] sm:$0xff]  ;;  %v510_v6 = vld [vmem:[%s16165_s1 + $0xed8] sm:$0xff] }
 0x2c0   :  { %v517_v11 = vld [vmem:[%s16165_s1 + $0xf10] sm:$0xff] }
 0x2c2   :  { %7046 = vmatpush1.bf16.msra.mxu0 %v10315_v22  ;;  %7374 = vmatpush1.bf16.msra.mxu1 %v10317_v15 }
 0x2c3   :  { %7056 = vmatprep.subr.bf16.mxu0 %v10324_v28  ;;  %7384 = vmatprep.subr.bf16.mxu1 %v10326_v29  ;;  %v478_v28 = vld [vmem:[%s16165_s1 + $0xdd8] sm:$0xff] }
 0x2c4   :  { %v482_v29 = vld [vmem:[%s16165_s1 + $0xdf8] sm:$0xff] }
 0x2c5   :  { %7048 = vmatmul.mubr.bf16.vlgmr.msra.gmra.mrb[4].mxu0 %v12614_v36  ;;  %7376 = vmatmul.mubr.bf16.vlgmr.msra.gmra.mrb[4].mxu1 %v12614_v36  ;;  %v446_v36 = vld [vmem:[%s16165_s1 + $0xcd8] sm:$0xff]  ;;  %v10382_v40 = vcombine.high %v478_v28, %v482_v29 }
 0x2c6   :  { %7057 = vmatpush1.bf16.msra.mxu0 %v10323_v31  ;;  %7385 = vmatpush1.bf16.msra.mxu1 %v10325_v35  ;;  %v10350_v60 = vcombine.high %v446_v36, %v450_v18  ;;  %v10349_v0 = vcombine.low %v446_v36, %v450_v18  ;;  %v10373_v35 = vcombine.low %v470_v13, %v474_v14  ;;  %v497_v36 = vld [vmem:[%s16165_s1 + $0xe70] sm:$0xff]  ;;  %v494_v18 = vld [vmem:[%s16165_s1 + $0xe58] sm:$0xff] }
 0x2c7   :  { %7058 = vmatprep.subr.bf16.mxu0 %v10332_v37  ;;  %7386 = vmatprep.subr.bf16.mxu1 %v10334_v38  ;;  %v10380_v37 = vcombine.high %v477_v26, %v481_v49  ;;  %v521_v13 = vld [vmem:[%s16165_s1 + $0xf30] sm:$0xff]  ;;  %v518_v14 = vld [vmem:[%s16165_s1 + $0xf18] sm:$0xff] }
 0x2c8   :  { %7088 = vmatprep.mubr.bf16.mxu0 %v12635_v45  ;;  %7416 = vmatprep.mubr.bf16.mxu1 %v12635_v45  ;;  %v454_v45 = vld [vmem:[%s16165_s1 + $0xd18] sm:$0xff] }
 0x2c9   :  { %v10358_v3 = vcombine.high %v454_v45, %v458_v39  ;;  %v10357_v7 = vcombine.low %v454_v45, %v458_v39  ;;  %v505_v45 = vld [vmem:[%s16165_s1 + $0xeb0] sm:$0xff]  ;;  %v502_v39 = vld [vmem:[%s16165_s1 + $0xe98] sm:$0xff] }
 0x2ca   :  { %7059 = vmatpush1.bf16.msra.mxu0 %v10331_v43  ;;  %7387 = vmatpush1.bf16.msra.mxu1 %v10333_v44  ;;  %v490_v43 = vld [vmem:[%s16165_s1 + $0xe38] sm:$0xff]  ;;  %v10379_v44 = vcombine.low %v477_v26, %v481_v49  ;;  %v525_v49 = vld [vmem:[%s16165_s1 + $0xf50] sm:$0xff] }
 0x2cb   :  { %7060 = vmatprep.subr.bf16.mxu0 %v10340_v47  ;;  %7388 = vmatprep.subr.bf16.mxu1 %v10342_v48  ;;  %v10381_v47 = vcombine.low %v478_v28, %v482_v29  ;;  %v10388_v48 = vcombine.high %v485_v41, %v489_v25  ;;  %v10390_v50 = vcombine.high %v486_v42, %v490_v43  ;;  %v529_v28 = vld [vmem:[%s16165_s1 + $0xf70] sm:$0xff]  ;;  %v526_v29 = vld [vmem:[%s16165_s1 + $0xf58] sm:$0xff] }
 0x2ce   :  { %7061 = vmatpush1.bf16.msra.mxu0 %v10339_v52  ;;  %7389 = vmatpush1.bf16.msra.mxu1 %v10341_v54  ;;  %v498_v52 = vld [vmem:[%s16165_s1 + $0xe78] sm:$0xff]  ;;  %v10387_v54 = vcombine.low %v485_v41, %v489_v25  ;;  %v10427_v25 = vcombine.low %v525_v49, %v529_v28 }
 0x2cf   :  { %7062 = vmatprep.subr.bf16.mxu0 %v10348_v56  ;;  %7390 = vmatprep.subr.bf16.mxu1 %v10350_v60  ;;  %v10389_v56 = vcombine.low %v486_v42, %v490_v43  ;;  %v10396_v60 = vcombine.high %v493_v51, %v497_v36  ;;  %v10398_v12 = vcombine.high %v494_v18, %v498_v52  ;;  %v538_v41 = vld [vmem:[%s16165_s1 + $0xfb8] sm:$0xff] }
 0x2d2   :  { %7063 = vmatpush1.bf16.msra.mxu0 %v10347_v62  ;;  %7391 = vmatpush1.bf16.msra.mxu1 %v10349_v0  ;;  %v506_v62 = vld [vmem:[%s16165_s1 + $0xeb8] sm:$0xff]  ;;  %v10395_v0 = vcombine.low %v493_v51, %v497_v36 }
 0x2d3   :  { %7064 = vmatprep.subr.bf16.mxu0 %v10356_v2  ;;  %7392 = vmatprep.subr.bf16.mxu1 %v10358_v3  ;;  %v10397_v2 = vcombine.low %v494_v18, %v498_v52  ;;  %v10404_v3 = vcombine.high %v501_v61, %v505_v45  ;;  %v10406_v4 = vcombine.high %v502_v39, %v506_v62  ;;  %v546_v51 = vld [vmem:[%s16165_s1 + $0xff8] sm:$0xff] }
 0x2d6   :  { %7065 = vmatpush1.bf16.msra.mxu0 %v10355_v23  ;;  %7393 = vmatpush1.bf16.msra.mxu1 %v10357_v7  ;;  %v514_v23 = vld [vmem:[%s16165_s1 + $0xef8] sm:$0xff]  ;;  %v10403_v7 = vcombine.low %v501_v61, %v505_v45 }
 0x2d7   :  { %7066 = vmatprep.subr.bf16.mxu0 %v10364_v8  ;;  %7394 = vmatprep.subr.bf16.mxu1 %v10366_v9  ;;  %v10405_v8 = vcombine.low %v502_v39, %v506_v62  ;;  %v10412_v9 = vcombine.high %v509_v21, %v513_v5  ;;  %v10414_v10 = vcombine.high %v510_v6, %v514_v23  ;;  %v554_v61 = vld [vmem:[%s16165_s1 + $0x1038] sm:$0xff] }
 0x2d8   :  { %v14319_v59 = vpop.f32.mrb[0].mxu0  ;;  %v14327_v22 = vpop.f32.mrb[0].mxu1 }
 0x2d9   :  { %v14329_v15 = vpop.f32.mrb[1].mxu0  ;;  %v14337_v57 = vpop.f32.mrb[1].mxu1 }
 0x2da   :  { %v6602_v32 = vpop.f32.mrb[2].mxu0  ;;  %7067 = vmatpush1.bf16.msra.mxu0 %v10363_v17  ;;  %v6930_v34 = vpop.f32.mrb[2].mxu1  ;;  %7395 = vmatpush1.bf16.msra.mxu1 %v10365_v53  ;;  %v522_v17 = vld [vmem:[%s16165_s1 + $0xf38] sm:$0xff]  ;;  %v10411_v53 = vcombine.low %v509_v21, %v513_v5 }
 0x2db   :  { %v6603_v31 = vpop.f32.mrb[3].mxu0  ;;  %7068 = vmatprep.subr.bf16.mxu0 %v10372_v20  ;;  %v6931_v38 = vpop.f32.mrb[3].mxu1  ;;  %7396 = vmatprep.subr.bf16.mxu1 %v10374_v24  ;;  %v10413_v20 = vcombine.low %v510_v6, %v514_v23  ;;  %v10420_v24 = vcombine.high %v517_v11, %v521_v13  ;;  %v10422_v26 = vcombine.high %v518_v14, %v522_v17  ;;  %v530_v32 = vld [vmem:[%s16165_s1 + $0xf78] sm:$0xff] }
 0x2dc   :  { %v10421_v34 = vcombine.low %v518_v14, %v522_v17  ;;  %v10428_v31 = vcombine.high %v525_v49, %v529_v28  ;;  %v537_v38 = vld [vmem:[%s16165_s1 + $0xfb0] sm:$0xff]  ;;  %v10429_v42 = vcombine.low %v526_v29, %v530_v32  ;;  %v562_v21 = vld [vmem:[%s16165_s1 + $0x1078] sm:$0xff] }
 0x2de   :  { %7069 = vmatpush1.bf16.msra.mxu0 %v10371_v33  ;;  %7397 = vmatpush1.bf16.msra.mxu1 %v10373_v35  ;;  %v10419_v33 = vcombine.low %v517_v11, %v521_v13  ;;  %v10430_v35 = vcombine.high %v526_v29, %v530_v32  ;;  %v570_v11 = vld [vmem:[%s16165_s1 + $0x10b8] sm:$0xff] }
 0x2df   :  { %7070 = vmatprep.subr.bf16.mxu0 %v10380_v37  ;;  %7398 = vmatprep.subr.bf16.mxu1 %v10382_v40  ;;  %v533_v37 = vld [vmem:[%s16165_s1 + $0xf90] sm:$0xff]  ;;  %v534_v40 = vld [vmem:[%s16165_s1 + $0xf98] sm:$0xff] }
 0x2e0   :  { %v10436_v43 = vcombine.high %v533_v37, %v537_v38  ;;  %v10435_v36 = vcombine.low %v533_v37, %v537_v38  ;;  %v10437_v18 = vcombine.low %v534_v40, %v538_v41 }
 0x2e2   :  { %7071 = vmatpush1.bf16.msra.mxu0 %v10379_v44  ;;  %7399 = vmatpush1.bf16.msra.mxu1 %v10381_v47  ;;  %v10438_v44 = vcombine.high %v534_v40, %v538_v41  ;;  %v541_v47 = vld [vmem:[%s16165_s1 + $0xfd0] sm:$0xff] }
 0x2e3   :  { %7072 = vmatprep.subr.bf16.mxu0 %v10388_v48  ;;  %7400 = vmatprep.subr.bf16.mxu1 %v10390_v50  ;;  %v545_v48 = vld [vmem:[%s16165_s1 + $0xff0] sm:$0xff]  ;;  %v542_v50 = vld [vmem:[%s16165_s1 + $0xfd8] sm:$0xff] }
 0x2e4   :  { %v10444_v52 = vcombine.high %v541_v47, %v545_v48  ;;  %v10443_v45 = vcombine.low %v541_v47, %v545_v48  ;;  %v10445_v39 = vcombine.low %v542_v50, %v546_v51  ;;  %v589_v41 = vld [vmem:[%s16165_s1 + $0x1150] sm:$0xff] }
 0x2e6   :  { %7073 = vmatpush1.bf16.msra.mxu0 %v10387_v54  ;;  %7401 = vmatpush1.bf16.msra.mxu1 %v10389_v56  ;;  %v10446_v54 = vcombine.high %v542_v50, %v546_v51  ;;  %v549_v56 = vld [vmem:[%s16165_s1 + $0x1010] sm:$0xff] }
 0x2e7   :  { %7074 = vmatprep.subr.bf16.mxu0 %v10396_v60  ;;  %7402 = vmatprep.subr.bf16.mxu1 %v10398_v12  ;;  %v553_v60 = vld [vmem:[%s16165_s1 + $0x1030] sm:$0xff]  ;;  %v550_v12 = vld [vmem:[%s16165_s1 + $0x1018] sm:$0xff] }
 0x2e8   :  { %v10452_v62 = vcombine.high %v549_v56, %v553_v60  ;;  %v10451_v5 = vcombine.low %v549_v56, %v553_v60  ;;  %v10453_v6 = vcombine.low %v550_v12, %v554_v61  ;;  %v597_v51 = vld [vmem:[%s16165_s1 + $0x1190] sm:$0xff] }
 0x2ea   :  { %7075 = vmatpush1.bf16.msra.mxu0 %v10395_v0  ;;  %7403 = vmatpush1.bf16.msra.mxu1 %v10397_v2  ;;  %v10454_v0 = vcombine.high %v550_v12, %v554_v61  ;;  %v557_v2 = vld [vmem:[%s16165_s1 + $0x1050] sm:$0xff] }
 0x2eb   :  { %7076 = vmatprep.subr.bf16.mxu0 %v10404_v3  ;;  %7404 = vmatprep.subr.bf16.mxu1 %v10406_v4  ;;  %v561_v3 = vld [vmem:[%s16165_s1 + $0x1070] sm:$0xff]  ;;  %v558_v4 = vld [vmem:[%s16165_s1 + $0x1058] sm:$0xff] }
 0x2ec   :  { %v10460_v23 = vcombine.high %v557_v2, %v561_v3  ;;  %v10459_v13 = vcombine.low %v557_v2, %v561_v3  ;;  %v10461_v14 = vcombine.low %v558_v4, %v562_v21  ;;  %v605_v61 = vld [vmem:[%s16165_s1 + $0x11d0] sm:$0xff] }
 0x2ee   :  { %7077 = vmatpush1.bf16.msra.mxu0 %v10403_v7  ;;  %7405 = vmatpush1.bf16.msra.mxu1 %v10405_v8  ;;  %v10462_v7 = vcombine.high %v558_v4, %v562_v21  ;;  %v565_v8 = vld [vmem:[%s16165_s1 + $0x1090] sm:$0xff] }
 0x2ef   :  { %7078 = vmatprep.subr.bf16.mxu0 %v10412_v9  ;;  %7406 = vmatprep.subr.bf16.mxu1 %v10414_v10  ;;  %v569_v9 = vld [vmem:[%s16165_s1 + $0x10b0] sm:$0xff]  ;;  %v566_v10 = vld [vmem:[%s16165_s1 + $0x1098] sm:$0xff] }
 0x2f0   :  { %v10468_v17 = vcombine.high %v565_v8, %v569_v9  ;;  %v10467_v49 = vcombine.low %v565_v8, %v569_v9  ;;  %v10469_v28 = vcombine.low %v566_v10, %v570_v11  ;;  %v613_v21 = vld [vmem:[%s16165_s1 + $0x1210] sm:$0xff] }
 0x2f2   :  { %7079 = vmatpush1.bf16.msra.mxu0 %v10411_v53  ;;  %7407 = vmatpush1.bf16.msra.mxu1 %v10413_v20  ;;  %v10470_v53 = vcombine.high %v566_v10, %v570_v11  ;;  %v573_v20 = vld [vmem:[%s16165_s1 + $0x10d0] sm:$0xff] }
 0x2f3   :  { %7080 = vmatprep.subr.bf16.mxu0 %v10420_v24  ;;  %7408 = vmatprep.subr.bf16.mxu1 %v10422_v26  ;;  %v577_v24 = vld [vmem:[%s16165_s1 + $0x10f0] sm:$0xff]  ;;  %v578_v26 = vld [vmem:[%s16165_s1 + $0x10f8] sm:$0xff] }
 0x2f4   :  { %v10476_v29 = vcombine.high %v573_v20, %v577_v24  ;;  %v621_v11 = vld [vmem:[%s16165_s1 + $0x1250] sm:$0xff] }
 0x2f6   :  { %7081 = vmatpush1.bf16.msra.mxu0 %v10419_v33  ;;  %7409 = vmatpush1.bf16.msra.mxu1 %v10421_v34  ;;  %v581_v33 = vld [vmem:[%s16165_s1 + $0x1110] sm:$0xff] }
 0x2f7   :  { %7082 = vmatprep.subr.bf16.mxu0 %v10428_v31  ;;  %7410 = vmatprep.subr.bf16.mxu1 %v10430_v35  ;;  %v585_v34 = vld [vmem:[%s16165_s1 + $0x1130] sm:$0xff]  ;;  %v586_v31 = vld [vmem:[%s16165_s1 + $0x1138] sm:$0xff]  ;;  %v10475_v35 = vcombine.low %v573_v20, %v577_v24 }
 0x2f8   :  { %v10484_v38 = vcombine.high %v581_v33, %v585_v34 }
 0x2fa   :  { %7083 = vmatpush1.bf16.msra.mxu0 %v10427_v25  ;;  %7411 = vmatpush1.bf16.msra.mxu1 %v10429_v42  ;;  %v593_v25 = vld [vmem:[%s16165_s1 + $0x1170] sm:$0xff]  ;;  %v590_v42 = vld [vmem:[%s16165_s1 + $0x1158] sm:$0xff] }
 0x2fb   :  { %7084 = vmatprep.subr.bf16.mxu0 %v10436_v43  ;;  %7412 = vmatprep.subr.bf16.mxu1 %v10438_v44  ;;  %v594_v43 = vld [vmem:[%s16165_s1 + $0x1178] sm:$0xff]  ;;  %v10483_v44 = vcombine.low %v581_v33, %v585_v34  ;;  %v10492_v48 = vcombine.high %v589_v41, %v593_v25 }
 0x2fc   :  { %v10494_v50 = vcombine.high %v590_v42, %v594_v43  ;;  %v10493_v56 = vcombine.low %v590_v42, %v594_v43  ;;  %v645_v43 = vld [vmem:[%s16165_s1 + $0x1310] sm:$0xff] }
 0x2fe   :  { %7085 = vmatpush1.bf16.msra.mxu0 %v10435_v36  ;;  %7413 = vmatpush1.bf16.msra.mxu1 %v10437_v18  ;;  %v601_v36 = vld [vmem:[%s16165_s1 + $0x11b0] sm:$0xff]  ;;  %v598_v18 = vld [vmem:[%s16165_s1 + $0x1198] sm:$0xff] }
 0x2ff   :  { %7086 = vmatprep.subr.bf16.mxu0 %v10444_v52  ;;  %7414 = vmatprep.subr.bf16.mxu1 %v10446_v54  ;;  %v602_v52 = vld [vmem:[%s16165_s1 + $0x11b8] sm:$0xff]  ;;  %v10491_v54 = vcombine.low %v589_v41, %v593_v25  ;;  %v10500_v60 = vcombine.high %v597_v51, %v601_v36 }
 0x300   :  { %v10502_v12 = vcombine.high %v598_v18, %v602_v52  ;;  %v10501_v2 = vcombine.low %v598_v18, %v602_v52  ;;  %v653_v52 = vld [vmem:[%s16165_s1 + $0x1350] sm:$0xff] }
 0x302   :  { %7087 = vmatpush1.bf16.msra.mxu0 %v10443_v45  ;;  %7415 = vmatpush1.bf16.msra.mxu1 %v10445_v39  ;;  %v609_v45 = vld [vmem:[%s16165_s1 + $0x11f0] sm:$0xff]  ;;  %v606_v39 = vld [vmem:[%s16165_s1 + $0x11d8] sm:$0xff] }
 0x303   :  { %7097 = vmatprep.subr.bf16.mxu0 %v10452_v62  ;;  %7425 = vmatprep.subr.bf16.mxu1 %v10454_v0  ;;  %v610_v62 = vld [vmem:[%s16165_s1 + $0x11f8] sm:$0xff]  ;;  %v10499_v0 = vcombine.low %v597_v51, %v601_v36  ;;  %v10508_v3 = vcombine.high %v605_v61, %v609_v45 }
 0x304   :  { %v10510_v4 = vcombine.high %v606_v39, %v610_v62  ;;  %v10509_v8 = vcombine.low %v606_v39, %v610_v62  ;;  %v661_v62 = vld [vmem:[%s16165_s1 + $0x1390] sm:$0xff] }
 0x305   :  { %7089 = vmatmul.mubr.bf16.vlgmr.msra.gmra.mrb[4].mxu0 %v12823_v55  ;;  %7417 = vmatmul.mubr.bf16.vlgmr.msra.gmra.mrb[4].mxu1 %v12823_v55  ;;  %v574_v55 = vld [vmem:[%s16165_s1 + $0x10d8] sm:$0xff] }
 0x306   :  { %7098 = vmatpush1.bf16.msra.mxu0 %v10451_v5  ;;  %7426 = vmatpush1.bf16.msra.mxu1 %v10453_v6  ;;  %v10478_v32 = vcombine.high %v574_v55, %v578_v26  ;;  %v10477_v37 = vcombine.low %v574_v55, %v578_v26  ;;  %v617_v5 = vld [vmem:[%s16165_s1 + $0x1230] sm:$0xff]  ;;  %v614_v6 = vld [vmem:[%s16165_s1 + $0x1218] sm:$0xff] }
 0x307   :  { %7099 = vmatprep.subr.bf16.mxu0 %v10460_v23  ;;  %7427 = vmatprep.subr.bf16.mxu1 %v10462_v7  ;;  %v618_v23 = vld [vmem:[%s16165_s1 + $0x1238] sm:$0xff]  ;;  %v10507_v7 = vcombine.low %v605_v61, %v609_v45  ;;  %v10516_v9 = vcombine.high %v613_v21, %v617_v5  ;;  %v629_v26 = vld [vmem:[%s16165_s1 + $0x1290] sm:$0xff] }
 0x308   :  { %7129 = vmatprep.mubr.bf16.mxu0 %v12844_v1  ;;  %7457 = vmatprep.mubr.bf16.mxu1 %v12844_v1  ;;  %v582_v1 = vld [vmem:[%s16165_s1 + $0x1118] sm:$0xff]  ;;  %v10518_v10 = vcombine.high %v614_v6, %v618_v23  ;;  %v10517_v20 = vcombine.low %v614_v6, %v618_v23  ;;  %v669_v23 = vld [vmem:[%s16165_s1 + $0x13d0] sm:$0xff] }
 0x309   :  { %v10486_v40 = vcombine.high %v582_v1, %v586_v31  ;;  %v10485_v47 = vcombine.low %v582_v1, %v586_v31  ;;  %v637_v31 = vld [vmem:[%s16165_s1 + $0x12d0] sm:$0xff] }
 0x30a   :  { %7100 = vmatpush1.bf16.msra.mxu0 %v10459_v13  ;;  %7428 = vmatpush1.bf16.msra.mxu1 %v10461_v14  ;;  %v625_v13 = vld [vmem:[%s16165_s1 + $0x1270] sm:$0xff]  ;;  %v622_v14 = vld [vmem:[%s16165_s1 + $0x1258] sm:$0xff] }
 0x30b   :  { %7101 = vmatprep.subr.bf16.mxu0 %v10468_v17  ;;  %7429 = vmatprep.subr.bf16.mxu1 %v10470_v53  ;;  %v626_v17 = vld [vmem:[%s16165_s1 + $0x1278] sm:$0xff]  ;;  %v10515_v53 = vcombine.low %v613_v21, %v617_v5  ;;  %v10524_v24 = vcombine.high %v621_v11, %v625_v13 }
 0x30c   :  { %v10526_v55 = vcombine.high %v622_v14, %v626_v17  ;;  %v10525_v33 = vcombine.low %v622_v14, %v626_v17  ;;  %v677_v17 = vld [vmem:[%s16165_s1 + $0x1410] sm:$0xff] }
 0x30e   :  { %7102 = vmatpush1.bf16.msra.mxu0 %v10467_v49  ;;  %7430 = vmatpush1.bf16.msra.mxu1 %v10469_v28  ;;  %v633_v49 = vld [vmem:[%s16165_s1 + $0x12b0] sm:$0xff]  ;;  %v630_v28 = vld [vmem:[%s16165_s1 + $0x1298] sm:$0xff] }
 0x30f   :  { %7103 = vmatprep.subr.bf16.mxu0 %v10476_v29  ;;  %7431 = vmatprep.subr.bf16.mxu1 %v10478_v32  ;;  %v634_v29 = vld [vmem:[%s16165_s1 + $0x12b8] sm:$0xff]  ;;  %v10523_v32 = vcombine.low %v621_v11, %v625_v13  ;;  %v10532_v34 = vcombine.high %v629_v26, %v633_v49 }
 0x310   :  { %v10534_v1 = vcombine.high %v630_v28, %v634_v29  ;;  %v10533_v41 = vcombine.low %v630_v28, %v634_v29  ;;  %v685_v29 = vld [vmem:[%s16165_s1 + $0x1450] sm:$0xff] }
 0x312   :  { %7104 = vmatpush1.bf16.msra.mxu0 %v10475_v35  ;;  %7432 = vmatpush1.bf16.msra.mxu1 %v10477_v37  ;;  %v641_v35 = vld [vmem:[%s16165_s1 + $0x12f0] sm:$0xff]  ;;  %v638_v37 = vld [vmem:[%s16165_s1 + $0x12d8] sm:$0xff] }
 0x313   :  { %7105 = vmatprep.subr.bf16.mxu0 %v10484_v38  ;;  %7433 = vmatprep.subr.bf16.mxu1 %v10486_v40  ;;  %v642_v38 = vld [vmem:[%s16165_s1 + $0x12f8] sm:$0xff]  ;;  %v10531_v40 = vcombine.low %v629_v26, %v633_v49  ;;  %v10540_v25 = vcombine.high %v637_v31, %v641_v35 }
 0x314   :  { %v10542_v42 = vcombine.high %v638_v37, %v642_v38  ;;  %v10541_v51 = vcombine.low %v638_v37, %v642_v38  ;;  %v693_v38 = vld [vmem:[%s16165_s1 + $0x1490] sm:$0xff] }
 0x316   :  { %7106 = vmatpush1.bf16.msra.mxu0 %v10483_v44  ;;  %7434 = vmatpush1.bf16.msra.mxu1 %v10485_v47  ;;  %v649_v44 = vld [vmem:[%s16165_s1 + $0x1330] sm:$0xff]  ;;  %v646_v47 = vld [vmem:[%s16165_s1 + $0x1318] sm:$0xff] }
 0x317   :  { %7107 = vmatprep.subr.bf16.mxu0 %v10492_v48  ;;  %7435 = vmatprep.subr.bf16.mxu1 %v10494_v50  ;;  %v650_v48 = vld [vmem:[%s16165_s1 + $0x1338] sm:$0xff]  ;;  %v10539_v50 = vcombine.low %v637_v31, %v641_v35  ;;  %v10548_v36 = vcombine.high %v645_v43, %v649_v44 }
 0x318   :  { %v10550_v18 = vcombine.high %v646_v47, %v650_v48  ;;  %v10549_v61 = vcombine.low %v646_v47, %v650_v48  ;;  %v701_v48 = vld [vmem:[%s16165_s1 + $0x14d0] sm:$0xff] }
 0x31a   :  { %7108 = vmatpush1.bf16.msra.mxu0 %v10491_v54  ;;  %7436 = vmatpush1.bf16.msra.mxu1 %v10493_v56  ;;  %v657_v54 = vld [vmem:[%s16165_s1 + $0x1370] sm:$0xff]  ;;  %v654_v56 = vld [vmem:[%s16165_s1 + $0x1358] sm:$0xff] }
 0x31b   :  { %7109 = vmatprep.subr.bf16.mxu0 %v10500_v60  ;;  %7437 = vmatprep.subr.bf16.mxu1 %v10502_v12  ;;  %v658_v60 = vld [vmem:[%s16165_s1 + $0x1378] sm:$0xff]  ;;  %v10547_v12 = vcombine.low %v645_v43, %v649_v44  ;;  %v10556_v45 = vcombine.high %v653_v52, %v657_v54 }
 0x31c   :  { %v10558_v39 = vcombine.high %v654_v56, %v658_v60  ;;  %v10557_v21 = vcombine.low %v654_v56, %v658_v60  ;;  %v709_v56 = vld [vmem:[%s16165_s1 + $0x1510] sm:$0xff] }
 0x31d   :  { %v713_v60 = vld [vmem:[%s16165_s1 + $0x1530] sm:$0xff] }
 0x31e   :  { %7110 = vmatpush1.bf16.msra.mxu0 %v10499_v0  ;;  %7438 = vmatpush1.bf16.msra.mxu1 %v10501_v2  ;;  %v665_v0 = vld [vmem:[%s16165_s1 + $0x13b0] sm:$0xff]  ;;  %v662_v2 = vld [vmem:[%s16165_s1 + $0x1398] sm:$0xff] }
 0x31f   :  { %7111 = vmatprep.subr.bf16.mxu0 %v10508_v3  ;;  %7439 = vmatprep.subr.bf16.mxu1 %v10510_v4  ;;  %v666_v3 = vld [vmem:[%s16165_s1 + $0x13b8] sm:$0xff]  ;;  %v10555_v4 = vcombine.low %v653_v52, %v657_v54  ;;  %v10564_v5 = vcombine.high %v661_v62, %v665_v0 }
 0x320   :  { %v10566_v6 = vcombine.high %v662_v2, %v666_v3  ;;  %v10565_v11 = vcombine.low %v662_v2, %v666_v3  ;;  %v721_v2 = vld [vmem:[%s16165_s1 + $0x1570] sm:$0xff]  ;;  %v718_v3 = vld [vmem:[%s16165_s1 + $0x1558] sm:$0xff] }
 0x322   :  { %7112 = vmatpush1.bf16.msra.mxu0 %v10507_v7  ;;  %7440 = vmatpush1.bf16.msra.mxu1 %v10509_v8  ;;  %v673_v7 = vld [vmem:[%s16165_s1 + $0x13f0] sm:$0xff]  ;;  %v670_v8 = vld [vmem:[%s16165_s1 + $0x13d8] sm:$0xff] }
 0x323   :  { %7113 = vmatprep.subr.bf16.mxu0 %v10516_v9  ;;  %7441 = vmatprep.subr.bf16.mxu1 %v10518_v10  ;;  %v674_v9 = vld [vmem:[%s16165_s1 + $0x13f8] sm:$0xff]  ;;  %v10563_v10 = vcombine.low %v661_v62, %v665_v0  ;;  %v10572_v13 = vcombine.high %v669_v23, %v673_v7  ;;  %v717_v0 = vld [vmem:[%s16165_s1 + $0x1550] sm:$0xff] }
 0x324   :  { %v10574_v14 = vcombine.high %v670_v8, %v674_v9  ;;  %v10573_v26 = vcombine.low %v670_v8, %v674_v9  ;;  %v729_v8 = vld [vmem:[%s16165_s1 + $0x15b0] sm:$0xff]  ;;  %v726_v9 = vld [vmem:[%s16165_s1 + $0x1598] sm:$0xff] }
 0x326   :  { %7114 = vmatpush1.bf16.msra.mxu0 %v10515_v53  ;;  %7442 = vmatpush1.bf16.msra.mxu1 %v10517_v20  ;;  %v681_v53 = vld [vmem:[%s16165_s1 + $0x1430] sm:$0xff]  ;;  %v678_v20 = vld [vmem:[%s16165_s1 + $0x1418] sm:$0xff] }
 0x327   :  { %7115 = vmatprep.subr.bf16.mxu0 %v10524_v24  ;;  %7443 = vmatprep.subr.bf16.mxu1 %v10526_v55  ;;  %v682_v24 = vld [vmem:[%s16165_s1 + $0x1438] sm:$0xff]  ;;  %v10571_v55 = vcombine.low %v669_v23, %v673_v7  ;;  %v10580_v49 = vcombine.high %v677_v17, %v681_v53  ;;  %v725_v7 = vld [vmem:[%s16165_s1 + $0x1590] sm:$0xff] }
 0x328   :  { %v10582_v28 = vcombine.high %v678_v20, %v682_v24  ;;  %v10581_v31 = vcombine.low %v678_v20, %v682_v24  ;;  %v737_v20 = vld [vmem:[%s16165_s1 + $0x15f0] sm:$0xff]  ;;  %v734_v24 = vld [vmem:[%s16165_s1 + $0x15d8] sm:$0xff] }
 0x32a   :  { %7116 = vmatpush1.bf16.msra.mxu0 %v10523_v32  ;;  %7444 = vmatpush1.bf16.msra.mxu1 %v10525_v33  ;;  %v689_v32 = vld [vmem:[%s16165_s1 + $0x1470] sm:$0xff]  ;;  %v686_v33 = vld [vmem:[%s16165_s1 + $0x1458] sm:$0xff] }
 0x32b   :  { %7117 = vmatprep.subr.bf16.mxu0 %v10532_v34  ;;  %7445 = vmatprep.subr.bf16.mxu1 %v10534_v1  ;;  %v690_v34 = vld [vmem:[%s16165_s1 + $0x1478] sm:$0xff]  ;;  %v10579_v1 = vcombine.low %v677_v17, %v681_v53  ;;  %v10588_v35 = vcombine.high %v685_v29, %v689_v32  ;;  %v733_v53 = vld [vmem:[%s16165_s1 + $0x15d0] sm:$0xff] }
 0x32c   :  { %v10590_v37 = vcombine.high %v686_v33, %v690_v34  ;;  %v10589_v43 = vcombine.low %v686_v33, %v690_v34  ;;  %v745_v33 = vld [vmem:[%s16165_s1 + $0x1630] sm:$0xff]  ;;  %v742_v34 = vld [vmem:[%s16165_s1 + $0x1618] sm:$0xff] }
 0x32e   :  { %7118 = vmatpush1.bf16.msra.mxu0 %v10531_v40  ;;  %7446 = vmatpush1.bf16.msra.mxu1 %v10533_v41  ;;  %v697_v40 = vld [vmem:[%s16165_s1 + $0x14b0] sm:$0xff]  ;;  %v694_v41 = vld [vmem:[%s16165_s1 + $0x1498] sm:$0xff] }
 0x32f   :  { %7119 = vmatprep.subr.bf16.mxu0 %v10540_v25  ;;  %7447 = vmatprep.subr.bf16.mxu1 %v10542_v42  ;;  %v698_v25 = vld [vmem:[%s16165_s1 + $0x14b8] sm:$0xff]  ;;  %v10587_v42 = vcombine.low %v685_v29, %v689_v32  ;;  %v10596_v44 = vcombine.high %v693_v38, %v697_v40  ;;  %v741_v32 = vld [vmem:[%s16165_s1 + $0x1610] sm:$0xff] }
 0x330   :  { %v10598_v47 = vcombine.high %v694_v41, %v698_v25 }
 0x332   :  { %7120 = vmatpush1.bf16.msra.mxu0 %v10539_v50  ;;  %7448 = vmatpush1.bf16.msra.mxu1 %v10541_v51  ;;  %v705_v50 = vld [vmem:[%s16165_s1 + $0x14f0] sm:$0xff]  ;;  %v706_v51 = vld [vmem:[%s16165_s1 + $0x14f8] sm:$0xff] }
 0x333   :  { %7121 = vmatprep.subr.bf16.mxu0 %v10548_v36  ;;  %7449 = vmatprep.subr.bf16.mxu1 %v10550_v18  ;;  %v10595_v36 = vcombine.low %v693_v38, %v697_v40  ;;  %v10597_v18 = vcombine.low %v694_v41, %v698_v25  ;;  %v10604_v52 = vcombine.high %v701_v48, %v705_v50  ;;  %v749_v40 = vld [vmem:[%s16165_s1 + $0x1650] sm:$0xff]  ;;  %v750_v25 = vld [vmem:[%s16165_s1 + $0x1658] sm:$0xff] }
 0x334   :  { %v753_v41 = vld [vmem:[%s16165_s1 + $0x1670] sm:$0xff] }
 0x336   :  { %7122 = vmatpush1.bf16.msra.mxu0 %v10547_v12  ;;  %7450 = vmatpush1.bf16.msra.mxu1 %v10549_v61  ;;  %v714_v12 = vld [vmem:[%s16165_s1 + $0x1538] sm:$0xff]  ;;  %v10603_v61 = vcombine.low %v701_v48, %v705_v50  ;;  %v757_v50 = vld [vmem:[%s16165_s1 + $0x1690] sm:$0xff] }
 0x337   :  { %7123 = vmatprep.subr.bf16.mxu0 %v10556_v45  ;;  %7451 = vmatprep.subr.bf16.mxu1 %v10558_v39  ;;  %v10612_v39 = vcombine.high %v709_v56, %v713_v60 }
 0x33a   :  { %7124 = vmatpush1.bf16.msra.mxu0 %v10555_v4  ;;  %7452 = vmatpush1.bf16.msra.mxu1 %v10557_v21  ;;  %v722_v4 = vld [vmem:[%s16165_s1 + $0x1578] sm:$0xff]  ;;  %v10611_v21 = vcombine.low %v709_v56, %v713_v60  ;;  %v765_v60 = vld [vmem:[%s16165_s1 + $0x16d0] sm:$0xff] }
 0x33b   :  { %7125 = vmatprep.subr.bf16.mxu0 %v10564_v5  ;;  %7453 = vmatprep.subr.bf16.mxu1 %v10566_v6  ;;  %v10620_v6 = vcombine.high %v717_v0, %v721_v2  ;;  %v10622_v23 = vcombine.high %v718_v3, %v722_v4 }
 0x33e   :  { %7126 = vmatpush1.bf16.msra.mxu0 %v10563_v10  ;;  %7454 = vmatpush1.bf16.msra.mxu1 %v10565_v11  ;;  %v730_v10 = vld [vmem:[%s16165_s1 + $0x15b8] sm:$0xff]  ;;  %v10619_v11 = vcombine.low %v717_v0, %v721_v2  ;;  %v773_v2 = vld [vmem:[%s16165_s1 + $0x1710] sm:$0xff] }
 0x33f   :  { %7127 = vmatprep.subr.bf16.mxu0 %v10572_v13  ;;  %7455 = vmatprep.subr.bf16.mxu1 %v10574_v14  ;;  %v10621_v13 = vcombine.low %v718_v3, %v722_v4  ;;  %v10628_v14 = vcombine.high %v725_v7, %v729_v8  ;;  %v10630_v17 = vcombine.high %v726_v9, %v730_v10  ;;  %v777_v3 = vld [vmem:[%s16165_s1 + $0x1730] sm:$0xff]  ;;  %v774_v4 = vld [vmem:[%s16165_s1 + $0x1718] sm:$0xff] }
 0x342   :  { %7128 = vmatpush1.bf16.msra.mxu0 %v10571_v55  ;;  %7456 = vmatpush1.bf16.msra.mxu1 %v10573_v26  ;;  %v738_v55 = vld [vmem:[%s16165_s1 + $0x15f8] sm:$0xff]  ;;  %v10627_v26 = vcombine.low %v725_v7, %v729_v8  ;;  %v781_v8 = vld [vmem:[%s16165_s1 + $0x1750] sm:$0xff] }
 0x343   :  { %7138 = vmatprep.subr.bf16.mxu0 %v10580_v49  ;;  %7466 = vmatprep.subr.bf16.mxu1 %v10582_v28  ;;  %v10629_v49 = vcombine.low %v726_v9, %v730_v10  ;;  %v10636_v28 = vcombine.high %v733_v53, %v737_v20  ;;  %v10638_v29 = vcombine.high %v734_v24, %v738_v55  ;;  %v785_v9 = vld [vmem:[%s16165_s1 + $0x1770] sm:$0xff]  ;;  %v782_v10 = vld [vmem:[%s16165_s1 + $0x1758] sm:$0xff] }
 0x345   :  { %7130 = vmatmul.mubr.bf16.vlgmr.msra.gmra.mrb[4].mxu0 %v13032_v16  ;;  %7458 = vmatmul.mubr.bf16.vlgmr.msra.gmra.mrb[4].mxu1 %v13032_v16  ;;  %v702_v16 = vld [vmem:[%s16165_s1 + $0x14d8] sm:$0xff] }
 0x346   :  { %7139 = vmatpush1.bf16.msra.mxu0 %v10579_v1  ;;  %7467 = vmatpush1.bf16.msra.mxu1 %v10581_v31  ;;  %v10606_v54 = vcombine.high %v702_v16, %v706_v51  ;;  %v10605_v45 = vcombine.low %v702_v16, %v706_v51  ;;  %v746_v1 = vld [vmem:[%s16165_s1 + $0x1638] sm:$0xff]  ;;  %v10635_v31 = vcombine.low %v733_v53, %v737_v20  ;;  %v761_v16 = vld [vmem:[%s16165_s1 + $0x16b0] sm:$0xff] }
 0x347   :  { %7140 = vmatprep.subr.bf16.mxu0 %v10588_v35  ;;  %7468 = vmatprep.subr.bf16.mxu1 %v10590_v37  ;;  %v10637_v35 = vcombine.low %v734_v24, %v738_v55  ;;  %v10644_v37 = vcombine.high %v741_v32, %v745_v33  ;;  %v10646_v38 = vcombine.high %v742_v34, %v746_v1  ;;  %v758_v51 = vld [vmem:[%s16165_s1 + $0x1698] sm:$0xff]  ;;  %v789_v20 = vld [vmem:[%s16165_s1 + $0x1790] sm:$0xff] }
 0x348   :  { %7170 = vmatprep.mubr.bf16.mxu0 %v13053_v27  ;;  %7498 = vmatprep.mubr.bf16.mxu1 %v13053_v27  ;;  %v710_v27 = vld [vmem:[%s16165_s1 + $0x1518] sm:$0xff]  ;;  %v793_v24 = vld [vmem:[%s16165_s1 + $0x17b0] sm:$0xff] }
 0x349   :  { %v10614_v62 = vcombine.high %v710_v27, %v714_v12  ;;  %v10613_v5 = vcombine.low %v710_v27, %v714_v12  ;;  %v769_v27 = vld [vmem:[%s16165_s1 + $0x16f0] sm:$0xff]  ;;  %v766_v12 = vld [vmem:[%s16165_s1 + $0x16d8] sm:$0xff] }
 0x34a   :  { %7141 = vmatpush1.bf16.msra.mxu0 %v10587_v42  ;;  %7469 = vmatpush1.bf16.msra.mxu1 %v10589_v43  ;;  %v754_v42 = vld [vmem:[%s16165_s1 + $0x1678] sm:$0xff]  ;;  %v10643_v43 = vcombine.low %v741_v32, %v745_v33  ;;  %v797_v33 = vld [vmem:[%s16165_s1 + $0x17d0] sm:$0xff] }
 0x34b   :  { %7142 = vmatprep.subr.bf16.mxu0 %v10596_v44  ;;  %7470 = vmatprep.subr.bf16.mxu1 %v10598_v47  ;;  %v10645_v44 = vcombine.low %v742_v34, %v746_v1  ;;  %v10652_v47 = vcombine.high %v749_v40, %v753_v41  ;;  %v10654_v48 = vcombine.high %v750_v25, %v754_v42  ;;  %v790_v55 = vld [vmem:[%s16165_s1 + $0x1798] sm:$0xff]  ;;  %v801_v34 = vld [vmem:[%s16165_s1 + $0x17f0] sm:$0xff] }
 0x34c   :  { %v798_v1 = vld [vmem:[%s16165_s1 + $0x17d8] sm:$0xff] }
 0x34e   :  { %7143 = vmatpush1.bf16.msra.mxu0 %v10595_v36  ;;  %7471 = vmatpush1.bf16.msra.mxu1 %v10597_v18  ;;  %v762_v36 = vld [vmem:[%s16165_s1 + $0x16b8] sm:$0xff]  ;;  %v10651_v18 = vcombine.low %v749_v40, %v753_v41  ;;  %v805_v41 = vld [vmem:[%s16165_s1 + $0x1810] sm:$0xff] }
 0x34f   :  { %7144 = vmatprep.subr.bf16.mxu0 %v10604_v52  ;;  %7472 = vmatprep.subr.bf16.mxu1 %v10606_v54  ;;  %v10653_v52 = vcombine.low %v750_v25, %v754_v42  ;;  %v10660_v54 = vcombine.high %v757_v50, %v761_v16  ;;  %v10662_v56 = vcombine.high %v758_v51, %v762_v36  ;;  %v809_v25 = vld [vmem:[%s16165_s1 + $0x1830] sm:$0xff]  ;;  %v806_v42 = vld [vmem:[%s16165_s1 + $0x1818] sm:$0xff] }
 0x352   :  { %7145 = vmatpush1.bf16.msra.mxu0 %v10603_v61  ;;  %7473 = vmatpush1.bf16.msra.mxu1 %v10605_v45  ;;  %v770_v61 = vld [vmem:[%s16165_s1 + $0x16f8] sm:$0xff]  ;;  %v10659_v45 = vcombine.low %v757_v50, %v761_v16  ;;  %v813_v16 = vld [vmem:[%s16165_s1 + $0x1850] sm:$0xff] }
 0x353   :  { %7146 = vmatprep.subr.bf16.mxu0 %v10612_v39  ;;  %7474 = vmatprep.subr.bf16.mxu1 %v10614_v62  ;;  %v10661_v39 = vcombine.low %v758_v51, %v762_v36  ;;  %v10668_v62 = vcombine.high %v765_v60, %v769_v27  ;;  %v10670_v0 = vcombine.high %v766_v12, %v770_v61  ;;  %v817_v51 = vld [vmem:[%s16165_s1 + $0x1870] sm:$0xff]  ;;  %v814_v36 = vld [vmem:[%s16165_s1 + $0x1858] sm:$0xff] }
 0x356   :  { %7147 = vmatpush1.bf16.msra.mxu0 %v10611_v21  ;;  %7475 = vmatpush1.bf16.msra.mxu1 %v10613_v5  ;;  %v778_v21 = vld [vmem:[%s16165_s1 + $0x1738] sm:$0xff]  ;;  %v10667_v5 = vcombine.low %v765_v60, %v769_v27  ;;  %v821_v27 = vld [vmem:[%s16165_s1 + $0x1890] sm:$0xff] }
 0x357   :  { %7148 = vmatprep.subr.bf16.mxu0 %v10620_v6  ;;  %7476 = vmatprep.subr.bf16.mxu1 %v10622_v23  ;;  %v10669_v6 = vcombine.low %v766_v12, %v770_v61  ;;  %v10676_v23 = vcombine.high %v773_v2, %v777_v3  ;;  %v10678_v7 = vcombine.high %v774_v4, %v778_v21  ;;  %v825_v12 = vld [vmem:[%s16165_s1 + $0x18b0] sm:$0xff]  ;;  %v822_v61 = vld [vmem:[%s16165_s1 + $0x1898] sm:$0xff] }
 0x35a   :  { %7149 = vmatpush1.bf16.msra.mxu0 %v10619_v11  ;;  %7477 = vmatpush1.bf16.msra.mxu1 %v10621_v13  ;;  %v786_v11 = vld [vmem:[%s16165_s1 + $0x1778] sm:$0xff]  ;;  %v10675_v13 = vcombine.low %v773_v2, %v777_v3  ;;  %v829_v2 = vld [vmem:[%s16165_s1 + $0x18d0] sm:$0xff] }
 0x35b   :  { %7150 = vmatprep.subr.bf16.mxu0 %v10628_v14  ;;  %7478 = vmatprep.subr.bf16.mxu1 %v10630_v17  ;;  %v10677_v14 = vcombine.low %v774_v4, %v778_v21  ;;  %v10684_v17 = vcombine.high %v781_v8, %v785_v9  ;;  %v10686_v53 = vcombine.high %v782_v10, %v786_v11  ;;  %v833_v4 = vld [vmem:[%s16165_s1 + $0x18f0] sm:$0xff]  ;;  %v830_v21 = vld [vmem:[%s16165_s1 + $0x18d8] sm:$0xff] }
 0x35e   :  { %7151 = vmatpush1.bf16.msra.mxu0 %v10627_v26  ;;  %7479 = vmatpush1.bf16.msra.mxu1 %v10629_v49  ;;  %v794_v26 = vld [vmem:[%s16165_s1 + $0x17b8] sm:$0xff]  ;;  %v10683_v49 = vcombine.low %v781_v8, %v785_v9  ;;  %v841_v8 = vld [vmem:[%s16165_s1 + $0x1930] sm:$0xff] }
 0x35f   :  { %7152 = vmatprep.subr.bf16.mxu0 %v10636_v28  ;;  %7480 = vmatprep.subr.bf16.mxu1 %v10638_v29  ;;  %v10685_v28 = vcombine.low %v782_v10, %v786_v11  ;;  %v10692_v29 = vcombine.high %v789_v20, %v793_v24  ;;  %v10694_v32 = vcombine.high %v790_v55, %v794_v26  ;;  %v842_v10 = vld [vmem:[%s16165_s1 + $0x1938] sm:$0xff] }
 0x360   :  { %v10731_v11 = vcombine.low %v829_v2, %v833_v4 }
 0x362   :  { %7153 = vmatpush1.bf16.msra.mxu0 %v10635_v31  ;;  %7481 = vmatpush1.bf16.msra.mxu1 %v10637_v35  ;;  %v802_v31 = vld [vmem:[%s16165_s1 + $0x17f8] sm:$0xff]  ;;  %v10691_v35 = vcombine.low %v789_v20, %v793_v24 }
 0x363   :  { %7154 = vmatprep.subr.bf16.mxu0 %v10644_v37  ;;  %7482 = vmatprep.subr.bf16.mxu1 %v10646_v38  ;;  %v10693_v37 = vcombine.low %v790_v55, %v794_v26  ;;  %v10700_v38 = vcombine.high %v797_v33, %v801_v34  ;;  %v10702_v40 = vcombine.high %v798_v1, %v802_v31  ;;  %v846_v20 = vld [vmem:[%s16165_s1 + $0x1958] sm:$0xff] }
 0x364   :  { %v850_v55 = vld [vmem:[%s16165_s1 + $0x1978] sm:$0xff] }
 0x366   :  { %7155 = vmatpush1.bf16.msra.mxu0 %v10643_v43  ;;  %7483 = vmatpush1.bf16.msra.mxu1 %v10645_v44  ;;  %v810_v43 = vld [vmem:[%s16165_s1 + $0x1838] sm:$0xff]  ;;  %v10699_v44 = vcombine.low %v797_v33, %v801_v34  ;;  %v10750_v34 = vcombine.high %v846_v20, %v850_v55 }
 0x367   :  { %7156 = vmatprep.subr.bf16.mxu0 %v10652_v47  ;;  %7484 = vmatprep.subr.bf16.mxu1 %v10654_v48  ;;  %v10701_v47 = vcombine.low %v798_v1, %v802_v31  ;;  %v10708_v48 = vcombine.high %v805_v41, %v809_v25  ;;  %v10710_v50 = vcombine.high %v806_v42, %v810_v43  ;;  %v854_v33 = vld [vmem:[%s16165_s1 + $0x1998] sm:$0xff] }
 0x368   :  { %v858_v1 = vld [vmem:[%s16165_s1 + $0x19b8] sm:$0xff] }
 0x36a   :  { %7157 = vmatpush1.bf16.msra.mxu0 %v10651_v18  ;;  %7485 = vmatpush1.bf16.msra.mxu1 %v10653_v52  ;;  %v818_v18 = vld [vmem:[%s16165_s1 + $0x1878] sm:$0xff]  ;;  %v10707_v52 = vcombine.low %v805_v41, %v809_v25  ;;  %v10758_v25 = vcombine.high %v854_v33, %v858_v1 }
 0x36b   :  { %7158 = vmatprep.subr.bf16.mxu0 %v10660_v54  ;;  %7486 = vmatprep.subr.bf16.mxu1 %v10662_v56  ;;  %v10709_v54 = vcombine.low %v806_v42, %v810_v43  ;;  %v10716_v56 = vcombine.high %v813_v16, %v817_v51  ;;  %v10718_v60 = vcombine.high %v814_v36, %v818_v18  ;;  %v862_v41 = vld [vmem:[%s16165_s1 + $0x19d8] sm:$0xff] }
 0x36c   :  { %v866_v42 = vld [vmem:[%s16165_s1 + $0x19f8] sm:$0xff] }
 0x36e   :  { %7159 = vmatpush1.bf16.msra.mxu0 %v10659_v45  ;;  %7487 = vmatpush1.bf16.msra.mxu1 %v10661_v39  ;;  %v826_v45 = vld [vmem:[%s16165_s1 + $0x18b8] sm:$0xff]  ;;  %v10715_v39 = vcombine.low %v813_v16, %v817_v51  ;;  %v10766_v51 = vcombine.high %v862_v41, %v866_v42 }
 0x36f   :  { %7160 = vmatprep.subr.bf16.mxu0 %v10668_v62  ;;  %7488 = vmatprep.subr.bf16.mxu1 %v10670_v0  ;;  %v10717_v62 = vcombine.low %v814_v36, %v818_v18  ;;  %v10724_v0 = vcombine.high %v821_v27, %v825_v12  ;;  %v10726_v3 = vcombine.high %v822_v61, %v826_v45  ;;  %v870_v16 = vld [vmem:[%s16165_s1 + $0x1a18] sm:$0xff] }
 0x370   :  { %v874_v36 = vld [vmem:[%s16165_s1 + $0x1a38] sm:$0xff] }
 0x372   :  { %7161 = vmatpush1.bf16.msra.mxu0 %v10667_v5  ;;  %7489 = vmatpush1.bf16.msra.mxu1 %v10669_v6  ;;  %v10723_v5 = vcombine.low %v821_v27, %v825_v12  ;;  %v10725_v6 = vcombine.low %v822_v61, %v826_v45  ;;  %v878_v27 = vld [vmem:[%s16165_s1 + $0x1a58] sm:$0xff]  ;;  %v10774_v12 = vcombine.high %v870_v16, %v874_v36 }
 0x373   :  { %7162 = vmatprep.subr.bf16.mxu0 %v10676_v23  ;;  %7490 = vmatprep.subr.bf16.mxu1 %v10678_v7  ;;  %v10732_v23 = vcombine.high %v829_v2, %v833_v4  ;;  %v837_v7 = vld [vmem:[%s16165_s1 + $0x1910] sm:$0xff]  ;;  %v882_v61 = vld [vmem:[%s16165_s1 + $0x1a78] sm:$0xff] }
 0x374   :  { %v10739_v26 = vcombine.low %v837_v7, %v841_v8  ;;  %v889_v2 = vld [vmem:[%s16165_s1 + $0x1ab0] sm:$0xff]  ;;  %v10782_v4 = vcombine.high %v878_v27, %v882_v61 }
 0x376   :  { %7163 = vmatpush1.bf16.msra.mxu0 %v10675_v13  ;;  %7491 = vmatpush1.bf16.msra.mxu1 %v10677_v14  ;;  %v10740_v14 = vcombine.high %v837_v7, %v841_v8  ;;  %v897_v7 = vld [vmem:[%s16165_s1 + $0x1af0] sm:$0xff]  ;;  %v894_v8 = vld [vmem:[%s16165_s1 + $0x1ad8] sm:$0xff] }
 0x377   :  { %7164 = vmatprep.subr.bf16.mxu0 %v10684_v17  ;;  %7492 = vmatprep.subr.bf16.mxu1 %v10686_v53  ;;  %v845_v17 = vld [vmem:[%s16165_s1 + $0x1950] sm:$0xff] }
 0x378   :  { %v849_v53 = vld [vmem:[%s16165_s1 + $0x1970] sm:$0xff] }
 0x379   :  { %v10747_v31 = vcombine.low %v845_v17, %v849_v53 }
 0x37a   :  { %7165 = vmatpush1.bf16.msra.mxu0 %v10683_v49  ;;  %7493 = vmatpush1.bf16.msra.mxu1 %v10685_v28  ;;  %v10748_v28 = vcombine.high %v845_v17, %v849_v53  ;;  %v905_v17 = vld [vmem:[%s16165_s1 + $0x1b30] sm:$0xff]  ;;  %v902_v53 = vld [vmem:[%s16165_s1 + $0x1b18] sm:$0xff] }
 0x37b   :  { %7166 = vmatprep.subr.bf16.mxu0 %v10692_v29  ;;  %7494 = vmatprep.subr.bf16.mxu1 %v10694_v32  ;;  %v853_v29 = vld [vmem:[%s16165_s1 + $0x1990] sm:$0xff] }
 0x37c   :  { %v857_v32 = vld [vmem:[%s16165_s1 + $0x19b0] sm:$0xff] }
 0x37d   :  { %v10755_v43 = vcombine.low %v853_v29, %v857_v32 }
 0x37e   :  { %7167 = vmatpush1.bf16.msra.mxu0 %v10691_v35  ;;  %7495 = vmatpush1.bf16.msra.mxu1 %v10693_v37  ;;  %v10749_v35 = vcombine.low %v846_v20, %v850_v55  ;;  %v10756_v37 = vcombine.high %v853_v29, %v857_v32  ;;  %v913_v29 = vld [vmem:[%s16165_s1 + $0x1b70] sm:$0xff]  ;;  %v910_v32 = vld [vmem:[%s16165_s1 + $0x1b58] sm:$0xff] }
 0x37f   :  { %7168 = vmatprep.subr.bf16.mxu0 %v10700_v38  ;;  %7496 = vmatprep.subr.bf16.mxu1 %v10702_v40  ;;  %v861_v38 = vld [vmem:[%s16165_s1 + $0x19d0] sm:$0xff] }
 0x380   :  { %v865_v40 = vld [vmem:[%s16165_s1 + $0x19f0] sm:$0xff] }
 0x381   :  { %v10763_v18 = vcombine.low %v861_v38, %v865_v40 }
 0x382   :  { %7169 = vmatpush1.bf16.msra.mxu0 %v10699_v44  ;;  %7497 = vmatpush1.bf16.msra.mxu1 %v10701_v47  ;;  %v10757_v44 = vcombine.low %v854_v33, %v858_v1  ;;  %v10764_v47 = vcombine.high %v861_v38, %v865_v40  ;;  %v921_v38 = vld [vmem:[%s16165_s1 + $0x1bb0] sm:$0xff]  ;;  %v918_v40 = vld [vmem:[%s16165_s1 + $0x1b98] sm:$0xff] }
 0x383   :  { %7179 = vmatprep.subr.bf16.mxu0 %v10708_v48  ;;  %7507 = vmatprep.subr.bf16.mxu1 %v10710_v50  ;;  %v869_v48 = vld [vmem:[%s16165_s1 + $0x1a10] sm:$0xff] }
 0x384   :  { %v873_v50 = vld [vmem:[%s16165_s1 + $0x1a30] sm:$0xff] }
 0x385   :  { %7171 = vmatmul.mubr.bf16.vlgmr.msra.gmra.mrb[4].mxu0 %v13241_v46  ;;  %7499 = vmatmul.mubr.bf16.vlgmr.msra.gmra.mrb[4].mxu1 %v13241_v46  ;;  %v834_v46 = vld [vmem:[%s16165_s1 + $0x18f8] sm:$0xff]  ;;  %v10771_v45 = vcombine.low %v869_v48, %v873_v50 }
 0x386   :  { %7180 = vmatpush1.bf16.msra.mxu0 %v10707_v52  ;;  %7508 = vmatpush1.bf16.msra.mxu1 %v10709_v54  ;;  %v10734_v9 = vcombine.high %v830_v21, %v834_v46  ;;  %v10733_v13 = vcombine.low %v830_v21, %v834_v46  ;;  %v10765_v52 = vcombine.low %v862_v41, %v866_v42  ;;  %v890_v21 = vld [vmem:[%s16165_s1 + $0x1ab8] sm:$0xff] }
 0x387   :  { %7181 = vmatprep.subr.bf16.mxu0 %v10716_v56  ;;  %7509 = vmatprep.subr.bf16.mxu1 %v10718_v60  ;;  %v10772_v54 = vcombine.high %v869_v48, %v873_v50  ;;  %v877_v56 = vld [vmem:[%s16165_s1 + $0x1a50] sm:$0xff]  ;;  %v926_v50 = vld [vmem:[%s16165_s1 + $0x1bd8] sm:$0xff] }
 0x388   :  { %7211 = vmatprep.mubr.bf16.mxu0 %v13262_v58  ;;  %7539 = vmatprep.mubr.bf16.mxu1 %v13262_v58  ;;  %v838_v58 = vld [vmem:[%s16165_s1 + $0x1918] sm:$0xff]  ;;  %v881_v60 = vld [vmem:[%s16165_s1 + $0x1a70] sm:$0xff] }
 0x389   :  { %v10742_v24 = vcombine.high %v838_v58, %v842_v10  ;;  %v10741_v49 = vcombine.low %v838_v58, %v842_v10  ;;  %v10779_v46 = vcombine.low %v877_v56, %v881_v60  ;;  %v898_v58 = vld [vmem:[%s16165_s1 + $0x1af8] sm:$0xff]  ;;  %v929_v48 = vld [vmem:[%s16165_s1 + $0x1bf0] sm:$0xff] }
 0x38a   :  { %7182 = vmatpush1.bf16.msra.mxu0 %v10715_v39  ;;  %7510 = vmatpush1.bf16.msra.mxu1 %v10717_v62  ;;  %v10773_v39 = vcombine.low %v870_v16, %v874_v36  ;;  %v10780_v62 = vcombine.high %v877_v56, %v881_v60  ;;  %v10798_v20 = vcombine.high %v894_v8, %v898_v58  ;;  %v937_v56 = vld [vmem:[%s16165_s1 + $0x1c30] sm:$0xff]  ;;  %v934_v60 = vld [vmem:[%s16165_s1 + $0x1c18] sm:$0xff] }
 0x38b   :  { %7183 = vmatprep.subr.bf16.mxu0 %v10724_v0  ;;  %7511 = vmatprep.subr.bf16.mxu1 %v10726_v3  ;;  %v885_v0 = vld [vmem:[%s16165_s1 + $0x1a90] sm:$0xff]  ;;  %v886_v3 = vld [vmem:[%s16165_s1 + $0x1a98] sm:$0xff] }
 0x38c   :  { %v10787_v10 = vcombine.low %v885_v0, %v889_v2 }
 0x38e   :  { %7184 = vmatpush1.bf16.msra.mxu0 %v10723_v5  ;;  %7512 = vmatpush1.bf16.msra.mxu1 %v10725_v6  ;;  %v10781_v5 = vcombine.low %v878_v27, %v882_v61  ;;  %v10788_v6 = vcombine.high %v885_v0, %v889_v2  ;;  %v945_v0 = vld [vmem:[%s16165_s1 + $0x1c70] sm:$0xff]  ;;  %v942_v2 = vld [vmem:[%s16165_s1 + $0x1c58] sm:$0xff] }
 0x38f   :  { %7185 = vmatprep.subr.bf16.mxu0 %v10732_v23  ;;  %7513 = vmatprep.subr.bf16.mxu1 %v10734_v9  ;;  %v893_v23 = vld [vmem:[%s16165_s1 + $0x1ad0] sm:$0xff]  ;;  %v10790_v9 = vcombine.high %v886_v3, %v890_v21 }
 0x390   :  { %v10795_v55 = vcombine.low %v893_v23, %v897_v7 }
 0x392   :  { %7186 = vmatpush1.bf16.msra.mxu0 %v10731_v11  ;;  %7514 = vmatpush1.bf16.msra.mxu1 %v10733_v13  ;;  %v10789_v11 = vcombine.low %v886_v3, %v890_v21  ;;  %v10796_v13 = vcombine.high %v893_v23, %v897_v7 }
 0x393   :  { %7187 = vmatprep.subr.bf16.mxu0 %v10740_v14  ;;  %7515 = vmatprep.subr.bf16.mxu1 %v10742_v24  ;;  %v901_v14 = vld [vmem:[%s16165_s1 + $0x1b10] sm:$0xff]  ;;  %v906_v24 = vld [vmem:[%s16165_s1 + $0x1b38] sm:$0xff] }
 0x394   :  { %v10806_v33 = vcombine.high %v902_v53, %v906_v24  ;;  %v10803_v1 = vcombine.low %v901_v14, %v905_v17 }
 0x396   :  { %7188 = vmatpush1.bf16.msra.mxu0 %v10739_v26  ;;  %7516 = vmatpush1.bf16.msra.mxu1 %v10741_v49  ;;  %v10797_v26 = vcombine.low %v894_v8, %v898_v58  ;;  %v10804_v49 = vcombine.high %v901_v14, %v905_v17  ;;  %v950_v8 = vld [vmem:[%s16165_s1 + $0x1c98] sm:$0xff]  ;;  %v957_v14 = vld [vmem:[%s16165_s1 + $0x1cd0] sm:$0xff] }
 0x397   :  { %7189 = vmatprep.subr.bf16.mxu0 %v10748_v28  ;;  %7517 = vmatprep.subr.bf16.mxu1 %v10750_v34  ;;  %v909_v28 = vld [vmem:[%s16165_s1 + $0x1b50] sm:$0xff]  ;;  %v914_v34 = vld [vmem:[%s16165_s1 + $0x1b78] sm:$0xff] }
 0x398   :  { %v10814_v41 = vcombine.high %v910_v32, %v914_v34  ;;  %v10811_v42 = vcombine.low %v909_v28, %v913_v29  ;;  %v961_v17 = vld [vmem:[%s16165_s1 + $0x1cf0] sm:$0xff] }
 0x39a   :  { %7190 = vmatpush1.bf16.msra.mxu0 %v10747_v31  ;;  %7518 = vmatpush1.bf16.msra.mxu1 %v10749_v35  ;;  %v10805_v31 = vcombine.low %v902_v53, %v906_v24  ;;  %v10812_v35 = vcombine.high %v909_v28, %v913_v29  ;;  %v958_v53 = vld [vmem:[%s16165_s1 + $0x1cd8] sm:$0xff]  ;;  %v1061_v24 = vlaneseq  ;;  %v969_v28 = vld [vmem:[%s16165_s1 + $0x1d30] sm:$0xff] }
 0x39b   :  { %7191 = vmatprep.subr.bf16.mxu0 %v10756_v37  ;;  %7519 = vmatprep.subr.bf16.mxu1 %v10758_v25  ;;  %v917_v37 = vld [vmem:[%s16165_s1 + $0x1b90] sm:$0xff]  ;;  %v922_v25 = vld [vmem:[%s16165_s1 + $0x1bb8] sm:$0xff] }
 0x39c   :  { %v10822_v16 = vcombine.high %v918_v40, %v922_v25  ;;  %v10819_v36 = vcombine.low %v917_v37, %v921_v38  ;;  %v966_v29 = vld [vmem:[%s16165_s1 + $0x1d18] sm:$0xff] }
 0x39e   :  { %7192 = vmatpush1.bf16.msra.mxu0 %v10755_v43  ;;  %7520 = vmatpush1.bf16.msra.mxu1 %v10757_v44  ;;  %v10813_v43 = vcombine.low %v910_v32, %v914_v34  ;;  %v10820_v44 = vcombine.high %v917_v37, %v921_v38  ;;  %v970_v32 = vld [vmem:[%s16165_s1 + $0x1d38] sm:$0xff]  ;;  %v15087_v34 = vshrl.u32 %v1061_v24, 7  ;;  %v977_v37 = vld [vmem:[%s16165_s1 + $0x1d70] sm:$0xff] }
 0x39f   :  { %7193 = vmatprep.subr.bf16.mxu0 %v10764_v47  ;;  %7521 = vmatprep.subr.bf16.mxu1 %v10766_v51  ;;  %v925_v47 = vld [vmem:[%s16165_s1 + $0x1bd0] sm:$0xff]  ;;  %v930_v51 = vld [vmem:[%s16165_s1 + $0x1bf8] sm:$0xff] }
 0x3a0   :  { %v10830_v27 = vcombine.high %v926_v50, %v930_v51  ;;  %v10827_v61 = vcombine.low %v925_v47, %v929_v48  ;;  %v974_v38 = vld [vmem:[%s16165_s1 + $0x1d58] sm:$0xff] }
 0x3a2   :  { %7194 = vmatpush1.bf16.msra.mxu0 %v10763_v18  ;;  %7522 = vmatpush1.bf16.msra.mxu1 %v10765_v52  ;;  %v10821_v18 = vcombine.low %v918_v40, %v922_v25  ;;  %v10828_v52 = vcombine.high %v925_v47, %v929_v48  ;;  %v10870_v40 = vcombine.high %v966_v29, %v970_v32  ;;  %v15104_v25 = vld [vmem:[%s16168_s2] sm:$0xff]  ;;  %v981_v48 = vld [vmem:[%s16165_s1 + $0x1d90] sm:$0xff] }
 0x3a3   :  { %7195 = vmatprep.subr.bf16.mxu0 %v10772_v54  ;;  %7523 = vmatprep.subr.bf16.mxu1 %v10774_v12  ;;  %v933_v54 = vld [vmem:[%s16165_s1 + $0x1c10] sm:$0xff]  ;;  %v938_v12 = vld [vmem:[%s16165_s1 + $0x1c38] sm:$0xff] }
 0x3a4   :  { %v10838_v3 = vcombine.high %v934_v60, %v938_v12  ;;  %v10835_v21 = vcombine.low %v933_v54, %v937_v56 }
 0x3a6   :  { %7196 = vmatpush1.bf16.msra.mxu0 %v10771_v45  ;;  %7524 = vmatpush1.bf16.msra.mxu1 %v10773_v39  ;;  %v10829_v45 = vcombine.low %v926_v50, %v930_v51  ;;  %v10836_v39 = vcombine.high %v933_v54, %v937_v56  ;;  %v985_v50 = vld [vmem:[%s16165_s1 + $0x1db0] sm:$0xff] }
 0x3a7   :  { %7197 = vmatprep.subr.bf16.mxu0 %v10780_v62  ;;  %7525 = vmatprep.subr.bf16.mxu1 %v10782_v4  ;;  %v941_v62 = vld [vmem:[%s16165_s1 + $0x1c50] sm:$0xff]  ;;  %v946_v4 = vld [vmem:[%s16165_s1 + $0x1c78] sm:$0xff]  ;;  %v10884_v56 = vcombine.high %v981_v48, %v985_v50 }
 0x3a8   :  { %v10844_v23 = vcombine.high %v941_v62, %v945_v0  ;;  %v10846_v7 = vcombine.high %v942_v2, %v946_v4  ;;  %v10843_v58 = vcombine.low %v941_v62, %v945_v0 }
 0x3aa   :  { %7198 = vmatpush1.bf16.msra.mxu0 %v10779_v46  ;;  %7526 = vmatpush1.bf16.msra.mxu1 %v10781_v5  ;;  %v949_v46 = vld [vmem:[%s16165_s1 + $0x1c90] sm:$0xff] }
 0x3ab   :  { %7199 = vmatprep.subr.bf16.mxu0 %v10788_v6  ;;  %7527 = vmatprep.subr.bf16.mxu1 %v10790_v9  ;;  %v953_v5 = vld [vmem:[%s16165_s1 + $0x1cb0] sm:$0xff]  ;;  %v10837_v6 = vcombine.low %v934_v60, %v938_v12  ;;  %v954_v9 = vld [vmem:[%s16165_s1 + $0x1cb8] sm:$0xff] }
 0x3ac   :  { %v989_v60 = vld [vmem:[%s16165_s1 + $0x1dd0] sm:$0xff]  ;;  %v990_v12 = vld [vmem:[%s16165_s1 + $0x1dd8] sm:$0xff] }
 0x3ae   :  { %7200 = vmatpush1.bf16.msra.mxu0 %v10787_v10  ;;  %7528 = vmatpush1.bf16.msra.mxu1 %v10789_v11  ;;  %v10845_v10 = vcombine.low %v942_v2, %v946_v4  ;;  %v10852_v11 = vcombine.high %v949_v46, %v953_v5  ;;  %v1001_v4 = vld [vmem:[%s16165_s1 + $0x1e30] sm:$0xff] }
 0x3af   :  { %7201 = vmatprep.subr.bf16.mxu0 %v10796_v13  ;;  %7529 = vmatprep.subr.bf16.mxu1 %v10798_v20  ;;  %v10854_v13 = vcombine.high %v950_v8, %v954_v9  ;;  %v10851_v20 = vcombine.low %v949_v46, %v953_v5 }
 0x3b2   :  { %7202 = vmatpush1.bf16.msra.mxu0 %v10795_v55  ;;  %7530 = vmatpush1.bf16.msra.mxu1 %v10797_v26  ;;  %v10853_v55 = vcombine.low %v950_v8, %v954_v9  ;;  %v10860_v26 = vcombine.high %v957_v14, %v961_v17  ;;  %v1005_v8 = vld [vmem:[%s16165_s1 + $0x1e50] sm:$0xff] }
 0x3b3   :  { %7203 = vmatprep.subr.bf16.mxu0 %v10804_v49  ;;  %7531 = vmatprep.subr.bf16.mxu1 %v10806_v33  ;;  %v965_v49 = vld [vmem:[%s16165_s1 + $0x1d10] sm:$0xff]  ;;  %v10859_v33 = vcombine.low %v957_v14, %v961_v17 }
 0x3b4   :  { %v1009_v9 = vld [vmem:[%s16165_s1 + $0x1e70] sm:$0xff] }
 0x3b5   :  { %v10908_v17 = vcombine.high %v1005_v8, %v1009_v9 }
 0x3b6   :  { %7204 = vmatpush1.bf16.msra.mxu0 %v10803_v1  ;;  %7532 = vmatpush1.bf16.msra.mxu1 %v10805_v31  ;;  %v10868_v31 = vcombine.high %v965_v49, %v969_v28 }
 0x3b7   :  { %7205 = vmatprep.subr.bf16.mxu0 %v10812_v35  ;;  %7533 = vmatprep.subr.bf16.mxu1 %v10814_v41  ;;  %v973_v35 = vld [vmem:[%s16165_s1 + $0x1d50] sm:$0xff]  ;;  %v978_v41 = vld [vmem:[%s16165_s1 + $0x1d78] sm:$0xff] }
 0x3b8   :  { %v10876_v47 = vcombine.high %v973_v35, %v977_v37  ;;  %v10878_v51 = vcombine.high %v974_v38, %v978_v41  ;;  %v10877_v54 = vcombine.low %v974_v38, %v978_v41  ;;  %v1029_v38 = vld [vmem:[%s16165_s1 + $0x1f10] sm:$0xff]  ;;  %v1030_v41 = vld [vmem:[%s16165_s1 + $0x1f18] sm:$0xff] }
 0x3ba   :  { %7206 = vmatpush1.bf16.msra.mxu0 %v10811_v42  ;;  %7534 = vmatpush1.bf16.msra.mxu1 %v10813_v43  ;;  %v10867_v42 = vcombine.low %v965_v49, %v969_v28  ;;  %v1067_v43 = vsub.s32 1, %v15087_v34 }
 0x3bb   :  { %7207 = vmatprep.subr.bf16.mxu0 %v10820_v44  ;;  %7535 = vmatprep.subr.bf16.mxu1 %v10822_v16  ;;  %v10869_v44 = vcombine.low %v966_v29, %v970_v32  ;;  %v982_v16 = vld [vmem:[%s16165_s1 + $0x1d98] sm:$0xff]  ;;  %v1021_v29 = vld [vmem:[%s16165_s1 + $0x1ed0] sm:$0xff] }
 0x3bc   :  { %v1022_v32 = vld [vmem:[%s16165_s1 + $0x1ed8] sm:$0xff] }
 0x3be   :  { %7208 = vmatpush1.bf16.msra.mxu0 %v10819_v36  ;;  %7536 = vmatpush1.bf16.msra.mxu1 %v10821_v18  ;;  %v986_v36 = vld [vmem:[%s16165_s1 + $0x1db8] sm:$0xff]  ;;  %v10875_v18 = vcombine.low %v973_v35, %v977_v37 }
 0x3bf   :  { %7209 = vmatprep.subr.bf16.mxu0 %v10828_v52  ;;  %7537 = vmatprep.subr.bf16.mxu1 %v10830_v27  ;;  %v1068_v52 = vrot.slane %v15104_v25, %v1067_v43  ;;  %v993_v27 = vld [vmem:[%s16165_s1 + $0x1df0] sm:$0xff]  ;;  %v10885_v0 = vcombine.low %v982_v16, %v986_v36 }
 0x3c0   :  { %v10892_v2 = vcombine.high %v989_v60, %v993_v27  ;;  %v10891_v5 = vcombine.low %v989_v60, %v993_v27 }
 0x3c1   :  { %v15135_v62 = vadd.f32 %v14329_v15, %v1068_v52  ;;  %v1002_v15 = vld [vmem:[%s16165_s1 + $0x1e38] sm:$0xff] }
 0x3c2   :  { %7210 = vmatpush1.bf16.msra.mxu0 %v10827_v61  ;;  %7538 = vmatpush1.bf16.msra.mxu1 %v10829_v45  ;;  %v10886_v61 = vcombine.high %v982_v16, %v986_v36  ;;  %v994_v45 = vld [vmem:[%s16165_s1 + $0x1df8] sm:$0xff]  ;;  %v1041_v36 = vld [vmem:[%s16165_s1 + $0x1f70] sm:$0xff] }
 0x3c3   :  { %7220 = vmatprep.subr.bf16.mxu0 %v10836_v39  ;;  %7548 = vmatprep.subr.bf16.mxu1 %v10838_v3  ;;  %v10883_v39 = vcombine.low %v981_v48, %v985_v50  ;;  %v997_v3 = vld [vmem:[%s16165_s1 + $0x1e10] sm:$0xff]  ;;  %v10894_v46 = vcombine.high %v990_v12, %v994_v45 }
 0x3c5   :  { %7212 = vmatmul.mubr.bf16.vlgmr.msra.gmra.mrb[4].mxu0 %v13450_v19  ;;  %7540 = vmatmul.mubr.bf16.vlgmr.msra.gmra.mrb[4].mxu1 %v13450_v19  ;;  %v962_v19 = vld [vmem:[%s16165_s1 + $0x1cf8] sm:$0xff] }
 0x3c6   :  { %7221 = vmatpush1.bf16.msra.mxu0 %v10835_v21  ;;  %7549 = vmatpush1.bf16.msra.mxu1 %v10837_v6  ;;  %v10861_v1 = vcombine.low %v958_v53, %v962_v19  ;;  %v998_v21 = vld [vmem:[%s16165_s1 + $0x1e18] sm:$0xff]  ;;  %v10960_v6 = vmul.f32 -1.442695, %v15135_v62 }
 0x3c7   :  { %7222 = vmatprep.subr.bf16.mxu0 %v10844_v23  ;;  %7550 = vmatprep.subr.bf16.mxu1 %v10846_v7  ;;  %v10893_v23 = vcombine.low %v990_v12, %v994_v45  ;;  %v10900_v7 = vcombine.high %v997_v3, %v1001_v4  ;;  %v10901_v14 = vcombine.low %v998_v21, %v1002_v15  ;;  %v1049_v45 = vld [vmem:[%s16165_s1 + $0x1fb0] sm:$0xff] }
 0x3c8   :  { %7252 = vmatprep.mubr.bf16.mxu0 %v13471_v30  ;;  %7580 = vmatprep.mubr.bf16.mxu1 %v13471_v30  ;;  %v10862_v30 = vcombine.high %v958_v53, %v962_v19  ;;  %11884 = vpow2.f32 %v10960_v6  ;;  %v1013_v53 = vld [vmem:[%s16165_s1 + $0x1e90] sm:$0xff] }
 0x3c9   :  { %v1017_v19 = vld [vmem:[%s16165_s1 + $0x1eb0] sm:$0xff] }
 0x3ca   :  { %7223 = vmatpush1.bf16.msra.mxu0 %v10843_v58  ;;  %7551 = vmatpush1.bf16.msra.mxu1 %v10845_v10  ;;  %v1006_v58 = vld [vmem:[%s16165_s1 + $0x1e58] sm:$0xff]  ;;  %v10902_v10 = vcombine.high %v998_v21, %v1002_v15  ;;  %v10916_v28 = vcombine.high %v1013_v53, %v1017_v19  ;;  %v1057_v15 = vld [vmem:[%s16165_s1 + $0x1ff0] sm:$0xff] }
 0x3cb   :  { %7224 = vmatprep.subr.bf16.mxu0 %v10852_v11  ;;  %7552 = vmatprep.subr.bf16.mxu1 %v10854_v13  ;;  %v1010_v11 = vld [vmem:[%s16165_s1 + $0x1e78] sm:$0xff]  ;;  %v10899_v13 = vcombine.low %v997_v3, %v1001_v4 }
 0x3cc   :  { %v10910_v24 = vcombine.high %v1006_v58, %v1010_v11  ;;  %v10909_v49 = vcombine.low %v1006_v58, %v1010_v11 }
 0x3ce   :  { %7225 = vmatpush1.bf16.msra.mxu0 %v10851_v20  ;;  %7553 = vmatpush1.bf16.msra.mxu1 %v10853_v55  ;;  %v1014_v20 = vld [vmem:[%s16165_s1 + $0x1e98] sm:$0xff] }
 0x3cf   :  { %7226 = vmatprep.subr.bf16.mxu0 %v10860_v26  ;;  %7554 = vmatprep.subr.bf16.mxu1 %v10862_v30  ;;  %v1018_v55 = vld [vmem:[%s16165_s1 + $0x1eb8] sm:$0xff]  ;;  %v10907_v26 = vcombine.low %v1005_v8, %v1009_v9  ;;  %v1025_v30 = vld [vmem:[%s16165_s1 + $0x1ef0] sm:$0xff] }
 0x3d0   :  { %v10917_v35 = vcombine.low %v1014_v20, %v1018_v55  ;;  %v10924_v37 = vcombine.high %v1021_v29, %v1025_v30  ;;  %v10923_v48 = vcombine.low %v1021_v29, %v1025_v30  ;;  %v11480_v29 = vld [vmem:[%s16167_s3 + $0x40] ss:$16 sps:$4 sm:$0xff]   ;;  %v11483_v30 = vld [vmem:[%s16167_s3 + $0x48] ss:$16 sps:$4 sm:$0xff]  }
 0x3d2   :  { %7227 = vmatpush1.bf16.msra.mxu0 %v10859_v33  ;;  %7555 = vmatpush1.bf16.msra.mxu1 %v10861_v1  ;;  %v10918_v33 = vcombine.high %v1014_v20, %v1018_v55  ;;  %v1026_v1 = vld [vmem:[%s16165_s1 + $0x1ef8] sm:$0xff] }
 0x3d3   :  { %7228 = vmatprep.subr.bf16.mxu0 %v10868_v31  ;;  %7556 = vmatprep.subr.bf16.mxu1 %v10870_v40  ;;  %v10915_v31 = vcombine.low %v1013_v53, %v1017_v19  ;;  %v1033_v40 = vld [vmem:[%s16165_s1 + $0x1f30] sm:$0xff]  ;;  %v10925_v50 = vcombine.low %v1022_v32, %v1026_v1  ;;  %v11473_v53 = vld [vmem:[%s16167_s3 + $0xc] ss:$16 sps:$4 sm:$0xff]   ;;  %v11471_v20 = vld [vmem:[%s16167_s3 + $0x8] ss:$16 sps:$4 sm:$0xff]  }
 0x3d4   :  { %v10932_v16 = vcombine.high %v1029_v38, %v1033_v40  ;;  %v10931_v60 = vcombine.low %v1029_v38, %v1033_v40  ;;  %v1063_v38 = vsub.s32 0, %v15087_v34  ;;  %v11492_v40 = vld [vmem:[%s16167_s3 + $0x80] ss:$16 sps:$4 sm:$0xff]  }
 0x3d6   :  { %7229 = vmatpush1.bf16.msra.mxu0 %v10867_v42  ;;  %7557 = vmatpush1.bf16.msra.mxu1 %v10869_v44  ;;  %v10926_v42 = vcombine.high %v1022_v32, %v1026_v1  ;;  %v1034_v44 = vld [vmem:[%s16165_s1 + $0x1f38] sm:$0xff]  ;;  %v11488_v32 = vld [vmem:[%s16167_s3 + $0x64] ss:$16 sps:$4 sm:$0xff]   ;;  %v11486_v1 = vld [vmem:[%s16167_s3 + $0x60] ss:$16 sps:$4 sm:$0xff]  }
 0x3d7   :  { %7230 = vmatprep.subr.bf16.mxu0 %v10876_v47  ;;  %7558 = vmatprep.subr.bf16.mxu1 %v10878_v51  ;;  %v11885_v47 = vpop.eup %11884  ;;  %v1037_v51 = vld [vmem:[%s16165_s1 + $0x1f50] sm:$0xff]  ;;  %v10933_v27 = vcombine.low %v1030_v41, %v1034_v44 }
 0x3d8   :  { %v7614_v52 = vadd.f32 1.0, %v11885_v47  ;;  %v10940_v12 = vcombine.high %v1037_v51, %v1041_v36  ;;  %v10939_v3 = vcombine.low %v1037_v51, %v1041_v36  ;;  %v11503_v47 = vld [vmem:[%s16167_s3 + $0xac] ss:$16 sps:$4 sm:$0xff]   ;;  %v11501_v51 = vld [vmem:[%s16167_s3 + $0xa8] ss:$16 sps:$4 sm:$0xff]  }
 0x3d9   :  { %v11506_v36 = vld [vmem:[%s16167_s3 + $0xc4] ss:$16 sps:$4 sm:$0xff]  }
 0x3da   :  { %7231 = vmatpush1.bf16.msra.mxu0 %v10875_v18  ;;  %7559 = vmatpush1.bf16.msra.mxu1 %v10877_v54  ;;  %v1038_v18 = vld [vmem:[%s16165_s1 + $0x1f58] sm:$0xff]  ;;  %v10934_v54 = vcombine.high %v1030_v41, %v1034_v44  ;;  %11886 = vrcp.f32 %v7614_v52  ;;  %v1075_v41 = vsub.s32 3, %v15087_v34  ;;  %v11500_v44 = vld [vmem:[%s16167_s3 + $0xa4] ss:$16 sps:$4 sm:$0xff]  }
 0x3db   :  { %7232 = vmatprep.subr.bf16.mxu0 %v10884_v56  ;;  %7560 = vmatprep.subr.bf16.mxu1 %v10886_v61  ;;  %v1042_v56 = vld [vmem:[%s16165_s1 + $0x1f78] sm:$0xff]  ;;  %v1045_v61 = vld [vmem:[%s16165_s1 + $0x1f90] sm:$0xff] }
 0x3dc   :  { %v10941_v4 = vcombine.low %v1038_v18, %v1042_v56  ;;  %v10948_v21 = vcombine.high %v1045_v61, %v1049_v45 }
 0x3de   :  { %7233 = vmatpush1.bf16.msra.mxu0 %v10883_v39  ;;  %7561 = vmatpush1.bf16.msra.mxu1 %v10885_v0  ;;  %v1046_v39 = vld [vmem:[%s16165_s1 + $0x1f98] sm:$0xff]  ;;  %v10942_v0 = vcombine.high %v1038_v18, %v1042_v56 }
 0x3df   :  { %7234 = vmatprep.subr.bf16.mxu0 %v10892_v2  ;;  %7562 = vmatprep.subr.bf16.mxu1 %v10894_v46  ;;  %v1050_v2 = vld [vmem:[%s16165_s1 + $0x1fb8] sm:$0xff]  ;;  %v1053_v46 = vld [vmem:[%s16165_s1 + $0x1fd0] sm:$0xff] }
 0x3e0   :  { %v10950_v6 = vcombine.high %v1046_v39, %v1050_v2  ;;  %v10949_v8 = vcombine.low %v1046_v39, %v1050_v2  ;;  %v10956_v9 = vcombine.high %v1053_v46, %v1057_v15  ;;  %v10955_v11 = vcombine.low %v1053_v46, %v1057_v15  ;;  %v11509_v18 = vld [vmem:[%s16167_s3 + $0xcc] ss:$16 sps:$4 sm:$0xff]   ;;  %v11518_v39 = vld [vmem:[%s16167_s3 + $0x104] ss:$16 sps:$4 sm:$0xff]   ;;  %v11516_v2 = vld [vmem:[%s16167_s3 + $0x100] ss:$16 sps:$4 sm:$0xff]  }
 0x3e1   :  { %v11522_v46 = vld [vmem:[%s16167_s3 + $0x120] ss:$16 sps:$4 sm:$0xff]   ;;  %v11525_v15 = vld [vmem:[%s16167_s3 + $0x128] ss:$16 sps:$4 sm:$0xff]  }
 0x3e2   :  { %7235 = vmatpush1.bf16.msra.mxu0 %v10891_v5  ;;  %7563 = vmatpush1.bf16.msra.mxu1 %v10893_v23  ;;  %v1054_v5 = vld [vmem:[%s16165_s1 + $0x1fd8] sm:$0xff] }
 0x3e3   :  { %7236 = vmatprep.subr.bf16.mxu0 %v10900_v7  ;;  %7564 = vmatprep.subr.bf16.mxu1 %v10902_v10  ;;  %v1058_v23 = vld [vmem:[%s16165_s1 + $0x1ff8] sm:$0xff]  ;;  %v10947_v7 = vcombine.low %v1045_v61, %v1049_v45 }
 0x3e4   :  { %v10958_v58 = vcombine.high %v1054_v5, %v1058_v23  ;;  %v11887_v10 = vpop.eup %11886  ;;  %v11513_v45 = vld [vmem:[%s16167_s3 + $0xe8] ss:$16 sps:$4 sm:$0xff]  }
 0x3e5   :  { %v7638_v19 = vmul.f32 %v11887_v10, %v15135_v62  ;;  %v11474_v62 = vld [vmem:[%s16167_s3 + $0x20] ss:$16 sps:$4 sm:$0xff]  }
 0x3e6   :  { %7237 = vmatpush1.bf16.msra.mxu0 %v10899_v13  ;;  %7565 = vmatpush1.bf16.msra.mxu1 %v10901_v14  ;;  %v10957_v13 = vcombine.low %v1054_v5, %v1058_v23  ;;  %v11470_v14 = vld [vmem:[%s16167_s3 + $0x4] ss:$16 sps:$4 sm:$0xff]   ;;  %v11528_v23 = vld [vmem:[%s16167_s3 + $0x140] ss:$16 sps:$4 sm:$0xff]  }
 0x3e7   :  { %7238 = vmatprep.subr.bf16.mxu0 %v10908_v17  ;;  %7566 = vmatprep.subr.bf16.mxu1 %v10910_v24  ;;  %v11468_v17 = vld [vmem:[%s16167_s3] ss:$16 sps:$4 sm:$0xff]   ;;  %v11476_v24 = vld [vmem:[%s16167_s3 + $0x24] ss:$16 sps:$4 sm:$0xff]   ;;  %v7646_v55 = vpack.c.bf16 %v7638_v19, %v7638_v19  ;;  %v11545_v19 = vld [vmem:[%s16167_s3 + $0x18c] ss:$16 sps:$4 sm:$0xff]  }
 0x3e8   :  { %v11530_v5 = vld [vmem:[%s16167_s3 + $0x144] ss:$16 sps:$4 sm:$0xff]  }
 0x3ea   :  { %7239 = vmatpush1.bf16.msra.mxu0 %v10907_v26  ;;  %7567 = vmatpush1.bf16.msra.mxu1 %v10909_v49  ;;  %v11479_v26 = vld [vmem:[%s16167_s3 + $0x2c] ss:$16 sps:$4 sm:$0xff]   ;;  %v11477_v49 = vld [vmem:[%s16167_s3 + $0x28] ss:$16 sps:$4 sm:$0xff]  }
 0x3eb   :  { %7240 = vmatprep.subr.bf16.mxu0 %v10916_v28  ;;  %7568 = vmatprep.subr.bf16.mxu1 %v10918_v33  ;;  %v11482_v28 = vld [vmem:[%s16167_s3 + $0x44] ss:$16 sps:$4 sm:$0xff]   ;;  %v11491_v33 = vld [vmem:[%s16167_s3 + $0x6c] ss:$16 sps:$4 sm:$0xff]  }
 0x3ee   :  { %7241 = vmatpush1.bf16.msra.mxu0 %v10915_v31  ;;  %7569 = vmatpush1.bf16.msra.mxu1 %v10917_v35  ;;  %v11489_v31 = vld [vmem:[%s16167_s3 + $0x68] ss:$16 sps:$4 sm:$0xff]   ;;  %v11494_v35 = vld [vmem:[%s16167_s3 + $0x84] ss:$16 sps:$4 sm:$0xff]  }
 0x3ef   :  { %7242 = vmatprep.subr.bf16.mxu0 %v10924_v37  ;;  %7570 = vmatprep.subr.bf16.mxu1 %v10926_v42  ;;  %v11497_v37 = vld [vmem:[%s16167_s3 + $0x8c] ss:$16 sps:$4 sm:$0xff]   ;;  %v11495_v42 = vld [vmem:[%s16167_s3 + $0x88] ss:$16 sps:$4 sm:$0xff]  }
 0x3f2   :  { %7243 = vmatpush1.bf16.msra.mxu0 %v10923_v48  ;;  %7571 = vmatpush1.bf16.msra.mxu1 %v10925_v50  ;;  %v1064_v48 = vrot.slane %v15104_v25, %v1063_v38  ;;  %v11498_v50 = vld [vmem:[%s16167_s3 + $0xa0] ss:$16 sps:$4 sm:$0xff]  }
 0x3f3   :  { %7244 = vmatprep.subr.bf16.mxu0 %v10932_v16  ;;  %7572 = vmatprep.subr.bf16.mxu1 %v10934_v54  ;;  %v1076_v16 = vrot.slane %v15104_v25, %v1075_v41  ;;  %v11504_v54 = vld [vmem:[%s16167_s3 + $0xc0] ss:$16 sps:$4 sm:$0xff]  }
 0x3f4   :  { %v15324_v52 = vadd.f32 %v14319_v59, %v1064_v48  ;;  %v11515_v59 = vld [vmem:[%s16167_s3 + $0xec] ss:$16 sps:$4 sm:$0xff]   ;;  %v11564_v48 = vld [vmem:[%s16167_s3 + $0x200] ss:$16 sps:$4 sm:$0xff]  }
 0x3f5   :  { %v15330_v56 = vadd.f32 %v14337_v57, %v1076_v16  ;;  %v11510_v57 = vld [vmem:[%s16167_s3 + $0xe0] ss:$16 sps:$4 sm:$0xff]   ;;  %v11567_v16 = vld [vmem:[%s16167_s3 + $0x208] ss:$16 sps:$4 sm:$0xff]  }
 0x3f6   :  { %7245 = vmatpush1.bf16.msra.mxu0 %v10931_v60  ;;  %7573 = vmatpush1.bf16.msra.mxu1 %v10933_v27  ;;  %v11507_v60 = vld [vmem:[%s16167_s3 + $0xc8] ss:$16 sps:$4 sm:$0xff]   ;;  %v11512_v27 = vld [vmem:[%s16167_s3 + $0xe4] ss:$16 sps:$4 sm:$0xff]  }
 0x3f7   :  { %7246 = vmatprep.subr.bf16.mxu0 %v10940_v12  ;;  %7574 = vmatprep.subr.bf16.mxu1 %v10942_v0  ;;  %v10959_v12 = vmul.f32 -1.442695, %v15324_v52  ;;  %v10962_v61 = vmul.f32 -1.442695, %v15330_v56  ;;  %v11521_v0 = vld [vmem:[%s16167_s3 + $0x10c] ss:$16 sps:$4 sm:$0xff]  }
 0x3f9   :  { %11888 = vpow2.f32 %v10959_v12  ;;  %v11584_v12 = vld [vmem:[%s16167_s3 + $0x264] ss:$16 sps:$4 sm:$0xff]  }
 0x3fa   :  { %7247 = vmatpush1.bf16.msra.mxu0 %v10939_v3  ;;  %7575 = vmatpush1.bf16.msra.mxu1 %v10941_v4  ;;  %11890 = vpow2.f32 %v10962_v61  ;;  %v11519_v3 = vld [vmem:[%s16167_s3 + $0x108] ss:$16 sps:$4 sm:$0xff]   ;;  %v11524_v4 = vld [vmem:[%s16167_s3 + $0x124] ss:$16 sps:$4 sm:$0xff]   ;;  %v11582_v61 = vld [vmem:[%s16167_s3 + $0x260] ss:$16 sps:$4 sm:$0xff]  }
 0x3fb   :  { %7248 = vmatprep.subr.bf16.mxu0 %v10948_v21  ;;  %7576 = vmatprep.subr.bf16.mxu1 %v10950_v6  ;;  %v11527_v21 = vld [vmem:[%s16167_s3 + $0x12c] ss:$16 sps:$4 sm:$0xff]  }
 0x3fc   :  { %v11533_v6 = vld [vmem:[%s16167_s3 + $0x14c] ss:$16 sps:$4 sm:$0xff]  }
 0x3fe   :  { %7249 = vmatpush1.bf16.msra.mxu0 %v10947_v7  ;;  %7577 = vmatpush1.bf16.msra.mxu1 %v10949_v8  ;;  %v11531_v8 = vld [vmem:[%s16167_s3 + $0x148] ss:$16 sps:$4 sm:$0xff]  }
 0x3ff   :  { %7250 = vmatprep.subr.bf16.mxu0 %v10956_v9  ;;  %7578 = vmatprep.subr.bf16.mxu1 %v10958_v58  ;;  %v11536_v9 = vld [vmem:[%s16167_s3 + $0x164] ss:$16 sps:$4 sm:$0xff]   ;;  %v11539_v58 = vld [vmem:[%s16167_s3 + $0x16c] ss:$16 sps:$4 sm:$0xff]  }
 0x402   :  { %7251 = vmatpush1.bf16.msra.mxu0 %v10955_v11  ;;  %7579 = vmatpush1.bf16.msra.mxu1 %v10957_v13  ;;  %v11534_v13 = vld [vmem:[%s16167_s3 + $0x160] ss:$16 sps:$4 sm:$0xff]  }
 0x403   :  { %9211 = vmatprep.subr.bf16.mxu0 %v11470_v14  ;;  %9375 = vmatprep.subr.bf16.mxu1 %v11473_v53  ;;  %v11889_v7 = vpop.eup %11888  ;;  %v11537_v14 = vld [vmem:[%s16167_s3 + $0x168] ss:$16 sps:$4 sm:$0xff]  }
 0x404   :  { %v11891_v10 = vpop.eup %11890  ;;  %v7613_v11 = vadd.f32 1.0, %v11889_v7 }
 0x405   :  { %7253 = vmatmul.mubr.bf16.vlgmr.msra.gmra.mrb[4].mxu0 %v13659_v63  ;;  %7581 = vmatmul.mubr.bf16.vlgmr.msra.gmra.mrb[4].mxu1 %v13659_v63  ;;  %v11485_v63 = vld [vmem:[%s16167_s3 + $0x4c] ss:$16 sps:$4 sm:$0xff]   ;;  %v7616_v53 = vadd.f32 1.0, %v11891_v10 }
 0x406   :  { %9212 = vmatpush1.bf16.msra.mxu0 %v11468_v17  ;;  %9243 = vmatprep.mubr.bf16.mxu0 %v7646_v55  ;;  %v11542_v17 = vld [vmem:[%s16167_s3 + $0x184] ss:$16 sps:$4 sm:$0xff]   ;;  %11892 = vrcp.f32 %v7613_v11  ;;  %v11606_v11 = vld [vmem:[%s16167_s3 + $0x2e0] ss:$16 sps:$4 sm:$0xff]  }
 0x407   :  { %9376 = vmatpush1.bf16.msra.mxu1 %v11471_v20  ;;  %9407 = vmatprep.mubr.bf16.mxu1 %v7646_v55  ;;  %v11540_v20 = vld [vmem:[%s16167_s3 + $0x180] ss:$16 sps:$4 sm:$0xff]   ;;  %v11548_v55 = vld [vmem:[%s16167_s3 + $0x1a4] ss:$16 sps:$4 sm:$0xff]   ;;  %11894 = vrcp.f32 %v7616_v53 }
 0x408   :  { %9213 = vmatprep.subr.bf16.mxu0 %v11476_v24  ;;  %9377 = vmatprep.subr.bf16.mxu1 %v11479_v26  ;;  %v11543_v24 = vld [vmem:[%s16167_s3 + $0x188] ss:$16 sps:$4 sm:$0xff]   ;;  %v11551_v26 = vld [vmem:[%s16167_s3 + $0x1ac] ss:$16 sps:$4 sm:$0xff]   ;;  %v11612_v53 = vld [vmem:[%s16167_s3 + $0x300] ss:$16 sps:$4 sm:$0xff]  }
 0x40a   :  { %9214 = vmatpush1.bf16.msra.mxu0 %v11474_v62  ;;  %v11546_v62 = vld [vmem:[%s16167_s3 + $0x1a0] ss:$16 sps:$4 sm:$0xff]  }
 0x40b   :  { %9378 = vmatpush1.bf16.msra.mxu1 %v11477_v49  ;;  %9215 = vmatprep.subr.bf16.mxu0 %v11482_v28  ;;  %v11549_v49 = vld [vmem:[%s16167_s3 + $0x1a8] ss:$16 sps:$4 sm:$0xff]   ;;  %v11554_v28 = vld [vmem:[%s16167_s3 + $0x1c4] ss:$16 sps:$4 sm:$0xff]  }
 0x40c   :  { %9379 = vmatprep.subr.bf16.mxu1 %v11485_v63  ;;  %v11557_v63 = vld [vmem:[%s16167_s3 + $0x1cc] ss:$16 sps:$4 sm:$0xff]  }
 0x40e   :  { %9216 = vmatpush1.bf16.msra.mxu0 %v11480_v29  ;;  %v11552_v29 = vld [vmem:[%s16167_s3 + $0x1c0] ss:$16 sps:$4 sm:$0xff]  }
 0x40f   :  { %9380 = vmatpush1.bf16.msra.mxu1 %v11483_v30  ;;  %9217 = vmatprep.subr.bf16.mxu0 %v11488_v32  ;;  %v11555_v30 = vld [vmem:[%s16167_s3 + $0x1c8] ss:$16 sps:$4 sm:$0xff]   ;;  %v11560_v32 = vld [vmem:[%s16167_s3 + $0x1e4] ss:$16 sps:$4 sm:$0xff]  }
 0x410   :  { %9381 = vmatprep.subr.bf16.mxu1 %v11491_v33  ;;  %v11893_v33 = vpop.eup %11892 }
 0x412   :  { %9218 = vmatpush1.bf16.msra.mxu0 %v11486_v1  ;;  %v11563_v1 = vld [vmem:[%s16167_s3 + $0x1ec] ss:$16 sps:$4 sm:$0xff]  }
 0x413   :  { %9382 = vmatpush1.bf16.msra.mxu1 %v11489_v31  ;;  %9219 = vmatprep.subr.bf16.mxu0 %v11494_v35  ;;  %v11895_v31 = vpop.eup %11894  ;;  %v11558_v35 = vld [vmem:[%s16167_s3 + $0x1e0] ss:$16 sps:$4 sm:$0xff]  }
 0x414   :  { %9383 = vmatprep.subr.bf16.mxu1 %v11497_v37  ;;  %v7637_v37 = vmul.f32 %v11893_v33, %v15324_v52  ;;  %v11570_v52 = vld [vmem:[%s16167_s3 + $0x220] ss:$16 sps:$4 sm:$0xff]  }
 0x416   :  { %9220 = vmatpush1.bf16.msra.mxu0 %v11492_v40  ;;  %v11561_v40 = vld [vmem:[%s16167_s3 + $0x1e8] ss:$16 sps:$4 sm:$0xff]  }
 0x417   :  { %9384 = vmatpush1.bf16.msra.mxu1 %v11495_v42  ;;  %9221 = vmatprep.subr.bf16.mxu0 %v11500_v44  ;;  %v11566_v42 = vld [vmem:[%s16167_s3 + $0x204] ss:$16 sps:$4 sm:$0xff]   ;;  %v11569_v44 = vld [vmem:[%s16167_s3 + $0x20c] ss:$16 sps:$4 sm:$0xff]  }
 0x418   :  { %9385 = vmatprep.subr.bf16.mxu1 %v11503_v47  ;;  %v7640_v47 = vmul.f32 %v11895_v31, %v15330_v56  ;;  %v11578_v56 = vld [vmem:[%s16167_s3 + $0x244] ss:$16 sps:$4 sm:$0xff]   ;;  %v11633_v31 = vld [vmem:[%s16167_s3 + $0x368] ss:$16 sps:$4 sm:$0xff]  }
 0x41a   :  { %9222 = vmatpush1.bf16.msra.mxu0 %v11498_v50  ;;  %v7645_v50 = vpack.c.bf16 %v7637_v37, %v7637_v37  ;;  %v11641_v37 = vld [vmem:[%s16167_s3 + $0x38c] ss:$16 sps:$4 sm:$0xff]  }
 0x41b   :  { %9386 = vmatpush1.bf16.msra.mxu1 %v11501_v51  ;;  %9223 = vmatprep.subr.bf16.mxu0 %v11506_v36  ;;  %v11572_v51 = vld [vmem:[%s16167_s3 + $0x224] ss:$16 sps:$4 sm:$0xff]   ;;  %v7648_v36 = vpack.c.bf16 %v7640_v47, %v7640_v47  ;;  %v11647_v47 = vld [vmem:[%s16167_s3 + $0x3ac] ss:$16 sps:$4 sm:$0xff]  }
 0x41c   :  { %9387 = vmatprep.subr.bf16.mxu1 %v11509_v18  ;;  %v11575_v18 = vld [vmem:[%s16167_s3 + $0x22c] ss:$16 sps:$4 sm:$0xff]  }
 0x41e   :  { %9224 = vmatpush1.bf16.msra.mxu0 %v11504_v54  ;;  %v11573_v54 = vld [vmem:[%s16167_s3 + $0x228] ss:$16 sps:$4 sm:$0xff]  }
 0x41f   :  { %9388 = vmatpush1.bf16.msra.mxu1 %v11507_v60  ;;  %9225 = vmatprep.subr.bf16.mxu0 %v11512_v27  ;;  %v11581_v60 = vld [vmem:[%s16167_s3 + $0x24c] ss:$16 sps:$4 sm:$0xff]   ;;  %v11576_v27 = vld [vmem:[%s16167_s3 + $0x240] ss:$16 sps:$4 sm:$0xff]  }
 0x420   :  { %9389 = vmatprep.subr.bf16.mxu1 %v11515_v59  ;;  %v11579_v59 = vld [vmem:[%s16167_s3 + $0x248] ss:$16 sps:$4 sm:$0xff]  }
 0x422   :  { %9226 = vmatpush1.bf16.msra.mxu0 %v11510_v57  ;;  %v11587_v57 = vld [vmem:[%s16167_s3 + $0x26c] ss:$16 sps:$4 sm:$0xff]  }
 0x423   :  { %9390 = vmatpush1.bf16.msra.mxu1 %v11513_v45  ;;  %9227 = vmatprep.subr.bf16.mxu0 %v11518_v39  ;;  %v11585_v45 = vld [vmem:[%s16167_s3 + $0x268] ss:$16 sps:$4 sm:$0xff]   ;;  %v11590_v39 = vld [vmem:[%s16167_s3 + $0x284] ss:$16 sps:$4 sm:$0xff]  }
 0x424   :  { %9391 = vmatprep.subr.bf16.mxu1 %v11521_v0  ;;  %v11593_v0 = vld [vmem:[%s16167_s3 + $0x28c] ss:$16 sps:$4 sm:$0xff]  }
 0x426   :  { %9228 = vmatpush1.bf16.msra.mxu0 %v11516_v2  ;;  %v1071_v2 = vsub.s32 2, %v15087_v34 }
 0x427   :  { %9392 = vmatpush1.bf16.msra.mxu1 %v11519_v3  ;;  %9229 = vmatprep.subr.bf16.mxu0 %v11524_v4  ;;  %v11588_v3 = vld [vmem:[%s16167_s3 + $0x280] ss:$16 sps:$4 sm:$0xff]   ;;  %v11591_v4 = vld [vmem:[%s16167_s3 + $0x288] ss:$16 sps:$4 sm:$0xff]  }
 0x428   :  { %9393 = vmatprep.subr.bf16.mxu1 %v11527_v21  ;;  %v11596_v21 = vld [vmem:[%s16167_s3 + $0x2a4] ss:$16 sps:$4 sm:$0xff]  }
 0x42a   :  { %9230 = vmatpush1.bf16.msra.mxu0 %v11522_v46  ;;  %v11599_v46 = vld [vmem:[%s16167_s3 + $0x2ac] ss:$16 sps:$4 sm:$0xff]  }
 0x42b   :  { %9394 = vmatpush1.bf16.msra.mxu1 %v11525_v15  ;;  %9231 = vmatprep.subr.bf16.mxu0 %v11530_v5  ;;  %v1072_v15 = vrot.slane %v15104_v25, %v1071_v2  ;;  %v11594_v5 = vld [vmem:[%s16167_s3 + $0x2a0] ss:$16 sps:$4 sm:$0xff]   ;;  %v11605_v25 = vld [vmem:[%s16167_s3 + $0x2cc] ss:$16 sps:$4 sm:$0xff]  }
 0x42c   :  { %9395 = vmatprep.subr.bf16.mxu1 %v11533_v6  ;;  %v11597_v6 = vld [vmem:[%s16167_s3 + $0x2a8] ss:$16 sps:$4 sm:$0xff]  }
 0x42d   :  { %v15530_v7 = vadd.f32 %v14327_v22, %v1072_v15  ;;  %v11611_v22 = vld [vmem:[%s16167_s3 + $0x2ec] ss:$16 sps:$4 sm:$0xff]  }
 0x42e   :  { %9232 = vmatpush1.bf16.msra.mxu0 %v11528_v23  ;;  %v11602_v23 = vld [vmem:[%s16167_s3 + $0x2c4] ss:$16 sps:$4 sm:$0xff]   ;;  %v11677_v15 = vld [vmem:[%s16167_s3 + $0x44c] ss:$16 sps:$4 sm:$0xff]  }
 0x42f   :  { %9396 = vmatpush1.bf16.msra.mxu1 %v11531_v8  ;;  %9233 = vmatprep.subr.bf16.mxu0 %v11536_v9  ;;  %v11600_v8 = vld [vmem:[%s16167_s3 + $0x2c0] ss:$16 sps:$4 sm:$0xff]   ;;  %v11603_v9 = vld [vmem:[%s16167_s3 + $0x2c8] ss:$16 sps:$4 sm:$0xff]   ;;  %v10961_v10 = vmul.f32 -1.442695, %v15530_v7 }
 0x430   :  { %9397 = vmatprep.subr.bf16.mxu1 %v11539_v58  ;;  %v11608_v58 = vld [vmem:[%s16167_s3 + $0x2e4] ss:$16 sps:$4 sm:$0xff]  }
 0x431   :  { %11896 = vpow2.f32 %v10961_v10  ;;  %v11687_v10 = vld [vmem:[%s16167_s3 + $0x488] ss:$16 sps:$4 sm:$0xff]  }
 0x432   :  { %9234 = vmatpush1.bf16.msra.mxu0 %v11534_v13  ;;  %v11609_v13 = vld [vmem:[%s16167_s3 + $0x2e8] ss:$16 sps:$4 sm:$0xff]  }
 0x433   :  { %9398 = vmatpush1.bf16.msra.mxu1 %v11537_v14  ;;  %9235 = vmatprep.subr.bf16.mxu0 %v11542_v17  ;;  %v11614_v14 = vld [vmem:[%s16167_s3 + $0x304] ss:$16 sps:$4 sm:$0xff]   ;;  %v11617_v17 = vld [vmem:[%s16167_s3 + $0x30c] ss:$16 sps:$4 sm:$0xff]  }
 0x434   :  { %9399 = vmatprep.subr.bf16.mxu1 %v11545_v19  ;;  %v11615_v19 = vld [vmem:[%s16167_s3 + $0x308] ss:$16 sps:$4 sm:$0xff]  }
 0x436   :  { %9236 = vmatpush1.bf16.msra.mxu0 %v11540_v20  ;;  %v11620_v20 = vld [vmem:[%s16167_s3 + $0x324] ss:$16 sps:$4 sm:$0xff]  }
 0x437   :  { %9400 = vmatpush1.bf16.msra.mxu1 %v11543_v24  ;;  %9237 = vmatprep.subr.bf16.mxu0 %v11548_v55  ;;  %v11623_v24 = vld [vmem:[%s16167_s3 + $0x32c] ss:$16 sps:$4 sm:$0xff]   ;;  %v11618_v55 = vld [vmem:[%s16167_s3 + $0x320] ss:$16 sps:$4 sm:$0xff]  }
 0x438   :  { %9401 = vmatprep.subr.bf16.mxu1 %v11551_v26  ;;  %v11621_v26 = vld [vmem:[%s16167_s3 + $0x328] ss:$16 sps:$4 sm:$0xff]  }
 0x43a   :  { %9238 = vmatpush1.bf16.msra.mxu0 %v11546_v62  ;;  %v11626_v62 = vld [vmem:[%s16167_s3 + $0x344] ss:$16 sps:$4 sm:$0xff]  }
 0x43b   :  { %9402 = vmatpush1.bf16.msra.mxu1 %v11549_v49  ;;  %9239 = vmatprep.subr.bf16.mxu0 %v11554_v28  ;;  %v11629_v49 = vld [vmem:[%s16167_s3 + $0x34c] ss:$16 sps:$4 sm:$0xff]   ;;  %v11624_v28 = vld [vmem:[%s16167_s3 + $0x340] ss:$16 sps:$4 sm:$0xff]  }
 0x43c   :  { %9403 = vmatprep.subr.bf16.mxu1 %v11557_v63  ;;  %v11897_v63 = vpop.eup %11896 }
 0x43d   :  { %v7615_v33 = vadd.f32 1.0, %v11897_v63  ;;  %v11713_v63 = vld [vmem:[%s16167_s3 + $0x50c] ss:$16 sps:$4 sm:$0xff]  }
 0x43e   :  { %9240 = vmatpush1.bf16.msra.mxu0 %v11552_v29  ;;  %v11627_v29 = vld [vmem:[%s16167_s3 + $0x348] ss:$16 sps:$4 sm:$0xff]  }
 0x43f   :  { %9404 = vmatpush1.bf16.msra.mxu1 %v11555_v30  ;;  %9241 = vmatprep.subr.bf16.mxu0 %v11560_v32  ;;  %v11632_v30 = vld [vmem:[%s16167_s3 + $0x364] ss:$16 sps:$4 sm:$0xff]   ;;  %v11635_v32 = vld [vmem:[%s16167_s3 + $0x36c] ss:$16 sps:$4 sm:$0xff]   ;;  %11898 = vrcp.f32 %v7615_v33 }
 0x440   :  { %9405 = vmatprep.subr.bf16.mxu1 %v11563_v1  ;;  %v11630_v1 = vld [vmem:[%s16167_s3 + $0x360] ss:$16 sps:$4 sm:$0xff]   ;;  %v11719_v33 = vld [vmem:[%s16167_s3 + $0x52c] ss:$16 sps:$4 sm:$0xff]  }
 0x442   :  { %9242 = vmatpush1.bf16.msra.mxu0 %v11558_v35  ;;  %v11638_v35 = vld [vmem:[%s16167_s3 + $0x384] ss:$16 sps:$4 sm:$0xff]  }
 0x443   :  { %9406 = vmatpush1.bf16.msra.mxu1 %v11561_v40  ;;  %9252 = vmatprep.subr.bf16.mxu0 %v11566_v42  ;;  %v11636_v40 = vld [vmem:[%s16167_s3 + $0x380] ss:$16 sps:$4 sm:$0xff]   ;;  %v11639_v42 = vld [vmem:[%s16167_s3 + $0x388] ss:$16 sps:$4 sm:$0xff]  }
 0x444   :  { %9416 = vmatprep.subr.bf16.mxu1 %v11569_v44  ;;  %v11644_v44 = vld [vmem:[%s16167_s3 + $0x3a4] ss:$16 sps:$4 sm:$0xff]  }
 0x445   :  { %9244 = vmatmul.mubr.bf16.vlgmr.msra.gmra.mrb[8].mxu0 %v7645_v50 }
 0x446   :  { %9408 = vmatmul.mubr.bf16.vlgmr.msra.gmra.mrb[8].mxu1 %v7645_v50  ;;  %9253 = vmatpush1.bf16.msra.mxu0 %v11564_v48  ;;  %v11642_v48 = vld [vmem:[%s16167_s3 + $0x3a0] ss:$16 sps:$4 sm:$0xff]   ;;  %v11645_v50 = vld [vmem:[%s16167_s3 + $0x3a8] ss:$16 sps:$4 sm:$0xff]  }
 0x447   :  { %9284 = vmatprep.mubr.bf16.mxu0 %v7648_v36  ;;  %9417 = vmatpush1.bf16.msra.mxu1 %v11567_v16  ;;  %v11650_v16 = vld [vmem:[%s16167_s3 + $0x3c4] ss:$16 sps:$4 sm:$0xff]  }
 0x448   :  { %9448 = vmatprep.mubr.bf16.mxu1 %v7648_v36  ;;  %9254 = vmatprep.subr.bf16.mxu0 %v11572_v51  ;;  %v11653_v51 = vld [vmem:[%s16167_s3 + $0x3cc] ss:$16 sps:$4 sm:$0xff]   ;;  %v11648_v36 = vld [vmem:[%s16167_s3 + $0x3c0] ss:$16 sps:$4 sm:$0xff]  }
 0x449   :  { %9418 = vmatprep.subr.bf16.mxu1 %v11575_v18  ;;  %v11651_v18 = vld [vmem:[%s16167_s3 + $0x3c8] ss:$16 sps:$4 sm:$0xff]  }
 0x44a   :  { %9255 = vmatpush1.bf16.msra.mxu0 %v11570_v52  ;;  %v11656_v52 = vld [vmem:[%s16167_s3 + $0x3e4] ss:$16 sps:$4 sm:$0xff]  }
 0x44b   :  { %9419 = vmatpush1.bf16.msra.mxu1 %v11573_v54  ;;  %9256 = vmatprep.subr.bf16.mxu0 %v11578_v56  ;;  %v11899_v54 = vpop.eup %11898  ;;  %v11659_v56 = vld [vmem:[%s16167_s3 + $0x3ec] ss:$16 sps:$4 sm:$0xff]  }
 0x44c   :  { %9420 = vmatprep.subr.bf16.mxu1 %v11581_v60  ;;  %v11654_v60 = vld [vmem:[%s16167_s3 + $0x3e0] ss:$16 sps:$4 sm:$0xff]  }
 0x44e   :  { %9257 = vmatpush1.bf16.msra.mxu0 %v11576_v27  ;;  %v7639_v27 = vmul.f32 %v11899_v54, %v15530_v7  ;;  %v11678_v7 = vld [vmem:[%s16167_s3 + $0x460] ss:$16 sps:$4 sm:$0xff]   ;;  %v11743_v54 = vld [vmem:[%s16167_s3 + $0x5ac] ss:$16 sps:$4 sm:$0xff]  }
 0x44f   :  { %9421 = vmatpush1.bf16.msra.mxu1 %v11579_v59  ;;  %9258 = vmatprep.subr.bf16.mxu0 %v11584_v12  ;;  %v11657_v59 = vld [vmem:[%s16167_s3 + $0x3e8] ss:$16 sps:$4 sm:$0xff]   ;;  %v11662_v12 = vld [vmem:[%s16167_s3 + $0x404] ss:$16 sps:$4 sm:$0xff]  }
 0x450   :  { %9422 = vmatprep.subr.bf16.mxu1 %v11587_v57  ;;  %v11665_v57 = vld [vmem:[%s16167_s3 + $0x40c] ss:$16 sps:$4 sm:$0xff]  }
 0x452   :  { %9259 = vmatpush1.bf16.msra.mxu0 %v11582_v61  ;;  %v11660_v61 = vld [vmem:[%s16167_s3 + $0x400] ss:$16 sps:$4 sm:$0xff]  }
 0x453   :  { %9423 = vmatpush1.bf16.msra.mxu1 %v11585_v45  ;;  %9260 = vmatprep.subr.bf16.mxu0 %v11590_v39  ;;  %v7647_v45 = vpack.c.bf16 %v7639_v27, %v7639_v27  ;;  %v11663_v39 = vld [vmem:[%s16167_s3 + $0x408] ss:$16 sps:$4 sm:$0xff]   ;;  %v11746_v27 = vld [vmem:[%s16167_s3 + $0x5c4] ss:$16 sps:$4 sm:$0xff]  }
 0x454   :  { %9424 = vmatprep.subr.bf16.mxu1 %v11593_v0  ;;  %v11668_v0 = vld [vmem:[%s16167_s3 + $0x424] ss:$16 sps:$4 sm:$0xff]  }
 0x456   :  { %9261 = vmatpush1.bf16.msra.mxu0 %v11588_v3  ;;  %v11671_v3 = vld [vmem:[%s16167_s3 + $0x42c] ss:$16 sps:$4 sm:$0xff]  }
 0x457   :  { %9425 = vmatpush1.bf16.msra.mxu1 %v11591_v4  ;;  %9262 = vmatprep.subr.bf16.mxu0 %v11596_v21  ;;  %v11666_v4 = vld [vmem:[%s16167_s3 + $0x420] ss:$16 sps:$4 sm:$0xff]   ;;  %v11669_v21 = vld [vmem:[%s16167_s3 + $0x428] ss:$16 sps:$4 sm:$0xff]  }
 0x458   :  { %9426 = vmatprep.subr.bf16.mxu1 %v11599_v46  ;;  %v11674_v46 = vld [vmem:[%s16167_s3 + $0x444] ss:$16 sps:$4 sm:$0xff]  }
 0x45a   :  { %9263 = vmatpush1.bf16.msra.mxu0 %v11594_v5  ;;  %v11672_v5 = vld [vmem:[%s16167_s3 + $0x440] ss:$16 sps:$4 sm:$0xff]  }
 0x45b   :  { %9427 = vmatpush1.bf16.msra.mxu1 %v11597_v6  ;;  %9264 = vmatprep.subr.bf16.mxu0 %v11602_v23  ;;  %v11675_v6 = vld [vmem:[%s16167_s3 + $0x448] ss:$16 sps:$4 sm:$0xff]   ;;  %v11680_v23 = vld [vmem:[%s16167_s3 + $0x464] ss:$16 sps:$4 sm:$0xff]  }
 0x45c   :  { %9428 = vmatprep.subr.bf16.mxu1 %v11605_v25  ;;  %v11683_v25 = vld [vmem:[%s16167_s3 + $0x46c] ss:$16 sps:$4 sm:$0xff]  }
 0x45e   :  { %9265 = vmatpush1.bf16.msra.mxu0 %v11600_v8  ;;  %v11681_v8 = vld [vmem:[%s16167_s3 + $0x468] ss:$16 sps:$4 sm:$0xff]  }
 0x45f   :  { %9429 = vmatpush1.bf16.msra.mxu1 %v11603_v9  ;;  %9266 = vmatprep.subr.bf16.mxu0 %v11608_v58  ;;  %v11686_v9 = vld [vmem:[%s16167_s3 + $0x484] ss:$16 sps:$4 sm:$0xff]   ;;  %v11689_v58 = vld [vmem:[%s16167_s3 + $0x48c] ss:$16 sps:$4 sm:$0xff]  }
 0x460   :  { %9430 = vmatprep.subr.bf16.mxu1 %v11611_v22  ;;  %v11684_v22 = vld [vmem:[%s16167_s3 + $0x480] ss:$16 sps:$4 sm:$0xff]  }
 0x462   :  { %9267 = vmatpush1.bf16.msra.mxu0 %v11606_v11  ;;  %v11692_v11 = vld [vmem:[%s16167_s3 + $0x4a4] ss:$16 sps:$4 sm:$0xff]  }
 0x463   :  { %9431 = vmatpush1.bf16.msra.mxu1 %v11609_v13  ;;  %9268 = vmatprep.subr.bf16.mxu0 %v11614_v14  ;;  %v11695_v13 = vld [vmem:[%s16167_s3 + $0x4ac] ss:$16 sps:$4 sm:$0xff]   ;;  %v11690_v14 = vld [vmem:[%s16167_s3 + $0x4a0] ss:$16 sps:$4 sm:$0xff]  }
 0x464   :  { %9432 = vmatprep.subr.bf16.mxu1 %v11617_v17  ;;  %v11693_v17 = vld [vmem:[%s16167_s3 + $0x4a8] ss:$16 sps:$4 sm:$0xff]  }
 0x466   :  { %9269 = vmatpush1.bf16.msra.mxu0 %v11612_v53  ;;  %v11698_v53 = vld [vmem:[%s16167_s3 + $0x4c4] ss:$16 sps:$4 sm:$0xff]  }
 0x467   :  { %9433 = vmatpush1.bf16.msra.mxu1 %v11615_v19  ;;  %9270 = vmatprep.subr.bf16.mxu0 %v11620_v20  ;;  %v11701_v19 = vld [vmem:[%s16167_s3 + $0x4cc] ss:$16 sps:$4 sm:$0xff]   ;;  %v11696_v20 = vld [vmem:[%s16167_s3 + $0x4c0] ss:$16 sps:$4 sm:$0xff]  }
 0x468   :  { %9434 = vmatprep.subr.bf16.mxu1 %v11623_v24  ;;  %v11699_v24 = vld [vmem:[%s16167_s3 + $0x4c8] ss:$16 sps:$4 sm:$0xff]  }
 0x46a   :  { %9271 = vmatpush1.bf16.msra.mxu0 %v11618_v55  ;;  %v11704_v55 = vld [vmem:[%s16167_s3 + $0x4e4] ss:$16 sps:$4 sm:$0xff]  }
 0x46b   :  { %9435 = vmatpush1.bf16.msra.mxu1 %v11621_v26  ;;  %9272 = vmatprep.subr.bf16.mxu0 %v11626_v62  ;;  %v11707_v26 = vld [vmem:[%s16167_s3 + $0x4ec] ss:$16 sps:$4 sm:$0xff]   ;;  %v11702_v62 = vld [vmem:[%s16167_s3 + $0x4e0] ss:$16 sps:$4 sm:$0xff]  }
 0x46c   :  { %9436 = vmatprep.subr.bf16.mxu1 %v11629_v49  ;;  %v11705_v49 = vld [vmem:[%s16167_s3 + $0x4e8] ss:$16 sps:$4 sm:$0xff]  }
 0x46e   :  { %9273 = vmatpush1.bf16.msra.mxu0 %v11624_v28  ;;  %v11710_v28 = vld [vmem:[%s16167_s3 + $0x504] ss:$16 sps:$4 sm:$0xff]  }
 0x46f   :  { %9437 = vmatpush1.bf16.msra.mxu1 %v11627_v29  ;;  %9274 = vmatprep.subr.bf16.mxu0 %v11632_v30  ;;  %v11708_v29 = vld [vmem:[%s16167_s3 + $0x500] ss:$16 sps:$4 sm:$0xff]   ;;  %v11711_v30 = vld [vmem:[%s16167_s3 + $0x508] ss:$16 sps:$4 sm:$0xff]  }
 0x470   :  { %9438 = vmatprep.subr.bf16.mxu1 %v11635_v32  ;;  %v11716_v32 = vld [vmem:[%s16167_s3 + $0x524] ss:$16 sps:$4 sm:$0xff]  }
 0x472   :  { %9275 = vmatpush1.bf16.msra.mxu0 %v11630_v1  ;;  %v11714_v1 = vld [vmem:[%s16167_s3 + $0x520] ss:$16 sps:$4 sm:$0xff]  }
 0x473   :  { %9439 = vmatpush1.bf16.msra.mxu1 %v11633_v31  ;;  %9276 = vmatprep.subr.bf16.mxu0 %v11638_v35  ;;  %v11717_v31 = vld [vmem:[%s16167_s3 + $0x528] ss:$16 sps:$4 sm:$0xff]   ;;  %v11722_v35 = vld [vmem:[%s16167_s3 + $0x544] ss:$16 sps:$4 sm:$0xff]  }
 0x474   :  { %9440 = vmatprep.subr.bf16.mxu1 %v11641_v37  ;;  %v11725_v37 = vld [vmem:[%s16167_s3 + $0x54c] ss:$16 sps:$4 sm:$0xff]  }
 0x476   :  { %9277 = vmatpush1.bf16.msra.mxu0 %v11636_v40  ;;  %v11720_v40 = vld [vmem:[%s16167_s3 + $0x540] ss:$16 sps:$4 sm:$0xff]  }
 0x477   :  { %9441 = vmatpush1.bf16.msra.mxu1 %v11639_v42  ;;  %9278 = vmatprep.subr.bf16.mxu0 %v11644_v44  ;;  %v11723_v42 = vld [vmem:[%s16167_s3 + $0x548] ss:$16 sps:$4 sm:$0xff]   ;;  %v11728_v44 = vld [vmem:[%s16167_s3 + $0x564] ss:$16 sps:$4 sm:$0xff]  }
 0x478   :  { %9442 = vmatprep.subr.bf16.mxu1 %v11647_v47  ;;  %v11731_v47 = vld [vmem:[%s16167_s3 + $0x56c] ss:$16 sps:$4 sm:$0xff]  }
 0x47a   :  { %9279 = vmatpush1.bf16.msra.mxu0 %v11642_v48  ;;  %v11726_v48 = vld [vmem:[%s16167_s3 + $0x560] ss:$16 sps:$4 sm:$0xff]  }
 0x47b   :  { %9443 = vmatpush1.bf16.msra.mxu1 %v11645_v50  ;;  %9280 = vmatprep.subr.bf16.mxu0 %v11650_v16  ;;  %v11729_v50 = vld [vmem:[%s16167_s3 + $0x568] ss:$16 sps:$4 sm:$0xff]   ;;  %v11734_v16 = vld [vmem:[%s16167_s3 + $0x584] ss:$16 sps:$4 sm:$0xff]  }
 0x47c   :  { %9444 = vmatprep.subr.bf16.mxu1 %v11653_v51  ;;  %v11737_v51 = vld [vmem:[%s16167_s3 + $0x58c] ss:$16 sps:$4 sm:$0xff]  }
 0x47e   :  { %9281 = vmatpush1.bf16.msra.mxu0 %v11648_v36  ;;  %v11732_v36 = vld [vmem:[%s16167_s3 + $0x580] ss:$16 sps:$4 sm:$0xff]  }
 0x47f   :  { %9445 = vmatpush1.bf16.msra.mxu1 %v11651_v18  ;;  %9282 = vmatprep.subr.bf16.mxu0 %v11656_v52  ;;  %v11735_v18 = vld [vmem:[%s16167_s3 + $0x588] ss:$16 sps:$4 sm:$0xff]   ;;  %v11740_v52 = vld [vmem:[%s16167_s3 + $0x5a4] ss:$16 sps:$4 sm:$0xff]  }
 0x480   :  { %9446 = vmatprep.subr.bf16.mxu1 %v11659_v56  ;;  %v11738_v56 = vld [vmem:[%s16167_s3 + $0x5a0] ss:$16 sps:$4 sm:$0xff]  }
 0x482   :  { %9283 = vmatpush1.bf16.msra.mxu0 %v11654_v60  ;;  %v11741_v60 = vld [vmem:[%s16167_s3 + $0x5a8] ss:$16 sps:$4 sm:$0xff]  }
 0x483   :  { %9447 = vmatpush1.bf16.msra.mxu1 %v11657_v59  ;;  %9293 = vmatprep.subr.bf16.mxu0 %v11662_v12  ;;  %v11749_v59 = vld [vmem:[%s16167_s3 + $0x5cc] ss:$16 sps:$4 sm:$0xff]   ;;  %v11744_v12 = vld [vmem:[%s16167_s3 + $0x5c0] ss:$16 sps:$4 sm:$0xff]  }
 0x484   :  { %9457 = vmatprep.subr.bf16.mxu1 %v11665_v57  ;;  %v11747_v57 = vld [vmem:[%s16167_s3 + $0x5c8] ss:$16 sps:$4 sm:$0xff]  }
 0x485   :  { %9285 = vmatmul.mubr.bf16.vlgmr.msra.gmra.mrb[8].mxu0 %v7647_v45 }
 0x486   :  { %9449 = vmatmul.mubr.bf16.vlgmr.msra.gmra.mrb[8].mxu1 %v7647_v45  ;;  %9294 = vmatpush1.bf16.msra.mxu0 %v11660_v61  ;;  %v11752_v61 = vld [vmem:[%s16167_s3 + $0x5e4] ss:$16 sps:$4 sm:$0xff]   ;;  %v11755_v45 = vld [vmem:[%s16167_s3 + $0x5ec] ss:$16 sps:$4 sm:$0xff]  }
 0x487   :  { %9458 = vmatpush1.bf16.msra.mxu1 %v11663_v39  ;;  %9295 = vmatprep.subr.bf16.mxu0 %v11668_v0  ;;  %v11750_v39 = vld [vmem:[%s16167_s3 + $0x5e0] ss:$16 sps:$4 sm:$0xff]   ;;  %v11753_v0 = vld [vmem:[%s16167_s3 + $0x5e8] ss:$16 sps:$4 sm:$0xff]  }
 0x488   :  { %9459 = vmatprep.subr.bf16.mxu1 %v11671_v3  ;;  %v11758_v3 = vld [vmem:[%s16167_s3 + $0x604] ss:$16 sps:$4 sm:$0xff]  }
 0x48a   :  { %9296 = vmatpush1.bf16.msra.mxu0 %v11666_v4  ;;  %v11761_v4 = vld [vmem:[%s16167_s3 + $0x60c] ss:$16 sps:$4 sm:$0xff]  }
 0x48b   :  { %9460 = vmatpush1.bf16.msra.mxu1 %v11669_v21  ;;  %9297 = vmatprep.subr.bf16.mxu0 %v11674_v46  ;;  %v1079_v21 = vsub.s32 4, %v15087_v34  ;;  %v1083_v46 = vsub.s32 5, %v15087_v34 }
 0x48c   :  { %9461 = vmatprep.subr.bf16.mxu1 %v11677_v15  ;;  %v1091_v15 = vsub.s32 7, %v15087_v34 }
 0x48e   :  { %9298 = vmatpush1.bf16.msra.mxu0 %v11672_v5  ;;  %v15852_v5 = vld [vmem:[%s16168_s2] sm:$0xff] }
 0x48f   :  { %9462 = vmatpush1.bf16.msra.mxu1 %v11675_v6  ;;  %9299 = vmatprep.subr.bf16.mxu0 %v11680_v23  ;;  %v1080_v6 = vrot.slane %v15852_v5, %v1079_v21  ;;  %v1084_v23 = vrot.slane %v15852_v5, %v1083_v46  ;;  %v11789_v21 = vld [vmem:[%s16167_s3 + $0x6a8] ss:$16 sps:$4 sm:$0xff]   ;;  %v11794_v46 = vld [vmem:[%s16167_s3 + $0x6c4] ss:$16 sps:$4 sm:$0xff]  }
 0x490   :  { %9463 = vmatprep.subr.bf16.mxu1 %v11683_v25  ;;  %v1092_v25 = vrot.slane %v15852_v5, %v1091_v15  ;;  %v11797_v15 = vld [vmem:[%s16167_s3 + $0x6cc] ss:$16 sps:$4 sm:$0xff]  }
 0x492   :  { %9300 = vmatpush1.bf16.msra.mxu0 %v11678_v7 }
 0x493   :  { %9464 = vmatpush1.bf16.msra.mxu1 %v11681_v8  ;;  %9301 = vmatprep.subr.bf16.mxu0 %v11686_v9 }
 0x494   :  { %9465 = vmatprep.subr.bf16.mxu1 %v11689_v58 }
 0x496   :  { %9302 = vmatpush1.bf16.msra.mxu0 %v11684_v22 }
 0x497   :  { %9466 = vmatpush1.bf16.msra.mxu1 %v11687_v10  ;;  %9303 = vmatprep.subr.bf16.mxu0 %v11692_v11 }
 0x498   :  { %9467 = vmatprep.subr.bf16.mxu1 %v11695_v13 }
 0x49a   :  { %9304 = vmatpush1.bf16.msra.mxu0 %v11690_v14 }
 0x49b   :  { %9468 = vmatpush1.bf16.msra.mxu1 %v11693_v17  ;;  %9305 = vmatprep.subr.bf16.mxu0 %v11698_v53 }
 0x49c   :  { %9469 = vmatprep.subr.bf16.mxu1 %v11701_v19 }
 0x49e   :  { %9306 = vmatpush1.bf16.msra.mxu0 %v11696_v20 }
 0x49f   :  { %9470 = vmatpush1.bf16.msra.mxu1 %v11699_v24  ;;  %9307 = vmatprep.subr.bf16.mxu0 %v11704_v55 }
 0x4a0   :  { %9471 = vmatprep.subr.bf16.mxu1 %v11707_v26 }
 0x4a2   :  { %9308 = vmatpush1.bf16.msra.mxu0 %v11702_v62 }
 0x4a3   :  { %9472 = vmatpush1.bf16.msra.mxu1 %v11705_v49  ;;  %9309 = vmatprep.subr.bf16.mxu0 %v11710_v28 }
 0x4a4   :  { %9473 = vmatprep.subr.bf16.mxu1 %v11713_v63 }
 0x4a6   :  { %9310 = vmatpush1.bf16.msra.mxu0 %v11708_v29 }
 0x4a7   :  { %9474 = vmatpush1.bf16.msra.mxu1 %v11711_v30  ;;  %9311 = vmatprep.subr.bf16.mxu0 %v11716_v32 }
 0x4a8   :  { %9475 = vmatprep.subr.bf16.mxu1 %v11719_v33 }
 0x4aa   :  { %9312 = vmatpush1.bf16.msra.mxu0 %v11714_v1 }
 0x4ab   :  { %9476 = vmatpush1.bf16.msra.mxu1 %v11717_v31  ;;  %9313 = vmatprep.subr.bf16.mxu0 %v11722_v35 }
 0x4ac   :  { %9477 = vmatprep.subr.bf16.mxu1 %v11725_v37  ;;  %v11756_v37 = vld [vmem:[%s16167_s3 + $0x600] ss:$16 sps:$4 sm:$0xff]  }
 0x4ae   :  { %9314 = vmatpush1.bf16.msra.mxu0 %v11720_v40  ;;  %v11759_v40 = vld [vmem:[%s16167_s3 + $0x608] ss:$16 sps:$4 sm:$0xff]  }
 0x4af   :  { %9478 = vmatpush1.bf16.msra.mxu1 %v11723_v42  ;;  %9315 = vmatprep.subr.bf16.mxu0 %v11728_v44  ;;  %v11764_v44 = vld [vmem:[%s16167_s3 + $0x624] ss:$16 sps:$4 sm:$0xff]  }
 0x4b0   :  { %9479 = vmatprep.subr.bf16.mxu1 %v11731_v47  ;;  %v11767_v47 = vld [vmem:[%s16167_s3 + $0x62c] ss:$16 sps:$4 sm:$0xff]  }
 0x4b2   :  { %9316 = vmatpush1.bf16.msra.mxu0 %v11726_v48 }
 0x4b3   :  { %9480 = vmatpush1.bf16.msra.mxu1 %v11729_v50  ;;  %9317 = vmatprep.subr.bf16.mxu0 %v11734_v16  ;;  %v11762_v50 = vld [vmem:[%s16167_s3 + $0x620] ss:$16 sps:$4 sm:$0xff]   ;;  %v11765_v16 = vld [vmem:[%s16167_s3 + $0x628] ss:$16 sps:$4 sm:$0xff]  }
 0x4b4   :  { %9481 = vmatprep.subr.bf16.mxu1 %v11737_v51  ;;  %v11770_v51 = vld [vmem:[%s16167_s3 + $0x644] ss:$16 sps:$4 sm:$0xff]  }
 0x4b6   :  { %9318 = vmatpush1.bf16.msra.mxu0 %v11732_v36  ;;  %v11773_v36 = vld [vmem:[%s16167_s3 + $0x64c] ss:$16 sps:$4 sm:$0xff]  }
 0x4b7   :  { %9482 = vmatpush1.bf16.msra.mxu1 %v11735_v18  ;;  %9319 = vmatprep.subr.bf16.mxu0 %v11740_v52  ;;  %v11768_v18 = vld [vmem:[%s16167_s3 + $0x640] ss:$16 sps:$4 sm:$0xff]   ;;  %v11771_v52 = vld [vmem:[%s16167_s3 + $0x648] ss:$16 sps:$4 sm:$0xff]  }
 0x4b8   :  { %9483 = vmatprep.subr.bf16.mxu1 %v11743_v54  ;;  %v11776_v54 = vld [vmem:[%s16167_s3 + $0x664] ss:$16 sps:$4 sm:$0xff]  }
 0x4ba   :  { %9320 = vmatpush1.bf16.msra.mxu0 %v11738_v56  ;;  %v11779_v56 = vld [vmem:[%s16167_s3 + $0x66c] ss:$16 sps:$4 sm:$0xff]  }
 0x4bb   :  { %9484 = vmatpush1.bf16.msra.mxu1 %v11741_v60  ;;  %9321 = vmatprep.subr.bf16.mxu0 %v11746_v27  ;;  %v11774_v60 = vld [vmem:[%s16167_s3 + $0x660] ss:$16 sps:$4 sm:$0xff]   ;;  %v11777_v27 = vld [vmem:[%s16167_s3 + $0x668] ss:$16 sps:$4 sm:$0xff]  }
 0x4bc   :  { %9485 = vmatprep.subr.bf16.mxu1 %v11749_v59  ;;  %v11782_v59 = vld [vmem:[%s16167_s3 + $0x684] ss:$16 sps:$4 sm:$0xff]  }
 0x4be   :  { %9322 = vmatpush1.bf16.msra.mxu0 %v11744_v12  ;;  %v11785_v12 = vld [vmem:[%s16167_s3 + $0x68c] ss:$16 sps:$4 sm:$0xff]  }
 0x4bf   :  { %9486 = vmatpush1.bf16.msra.mxu1 %v11747_v57  ;;  %9323 = vmatprep.subr.bf16.mxu0 %v11752_v61  ;;  %v1087_v57 = vsub.s32 6, %v15087_v34  ;;  %v11780_v61 = vld [vmem:[%s16167_s3 + $0x680] ss:$16 sps:$4 sm:$0xff]  }
 0x4c0   :  { %9487 = vmatprep.subr.bf16.mxu1 %v11755_v45  ;;  %v11783_v45 = vld [vmem:[%s16167_s3 + $0x688] ss:$16 sps:$4 sm:$0xff]  }
 0x4c2   :  { %9324 = vmatpush1.bf16.msra.mxu0 %v11750_v39  ;;  %v11788_v39 = vld [vmem:[%s16167_s3 + $0x6a4] ss:$16 sps:$4 sm:$0xff]  }
 0x4c3   :  { %9488 = vmatpush1.bf16.msra.mxu1 %v11753_v0  ;;  %9334 = vmatprep.subr.bf16.mxu0 %v11758_v3  ;;  %v11791_v0 = vld [vmem:[%s16167_s3 + $0x6ac] ss:$16 sps:$4 sm:$0xff]   ;;  %v1088_v3 = vrot.slane %v15852_v5, %v1087_v57 }
 0x4c4   :  { %9498 = vmatprep.subr.bf16.mxu1 %v11761_v4  ;;  %v11786_v4 = vld [vmem:[%s16167_s3 + $0x6a0] ss:$16 sps:$4 sm:$0xff]   ;;  %v11856_v57 = vld [vmem:[%s16169_s5 + $0x48] sm:$0xff]  }
 0x4d8   :  { %v7254_v7 = vpop.f32.mrb[4].mxu0  ;;  %v15857_v9 = vpop.f32.mrb[4].mxu1 }
 0x4d9   :  { %v11308_v8 = vadd.f32 %v7254_v7, %v1080_v6  ;;  %v7256_v58 = vpop.f32.mrb[5].mxu0  ;;  %v7584_v10 = vpop.f32.mrb[5].mxu1  ;;  %v15934_v5 = vadd.f32 %v15857_v9, %v1088_v3  ;;  %v11792_v6 = vld [vmem:[%s16167_s3 + $0x6c0] ss:$16 sps:$4 sm:$0xff]   ;;  %v11803_v7 = vld [vmem:[%s16167_s3 + $0x6ec] ss:$16 sps:$4 sm:$0xff]  }
 0x4da   :  { %v11309_v22 = vadd.f32 %v7256_v58, %v1084_v23  ;;  %v7258_v11 = vpop.f32.mrb[6].mxu0  ;;  %v11311_v14 = vadd.f32 %v7584_v10, %v1092_v25  ;;  %v7586_v17 = vpop.f32.mrb[6].mxu1  ;;  %v11795_v23 = vld [vmem:[%s16167_s3 + $0x6c8] ss:$16 sps:$4 sm:$0xff]   ;;  %v11800_v25 = vld [vmem:[%s16167_s3 + $0x6e4] ss:$16 sps:$4 sm:$0xff]  }
 0x4db   :  { %v10963_v13 = vmul.f32 -1.442695, %v11308_v8  ;;  %v7259_v53 = vpop.f32.mrb[7].mxu0  ;;  %v7587_v20 = vpop.f32.mrb[7].mxu1  ;;  %v11798_v9 = vld [vmem:[%s16167_s3 + $0x6e0] ss:$16 sps:$4 sm:$0xff]  }
 0x4dc   :  { %v10964_v19 = vmul.f32 -1.442695, %v11309_v22  ;;  %v10966_v24 = vmul.f32 -1.442695, %v11311_v14  ;;  %v11801_v58 = vld [vmem:[%s16167_s3 + $0x6e8] ss:$16 sps:$4 sm:$0xff]  }
 0x4dd   :  { %11900 = vpow2.f32 %v10963_v13  ;;  %v11809_v10 = vld [vmem:[%s16167_s3 + $0x70c] ss:$16 sps:$4 sm:$0xff]   ;;  %v11804_v11 = vld [vmem:[%s16167_s3 + $0x700] ss:$16 sps:$4 sm:$0xff]   ;;  %v11807_v13 = vld [vmem:[%s16167_s3 + $0x708] ss:$16 sps:$4 sm:$0xff]  }
 0x4de   :  { %11902 = vpow2.f32 %v10964_v19  ;;  %v11815_v17 = vld [vmem:[%s16167_s3 + $0x72c] ss:$16 sps:$4 sm:$0xff]   ;;  %v11810_v53 = vld [vmem:[%s16167_s3 + $0x720] ss:$16 sps:$4 sm:$0xff]   ;;  %v11813_v19 = vld [vmem:[%s16167_s3 + $0x728] ss:$16 sps:$4 sm:$0xff]  }
 0x4df   :  { %11904 = vpow2.f32 %v10966_v24  ;;  %v11818_v20 = vld [vmem:[%s16167_s3 + $0x744] ss:$16 sps:$4 sm:$0xff]   ;;  %v11821_v24 = vld [vmem:[%s16167_s3 + $0x74c] ss:$16 sps:$4 sm:$0xff]  }
 0x4e0   :  { %v11861_v3 = vld [vmem:[%s16169_s5 + $0xd0] sm:$0xff]  }
 0x4e7   :  { %v11901_v55 = vpop.eup %11900 }
 0x4e8   :  { %v7617_v26 = vadd.f32 1.0, %v11901_v55  ;;  %v11903_v62 = vpop.eup %11902  ;;  %v11816_v55 = vld [vmem:[%s16167_s3 + $0x740] ss:$16 sps:$4 sm:$0xff]  }
 0x4e9   :  { %v11905_v49 = vpop.eup %11904  ;;  %v7618_v28 = vadd.f32 1.0, %v11903_v62 }
 0x4ea   :  { %11906 = vrcp.f32 %v7617_v26  ;;  %v7620_v63 = vadd.f32 1.0, %v11905_v49  ;;  %v11819_v26 = vld [vmem:[%s16167_s3 + $0x748] ss:$16 sps:$4 sm:$0xff]   ;;  %v11824_v49 = vld [vmem:[%s16167_s3 + $0x764] ss:$16 sps:$4 sm:$0xff]  }
 0x4eb   :  { %11908 = vrcp.f32 %v7618_v28  ;;  %v11827_v28 = vld [vmem:[%s16167_s3 + $0x76c] ss:$16 sps:$4 sm:$0xff]  }
 0x4ec   :  { %11910 = vrcp.f32 %v7620_v63 }
 0x4f4   :  { %v11907_v29 = vpop.eup %11906 }
 0x4f5   :  { %v11909_v30 = vpop.eup %11908  ;;  %v7641_v32 = vmul.f32 %v11907_v29, %v11308_v8  ;;  %v10965_v8 = vmul.f32 -1.442695, %v15934_v5  ;;  %v11822_v29 = vld [vmem:[%s16167_s3 + $0x760] ss:$16 sps:$4 sm:$0xff]  }
 0x4f6   :  { %v11911_v33 = vpop.eup %11910  ;;  %v7642_v1 = vmul.f32 %v11909_v30, %v11309_v22  ;;  %v11806_v22 = vld [vmem:[%s16167_s3 + $0x704] ss:$16 sps:$4 sm:$0xff]   ;;  %v11825_v30 = vld [vmem:[%s16167_s3 + $0x768] ss:$16 sps:$4 sm:$0xff]  }
 0x4f7   :  { %v7644_v31 = vmul.f32 %v11911_v33, %v11311_v14  ;;  %v7649_v42 = vpack.c.bf16 %v7641_v32, %v7641_v32  ;;  %11912 = vpow2.f32 %v10965_v8  ;;  %v11812_v14 = vld [vmem:[%s16167_s3 + $0x724] ss:$16 sps:$4 sm:$0xff]   ;;  %v11833_v33 = vld [vmem:[%s16167_s3 + $0x78c] ss:$16 sps:$4 sm:$0xff]  }
 0x4f8   :  { %v7650_v35 = vpack.c.bf16 %v7642_v1, %v7642_v1  ;;  %v11830_v32 = vld [vmem:[%s16167_s3 + $0x784] ss:$16 sps:$4 sm:$0xff]   ;;  %v11828_v1 = vld [vmem:[%s16167_s3 + $0x780] ss:$16 sps:$4 sm:$0xff]  }
 0x4f9   :  { %v7652_v48 = vpack.c.bf16 %v7644_v31, %v7644_v31  ;;  %v11831_v31 = vld [vmem:[%s16167_s3 + $0x788] ss:$16 sps:$4 sm:$0xff]   ;;  %v11871_v8 = vld [vmem:[%s16169_s5 + $0xa0] sm:$0xff]  }
 0x4fa   :  { %9325 = vmatprep.mubr.bf16.mxu0 %v7650_v35  ;;  %9489 = vmatprep.mubr.bf16.mxu1 %v7650_v35  ;;  %v11836_v35 = vld [vmem:[%s16167_s3 + $0x7a4] ss:$16 sps:$4 sm:$0xff]  }
 0x4fb   :  { %9326 = vmatmul.mubr.bf16.vlgmr.msra.gmra.mrb[8].mxu0 %v7649_v42  ;;  %9490 = vmatmul.mubr.bf16.vlgmr.msra.gmra.mrb[8].mxu1 %v7649_v42  ;;  %v11837_v42 = vld [vmem:[%s16167_s3 + $0x7a8] ss:$16 sps:$4 sm:$0xff]  }
 0x4fc   :  { %9335 = vmatpush1.bf16.msra.mxu0 %v11756_v37  ;;  %9499 = vmatpush1.bf16.msra.mxu1 %v11759_v40  ;;  %v11839_v37 = vld [vmem:[%s16167_s3 + $0x7ac] ss:$16 sps:$4 sm:$0xff]   ;;  %v11834_v40 = vld [vmem:[%s16167_s3 + $0x7a0] ss:$16 sps:$4 sm:$0xff]  }
 0x4fd   :  { %9366 = vmatprep.mubr.bf16.mxu0 %v7652_v48  ;;  %9530 = vmatprep.mubr.bf16.mxu1 %v7652_v48  ;;  %v11840_v48 = vld [vmem:[%s16167_s3 + $0x7c0] ss:$16 sps:$4 sm:$0xff]  }
 0x4fe   :  { %9336 = vmatprep.subr.bf16.mxu0 %v11764_v44  ;;  %9500 = vmatprep.subr.bf16.mxu1 %v11767_v47  ;;  %v11842_v44 = vld [vmem:[%s16167_s3 + $0x7c4] ss:$16 sps:$4 sm:$0xff]   ;;  %v11845_v47 = vld [vmem:[%s16167_s3 + $0x7cc] ss:$16 sps:$4 sm:$0xff]  }
 0x500   :  { %9337 = vmatpush1.bf16.msra.mxu0 %v11762_v50  ;;  %9501 = vmatpush1.bf16.msra.mxu1 %v11765_v16  ;;  %v11843_v50 = vld [vmem:[%s16167_s3 + $0x7c8] ss:$16 sps:$4 sm:$0xff]   ;;  %v11848_v16 = vld [vmem:[%s16167_s3 + $0x7e4] ss:$16 sps:$4 sm:$0xff]  }
 0x501   :  { %9338 = vmatprep.subr.bf16.mxu0 %v11770_v51  ;;  %9502 = vmatprep.subr.bf16.mxu1 %v11773_v36  ;;  %v11913_v62 = vpop.eup %11912  ;;  %v11851_v51 = vld [vmem:[%s16167_s3 + $0x7ec] ss:$16 sps:$4 sm:$0xff]  }
 0x502   :  { %v7619_v63 = vadd.f32 1.0, %v11913_v62 }
 0x504   :  { %9339 = vmatpush1.bf16.msra.mxu0 %v11768_v18  ;;  %9503 = vmatpush1.bf16.msra.mxu1 %v11771_v52  ;;  %11914 = vrcp.f32 %v7619_v63  ;;  %v11846_v18 = vld [vmem:[%s16167_s3 + $0x7e0] ss:$16 sps:$4 sm:$0xff]   ;;  %v11849_v52 = vld [vmem:[%s16167_s3 + $0x7e8] ss:$16 sps:$4 sm:$0xff]  }
 0x505   :  { %9340 = vmatprep.subr.bf16.mxu0 %v11776_v54  ;;  %9504 = vmatprep.subr.bf16.mxu1 %v11779_v56 }
 0x508   :  { %9341 = vmatpush1.bf16.msra.mxu0 %v11774_v60  ;;  %9505 = vmatpush1.bf16.msra.mxu1 %v11777_v27  ;;  %v11852_v60 = vld [vmem:[%s16169_s5 + $0x40] sm:$0xff]  }
 0x509   :  { %9342 = vmatprep.subr.bf16.mxu0 %v11782_v59  ;;  %9506 = vmatprep.subr.bf16.mxu1 %v11785_v12  ;;  %v11853_v27 = vld [vmem:[%s16169_s5 + $0xc0] sm:$0xff]  }
 0x50a   :  { %v11854_v59 = vld [vmem:[%s16169_s5] sm:$0xff]  }
 0x50b   :  { %v11855_v12 = vld [vmem:[%s16169_s5 + $0x80] sm:$0xff]  }
 0x50c   :  { %9343 = vmatpush1.bf16.msra.mxu0 %v11780_v61  ;;  %9507 = vmatpush1.bf16.msra.mxu1 %v11783_v45  ;;  %v11857_v61 = vld [vmem:[%s16169_s5 + $0xc8] sm:$0xff]  }
 0x50d   :  { %9344 = vmatprep.subr.bf16.mxu0 %v11788_v39  ;;  %9508 = vmatprep.subr.bf16.mxu1 %v11791_v0  ;;  %v11858_v45 = vld [vmem:[%s16169_s5 + $0x8] sm:$0xff]   ;;  %v11860_v0 = vld [vmem:[%s16169_s5 + $0x50] sm:$0xff]  }
 0x50e   :  { %v11915_v36 = vpop.eup %11914  ;;  %v11859_v39 = vld [vmem:[%s16169_s5 + $0x88] sm:$0xff]  }
 0x50f   :  { %v7643_v54 = vmul.f32 %v11915_v36, %v15934_v5  ;;  %v11866_v5 = vld [vmem:[%s16169_s5 + $0x18] sm:$0xff]  }
 0x510   :  { %9345 = vmatpush1.bf16.msra.mxu0 %v11786_v4  ;;  %9509 = vmatpush1.bf16.msra.mxu1 %v11789_v21  ;;  %v11862_v4 = vld [vmem:[%s16169_s5 + $0x10] sm:$0xff]  }
 0x511   :  { %9346 = vmatprep.subr.bf16.mxu0 %v11794_v46  ;;  %9510 = vmatprep.subr.bf16.mxu1 %v11797_v15  ;;  %v7651_v56 = vpack.c.bf16 %v7643_v54, %v7643_v54  ;;  %v11863_v21 = vld [vmem:[%s16169_s5 + $0x90] sm:$0xff]   ;;  %v11864_v46 = vld [vmem:[%s16169_s5 + $0x58] sm:$0xff]  }
 0x512   :  { %v11865_v15 = vld [vmem:[%s16169_s5 + $0xd8] sm:$0xff]  }
 0x514   :  { %9347 = vmatpush1.bf16.msra.mxu0 %v11792_v6  ;;  %9511 = vmatpush1.bf16.msra.mxu1 %v11795_v23  ;;  %v11867_v6 = vld [vmem:[%s16169_s5 + $0x98] sm:$0xff]   ;;  %v11868_v23 = vld [vmem:[%s16169_s5 + $0x60] sm:$0xff]  }
 0x515   :  { %9348 = vmatprep.subr.bf16.mxu0 %v11800_v25  ;;  %9512 = vmatprep.subr.bf16.mxu1 %v11803_v7  ;;  %v11869_v25 = vld [vmem:[%s16169_s5 + $0xe0] sm:$0xff]  }
 0x516   :  { %v11870_v7 = vld [vmem:[%s16169_s5 + $0x20] sm:$0xff]  }
 0x518   :  { %9349 = vmatpush1.bf16.msra.mxu0 %v11798_v9  ;;  %9513 = vmatpush1.bf16.msra.mxu1 %v11801_v58  ;;  %v11872_v9 = vld [vmem:[%s16169_s5 + $0x68] sm:$0xff]  }
 0x519   :  { %9350 = vmatprep.subr.bf16.mxu0 %v11806_v22  ;;  %9514 = vmatprep.subr.bf16.mxu1 %v11809_v10  ;;  %v11873_v58 = vld [vmem:[%s16169_s5 + $0xe8] sm:$0xff]  }
 0x51a   :  { %v11874_v22 = vld [vmem:[%s16169_s5 + $0x28] sm:$0xff]  }
 0x51b   :  { %v11875_v10 = vld [vmem:[%s16169_s5 + $0xa8] sm:$0xff]  }
 0x51c   :  { %9351 = vmatpush1.bf16.msra.mxu0 %v11804_v11  ;;  %9515 = vmatpush1.bf16.msra.mxu1 %v11807_v13  ;;  %v11876_v11 = vld [vmem:[%s16169_s5 + $0x70] sm:$0xff]  }
 0x51d   :  { %9352 = vmatprep.subr.bf16.mxu0 %v11812_v14  ;;  %9516 = vmatprep.subr.bf16.mxu1 %v11815_v17  ;;  %v11877_v13 = vld [vmem:[%s16169_s5 + $0xf0] sm:$0xff]  }
 0x51e   :  { %v11878_v14 = vld [vmem:[%s16169_s5 + $0x30] sm:$0xff]  }
 0x51f   :  { %v11879_v17 = vld [vmem:[%s16169_s5 + $0xb0] sm:$0xff]  }
 0x520   :  { %9353 = vmatpush1.bf16.msra.mxu0 %v11810_v53  ;;  %9517 = vmatpush1.bf16.msra.mxu1 %v11813_v19  ;;  %v11880_v53 = vld [vmem:[%s16169_s5 + $0x78] sm:$0xff]  }
 0x521   :  { %9354 = vmatprep.subr.bf16.mxu0 %v11818_v20  ;;  %9518 = vmatprep.subr.bf16.mxu1 %v11821_v24  ;;  %v11881_v19 = vld [vmem:[%s16169_s5 + $0xf8] sm:$0xff]  }
 0x522   :  { %v11882_v20 = vld [vmem:[%s16169_s5 + $0x38] sm:$0xff]  }
 0x523   :  { %v11883_v24 = vld [vmem:[%s16169_s5 + $0xb8] sm:$0xff]  }
 0x524   :  { %9355 = vmatpush1.bf16.msra.mxu0 %v11816_v55  ;;  %9519 = vmatpush1.bf16.msra.mxu1 %v11819_v26  ;;  %v7909_v55 = vld [vmem:[%s16170_s4] sm:$0xf] }
 0x525   :  { %9356 = vmatprep.subr.bf16.mxu0 %v11824_v49  ;;  %9520 = vmatprep.subr.bf16.mxu1 %v11827_v28  ;;  %v7914_v26 = vrot.slane %v7909_v55, %v1063_v38  ;;  %v7922_v62 = vrot.slane %v7909_v55, %v1071_v2  ;;  %v7918_v49 = vrot.slane %v7909_v55, %v1067_v43 }
 0x526   :  { %v7926_v28 = vrot.slane %v7909_v55, %v1075_v41 }
 0x528   :  { %9357 = vmatpush1.bf16.msra.mxu0 %v11822_v29  ;;  %9521 = vmatpush1.bf16.msra.mxu1 %v11825_v30 }
 0x529   :  { %9358 = vmatprep.subr.bf16.mxu0 %v11830_v32  ;;  %9522 = vmatprep.subr.bf16.mxu1 %v11833_v33 }
 0x52c   :  { %9359 = vmatpush1.bf16.msra.mxu0 %v11828_v1  ;;  %9523 = vmatpush1.bf16.msra.mxu1 %v11831_v31 }
 0x52d   :  { %9360 = vmatprep.subr.bf16.mxu0 %v11836_v35  ;;  %9524 = vmatprep.subr.bf16.mxu1 %v11839_v37 }
 0x530   :  { %9361 = vmatpush1.bf16.msra.mxu0 %v11834_v40  ;;  %9525 = vmatpush1.bf16.msra.mxu1 %v11837_v42 }
 0x531   :  { %9362 = vmatprep.subr.bf16.mxu0 %v11842_v44  ;;  %9526 = vmatprep.subr.bf16.mxu1 %v11845_v47 }
 0x534   :  { %9363 = vmatpush1.bf16.msra.mxu0 %v11840_v48  ;;  %9527 = vmatpush1.bf16.msra.mxu1 %v11843_v50 }
 0x535   :  { %9364 = vmatprep.subr.bf16.mxu0 %v11848_v16  ;;  %9528 = vmatprep.subr.bf16.mxu1 %v11851_v51 }
 0x538   :  { %9365 = vmatpush1.bf16.msra.mxu0 %v11846_v18  ;;  %9529 = vmatpush1.bf16.msra.mxu1 %v11849_v52 }
 0x539   :  { %11260 = vmatprep.subr.bf16.mxu0 %v11852_v60  ;;  %11282 = vmatprep.subr.bf16.mxu1 %v11853_v27 }
 0x53b   :  { %9367 = vmatmul.mubr.bf16.vlgmr.msra.gmra.mrb[8].mxu0 %v7651_v56  ;;  %9531 = vmatmul.mubr.bf16.vlgmr.msra.gmra.mrb[8].mxu1 %v7651_v56 }
 0x53c   :  { %11261 = vmatpush3.bf16.msra.mxu0 %v11854_v59  ;;  %11283 = vmatpush3.bf16.msra.mxu1 %v11855_v12 }
 0x53d   :  { %11262 = vmatprep.subr.bf16.mxu0 %v11856_v57  ;;  %11284 = vmatprep.subr.bf16.mxu1 %v11857_v61 }
 0x540   :  { %11263 = vmatpush3.bf16.msra.mxu0 %v11858_v45  ;;  %11285 = vmatpush3.bf16.msra.mxu1 %v11859_v39 }
 0x541   :  { %11264 = vmatprep.subr.bf16.mxu0 %v11860_v0  ;;  %11286 = vmatprep.subr.bf16.mxu1 %v11861_v3 }
 0x544   :  { %11265 = vmatpush3.bf16.msra.mxu0 %v11862_v4  ;;  %11287 = vmatpush3.bf16.msra.mxu1 %v11863_v21  ;;  %v11227_v21 = vld [vmem:[%s16171_s6] ss:$0 sm:$0xff] }
 0x545   :  { %11266 = vmatprep.subr.bf16.mxu0 %v11864_v46  ;;  %11288 = vmatprep.subr.bf16.mxu1 %v11865_v15 }
 0x548   :  { %11267 = vmatpush3.bf16.msra.mxu0 %v11866_v5  ;;  %11289 = vmatpush3.bf16.msra.mxu1 %v11867_v6 }
 0x549   :  { %11268 = vmatprep.subr.bf16.mxu0 %v11868_v23  ;;  %11290 = vmatprep.subr.bf16.mxu1 %v11869_v25 }
 0x54c   :  { %11269 = vmatpush3.bf16.msra.mxu0 %v11870_v7  ;;  %11291 = vmatpush3.bf16.msra.mxu1 %v11871_v8 }
 0x54d   :  { %11270 = vmatprep.subr.bf16.mxu0 %v11872_v9  ;;  %11292 = vmatprep.subr.bf16.mxu1 %v11873_v58 }
 0x550   :  { %11271 = vmatpush3.bf16.msra.mxu0 %v11874_v22  ;;  %11293 = vmatpush3.bf16.msra.mxu1 %v11875_v10 }
 0x551   :  { %11272 = vmatprep.subr.bf16.mxu0 %v11876_v11  ;;  %11294 = vmatprep.subr.bf16.mxu1 %v11877_v13 }
 0x554   :  { %11273 = vmatpush3.bf16.msra.mxu0 %v11878_v14  ;;  %11295 = vmatpush3.bf16.msra.mxu1 %v11879_v17 }
 0x555   :  { %11274 = vmatprep.subr.bf16.mxu0 %v11880_v53  ;;  %11296 = vmatprep.subr.bf16.mxu1 %v11881_v19 }
 0x558   :  { %11275 = vmatpush3.bf16.msra.mxu0 %v11882_v20  ;;  %11297 = vmatpush3.bf16.msra.mxu1 %v11883_v24 }
 0x60e   :  { %v9368_v63 = vpop.f32.mrb[8].mxu0  ;;  %v9532_v29 = vpop.f32.mrb[8].mxu1 }
 0x60f   :  { %v11312_v30 = vadd.f32 %v9368_v63, %v7914_v26  ;;  %v11314_v32 = vadd.f32 %v9532_v29, %v7922_v62  ;;  %v9370_v33 = vpop.f32.mrb[9].mxu0  ;;  %v9534_v1 = vpop.f32.mrb[9].mxu1 }
 0x610   :  { %v11313_v31 = vadd.f32 %v9370_v33, %v7918_v49  ;;  %v11315_v35 = vadd.f32 %v9534_v1, %v7926_v28  ;;  %v9372_v37 = vpop.f32.mrb[10].mxu0  ;;  %v9536_v40 = vpop.f32.mrb[10].mxu1 }
 0x611   :  { %v11223_v38 = vmul.f32 -1.442695, %v11312_v30  ;;  %v11225_v42 = vmul.f32 -1.442695, %v11314_v32  ;;  %v9373_v44 = vpop.f32.mrb[11].mxu0  ;;  %v9537_v2 = vpop.f32.mrb[11].mxu1 }
 0x612   :  { %v11224_v47 = vmul.f32 -1.442695, %v11313_v31  ;;  %v11226_v48 = vmul.f32 -1.442695, %v11315_v35 }
 0x613   :  { %11916 = vpow2.f32 %v11223_v38 }
 0x614   :  { %11918 = vpow2.f32 %v11225_v42 }
 0x615   :  { %11920 = vpow2.f32 %v11224_v47 }
 0x616   :  { %11922 = vpow2.f32 %v11226_v48 }
 0x61d   :  { %v11917_v34 = vpop.eup %11916 }
 0x61e   :  { %v11919_v43 = vpop.eup %11918  ;;  %v9551_v41 = vadd.f32 1.0, %v11917_v34 }
 0x61f   :  { %v11921_v50 = vpop.eup %11920  ;;  %v9553_v16 = vadd.f32 1.0, %v11919_v43 }
 0x620   :  { %v11923_v51 = vpop.eup %11922  ;;  %11924 = vrcp.f32 %v9551_v41  ;;  %v9552_v36 = vadd.f32 1.0, %v11921_v50 }
 0x621   :  { %11926 = vrcp.f32 %v9553_v16  ;;  %v9554_v18 = vadd.f32 1.0, %v11923_v51 }
 0x622   :  { %11928 = vrcp.f32 %v9552_v36 }
 0x623   :  { %11930 = vrcp.f32 %v9554_v18 }
 0x62a   :  { %v11925_v52 = vpop.eup %11924 }
 0x62b   :  { %v11927_v54 = vpop.eup %11926  ;;  %v9563_v60 = vmul.f32 %v11925_v52, %v11312_v30 }
 0x62c   :  { %v11929_v56 = vpop.eup %11928  ;;  %v9565_v59 = vmul.f32 %v11927_v54, %v11314_v32 }
 0x62d   :  { %v11931_v27 = vpop.eup %11930  ;;  %v9564_v12 = vmul.f32 %v11929_v56, %v11313_v31  ;;  %v9567_v45 = vpack.c.bf16 %v9563_v60, %v9563_v60 }
 0x62e   :  { %v9566_v57 = vmul.f32 %v11931_v27, %v11315_v35  ;;  %v9569_v0 = vpack.c.bf16 %v9565_v59, %v9565_v59 }
 0x62f   :  { %v9568_v61 = vpack.c.bf16 %v9564_v12, %v9564_v12 }
 0x630   :  { %v9570_v39 = vpack.c.bf16 %v9566_v57, %v9566_v57 }
 0x631   :  { %9866 = vmatprep.mubr.bf16.mxu0 %v9568_v61 }
 0x632   :  { %9906 = vmatprep.mubr.bf16.mxu1 %v9570_v39  ;;  %9867 = vmatmul.mubr.bf16.vlgmr.msra.gmra.mrb[12].mxu0 %v9567_v45 }
 0x633   :  { %9907 = vmatmul.mubr.bf16.vlgmr.msra.gmra.mrb[12].mxu1 %v9569_v0 }
 0x705   :  { %v11276_v3 = vpop.f32.mrb[12].mxu0 }
 0x706   :  { %v11298_v4 = vpop.f32.mrb[12].mxu1  ;;  %v11277_v46 = vpop.f32.mrb[13].mxu0 }
 0x707   :  { %v11278_v15 = vadd.f32 %v11277_v46, %v11276_v3  ;;  %v11299_v5 = vpop.f32.mrb[13].mxu1  ;;  %v11279_v6 = vpop.f32.mrb[14].mxu0 }
 0x708   :  { %v11300_v23 = vadd.f32 %v11299_v5, %v11298_v4  ;;  %v11301_v25 = vpop.f32.mrb[14].mxu1  ;;  %v11280_v7 = vpop.f32.mrb[15].mxu0 }
 0x709   :  { %v9869_v8 = vadd.f32 %v11278_v15, %v11227_v21  ;;  %v11302_v9 = vpop.f32.mrb[15].mxu1 }
 0x70b   :  { %v9909_v58 = vadd.f32 %v11300_v23, %v9869_v8 }
 0x70d   :  { %9914 = vst [vmem:[%s16172_s7] sm:$0xff] %v9909_v58 }

</bundles_post_ra>
